<compile_context>
chip_gen: v7x
topology: tpu7x:2x2x1
jax: 0.10.0
libtpu: 0.0.40
codegen_flags: <defaults>
</compile_context>

<pallas_src>
import functools

import jax
import jax.numpy as jnp
import numpy as np
from jax import lax
from jax.experimental import pallas as pl
from jax.experimental.pallas import tpu as pltpu

EPS = 1e-5
MXU_DTYPE = jnp.bfloat16


def _round_up(x, m):
    return (x + m - 1) // m * m


def _cdiv(a, b):
    return (a + b - 1) // b


# --------------------------- matmul (+epilogue) ----------------------------

def _epilogue(y, bias_ref, activation):
    if bias_ref is not None:
        y = y + bias_ref[...]
    if activation == "tanh_out":
        y = (jnp.tanh(y) + 1.0) * 0.5
    return y


def _mm_single_kernel(*refs, has_bias, activation):
    # Whole K in one block: no accumulator scratch, no init/finalize branches.
    if has_bias:
        a_ref, b_ref, bias_ref, o_ref = refs
    else:
        a_ref, b_ref, o_ref = refs
        bias_ref = None
    acc = jnp.dot(a_ref[...], b_ref[...], preferred_element_type=jnp.float32)
    o_ref[...] = _epilogue(acc, bias_ref, activation).astype(o_ref.dtype)


def _mm_kloop_kernel(*refs, has_bias, activation):
    if has_bias:
        a_ref, b_ref, bias_ref, o_ref, acc_ref = refs
    else:
        a_ref, b_ref, o_ref, acc_ref = refs
        bias_ref = None

    @pl.when(pl.program_id(2) == 0)
    def _():
        acc_ref[...] = jnp.zeros_like(acc_ref)

    acc_ref[...] += jnp.dot(a_ref[...], b_ref[...],
                            preferred_element_type=jnp.float32)

    @pl.when(pl.program_id(2) == pl.num_programs(2) - 1)
    def _():
        o_ref[...] = _epilogue(acc_ref[...], bias_ref, activation).astype(o_ref.dtype)


def pallas_matmul_bias(a, b, bias=None, activation=None, use_bf16=True,
                       tm_max=512, tn=128, tk_max=2048):
    """(M,K) @ (K,N) [+ bias[N]] [+ fused activation], f32 accumulation."""
    M, K = a.shape
    K2, N = b.shape
    assert K == K2
    mxu_dt = MXU_DTYPE if use_bf16 else a.dtype
    a = a.astype(mxu_dt)
    b = b.astype(mxu_dt)

    Mp = _round_up(M, 128)
    tm = min(tm_max, Mp)
    Mp = _round_up(Mp, tm)
    Np = _round_up(N, tn)

    n_k = max(1, _cdiv(K, tk_max))
    tk = _round_up(_cdiv(K, n_k), 128)
    Kp = n_k * tk

    a_p = a if (Mp == M and Kp == K) else jnp.pad(a, ((0, Mp - M), (0, Kp - K)))
    b_p = b if (Kp == K and Np == N) else jnp.pad(b, ((0, Kp - K), (0, Np - N)))

    has_bias = bias is not None
    inputs = [a_p, b_p]
    if has_bias:
        bias_p = jnp.pad(bias.astype(jnp.float32).reshape(1, N),
                         ((0, 0), (0, Np - N)))
        inputs.append(bias_p)

    if n_k == 1:
        kernel = functools.partial(_mm_single_kernel, has_bias=has_bias,
                                   activation=activation)
        in_specs = [pl.BlockSpec((tm, Kp), lambda i, j: (i, 0)),
                    pl.BlockSpec((Kp, tn), lambda i, j: (0, j))]
        if has_bias:
            in_specs.append(pl.BlockSpec((1, tn), lambda i, j: (0, j)))
        out = pl.pallas_call(
            kernel,
            out_shape=jax.ShapeDtypeStruct((Mp, Np), jnp.float32),
            grid_spec=pltpu.PrefetchScalarGridSpec(
                num_scalar_prefetch=0,
                grid=(Mp // tm, Np // tn),
                in_specs=in_specs,
                out_specs=pl.BlockSpec((tm, tn), lambda i, j: (i, j)),
                scratch_shapes=[]),
            compiler_params=pltpu.CompilerParams(
                dimension_semantics=("parallel", "parallel")),
        )(*inputs)
    else:
        kernel = functools.partial(_mm_kloop_kernel, has_bias=has_bias,
                                   activation=activation)
        in_specs = [pl.BlockSpec((tm, tk), lambda i, j, k: (i, k)),
                    pl.BlockSpec((tk, tn), lambda i, j, k: (k, j))]
        if has_bias:
            in_specs.append(pl.BlockSpec((1, tn), lambda i, j, k: (0, j)))
        out = pl.pallas_call(
            kernel,
            out_shape=jax.ShapeDtypeStruct((Mp, Np), jnp.float32),
            grid_spec=pltpu.PrefetchScalarGridSpec(
                num_scalar_prefetch=0,
                grid=(Mp // tm, Np // tn, n_k),
                in_specs=in_specs,
                out_specs=pl.BlockSpec((tm, tn), lambda i, j, k: (i, j)),
                scratch_shapes=[pltpu.VMEM((tm, tn), jnp.float32)]),
            compiler_params=pltpu.CompilerParams(
                dimension_semantics=("parallel", "parallel", "arbitrary")),
        )(*inputs)
    return out[:M, :N]


# ------------------- fused BN affine (+residual, +ReLU) ---------------------

def _affine_kernel(*refs, relu, has_res):
    if has_res:
        x_ref, s_ref, b_ref, r_ref, o_ref = refs
    else:
        x_ref, s_ref, b_ref, o_ref = refs
    y = x_ref[...] * s_ref[...] + b_ref[...]
    if has_res:
        y = y + refs[3][...]
    if relu:
        y = jnp.maximum(y, 0.0)
    o_ref[...] = y


def pallas_affine(x2, scale, shift, relu, residual=None, tm_max=512):
    """y = x*scale + shift (per-channel) [+residual] [ReLU].  x2: (M, C)."""
    M, C = x2.shape
    fold = 1
    if C < 128 and 128 % C == 0 and M % (128 // C) == 0:
        fold = 128 // C                      # lane-dense: (M,64) -> (M/2,128)
    Mf, Cf = M // fold, C * fold

    x = x2.reshape(Mf, Cf)
    s = jnp.tile(scale.astype(x2.dtype), fold).reshape(1, Cf)
    b = jnp.tile(shift.astype(x2.dtype), fold).reshape(1, Cf)
    has_res = residual is not None
    r = residual.reshape(Mf, Cf) if has_res else None

    tm = min(tm_max, _round_up(Mf, 8))
    Mp = _round_up(Mf, tm)
    if Mp != Mf:
        x = jnp.pad(x, ((0, Mp - Mf), (0, 0)))
        if has_res:
            r = jnp.pad(r, ((0, Mp - Mf), (0, 0)))

    in_specs = [pl.BlockSpec((tm, Cf), lambda i: (i, 0)),
                pl.BlockSpec((1, Cf), lambda i: (0, 0)),
                pl.BlockSpec((1, Cf), lambda i: (0, 0))]
    inputs = [x, s, b]
    if has_res:
        in_specs.append(pl.BlockSpec((tm, Cf), lambda i: (i, 0)))
        inputs.append(r)

    out = pl.pallas_call(
        functools.partial(_affine_kernel, relu=relu, has_res=has_res),
        out_shape=jax.ShapeDtypeStruct((Mp, Cf), x2.dtype),
        grid=(Mp // tm,),
        in_specs=in_specs,
        out_specs=pl.BlockSpec((tm, Cf), lambda i: (i, 0)),
        compiler_params=pltpu.CompilerParams(
            dimension_semantics=("parallel",)),
    )(*inputs)
    return out[:Mf].reshape(M, C)


# ------------------------------- conv glue ---------------------------------

def im2col(x, k, pad):
    """x: (N,H,W,C) -> (N*Ho*Wo, k*k*C), patch column order (dy, dx, c)."""
    # TODO(synk): replace HBM-materialized patches with in-kernel tap loop.
    if pad:
        x = jnp.pad(x, ((0, 0), (pad, pad), (pad, pad), (0, 0)))
    N, Hp, Wp, C = x.shape
    Ho, Wo = Hp - k + 1, Wp - k + 1
    cols = [x[:, dy:dy + Ho, dx:dx + Wo, :] for dy in range(k) for dx in range(k)]
    pat = jnp.concatenate(cols, axis=-1)
    return pat.reshape(N * Ho * Wo, k * k * C), (N, Ho, Wo)


def conv2d_pallas(x, w_hwio, bias, pad, activation=None, use_bf16=True):
    kh, kw, Cin, Cout = w_hwio.shape
    mxu_dt = MXU_DTYPE if use_bf16 else x.dtype
    patches, (N, Ho, Wo) = im2col(x.astype(mxu_dt), kh, pad)
    w_mat = w_hwio.astype(mxu_dt).reshape(kh * kw * Cin, Cout)
    y = pallas_matmul_bias(patches, w_mat, bias, activation=activation,
                           use_bf16=use_bf16)
    return y.reshape(N, Ho, Wo, Cout)


def conv_transpose2d_pallas(x, w_eq_hwio, bias, use_bf16=True):
    """ConvTranspose2d(k=4, s=2, p=1) via sub-pixel decomposition.

    Each output parity plane (a, b) equals a 2x2 conv of the input with the
    sub-kernel w_eq[a::2, b::2] and asymmetric padding, avoiding the 4x
    zero-work of the dilated-input lowering.
    """
    N, H, W, Cin = x.shape
    Cout = w_eq_hwio.shape[-1]
    out = jnp.zeros((N, 2 * H, 2 * W, Cout), jnp.float32)
    for a in (0, 1):
        for b in (0, 1):
            w_sub = w_eq_hwio[a::2, b::2]                     # (2,2,Cin,Cout)
            xp = jnp.pad(x, ((0, 0), (1 - a, a), (1 - b, b), (0, 0)))
            y = conv2d_pallas(xp, w_sub, bias, pad=0, use_bf16=use_bf16)
            out = out.at[:, a::2, b::2, :].set(y)
    return out


# -------------------------- reference (pure lax) ----------------------------

def conv2d_ref(x, w_hwio, bias, pad):
    y = lax.conv_general_dilated(
        x, w_hwio, window_strides=(1, 1),
        padding=[(pad, pad), (pad, pad)],
        dimension_numbers=('NHWC', 'HWIO', 'NHWC'),
        precision=lax.Precision.HIGHEST)
    return y + bias


def conv_transpose2d_ref(x, w_hwio_eq, bias, stride=2, pad_eq=2):
    y = lax.conv_general_dilated(
        x, w_hwio_eq, window_strides=(1, 1),
        padding=[(pad_eq, pad_eq), (pad_eq, pad_eq)],
        lhs_dilation=(stride, stride),
        dimension_numbers=('NHWC', 'HWIO', 'NHWC'),
        precision=lax.Precision.HIGHEST)
    return y + bias


# ------------------------------ batch norm ----------------------------------

def batch_norm2d_pallas(x, gamma, beta, relu, residual=None):
    """Training-mode BatchNorm2d (batch stats, biased var), fused affine."""
    C = x.shape[-1]
    x2 = x.reshape(-1, C)
    mean = jnp.mean(x2, axis=0)                          # single-pass stats
    var = jnp.maximum(jnp.mean(x2 * x2, axis=0) - mean * mean, 0.0)
    scale = gamma * lax.rsqrt(var + EPS)
    shift = beta - mean * scale
    res2 = residual.reshape(-1, C) if residual is not None else None
    y2 = pallas_affine(x2, scale, shift, relu, residual=res2)
    return y2.reshape(x.shape)


def batch_norm2d_ref(x, gamma, beta, relu):
    C = x.shape[-1]
    x2 = x.reshape(-1, C)
    mean = jnp.mean(x2, axis=0)
    var = jnp.mean(jnp.square(x2 - mean), axis=0)
    y2 = (x2 - mean) * (gamma * lax.rsqrt(var + EPS)) + beta
    if relu:
        y2 = jnp.maximum(y2, 0.0)
    return y2.reshape(x.shape)


# ------------------------------ full forward --------------------------------

def image_transformer_forward(x_nchw, params, scaling_factor,
                              use_pallas=True, use_bf16=True):
    x = jnp.transpose(x_nchw, (0, 2, 3, 1))               # NCHW -> NHWC
    n_up = {4: 2, 8: 3}.get(scaling_factor, 0)

    if use_pallas:
        # Conv biases before training-mode BN are exactly cancelled by the
        # mean subtraction -> dropped (bias=None).  Only conv_out keeps bias.
        x = conv2d_pallas(x, params['conv_in_w'], None, pad=4, use_bf16=use_bf16)
        x = batch_norm2d_pallas(x, params['bn64_g'], params['bn64_b'], relu=True)

        for blk in params['res_blocks']:
            out = conv2d_pallas(x, blk['w'], None, pad=1, use_bf16=use_bf16)
            out = batch_norm2d_pallas(out, blk['bn_g'], blk['bn_b'], relu=True)
            out = conv2d_pallas(out, blk['w'], None, pad=1, use_bf16=use_bf16)
            # residual add fused into the BN affine kernel
            x = batch_norm2d_pallas(out, blk['bn_g'], blk['bn_b'], relu=False,
                                    residual=x)

        for _ in range(n_up):
            x = conv_transpose2d_pallas(x, params['convT_w'], None,
                                        use_bf16=use_bf16)
            x = batch_norm2d_pallas(x, params['bn64_g'], params['bn64_b'],
                                    relu=True)

        # (tanh(x)+1)*0.5 fused into the conv_out matmul epilogue.
        x = conv2d_pallas(x, params['conv_out_w'], params['conv_out_b'], pad=4,
                          activation="tanh_out", use_bf16=use_bf16)
    else:
        x = conv2d_ref(x, params['conv_in_w'], params['conv_in_b'], pad=4)
        x = batch_norm2d_ref(x, params['bn64_g'], params['bn64_b'], relu=True)
        for blk in params['res_blocks']:
            out = conv2d_ref(x, blk['w'], blk['b'], pad=1)
            out = batch_norm2d_ref(out, blk['bn_g'], blk['bn_b'], relu=True)
            out = conv2d_ref(out, blk['w'], blk['b'], pad=1)
            out = batch_norm2d_ref(out, blk['bn_g'], blk['bn_b'], relu=False)
            x = x + out
        for _ in range(n_up):
            x = conv_transpose2d_ref(x, params['convT_w'], params['convT_b'])
            x = batch_norm2d_ref(x, params['bn64_g'], params['bn64_b'], relu=True)
        x = conv2d_ref(x, params['conv_out_w'], params['conv_out_b'], pad=4)
        x = (jnp.tanh(x) + 1.0) * 0.5
    return jnp.transpose(x, (0, 3, 1, 2))                 # NHWC -> NCHW


# ------------------------------ params init ---------------------------------

def init_params(key):
    keys = iter(jax.random.split(key, 40))

    def n(shape, s):
        return s * jax.random.normal(next(keys), shape, dtype=jnp.float32)

    p = {}
    w = n((64, 3, 9, 9), 0.05)                            # Conv2d OIHW
    p['conv_in_w'] = jnp.transpose(w, (2, 3, 1, 0))       # -> HWIO
    p['conv_in_b'] = n((64,), 0.01)
    p['bn64_g'] = 1.0 + n((64,), 0.1)
    p['bn64_b'] = n((64,), 0.1)

    blocks = []
    for _ in range(4):
        w = n((64, 64, 3, 3), 0.05)
        blocks.append({'w': jnp.transpose(w, (2, 3, 1, 0)),
                       'b': n((64,), 0.01),
                       'bn_g': 1.0 + n((64,), 0.1),
                       'bn_b': n((64,), 0.1)})
    p['res_blocks'] = blocks

    wt = n((64, 64, 4, 4), 0.05)                          # ConvTranspose2d IOHW
    # equivalent direct-conv kernel: flip spatial, transpose -> HWIO
    p['convT_w'] = jnp.transpose(jnp.flip(wt, axis=(2, 3)), (2, 3, 0, 1))
    p['convT_b'] = n((64,), 0.01)

    w = n((3, 64, 9, 9), 0.05)
    p['conv_out_w'] = jnp.transpose(w, (2, 3, 1, 0))
    p['conv_out_b'] = n((3,), 0.01)
    return p


# ---------------------------------- main -------------------------------------

if __name__ == "__main__":
    key = jax.random.PRNGKey(0)
    pkey, xkey = jax.random.split(key)
    params = init_params(pkey)

    scaling_factor = 4
    x = jax.random.normal(xkey, (2, 3, 8, 8), dtype=jnp.float32)   # NCHW

    fwd_bf16 = jax.jit(lambda inp: image_transformer_forward(
        inp, params, scaling_factor, use_pallas=True, use_bf16=True))
    fwd_f32 = jax.jit(lambda inp: image_transformer_forward(
        inp, params, scaling_factor, use_pallas=True, use_bf16=False))

    out = jax.block_until_ready(fwd_bf16(x))
    out_f32 = jax.block_until_ready(fwd_f32(x))
    ref = jax.block_until_ready(image_transformer_forward(
        x, params, scaling_factor, use_pallas=False))

    assert out.shape == (2, 3, 32, 32), out.shape
    assert bool(jnp.all(jnp.isfinite(out)))
    assert bool(jnp.all(jnp.isfinite(out_f32)))

    # Lowering correctness: f32 Pallas path vs lax reference (tight).
    np.testing.assert_allclose(np.asarray(out_f32), np.asarray(ref),
                               rtol=5e-3, atol=5e-3)

    # bf16-MXU fast path: only dtype noise vs the f32 reference (loose).
    diff = np.abs(np.asarray(out) - np.asarray(ref))
    assert float(diff.mean()) < 2e-2 and float(diff.max()) < 2e-1, \
        (float(diff.mean()), float(diff.max()))

    print("KERNEL_OK")
</pallas_src>

<mosaic_0001>
module attributes {stable_mosaic.version = 11 : i64} {
  func.func @_mm_single_kernel(%arg0: i32, %arg1: i32, %arg2: memref<128x256xbf16, #tpu.memory_space<vmem>>, %arg3: memref<256x128xbf16, #tpu.memory_space<vmem>>, %arg4: memref<128x128xf32, #tpu.memory_space<vmem>>) attributes {dimension_semantics = [#tpu.dimension_semantics<parallel>, #tpu.dimension_semantics<parallel>], iteration_bounds = array<i64: 1, 1>, scalar_prefetch = 0 : i64, scratch_operands = 0 : i64, tpu.core_type = #tpu.core_type<tc>, window_params = [{transform_indices = @transform_0, window_bounds = array<i64: 128, 256>}, {transform_indices = @transform_1, window_bounds = array<i64: 256, 128>}, {transform_indices = @transform_2, window_bounds = array<i64: 128, 128>}]} {
    %c0 = arith.constant 0 : index
    %c0_0 = arith.constant 0 : index
    %0 = vector.load %arg2[%c0, %c0_0] : memref<128x256xbf16, #tpu.memory_space<vmem>>, vector<128x256xbf16>
    %c0_1 = arith.constant 0 : index
    %c0_2 = arith.constant 0 : index
    %1 = vector.load %arg3[%c0_1, %c0_2] : memref<256x128xbf16, #tpu.memory_space<vmem>>, vector<256x128xbf16>
    %cst = arith.constant dense<0.000000e+00> : vector<128x128xf32>
    %2 = tpu.matmul %0, %1, %cst {dimension_numbers = #tpu.dot_dimension_numbers<[1], [0], [0], [1], [0, 0, 1, 1], [], []>} : vector<128x256xbf16>, vector<256x128xbf16>, vector<128x128xf32> -> vector<128x128xf32>
    %c0_3 = arith.constant 0 : index
    %c0_4 = arith.constant 0 : index
    %3 = vector.load %arg4[%c0_3, %c0_4] : memref<128x128xf32, #tpu.memory_space<vmem>>, vector<128x128xf32>
    tpu.vector_store %arg4[%c0_3, %c0_4], %2 {strides = array<i32>} : memref<128x128xf32, #tpu.memory_space<vmem>>, vector<128x128xf32>,
    return
  }
  func.func @transform_0(%arg0: i32, %arg1: i32) -> (i32, i32) {
    %c0_i32 = arith.constant 0 : i32
    %c0_i32_0 = arith.constant 0 : i32
    return %arg0, %c0_i32 : i32, i32
  }
  func.func @transform_1(%arg0: i32, %arg1: i32) -> (i32, i32) {
    %c0_i32 = arith.constant 0 : i32
    %c0_i32_0 = arith.constant 0 : i32
    return %c0_i32, %arg1 : i32, i32
  }
  func.func @transform_2(%arg0: i32, %arg1: i32) -> (i32, i32) {
    %c0_i32 = arith.constant 0 : i32
    return %arg0, %arg1 : i32, i32
  }
}

module attributes {stable_mosaic.version = 11 : i64} {
  func.func @_affine_kernel(%arg0: i32, %arg1: memref<64x128xf32, #tpu.memory_space<vmem>>, %arg2: memref<1x128xf32, #tpu.memory_space<vmem>>, %arg3: memref<1x128xf32, #tpu.memory_space<vmem>>, %arg4: memref<64x128xf32, #tpu.memory_space<vmem>>) attributes {dimension_semantics = [#tpu.dimension_semantics<parallel>], iteration_bounds = array<i64: 1>, scalar_prefetch = 0 : i64, scratch_operands = 0 : i64, tpu.core_type = #tpu.core_type<tc>, window_params = [{transform_indices = @transform_0, window_bounds = array<i64: 64, 128>}, {pipeline_mode = #tpu.pipeline_mode<synchronous>, transform_indices = @transform_1, window_bounds = array<i64: 1, 128>}, {pipeline_mode = #tpu.pipeline_mode<synchronous>, transform_indices = @transform_2, window_bounds = array<i64: 1, 128>}, {transform_indices = @transform_3, window_bounds = array<i64: 64, 128>}]} {
    %c0 = arith.constant 0 : index
    %c0_0 = arith.constant 0 : index
    %0 = vector.load %arg1[%c0, %c0_0] : memref<64x128xf32, #tpu.memory_space<vmem>>, vector<64x128xf32>
    %c0_1 = arith.constant 0 : index
    %c0_2 = arith.constant 0 : index
    %1 = vector.load %arg2[%c0_1, %c0_2] : memref<1x128xf32, #tpu.memory_space<vmem>>, vector<1x128xf32>
    %2 = vector.broadcast %1 : vector<1x128xf32> to vector<64x128xf32>
    %3 = arith.mulf %0, %2 : vector<64x128xf32>
    %c0_3 = arith.constant 0 : index
    %c0_4 = arith.constant 0 : index
    %4 = vector.load %arg3[%c0_3, %c0_4] : memref<1x128xf32, #tpu.memory_space<vmem>>, vector<1x128xf32>
    %5 = vector.broadcast %4 : vector<1x128xf32> to vector<64x128xf32>
    %6 = arith.addf %3, %5 : vector<64x128xf32>
    %cst = arith.constant 0.000000e+00 : f32
    %7 = vector.broadcast %cst : f32 to vector<64x128xf32>
    %8 = arith.maximumf %6, %7 : vector<64x128xf32>
    %c0_5 = arith.constant 0 : index
    %c0_6 = arith.constant 0 : index
    %9 = vector.load %arg4[%c0_5, %c0_6] : memref<64x128xf32, #tpu.memory_space<vmem>>, vector<64x128xf32>
    tpu.vector_store %arg4[%c0_5, %c0_6], %8 {strides = array<i32>} : memref<64x128xf32, #tpu.memory_space<vmem>>, vector<64x128xf32>,
    return
  }
  func.func @transform_0(%arg0: i32) -> (i32, i32) {
    %c0_i32 = arith.constant 0 : i32
    %c0_i32_0 = arith.constant 0 : i32
    return %arg0, %c0_i32 : i32, i32
  }
  func.func @transform_1(%arg0: i32) -> (i32, i32) {
    %c0_i32 = arith.constant 0 : i32
    %c0_i32_0 = arith.constant 0 : i32
    %c0_i32_1 = arith.constant 0 : i32
    return %c0_i32, %c0_i32_0 : i32, i32
  }
  func.func @transform_2(%arg0: i32) -> (i32, i32) {
    %c0_i32 = arith.constant 0 : i32
    %c0_i32_0 = arith.constant 0 : i32
    %c0_i32_1 = arith.constant 0 : i32
    return %c0_i32, %c0_i32_0 : i32, i32
  }
  func.func @transform_3(%arg0: i32) -> (i32, i32) {
    %c0_i32 = arith.constant 0 : i32
    %c0_i32_0 = arith.constant 0 : i32
    return %arg0, %c0_i32 : i32, i32
  }
}

module attributes {stable_mosaic.version = 11 : i64} {
  func.func @_mm_single_kernel(%arg0: i32, %arg1: i32, %arg2: memref<128x640xbf16, #tpu.memory_space<vmem>>, %arg3: memref<640x128xbf16, #tpu.memory_space<vmem>>, %arg4: memref<128x128xf32, #tpu.memory_space<vmem>>) attributes {dimension_semantics = [#tpu.dimension_semantics<parallel>, #tpu.dimension_semantics<parallel>], iteration_bounds = array<i64: 1, 1>, scalar_prefetch = 0 : i64, scratch_operands = 0 : i64, tpu.core_type = #tpu.core_type<tc>, window_params = [{transform_indices = @transform_0, window_bounds = array<i64: 128, 640>}, {transform_indices = @transform_1, window_bounds = array<i64: 640, 128>}, {transform_indices = @transform_2, window_bounds = array<i64: 128, 128>}]} {
    %c0 = arith.constant 0 : index
    %c0_0 = arith.constant 0 : index
    %0 = vector.load %arg2[%c0, %c0_0] : memref<128x640xbf16, #tpu.memory_space<vmem>>, vector<128x640xbf16>
    %c0_1 = arith.constant 0 : index
    %c0_2 = arith.constant 0 : index
    %1 = vector.load %arg3[%c0_1, %c0_2] : memref<640x128xbf16, #tpu.memory_space<vmem>>, vector<640x128xbf16>
    %cst = arith.constant dense<0.000000e+00> : vector<128x128xf32>
    %2 = tpu.matmul %0, %1, %cst {dimension_numbers = #tpu.dot_dimension_numbers<[1], [0], [0], [1], [0, 0, 1, 1], [], []>} : vector<128x640xbf16>, vector<640x128xbf16>, vector<128x128xf32> -> vector<128x128xf32>
    %c0_3 = arith.constant 0 : index
    %c0_4 = arith.constant 0 : index
    %3 = vector.load %arg4[%c0_3, %c0_4] : memref<128x128xf32, #tpu.memory_space<vmem>>, vector<128x128xf32>
    tpu.vector_store %arg4[%c0_3, %c0_4], %2 {strides = array<i32>} : memref<128x128xf32, #tpu.memory_space<vmem>>, vector<128x128xf32>,
    return
  }
  func.func @transform_0(%arg0: i32, %arg1: i32) -> (i32, i32) {
    %c0_i32 = arith.constant 0 : i32
    %c0_i32_0 = arith.constant 0 : i32
    return %arg0, %c0_i32 : i32, i32
  }
  func.func @transform_1(%arg0: i32, %arg1: i32) -> (i32, i32) {
    %c0_i32 = arith.constant 0 : i32
    %c0_i32_0 = arith.constant 0 : i32
    return %c0_i32, %arg1 : i32, i32
  }
  func.func @transform_2(%arg0: i32, %arg1: i32) -> (i32, i32) {
    %c0_i32 = arith.constant 0 : i32
    return %arg0, %arg1 : i32, i32
  }
}

module attributes {stable_mosaic.version = 11 : i64} {
  func.func @_affine_kernel(%arg0: i32, %arg1: memref<64x128xf32, #tpu.memory_space<vmem>>, %arg2: memref<1x128xf32, #tpu.memory_space<vmem>>, %arg3: memref<1x128xf32, #tpu.memory_space<vmem>>, %arg4: memref<64x128xf32, #tpu.memory_space<vmem>>, %arg5: memref<64x128xf32, #tpu.memory_space<vmem>>) attributes {dimension_semantics = [#tpu.dimension_semantics<parallel>], iteration_bounds = array<i64: 1>, scalar_prefetch = 0 : i64, scratch_operands = 0 : i64, tpu.core_type = #tpu.core_type<tc>, window_params = [{transform_indices = @transform_0, window_bounds = array<i64: 64, 128>}, {pipeline_mode = #tpu.pipeline_mode<synchronous>, transform_indices = @transform_1, window_bounds = array<i64: 1, 128>}, {pipeline_mode = #tpu.pipeline_mode<synchronous>, transform_indices = @transform_2, window_bounds = array<i64: 1, 128>}, {transform_indices = @transform_3, window_bounds = array<i64: 64, 128>}, {transform_indices = @transform_4, window_bounds = array<i64: 64, 128>}]} {
    %c0 = arith.constant 0 : index
    %c0_0 = arith.constant 0 : index
    %0 = vector.load %arg1[%c0, %c0_0] : memref<64x128xf32, #tpu.memory_space<vmem>>, vector<64x128xf32>
    %c0_1 = arith.constant 0 : index
    %c0_2 = arith.constant 0 : index
    %1 = vector.load %arg2[%c0_1, %c0_2] : memref<1x128xf32, #tpu.memory_space<vmem>>, vector<1x128xf32>
    %2 = vector.broadcast %1 : vector<1x128xf32> to vector<64x128xf32>
    %3 = arith.mulf %0, %2 : vector<64x128xf32>
    %c0_3 = arith.constant 0 : index
    %c0_4 = arith.constant 0 : index
    %4 = vector.load %arg3[%c0_3, %c0_4] : memref<1x128xf32, #tpu.memory_space<vmem>>, vector<1x128xf32>
    %5 = vector.broadcast %4 : vector<1x128xf32> to vector<64x128xf32>
    %6 = arith.addf %3, %5 : vector<64x128xf32>
    %c0_5 = arith.constant 0 : index
    %c0_6 = arith.constant 0 : index
    %7 = vector.load %arg4[%c0_5, %c0_6] : memref<64x128xf32, #tpu.memory_space<vmem>>, vector<64x128xf32>
    %8 = arith.addf %6, %7 : vector<64x128xf32>
    %c0_7 = arith.constant 0 : index
    %c0_8 = arith.constant 0 : index
    %9 = vector.load %arg5[%c0_7, %c0_8] : memref<64x128xf32, #tpu.memory_space<vmem>>, vector<64x128xf32>
    tpu.vector_store %arg5[%c0_7, %c0_8], %8 {strides = array<i32>} : memref<64x128xf32, #tpu.memory_space<vmem>>, vector<64x128xf32>,
    return
  }
  func.func @transform_0(%arg0: i32) -> (i32, i32) {
    %c0_i32 = arith.constant 0 : i32
    %c0_i32_0 = arith.constant 0 : i32
    return %arg0, %c0_i32 : i32, i32
  }
  func.func @transform_1(%arg0: i32) -> (i32, i32) {
    %c0_i32 = arith.constant 0 : i32
    %c0_i32_0 = arith.constant 0 : i32
    %c0_i32_1 = arith.constant 0 : i32
    return %c0_i32, %c0_i32_0 : i32, i32
  }
  func.func @transform_2(%arg0: i32) -> (i32, i32) {
    %c0_i32 = arith.constant 0 : i32
    %c0_i32_0 = arith.constant 0 : i32
    %c0_i32_1 = arith.constant 0 : i32
    return %c0_i32, %c0_i32_0 : i32, i32
  }
  func.func @transform_3(%arg0: i32) -> (i32, i32) {
    %c0_i32 = arith.constant 0 : i32
    %c0_i32_0 = arith.constant 0 : i32
    return %arg0, %c0_i32 : i32, i32
  }
  func.func @transform_4(%arg0: i32) -> (i32, i32) {
    %c0_i32 = arith.constant 0 : i32
    %c0_i32_0 = arith.constant 0 : i32
    return %arg0, %c0_i32 : i32, i32
  }
}

module attributes {stable_mosaic.version = 11 : i64} {
  func.func @_mm_single_kernel(%arg0: i32, %arg1: i32, %arg2: memref<128x640xbf16, #tpu.memory_space<vmem>>, %arg3: memref<640x128xbf16, #tpu.memory_space<vmem>>, %arg4: memref<128x128xf32, #tpu.memory_space<vmem>>) attributes {dimension_semantics = [#tpu.dimension_semantics<parallel>, #tpu.dimension_semantics<parallel>], iteration_bounds = array<i64: 1, 1>, scalar_prefetch = 0 : i64, scratch_operands = 0 : i64, tpu.core_type = #tpu.core_type<tc>, window_params = [{transform_indices = @transform_0, window_bounds = array<i64: 128, 640>}, {transform_indices = @transform_1, window_bounds = array<i64: 640, 128>}, {transform_indices = @transform_2, window_bounds = array<i64: 128, 128>}]} {
    %c0 = arith.constant 0 : index
    %c0_0 = arith.constant 0 : index
    %0 = vector.load %arg2[%c0, %c0_0] : memref<128x640xbf16, #tpu.memory_space<vmem>>, vector<128x640xbf16>
    %c0_1 = arith.constant 0 : index
    %c0_2 = arith.constant 0 : index
    %1 = vector.load %arg3[%c0_1, %c0_2] : memref<640x128xbf16, #tpu.memory_space<vmem>>, vector<640x128xbf16>
    %cst = arith.constant dense<0.000000e+00> : vector<128x128xf32>
    %2 = tpu.matmul %0, %1, %cst {dimension_numbers = #tpu.dot_dimension_numbers<[1], [0], [0], [1], [0, 0, 1, 1], [], []>} : vector<128x640xbf16>, vector<640x128xbf16>, vector<128x128xf32> -> vector<128x128xf32>
    %c0_3 = arith.constant 0 : index
    %c0_4 = arith.constant 0 : index
    %3 = vector.load %arg4[%c0_3, %c0_4] : memref<128x128xf32, #tpu.memory_space<vmem>>, vector<128x128xf32>
    tpu.vector_store %arg4[%c0_3, %c0_4], %2 {strides = array<i32>} : memref<128x128xf32, #tpu.memory_space<vmem>>, vector<128x128xf32>,
    return
  }
  func.func @transform_0(%arg0: i32, %arg1: i32) -> (i32, i32) {
    %c0_i32 = arith.constant 0 : i32
    %c0_i32_0 = arith.constant 0 : i32
    return %arg0, %c0_i32 : i32, i32
  }
  func.func @transform_1(%arg0: i32, %arg1: i32) -> (i32, i32) {
    %c0_i32 = arith.constant 0 : i32
    %c0_i32_0 = arith.constant 0 : i32
    return %c0_i32, %arg1 : i32, i32
  }
  func.func @transform_2(%arg0: i32, %arg1: i32) -> (i32, i32) {
    %c0_i32 = arith.constant 0 : i32
    return %arg0, %arg1 : i32, i32
  }
}

module attributes {stable_mosaic.version = 11 : i64} {
  func.func @_mm_single_kernel(%arg0: i32, %arg1: i32, %arg2: memref<128x256xbf16, #tpu.memory_space<vmem>>, %arg3: memref<256x128xbf16, #tpu.memory_space<vmem>>, %arg4: memref<128x128xf32, #tpu.memory_space<vmem>>) attributes {dimension_semantics = [#tpu.dimension_semantics<parallel>, #tpu.dimension_semantics<parallel>], iteration_bounds = array<i64: 1, 1>, scalar_prefetch = 0 : i64, scratch_operands = 0 : i64, tpu.core_type = #tpu.core_type<tc>, window_params = [{transform_indices = @transform_0, window_bounds = array<i64: 128, 256>}, {transform_indices = @transform_1, window_bounds = array<i64: 256, 128>}, {transform_indices = @transform_2, window_bounds = array<i64: 128, 128>}]} {
    %c0 = arith.constant 0 : index
    %c0_0 = arith.constant 0 : index
    %0 = vector.load %arg2[%c0, %c0_0] : memref<128x256xbf16, #tpu.memory_space<vmem>>, vector<128x256xbf16>
    %c0_1 = arith.constant 0 : index
    %c0_2 = arith.constant 0 : index
    %1 = vector.load %arg3[%c0_1, %c0_2] : memref<256x128xbf16, #tpu.memory_space<vmem>>, vector<256x128xbf16>
    %cst = arith.constant dense<0.000000e+00> : vector<128x128xf32>
    %2 = tpu.matmul %0, %1, %cst {dimension_numbers = #tpu.dot_dimension_numbers<[1], [0], [0], [1], [0, 0, 1, 1], [], []>} : vector<128x256xbf16>, vector<256x128xbf16>, vector<128x128xf32> -> vector<128x128xf32>
    %c0_3 = arith.constant 0 : index
    %c0_4 = arith.constant 0 : index
    %3 = vector.load %arg4[%c0_3, %c0_4] : memref<128x128xf32, #tpu.memory_space<vmem>>, vector<128x128xf32>
    tpu.vector_store %arg4[%c0_3, %c0_4], %2 {strides = array<i32>} : memref<128x128xf32, #tpu.memory_space<vmem>>, vector<128x128xf32>,
    return
  }
  func.func @transform_0(%arg0: i32, %arg1: i32) -> (i32, i32) {
    %c0_i32 = arith.constant 0 : i32
    %c0_i32_0 = arith.constant 0 : i32
    return %arg0, %c0_i32 : i32, i32
  }
  func.func @transform_1(%arg0: i32, %arg1: i32) -> (i32, i32) {
    %c0_i32 = arith.constant 0 : i32
    %c0_i32_0 = arith.constant 0 : i32
    return %c0_i32, %arg1 : i32, i32
  }
  func.func @transform_2(%arg0: i32, %arg1: i32) -> (i32, i32) {
    %c0_i32 = arith.constant 0 : i32
    return %arg0, %arg1 : i32, i32
  }
}

module attributes {stable_mosaic.version = 11 : i64} {
  func.func @_affine_kernel(%arg0: i32, %arg1: memref<256x128xf32, #tpu.memory_space<vmem>>, %arg2: memref<1x128xf32, #tpu.memory_space<vmem>>, %arg3: memref<1x128xf32, #tpu.memory_space<vmem>>, %arg4: memref<256x128xf32, #tpu.memory_space<vmem>>) attributes {dimension_semantics = [#tpu.dimension_semantics<parallel>], iteration_bounds = array<i64: 1>, scalar_prefetch = 0 : i64, scratch_operands = 0 : i64, tpu.core_type = #tpu.core_type<tc>, window_params = [{transform_indices = @transform_0, window_bounds = array<i64: 256, 128>}, {pipeline_mode = #tpu.pipeline_mode<synchronous>, transform_indices = @transform_1, window_bounds = array<i64: 1, 128>}, {pipeline_mode = #tpu.pipeline_mode<synchronous>, transform_indices = @transform_2, window_bounds = array<i64: 1, 128>}, {transform_indices = @transform_3, window_bounds = array<i64: 256, 128>}]} {
    %c0 = arith.constant 0 : index
    %c0_0 = arith.constant 0 : index
    %0 = vector.load %arg1[%c0, %c0_0] : memref<256x128xf32, #tpu.memory_space<vmem>>, vector<256x128xf32>
    %c0_1 = arith.constant 0 : index
    %c0_2 = arith.constant 0 : index
    %1 = vector.load %arg2[%c0_1, %c0_2] : memref<1x128xf32, #tpu.memory_space<vmem>>, vector<1x128xf32>
    %2 = vector.broadcast %1 : vector<1x128xf32> to vector<256x128xf32>
    %3 = arith.mulf %0, %2 : vector<256x128xf32>
    %c0_3 = arith.constant 0 : index
    %c0_4 = arith.constant 0 : index
    %4 = vector.load %arg3[%c0_3, %c0_4] : memref<1x128xf32, #tpu.memory_space<vmem>>, vector<1x128xf32>
    %5 = vector.broadcast %4 : vector<1x128xf32> to vector<256x128xf32>
    %6 = arith.addf %3, %5 : vector<256x128xf32>
    %cst = arith.constant 0.000000e+00 : f32
    %7 = vector.broadcast %cst : f32 to vector<256x128xf32>
    %8 = arith.maximumf %6, %7 : vector<256x128xf32>
    %c0_5 = arith.constant 0 : index
    %c0_6 = arith.constant 0 : index
    %9 = vector.load %arg4[%c0_5, %c0_6] : memref<256x128xf32, #tpu.memory_space<vmem>>, vector<256x128xf32>
    tpu.vector_store %arg4[%c0_5, %c0_6], %8 {strides = array<i32>} : memref<256x128xf32, #tpu.memory_space<vmem>>, vector<256x128xf32>,
    return
  }
  func.func @transform_0(%arg0: i32) -> (i32, i32) {
    %c0_i32 = arith.constant 0 : i32
    %c0_i32_0 = arith.constant 0 : i32
    return %arg0, %c0_i32 : i32, i32
  }
  func.func @transform_1(%arg0: i32) -> (i32, i32) {
    %c0_i32 = arith.constant 0 : i32
    %c0_i32_0 = arith.constant 0 : i32
    %c0_i32_1 = arith.constant 0 : i32
    return %c0_i32, %c0_i32_0 : i32, i32
  }
  func.func @transform_2(%arg0: i32) -> (i32, i32) {
    %c0_i32 = arith.constant 0 : i32
    %c0_i32_0 = arith.constant 0 : i32
    %c0_i32_1 = arith.constant 0 : i32
    return %c0_i32, %c0_i32_0 : i32, i32
  }
  func.func @transform_3(%arg0: i32) -> (i32, i32) {
    %c0_i32 = arith.constant 0 : i32
    %c0_i32_0 = arith.constant 0 : i32
    return %arg0, %c0_i32 : i32, i32
  }
}

module attributes {stable_mosaic.version = 11 : i64} {
  func.func @_mm_single_kernel(%arg0: i32, %arg1: i32, %arg2: memref<512x256xbf16, #tpu.memory_space<vmem>>, %arg3: memref<256x128xbf16, #tpu.memory_space<vmem>>, %arg4: memref<512x128xf32, #tpu.memory_space<vmem>>) attributes {dimension_semantics = [#tpu.dimension_semantics<parallel>, #tpu.dimension_semantics<parallel>], iteration_bounds = array<i64: 1, 1>, scalar_prefetch = 0 : i64, scratch_operands = 0 : i64, tpu.core_type = #tpu.core_type<tc>, window_params = [{transform_indices = @transform_0, window_bounds = array<i64: 512, 256>}, {transform_indices = @transform_1, window_bounds = array<i64: 256, 128>}, {transform_indices = @transform_2, window_bounds = array<i64: 512, 128>}]} {
    %c0 = arith.constant 0 : index
    %c0_0 = arith.constant 0 : index
    %0 = vector.load %arg2[%c0, %c0_0] : memref<512x256xbf16, #tpu.memory_space<vmem>>, vector<512x256xbf16>
    %c0_1 = arith.constant 0 : index
    %c0_2 = arith.constant 0 : index
    %1 = vector.load %arg3[%c0_1, %c0_2] : memref<256x128xbf16, #tpu.memory_space<vmem>>, vector<256x128xbf16>
    %cst = arith.constant dense<0.000000e+00> : vector<512x128xf32>
    %2 = tpu.matmul %0, %1, %cst {dimension_numbers = #tpu.dot_dimension_numbers<[1], [0], [0], [1], [0, 0, 1, 1], [], []>} : vector<512x256xbf16>, vector<256x128xbf16>, vector<512x128xf32> -> vector<512x128xf32>
    %c0_3 = arith.constant 0 : index
    %c0_4 = arith.constant 0 : index
    %3 = vector.load %arg4[%c0_3, %c0_4] : memref<512x128xf32, #tpu.memory_space<vmem>>, vector<512x128xf32>
    tpu.vector_store %arg4[%c0_3, %c0_4], %2 {strides = array<i32>} : memref<512x128xf32, #tpu.memory_space<vmem>>, vector<512x128xf32>,
    return
  }
  func.func @transform_0(%arg0: i32, %arg1: i32) -> (i32, i32) {
    %c0_i32 = arith.constant 0 : i32
    %c0_i32_0 = arith.constant 0 : i32
    return %arg0, %c0_i32 : i32, i32
  }
  func.func @transform_1(%arg0: i32, %arg1: i32) -> (i32, i32) {
    %c0_i32 = arith.constant 0 : i32
    %c0_i32_0 = arith.constant 0 : i32
    return %c0_i32, %arg1 : i32, i32
  }
  func.func @transform_2(%arg0: i32, %arg1: i32) -> (i32, i32) {
    %c0_i32 = arith.constant 0 : i32
    return %arg0, %arg1 : i32, i32
  }
}

module attributes {stable_mosaic.version = 11 : i64} {
  func.func @_affine_kernel(%arg0: i32, %arg1: memref<512x128xf32, #tpu.memory_space<vmem>>, %arg2: memref<1x128xf32, #tpu.memory_space<vmem>>, %arg3: memref<1x128xf32, #tpu.memory_space<vmem>>, %arg4: memref<512x128xf32, #tpu.memory_space<vmem>>) attributes {dimension_semantics = [#tpu.dimension_semantics<parallel>], iteration_bounds = array<i64: 2>, scalar_prefetch = 0 : i64, scratch_operands = 0 : i64, tpu.core_type = #tpu.core_type<tc>, window_params = [{transform_indices = @transform_0, window_bounds = array<i64: 512, 128>}, {pipeline_mode = #tpu.pipeline_mode<synchronous>, transform_indices = @transform_1, window_bounds = array<i64: 1, 128>}, {pipeline_mode = #tpu.pipeline_mode<synchronous>, transform_indices = @transform_2, window_bounds = array<i64: 1, 128>}, {transform_indices = @transform_3, window_bounds = array<i64: 512, 128>}]} {
    %c0 = arith.constant 0 : index
    %c0_0 = arith.constant 0 : index
    %0 = vector.load %arg1[%c0, %c0_0] : memref<512x128xf32, #tpu.memory_space<vmem>>, vector<512x128xf32>
    %c0_1 = arith.constant 0 : index
    %c0_2 = arith.constant 0 : index
    %1 = vector.load %arg2[%c0_1, %c0_2] : memref<1x128xf32, #tpu.memory_space<vmem>>, vector<1x128xf32>
    %2 = vector.broadcast %1 : vector<1x128xf32> to vector<512x128xf32>
    %3 = arith.mulf %0, %2 : vector<512x128xf32>
    %c0_3 = arith.constant 0 : index
    %c0_4 = arith.constant 0 : index
    %4 = vector.load %arg3[%c0_3, %c0_4] : memref<1x128xf32, #tpu.memory_space<vmem>>, vector<1x128xf32>
    %5 = vector.broadcast %4 : vector<1x128xf32> to vector<512x128xf32>
    %6 = arith.addf %3, %5 : vector<512x128xf32>
    %cst = arith.constant 0.000000e+00 : f32
    %7 = vector.broadcast %cst : f32 to vector<512x128xf32>
    %8 = arith.maximumf %6, %7 : vector<512x128xf32>
    %c0_5 = arith.constant 0 : index
    %c0_6 = arith.constant 0 : index
    %9 = vector.load %arg4[%c0_5, %c0_6] : memref<512x128xf32, #tpu.memory_space<vmem>>, vector<512x128xf32>
    tpu.vector_store %arg4[%c0_5, %c0_6], %8 {strides = array<i32>} : memref<512x128xf32, #tpu.memory_space<vmem>>, vector<512x128xf32>,
    return
  }
  func.func @transform_0(%arg0: i32) -> (i32, i32) {
    %c0_i32 = arith.constant 0 : i32
    %c0_i32_0 = arith.constant 0 : i32
    return %arg0, %c0_i32 : i32, i32
  }
  func.func @transform_1(%arg0: i32) -> (i32, i32) {
    %c0_i32 = arith.constant 0 : i32
    %c0_i32_0 = arith.constant 0 : i32
    %c0_i32_1 = arith.constant 0 : i32
    return %c0_i32, %c0_i32_0 : i32, i32
  }
  func.func @transform_2(%arg0: i32) -> (i32, i32) {
    %c0_i32 = arith.constant 0 : i32
    %c0_i32_0 = arith.constant 0 : i32
    %c0_i32_1 = arith.constant 0 : i32
    return %c0_i32, %c0_i32_0 : i32, i32
  }
  func.func @transform_3(%arg0: i32) -> (i32, i32) {
    %c0_i32 = arith.constant 0 : i32
    %c0_i32_0 = arith.constant 0 : i32
    return %arg0, %c0_i32 : i32, i32
  }
}

module attributes {stable_mosaic.version = 11 : i64} {
  func.func @_mm_kloop_kernel(%arg0: i32, %arg1: i32, %arg2: i32, %arg3: memref<512x1792xbf16, #tpu.memory_space<vmem>>, %arg4: memref<1792x128xbf16, #tpu.memory_space<vmem>>, %arg5: memref<1x128xf32, #tpu.memory_space<vmem>>, %arg6: memref<512x128xf32, #tpu.memory_space<vmem>>, %arg7: memref<512x128xf32, #tpu.memory_space<vmem>>) attributes {dimension_semantics = [#tpu.dimension_semantics<parallel>, #tpu.dimension_semantics<parallel>, #tpu.dimension_semantics<arbitrary>], iteration_bounds = array<i64: 4, 1, 3>, scalar_prefetch = 0 : i64, scratch_operands = 1 : i64, tpu.core_type = #tpu.core_type<tc>, window_params = [{transform_indices = @transform_0, window_bounds = array<i64: 512, 1792>}, {transform_indices = @transform_1, window_bounds = array<i64: 1792, 128>}, {transform_indices = @transform_2, window_bounds = array<i64: 1, 128>}, {transform_indices = @transform_3, window_bounds = array<i64: 512, 128>}]} {
    %c0_i32 = arith.constant 0 : i32
    %0 = arith.cmpi eq, %arg2, %c0_i32 : i32
    %1 = arith.extui %0 : i1 to i32
    %c0_i32_0 = arith.constant 0 : i32
    %2 = arith.cmpi ne, %1, %c0_i32_0 : i32
    scf.if %2 {
      %cst_9 = arith.constant 0.000000e+00 : f32
      %12 = vector.broadcast %cst_9 : f32 to vector<512x128xf32>
      %c0_10 = arith.constant 0 : index
      %c0_11 = arith.constant 0 : index
      %13 = vector.load %arg7[%c0_10, %c0_11] : memref<512x128xf32, #tpu.memory_space<vmem>>, vector<512x128xf32>
      tpu.vector_store %arg7[%c0_10, %c0_11], %12 {strides = array<i32>} : memref<512x128xf32, #tpu.memory_space<vmem>>, vector<512x128xf32>,
    } else {
    }
    %c0 = arith.constant 0 : index
    %c0_1 = arith.constant 0 : index
    %3 = vector.load %arg7[%c0, %c0_1] : memref<512x128xf32, #tpu.memory_space<vmem>>, vector<512x128xf32>
    %c0_2 = arith.constant 0 : index
    %c0_3 = arith.constant 0 : index
    %4 = vector.load %arg3[%c0_2, %c0_3] : memref<512x1792xbf16, #tpu.memory_space<vmem>>, vector<512x1792xbf16>
    %c0_4 = arith.constant 0 : index
    %c0_5 = arith.constant 0 : index
    %5 = vector.load %arg4[%c0_4, %c0_5] : memref<1792x128xbf16, #tpu.memory_space<vmem>>, vector<1792x128xbf16>
    %cst = arith.constant dense<0.000000e+00> : vector<512x128xf32>
    %6 = tpu.matmul %4, %5, %cst {dimension_numbers = #tpu.dot_dimension_numbers<[1], [0], [0], [1], [0, 0, 1, 1], [], []>} : vector<512x1792xbf16>, vector<1792x128xbf16>, vector<512x128xf32> -> vector<512x128xf32>
    %7 = arith.addf %3, %6 : vector<512x128xf32>
    %c0_6 = arith.constant 0 : index
    %c0_7 = arith.constant 0 : index
    %8 = vector.load %arg7[%c0_6, %c0_7] : memref<512x128xf32, #tpu.memory_space<vmem>>, vector<512x128xf32>
    tpu.vector_store %arg7[%c0_6, %c0_7], %7 {strides = array<i32>} : memref<512x128xf32, #tpu.memory_space<vmem>>, vector<512x128xf32>,
    %c2_i32 = arith.constant 2 : i32
    %9 = arith.cmpi eq, %arg2, %c2_i32 : i32
    %10 = arith.extui %9 : i1 to i32
    %c0_i32_8 = arith.constant 0 : i32
    %11 = arith.cmpi ne, %10, %c0_i32_8 : i32
    scf.if %11 {
      %c0_9 = arith.constant 0 : index
      %c0_10 = arith.constant 0 : index
      %12 = vector.load %arg7[%c0_9, %c0_10] : memref<512x128xf32, #tpu.memory_space<vmem>>, vector<512x128xf32>
      %c0_11 = arith.constant 0 : index
      %c0_12 = arith.constant 0 : index
      %13 = vector.load %arg5[%c0_11, %c0_12] : memref<1x128xf32, #tpu.memory_space<vmem>>, vector<1x128xf32>
      %14 = vector.broadcast %13 : vector<1x128xf32> to vector<512x128xf32>
      %15 = arith.addf %12, %14 : vector<512x128xf32>
      %16 = math.tanh %15 : vector<512x128xf32>
      %cst_13 = arith.constant 1.000000e+00 : f32
      %17 = vector.broadcast %cst_13 : f32 to vector<512x128xf32>
      %18 = arith.addf %16, %17 : vector<512x128xf32>
      %cst_14 = arith.constant 5.000000e-01 : f32
      %19 = vector.broadcast %cst_14 : f32 to vector<512x128xf32>
      %20 = arith.mulf %18, %19 : vector<512x128xf32>
      %c0_15 = arith.constant 0 : index
      %c0_16 = arith.constant 0 : index
      %21 = vector.load %arg6[%c0_15, %c0_16] : memref<512x128xf32, #tpu.memory_space<vmem>>, vector<512x128xf32>
      tpu.vector_store %arg6[%c0_15, %c0_16], %20 {strides = array<i32>} : memref<512x128xf32, #tpu.memory_space<vmem>>, vector<512x128xf32>,
    } else {
    }
    return
  }
  func.func @transform_0(%arg0: i32, %arg1: i32, %arg2: i32) -> (i32, i32) {
    %c0_i32 = arith.constant 0 : i32
    return %arg0, %arg2 : i32, i32
  }
  func.func @transform_1(%arg0: i32, %arg1: i32, %arg2: i32) -> (i32, i32) {
    %c0_i32 = arith.constant 0 : i32
    return %arg2, %arg1 : i32, i32
  }
  func.func @transform_2(%arg0: i32, %arg1: i32, %arg2: i32) -> (i32, i32) {
    %c0_i32 = arith.constant 0 : i32
    %c0_i32_0 = arith.constant 0 : i32
    return %c0_i32, %arg1 : i32, i32
  }
  func.func @transform_3(%arg0: i32, %arg1: i32, %arg2: i32) -> (i32, i32) {
    %c0_i32 = arith.constant 0 : i32
    return %arg0, %arg1 : i32, i32
  }
}

</mosaic_0001>

<bundles_post_ra>
// kernel: tile.118
= control target key start
LH: loop header
LB: loop body
LE: loop exit
PB: predicated region body
PF: predicated region fallthrough
CT: control target
= control target key end

     0   :  { %s22_s0 = inlined_call_operand.vmem [shape: f32[64], index: 0, kind: input, shape index: {}]   ;;  %s23_s1 = inlined_call_operand.vmem [shape: f32[2,64], index: 1, kind: output, shape index: {}]  }
   0x1   :  { %v4_v0 = vld [vmem:[%s22_s0] ss:$0 sm:$0xff] }
   0x2   :  { %5 = vst [vmem:[%s23_s1] sm:$0x3] %v4_v0 }

// kernel: tile.119
= control target key start
LH: loop header
LB: loop body
LE: loop exit
PB: predicated region body
PF: predicated region fallthrough
CT: control target
= control target key end

     0   :  { %vm7_vm0 = vcmask 523264   ;;  %vm13_vm1 = vcmask 1048064   ;;  %s39_s0 = inlined_call_operand.vmem [shape: f32[2,64], index: 0, kind: input, shape index: {}]   ;;  %s40_s1 = inlined_call_operand.vmem [shape: f32[1,128], index: 1, kind: output, shape index: {}]  }
   0x1   :  { %v4_v0 = vld [vmem:[%s39_s0] sm:$0x3]  ;;  %s22_s0 = smov 64  }
   0x2   :  { %5 = vst [vmem:[#allocation1] sm:$0x3] %v4_v0 }
   0x9   :  { %v10_v1 = vld [vmem:[#allocation1 + $0x1] sm:$0x1]   ;;  %v6_v2 = vld [vmem:[#allocation1] sm:$0x1]  }
   0xa   :  { %11 = vrot.lane.b32.xlu0 %v10_v1, %s22_s0  ;;  %8 = vst.msk [vmem:[#allocation0] sm:$0x1] %vm7_vm0, %v6_v2  }
  0x7c   :  { %v12_v3 = vpop.permute.xlu0 %11  }
  0x7d   :  { %14 = vst.msk [vmem:[#allocation0] sm:$0x1] %vm13_vm1, %v12_v3  }
  0x84   :  { %v18_v4 = vld [vmem:[#allocation0] sm:$0x1] }
  0x85   :  { %20 = vst [vmem:[%s40_s1] sm:$0x1] %v18_v4 }

// kernel: _lambda_.30
= control target key start
LH: loop header
LB: loop body
LE: loop exit
PB: predicated region body
PF: predicated region fallthrough
CT: control target
= control target key end

     0   :  { %s148_s0 = inlined_call_operand.vmem [shape: f32[64,128], index: 0, kind: input, shape index: {}]   ;;  %s149_s1 = inlined_call_operand.vmem [shape: f32[1,128], index: 1, kind: input, shape index: {}]   ;;  %s150_s2 = inlined_call_operand.vmem [shape: f32[1,128], index: 2, kind: input, shape index: {}]   ;;  %s151_s3 = inlined_call_operand.vmem [shape: f32[64,128], index: 3, kind: output, shape index: {}]  }
   0x1   :  { %v14_v0 = vld [vmem:[%s148_s0] sm:$0xff]  ;;  %v15_v4 = vld [vmem:[%s148_s0 + $0x8] sm:$0xff]  ;;  %v16_v5 = vld [vmem:[%s148_s0 + $0x10] sm:$0xff] }
   0x2   :  { %v72_v1 = vld [vmem:[%s149_s1] ss:$0 sm:$0xff]  ;;  %v17_v6 = vld [vmem:[%s148_s0 + $0x18] sm:$0xff]  ;;  %v19_v11 = vld [vmem:[%s148_s0 + $0x28] sm:$0xff] }
   0x3   :  { %v73_v2 = vld [vmem:[%s150_s2] ss:$0 sm:$0xff]  ;;  %v29_v3 = vmul.f32 %v72_v1, %v14_v0  ;;  %v30_v7 = vmul.f32 %v72_v1, %v15_v4  ;;  %v31_v8 = vmul.f32 %v72_v1, %v16_v5  ;;  %v32_v9 = vmul.f32 %v72_v1, %v17_v6  ;;  %v20_v12 = vld [vmem:[%s148_s0 + $0x30] sm:$0xff]  ;;  %v21_v17 = vld [vmem:[%s148_s0 + $0x38] sm:$0xff] }
   0x4   :  { %v18_v10 = vld [vmem:[%s148_s0 + $0x20] sm:$0xff]  ;;  %v34_v15 = vmul.f32 %v72_v1, %v19_v11  ;;  %v35_v16 = vmul.f32 %v72_v1, %v20_v12  ;;  %v36_v21 = vmul.f32 %v72_v1, %v21_v17 }
   0x5   :  { %v44_v13 = vadd.f32 %v73_v2, %v29_v3  ;;  %v33_v14 = vmul.f32 %v72_v1, %v18_v10  ;;  %v45_v18 = vadd.f32 %v73_v2, %v30_v7  ;;  %v46_v19 = vadd.f32 %v73_v2, %v31_v8 }
   0x6   :  { %v47_v20 = vadd.f32 %v73_v2, %v32_v9  ;;  %v49_v24 = vadd.f32 %v73_v2, %v34_v15  ;;  %v50_v25 = vadd.f32 %v73_v2, %v35_v16  ;;  %v51_v29 = vadd.f32 %v73_v2, %v36_v21 }
   0x7   :  { %v52_v22 = vmax.f32 %v44_v13, 0.0  ;;  %v48_v23 = vadd.f32 %v73_v2, %v33_v14  ;;  %v53_v26 = vmax.f32 %v45_v18, 0.0  ;;  %v54_v27 = vmax.f32 %v46_v19, 0.0 }
   0x8   :  { %v55_v28 = vmax.f32 %v47_v20, 0.0  ;;  %v57_v31 = vmax.f32 %v49_v24, 0.0  ;;  %v58_v32 = vmax.f32 %v50_v25, 0.0  ;;  %v59_v33 = vmax.f32 %v51_v29, 0.0 }
   0x9   :  { %60 = vst [vmem:[%s151_s3] sm:$0xff] %v52_v22  ;;  %v56_v30 = vmax.f32 %v48_v23, 0.0  ;;  %61 = vst [vmem:[%s151_s3 + $0x8] sm:$0xff] %v53_v26 }
   0xa   :  { %62 = vst [vmem:[%s151_s3 + $0x10] sm:$0xff] %v54_v27  ;;  %63 = vst [vmem:[%s151_s3 + $0x18] sm:$0xff] %v55_v28 }
   0xb   :  { %64 = vst [vmem:[%s151_s3 + $0x20] sm:$0xff] %v56_v30  ;;  %65 = vst [vmem:[%s151_s3 + $0x28] sm:$0xff] %v57_v31 }
   0xc   :  { %66 = vst [vmem:[%s151_s3 + $0x30] sm:$0xff] %v58_v32  ;;  %67 = vst [vmem:[%s151_s3 + $0x38] sm:$0xff] %v59_v33 }

// kernel: _lambda_.29
= control target key start
LH: loop header
LB: loop body
LE: loop exit
PB: predicated region body
PF: predicated region fallthrough
CT: control target
= control target key end

     0   :  { %7 = vsyncpa [#allocation3], 0  ;;  %s547_s9 = smov [#allocation2]   ;;  %s673_s0 = inlined_call_operand.vmem [shape: bf16[128,256], index: 0, kind: input, shape index: {}]   ;;  %s674_s1 = inlined_call_operand.hbm [shape: bf16[256,128], index: 1, kind: input, shape index: {}]   ;;  %s675_s2 = inlined_call_operand.vmem [shape: f32[128,128], index: 2, kind: output, shape index: {}]  }
   0x1   :  { %s15_s10 = sshll.u32 %s547_s9, 4  ;;  %s523_s13 = scalar_lea.hbm %s674_s1, 2048  ;;  %s16_s10 = int_to_ptr.vmem [resolvable:$true] %s15_s10 }
   0x2   :  { %p524_p0 = scmp.ne.s32.totalorder %s674_s1, %s523_s13  ;;  %p527_p1 = scmp.lt.u32.totalorder %s523_s13, %s674_s1 }
   0x4   :  { %p529_p2 = pnand %p527_p1, %p524_p0 }
   0x6   :  { %532 = shalt.err (!%p529_p2)
}
   0x7   :  { %s533_s18 = scalar_lea.vmem %s16_s10, 2048  ;;  %p538_p4 = scmp.lt.s32.totalorder %s16_s10, %s16_s10 }
   0x8   :  { %p534_p3 = scmp.ne.s32.totalorder %s16_s10, %s533_s18  ;;  %p539_p5 = scmp.lt.s32.totalorder %s533_s18, %s533_s18 }
   0xa   :  { %p540_p6 = por %p539_p5, %p538_p4 }
   0xc   :  { %p541_p7 = pnand %p540_p6, %p534_p3 }
   0xe   :  { %544 = shalt.err (!%p541_p7)
}
   0xf   :  { %s548_s19 = smov 64   ;;  %s549_s20 = smov 4  }
  0x10   :  { %21 = dma.hbm_to_vmem [thread:$0]  %s674_s1, 2048, %s16_s10, [#allocation3], %s548_s19, %s548_s19, %s549_s20  }
  0x11   :  { %545 = dma.done.wait [#allocation3], 2048  }
  0x12   :  { %546 = vsyncadd [#allocation3], 4294965248  ;;  %v483_v0 = vld [vmem:[#allocation2 + $0x40] sm:$0xff]   ;;  %v485_v2 = vld [vmem:[#allocation2 + $0x48] sm:$0xff]  }
  0x13   :  { %v484_v1 = vld [vmem:[#allocation2] sm:$0xff]   ;;  %400 = vmatprep.subr.bf16.mxu0 %v483_v0  ;;  %464 = vmatprep.subr.bf16.mxu1 %v483_v0  ;;  %v486_v3 = vld [vmem:[#allocation2 + $0x8] sm:$0xff]   ;;  %v487_v4 = vld [vmem:[#allocation2 + $0x50] sm:$0xff]  }
  0x14   :  { %401 = vmatpush3.bf16.msra.mxu0 %v484_v1  ;;  %472 = vmatpush3.bf16.msra.mxu1 %v484_v1  ;;  %v488_v5 = vld [vmem:[#allocation2 + $0x10] sm:$0xff]   ;;  %v489_v6 = vld [vmem:[#allocation2 + $0x58] sm:$0xff]   ;;  %v491_v8 = vld [vmem:[#allocation2 + $0x60] sm:$0xff]  }
  0x15   :  { %402 = vmatprep.subr.bf16.mxu0 %v485_v2  ;;  %465 = vmatprep.subr.bf16.mxu1 %v485_v2  ;;  %v490_v7 = vld [vmem:[#allocation2 + $0x18] sm:$0xff]   ;;  %v492_v9 = vld [vmem:[#allocation2 + $0x20] sm:$0xff]   ;;  %v493_v10 = vld [vmem:[#allocation2 + $0x68] sm:$0xff]  }
  0x16   :  { %v501_v11 = vld [vmem:[%s673_s0 + $0x4] ss:$8 sps:$4 sm:$0xff]   ;;  %v495_v14 = vld [vmem:[#allocation2 + $0x70] sm:$0xff]   ;;  %v497_v16 = vld [vmem:[#allocation2 + $0x78] sm:$0xff]  }
  0x17   :  { %v504_v12 = vld [vmem:[%s673_s0 + $0x44] ss:$8 sps:$4 sm:$0xff]   ;;  %282 = vmatprep.mubr.bf16.mxu0 %v501_v11  ;;  %v496_v15 = vld [vmem:[#allocation2 + $0x30] sm:$0xff]   ;;  %v498_v17 = vld [vmem:[#allocation2 + $0x38] sm:$0xff]  }
  0x18   :  { %403 = vmatpush3.bf16.msra.mxu0 %v486_v3  ;;  %473 = vmatpush3.bf16.msra.mxu1 %v486_v3  ;;  %v494_v13 = vld [vmem:[#allocation2 + $0x28] sm:$0xff]   ;;  %v505_v20 = vld [vmem:[%s673_s0 + $0x14] ss:$8 sps:$4 sm:$0xff]   ;;  %v509_v22 = vld [vmem:[%s673_s0 + $0x10] ss:$8 sps:$4 sm:$0xff]  }
  0x19   :  { %404 = vmatprep.subr.bf16.mxu0 %v487_v4  ;;  %466 = vmatprep.subr.bf16.mxu1 %v487_v4  ;;  %v499_v18 = vld [vmem:[%s673_s0] ss:$8 sps:$4 sm:$0xff]   ;;  %v507_v21 = vld [vmem:[%s673_s0 + $0x54] ss:$8 sps:$4 sm:$0xff]   ;;  %v510_v23 = vld [vmem:[%s673_s0 + $0x50] ss:$8 sps:$4 sm:$0xff]  }
  0x1a   :  { %314 = vmatprep.mubr.bf16.mxu1 %v504_v12  ;;  %v502_v19 = vld [vmem:[%s673_s0 + $0x40] ss:$8 sps:$4 sm:$0xff]   ;;  %v511_v24 = vld [vmem:[%s673_s0 + $0x24] ss:$8 sps:$4 sm:$0xff]   ;;  %v517_v28 = vld [vmem:[%s673_s0 + $0x34] ss:$8 sps:$4 sm:$0xff]  }
  0x1b   :  { %v513_v25 = vld [vmem:[%s673_s0 + $0x64] ss:$8 sps:$4 sm:$0xff]   ;;  %v515_v26 = vld [vmem:[%s673_s0 + $0x20] ss:$8 sps:$4 sm:$0xff]   ;;  %v519_v29 = vld [vmem:[%s673_s0 + $0x74] ss:$8 sps:$4 sm:$0xff]  }
  0x1c   :  { %405 = vmatpush3.bf16.msra.mxu0 %v488_v5  ;;  %474 = vmatpush3.bf16.msra.mxu1 %v488_v5  ;;  %v516_v27 = vld [vmem:[%s673_s0 + $0x60] ss:$8 sps:$4 sm:$0xff]   ;;  %v521_v30 = vld [vmem:[%s673_s0 + $0x30] ss:$8 sps:$4 sm:$0xff]  }
  0x1d   :  { %406 = vmatprep.subr.bf16.mxu0 %v489_v6  ;;  %467 = vmatprep.subr.bf16.mxu1 %v489_v6  ;;  %v522_v31 = vld [vmem:[%s673_s0 + $0x70] ss:$8 sps:$4 sm:$0xff]  }
  0x20   :  { %407 = vmatpush3.bf16.msra.mxu0 %v490_v7  ;;  %475 = vmatpush3.bf16.msra.mxu1 %v490_v7 }
  0x21   :  { %408 = vmatprep.subr.bf16.mxu0 %v491_v8  ;;  %468 = vmatprep.subr.bf16.mxu1 %v491_v8 }
  0x24   :  { %409 = vmatpush3.bf16.msra.mxu0 %v492_v9  ;;  %476 = vmatpush3.bf16.msra.mxu1 %v492_v9 }
  0x25   :  { %410 = vmatprep.subr.bf16.mxu0 %v493_v10  ;;  %469 = vmatprep.subr.bf16.mxu1 %v493_v10 }
  0x28   :  { %411 = vmatpush3.bf16.msra.mxu0 %v494_v13  ;;  %477 = vmatpush3.bf16.msra.mxu1 %v494_v13 }
  0x29   :  { %412 = vmatprep.subr.bf16.mxu0 %v495_v14  ;;  %470 = vmatprep.subr.bf16.mxu1 %v495_v14 }
  0x2c   :  { %413 = vmatpush3.bf16.msra.mxu0 %v496_v15  ;;  %478 = vmatpush3.bf16.msra.mxu1 %v496_v15 }
  0x2d   :  { %414 = vmatprep.subr.bf16.mxu0 %v497_v16  ;;  %471 = vmatprep.subr.bf16.mxu1 %v497_v16 }
  0x30   :  { %415 = vmatpush3.bf16.msra.mxu0 %v498_v17  ;;  %479 = vmatpush3.bf16.msra.mxu1 %v498_v17 }
  0x33   :  { %283 = vmatmul.mubr.bf16.vlgmr.msra.gmra.mrb[0].mxu0 %v499_v18  ;;  %315 = vmatmul.mubr.bf16.vlgmr.msra.gmra.mrb[0].mxu1 %v502_v19 }
  0x34   :  { %290 = vmatprep.mubr.bf16.mxu0 %v505_v20  ;;  %322 = vmatprep.mubr.bf16.mxu1 %v507_v21 }
  0x3b   :  { %291 = vmatmul.mubr.bf16.gmra.mrb[4].mxu0 %v509_v22  ;;  %323 = vmatmul.mubr.bf16.gmra.mrb[4].mxu1 %v510_v23 }
  0x3c   :  { %298 = vmatprep.mubr.bf16.mxu0 %v511_v24  ;;  %330 = vmatprep.mubr.bf16.mxu1 %v513_v25 }
  0x43   :  { %299 = vmatmul.mubr.bf16.gmra.mrb[8].mxu0 %v515_v26  ;;  %331 = vmatmul.mubr.bf16.gmra.mrb[8].mxu1 %v516_v27 }
  0x44   :  { %306 = vmatprep.mubr.bf16.mxu0 %v517_v28  ;;  %338 = vmatprep.mubr.bf16.mxu1 %v519_v29 }
  0x4b   :  { %307 = vmatmul.mubr.bf16.gmra.mrb[12].mxu0 %v521_v30  ;;  %339 = vmatmul.mubr.bf16.gmra.mrb[12].mxu1 %v522_v31 }
 0x106   :  { %v416_v32 = vpop.f32.mrb[0].mxu0  ;;  %v440_v33 = vpop.f32.mrb[0].mxu1 }
 0x107   :  { %v417_v34 = vpop.f32.mrb[1].mxu0  ;;  %v441_v35 = vpop.f32.mrb[1].mxu1 }
 0x108   :  { %v418_v36 = vadd.f32 %v417_v34, %v416_v32  ;;  %v442_v37 = vadd.f32 %v441_v35, %v440_v33  ;;  %v419_v38 = vpop.f32.mrb[2].mxu0  ;;  %v443_v39 = vpop.f32.mrb[2].mxu1 }
 0x109   :  { %v420_v40 = vpop.f32.mrb[3].mxu0  ;;  %v444_v41 = vpop.f32.mrb[3].mxu1 }
 0x10a   :  { %347 = vst [vmem:[%s675_s2] sm:$0xff] %v418_v36  ;;  %355 = vst [vmem:[%s675_s2 + $0x40] sm:$0xff] %v442_v37  ;;  %v421_v42 = vadd.f32 %v420_v40, %v419_v38  ;;  %v445_v43 = vadd.f32 %v444_v41, %v443_v39 }
 0x10c   :  { %348 = vst [vmem:[%s675_s2 + $0x8] sm:$0xff] %v421_v42  ;;  %356 = vst [vmem:[%s675_s2 + $0x48] sm:$0xff] %v445_v43 }
 0x10e   :  { %v422_v44 = vpop.f32.mrb[4].mxu0  ;;  %v446_v45 = vpop.f32.mrb[4].mxu1 }
 0x10f   :  { %v423_v46 = vpop.f32.mrb[5].mxu0  ;;  %v447_v47 = vpop.f32.mrb[5].mxu1 }
 0x110   :  { %v424_v48 = vadd.f32 %v423_v46, %v422_v44  ;;  %v448_v49 = vadd.f32 %v447_v47, %v446_v45  ;;  %v425_v50 = vpop.f32.mrb[6].mxu0  ;;  %v449_v51 = vpop.f32.mrb[6].mxu1 }
 0x111   :  { %v426_v52 = vpop.f32.mrb[7].mxu0  ;;  %v450_v53 = vpop.f32.mrb[7].mxu1 }
 0x112   :  { %349 = vst [vmem:[%s675_s2 + $0x10] sm:$0xff] %v424_v48  ;;  %357 = vst [vmem:[%s675_s2 + $0x50] sm:$0xff] %v448_v49  ;;  %v427_v54 = vadd.f32 %v426_v52, %v425_v50  ;;  %v451_v55 = vadd.f32 %v450_v53, %v449_v51 }
 0x114   :  { %350 = vst [vmem:[%s675_s2 + $0x18] sm:$0xff] %v427_v54  ;;  %358 = vst [vmem:[%s675_s2 + $0x58] sm:$0xff] %v451_v55 }
 0x116   :  { %v428_v56 = vpop.f32.mrb[8].mxu0  ;;  %v452_v57 = vpop.f32.mrb[8].mxu1 }
 0x117   :  { %v429_v58 = vpop.f32.mrb[9].mxu0  ;;  %v453_v59 = vpop.f32.mrb[9].mxu1 }
 0x118   :  { %v430_v60 = vadd.f32 %v429_v58, %v428_v56  ;;  %v454_v61 = vadd.f32 %v453_v59, %v452_v57  ;;  %v431_v62 = vpop.f32.mrb[10].mxu0  ;;  %v455_v63 = vpop.f32.mrb[10].mxu1 }
 0x119   :  { %v432_v0 = vpop.f32.mrb[11].mxu0  ;;  %v456_v1 = vpop.f32.mrb[11].mxu1 }
 0x11a   :  { %351 = vst [vmem:[%s675_s2 + $0x20] sm:$0xff] %v430_v60  ;;  %359 = vst [vmem:[%s675_s2 + $0x60] sm:$0xff] %v454_v61  ;;  %v433_v2 = vadd.f32 %v432_v0, %v431_v62  ;;  %v457_v3 = vadd.f32 %v456_v1, %v455_v63 }
 0x11c   :  { %352 = vst [vmem:[%s675_s2 + $0x28] sm:$0xff] %v433_v2  ;;  %360 = vst [vmem:[%s675_s2 + $0x68] sm:$0xff] %v457_v3 }
 0x11e   :  { %v434_v4 = vpop.f32.mrb[12].mxu0  ;;  %v458_v5 = vpop.f32.mrb[12].mxu1 }
 0x11f   :  { %v435_v6 = vpop.f32.mrb[13].mxu0  ;;  %v459_v7 = vpop.f32.mrb[13].mxu1 }
 0x120   :  { %v436_v8 = vadd.f32 %v435_v6, %v434_v4  ;;  %v460_v9 = vadd.f32 %v459_v7, %v458_v5  ;;  %v437_v10 = vpop.f32.mrb[14].mxu0  ;;  %v461_v11 = vpop.f32.mrb[14].mxu1 }
 0x121   :  { %v438_v12 = vpop.f32.mrb[15].mxu0  ;;  %v462_v13 = vpop.f32.mrb[15].mxu1 }
 0x122   :  { %353 = vst [vmem:[%s675_s2 + $0x30] sm:$0xff] %v436_v8  ;;  %361 = vst [vmem:[%s675_s2 + $0x70] sm:$0xff] %v460_v9  ;;  %v439_v14 = vadd.f32 %v438_v12, %v437_v10  ;;  %v463_v15 = vadd.f32 %v462_v13, %v461_v11 }
 0x124   :  { %354 = vst [vmem:[%s675_s2 + $0x38] sm:$0xff] %v439_v14  ;;  %362 = vst [vmem:[%s675_s2 + $0x78] sm:$0xff] %v463_v15 }
 0x125   :  { %367 = vsyncpa [#allocation3], 1 }

// kernel: _lambda_.34
= control target key start
LH: loop header
LB: loop body
LE: loop exit
PB: predicated region body
PF: predicated region fallthrough
CT: control target
= control target key end

     0   :  { %s188_s0 = inlined_call_operand.vmem [shape: f32[64,128], index: 0, kind: input, shape index: {}]   ;;  %s189_s1 = inlined_call_operand.vmem [shape: f32[1,128], index: 1, kind: input, shape index: {}]   ;;  %s190_s2 = inlined_call_operand.vmem [shape: f32[1,128], index: 2, kind: input, shape index: {}]   ;;  %s191_s3 = inlined_call_operand.vmem [shape: f32[64,128], index: 3, kind: input, shape index: {}]   ;;  %s192_s4 = inlined_call_operand.vmem [shape: f32[64,128], index: 4, kind: output, shape index: {}]  }
   0x1   :  { %v17_v0 = vld [vmem:[%s188_s0] sm:$0xff]  ;;  %v18_v4 = vld [vmem:[%s188_s0 + $0x8] sm:$0xff]  ;;  %v19_v7 = vld [vmem:[%s188_s0 + $0x10] sm:$0xff] }
   0x2   :  { %v83_v1 = vld [vmem:[%s189_s1] ss:$0 sm:$0xff]  ;;  %v20_v8 = vld [vmem:[%s188_s0 + $0x18] sm:$0xff]  ;;  %v56_v10 = vld [vmem:[%s191_s3 + $0x8] sm:$0xff] }
   0x3   :  { %v84_v2 = vld [vmem:[%s190_s2] ss:$0 sm:$0xff]  ;;  %v32_v3 = vmul.f32 %v83_v1, %v17_v0  ;;  %v33_v6 = vmul.f32 %v83_v1, %v18_v4  ;;  %v34_v11 = vmul.f32 %v83_v1, %v19_v7  ;;  %v57_v12 = vld [vmem:[%s191_s3 + $0x10] sm:$0xff]  ;;  %v35_v13 = vmul.f32 %v83_v1, %v20_v8  ;;  %v58_v16 = vld [vmem:[%s191_s3 + $0x18] sm:$0xff] }
   0x4   :  { %v55_v5 = vld [vmem:[%s191_s3] sm:$0xff]  ;;  %v22_v18 = vld [vmem:[%s188_s0 + $0x28] sm:$0xff]  ;;  %v23_v19 = vld [vmem:[%s188_s0 + $0x30] sm:$0xff] }
   0x5   :  { %v47_v9 = vadd.f32 %v84_v2, %v32_v3  ;;  %v21_v14 = vld [vmem:[%s188_s0 + $0x20] sm:$0xff]  ;;  %v48_v15 = vadd.f32 %v84_v2, %v33_v6  ;;  %v49_v21 = vadd.f32 %v84_v2, %v34_v11  ;;  %v50_v22 = vadd.f32 %v84_v2, %v35_v13  ;;  %v24_v25 = vld [vmem:[%s188_s0 + $0x38] sm:$0xff]  ;;  %v60_v28 = vld [vmem:[%s191_s3 + $0x28] sm:$0xff] }
   0x6   :  { %v36_v17 = vmul.f32 %v83_v1, %v21_v14  ;;  %v59_v23 = vld [vmem:[%s191_s3 + $0x20] sm:$0xff]  ;;  %v37_v24 = vmul.f32 %v83_v1, %v22_v18  ;;  %v38_v29 = vmul.f32 %v83_v1, %v23_v19  ;;  %v39_v30 = vmul.f32 %v83_v1, %v24_v25  ;;  %v61_v34 = vld [vmem:[%s191_s3 + $0x30] sm:$0xff]  ;;  %v62_v35 = vld [vmem:[%s191_s3 + $0x38] sm:$0xff] }
   0x7   :  { %v63_v20 = vadd.f32 %v55_v5, %v47_v9  ;;  %v64_v26 = vadd.f32 %v56_v10, %v48_v15  ;;  %v65_v31 = vadd.f32 %v57_v12, %v49_v21  ;;  %v66_v32 = vadd.f32 %v58_v16, %v50_v22 }
   0x8   :  { %v51_v27 = vadd.f32 %v84_v2, %v36_v17  ;;  %v52_v33 = vadd.f32 %v84_v2, %v37_v24  ;;  %v53_v37 = vadd.f32 %v84_v2, %v38_v29  ;;  %v54_v38 = vadd.f32 %v84_v2, %v39_v30 }
   0x9   :  { %71 = vst [vmem:[%s192_s4] sm:$0xff] %v63_v20  ;;  %72 = vst [vmem:[%s192_s4 + $0x8] sm:$0xff] %v64_v26 }
   0xa   :  { %v67_v36 = vadd.f32 %v59_v23, %v51_v27  ;;  %73 = vst [vmem:[%s192_s4 + $0x10] sm:$0xff] %v65_v31  ;;  %74 = vst [vmem:[%s192_s4 + $0x18] sm:$0xff] %v66_v32  ;;  %v68_v39 = vadd.f32 %v60_v28, %v52_v33  ;;  %v69_v40 = vadd.f32 %v61_v34, %v53_v37 }
   0xb   :  { %v70_v41 = vadd.f32 %v62_v35, %v54_v38 }
   0xc   :  { %75 = vst [vmem:[%s192_s4 + $0x20] sm:$0xff] %v67_v36  ;;  %76 = vst [vmem:[%s192_s4 + $0x28] sm:$0xff] %v68_v39 }
   0xd   :  { %77 = vst [vmem:[%s192_s4 + $0x30] sm:$0xff] %v69_v40  ;;  %78 = vst [vmem:[%s192_s4 + $0x38] sm:$0xff] %v70_v41 }

// kernel: _lambda_.31
= control target key start
LH: loop header
LB: loop body
LE: loop exit
PB: predicated region body
PF: predicated region fallthrough
CT: control target
= control target key end

     0   :  { %7 = vsyncpa [#allocation3], 0  ;;  %s1309_s9 = smov [#allocation2]   ;;  %s1534_s0 = inlined_call_operand.vmem [shape: bf16[128,640], index: 0, kind: input, shape index: {}]   ;;  %s1535_s1 = inlined_call_operand.hbm [shape: bf16[640,128], index: 1, kind: input, shape index: {}]   ;;  %s1536_s2 = inlined_call_operand.vmem [shape: f32[128,128], index: 2, kind: output, shape index: {}]  }
   0x1   :  { %s15_s10 = sshll.u32 %s1309_s9, 4  ;;  %s1285_s13 = scalar_lea.hbm %s1535_s1, 5120  ;;  %s16_s10 = int_to_ptr.vmem [resolvable:$true] %s15_s10 }
   0x2   :  { %p1286_p0 = scmp.ne.s32.totalorder %s1535_s1, %s1285_s13  ;;  %p1289_p1 = scmp.lt.u32.totalorder %s1285_s13, %s1535_s1 }
   0x4   :  { %p1291_p2 = pnand %p1289_p1, %p1286_p0 }
   0x6   :  { %1294 = shalt.err (!%p1291_p2)
}
   0x7   :  { %s1295_s18 = scalar_lea.vmem %s16_s10, 5120  ;;  %p1300_p4 = scmp.lt.s32.totalorder %s16_s10, %s16_s10 }
   0x8   :  { %p1296_p3 = scmp.ne.s32.totalorder %s16_s10, %s1295_s18  ;;  %p1301_p5 = scmp.lt.s32.totalorder %s1295_s18, %s1295_s18 }
   0xa   :  { %p1302_p6 = por %p1301_p5, %p1300_p4 }
   0xc   :  { %p1303_p7 = pnand %p1302_p6, %p1296_p3 }
   0xe   :  { %1306 = shalt.err (!%p1303_p7)
}
   0xf   :  { %s1310_s19 = smov 64   ;;  %s1311_s20 = smov 4  }
  0x10   :  { %21 = dma.hbm_to_vmem [thread:$0]  %s1535_s1, 5120, %s16_s10, [#allocation3], %s1310_s19, %s1310_s19, %s1311_s20  }
  0x11   :  { %1307 = dma.done.wait [#allocation3], 5120  }
  0x12   :  { %1308 = vsyncadd [#allocation3], 4294962176  ;;  %v1189_v0 = vld [vmem:[#allocation2 + $0x40] sm:$0xff]   ;;  %v1193_v4 = vld [vmem:[#allocation2 + $0x48] sm:$0xff]  }
  0x13   :  { %v1190_v1 = vld [vmem:[#allocation2 + $0xc0] sm:$0xff]   ;;  %994 = vmatprep.subr.bf16.mxu0 %v1189_v0  ;;  %v1194_v5 = vld [vmem:[#allocation2 + $0xc8] sm:$0xff]   ;;  %v1197_v8 = vld [vmem:[#allocation2 + $0x50] sm:$0xff]  }
  0x14   :  { %v1191_v2 = vld [vmem:[#allocation2] sm:$0xff]   ;;  %1058 = vmatprep.subr.bf16.mxu1 %v1190_v1  ;;  %v1195_v6 = vld [vmem:[#allocation2 + $0x8] sm:$0xff]   ;;  %v1198_v9 = vld [vmem:[#allocation2 + $0xd0] sm:$0xff]  }
  0x15   :  { %v1192_v3 = vld [vmem:[#allocation2 + $0x80] sm:$0xff]   ;;  %995 = vmatpush3.bf16.msra.mxu0 %v1191_v2  ;;  %v1196_v7 = vld [vmem:[#allocation2 + $0x88] sm:$0xff]   ;;  %v1199_v10 = vld [vmem:[#allocation2 + $0x10] sm:$0xff]  }
  0x16   :  { %1059 = vmatpush3.bf16.msra.mxu1 %v1192_v3  ;;  %996 = vmatprep.subr.bf16.mxu0 %v1193_v4  ;;  %v1200_v11 = vld [vmem:[#allocation2 + $0x90] sm:$0xff]   ;;  %v1201_v12 = vld [vmem:[#allocation2 + $0x58] sm:$0xff]   ;;  %v1205_v16 = vld [vmem:[#allocation2 + $0x60] sm:$0xff]  }
  0x17   :  { %1060 = vmatprep.subr.bf16.mxu1 %v1194_v5  ;;  %v1202_v13 = vld [vmem:[#allocation2 + $0xd8] sm:$0xff]   ;;  %v1206_v17 = vld [vmem:[#allocation2 + $0xe0] sm:$0xff]   ;;  %v1209_v20 = vld [vmem:[#allocation2 + $0x68] sm:$0xff]  }
  0x18   :  { %v1203_v14 = vld [vmem:[#allocation2 + $0x18] sm:$0xff]   ;;  %v1207_v18 = vld [vmem:[#allocation2 + $0x20] sm:$0xff]   ;;  %v1210_v21 = vld [vmem:[#allocation2 + $0xe8] sm:$0xff]  }
  0x19   :  { %997 = vmatpush3.bf16.msra.mxu0 %v1195_v6  ;;  %v1204_v15 = vld [vmem:[#allocation2 + $0x98] sm:$0xff]   ;;  %v1208_v19 = vld [vmem:[#allocation2 + $0xa0] sm:$0xff]   ;;  %v1211_v22 = vld [vmem:[#allocation2 + $0x28] sm:$0xff]  }
  0x1a   :  { %1061 = vmatpush3.bf16.msra.mxu1 %v1196_v7  ;;  %998 = vmatprep.subr.bf16.mxu0 %v1197_v8  ;;  %v1212_v23 = vld [vmem:[#allocation2 + $0xa8] sm:$0xff]   ;;  %v1213_v24 = vld [vmem:[#allocation2 + $0x70] sm:$0xff]   ;;  %v1217_v28 = vld [vmem:[#allocation2 + $0x78] sm:$0xff]  }
  0x1b   :  { %1062 = vmatprep.subr.bf16.mxu1 %v1198_v9  ;;  %v1214_v25 = vld [vmem:[#allocation2 + $0xf0] sm:$0xff]   ;;  %v1218_v29 = vld [vmem:[#allocation2 + $0xf8] sm:$0xff]   ;;  %v1226_v35 = vld [vmem:[%s1534_s0 + $0xc] ss:$20 sps:$4 sm:$0xff]  }
  0x1c   :  { %v1215_v26 = vld [vmem:[#allocation2 + $0x30] sm:$0xff]   ;;  %v1219_v30 = vld [vmem:[#allocation2 + $0x38] sm:$0xff]   ;;  %v1227_v36 = vld [vmem:[#allocation2 + $0x100] sm:$0xff]   ;;  %731 = vmatprep.mubr.bf16.mxu1 %v1226_v35 }
  0x1d   :  { %999 = vmatpush3.bf16.msra.mxu0 %v1199_v10  ;;  %v1216_v27 = vld [vmem:[#allocation2 + $0xb0] sm:$0xff]   ;;  %v1220_v31 = vld [vmem:[#allocation2 + $0xb8] sm:$0xff]   ;;  %v1228_v37 = vld [vmem:[%s1534_s0 + $0x2c] ss:$20 sps:$4 sm:$0xff]  }
  0x1e   :  { %1063 = vmatpush3.bf16.msra.mxu1 %v1200_v11  ;;  %1000 = vmatprep.subr.bf16.mxu0 %v1201_v12  ;;  %v1221_v32 = vld [vmem:[%s1534_s0] ss:$20 sps:$4 sm:$0xff]   ;;  %v1223_v33 = vld [vmem:[%s1534_s0 + $0x4] ss:$20 sps:$4 sm:$0xff]   ;;  %v1224_v34 = vld [vmem:[%s1534_s0 + $0x8] ss:$20 sps:$4 sm:$0xff]  }
  0x1f   :  { %1064 = vmatprep.subr.bf16.mxu1 %v1202_v13  ;;  %634 = vmatprep.mubr.bf16.mxu0 %v1223_v33  ;;  %v1230_v38 = vld [vmem:[%s1534_s0 + $0x34] ss:$20 sps:$4 sm:$0xff]   ;;  %v1233_v41 = vld [vmem:[%s1534_s0 + $0x30] ss:$20 sps:$4 sm:$0xff]   ;;  %v1248_v45 = vld [vmem:[#allocation2 + $0x118] sm:$0xff]  }
  0x20   :  { %v1234_v39 = vld [vmem:[#allocation2 + $0x108] sm:$0xff]   ;;  %v1237_v43 = vld [vmem:[%s1534_s0 + $0x5c] ss:$20 sps:$4 sm:$0xff]   ;;  %v1244_v49 = vld [vmem:[%s1534_s0 + $0x84] ss:$20 sps:$4 sm:$0xff]  }
  0x21   :  { %1001 = vmatpush3.bf16.msra.mxu0 %v1203_v14  ;;  %v1232_v40 = vld [vmem:[%s1534_s0 + $0x28] ss:$20 sps:$4 sm:$0xff]   ;;  %v1241_v44 = vld [vmem:[#allocation2 + $0x110] sm:$0xff]   ;;  %v1240_v47 = vld [vmem:[%s1534_s0 + $0x58] ss:$20 sps:$4 sm:$0xff]  }
  0x22   :  { %1065 = vmatpush3.bf16.msra.mxu1 %v1204_v15  ;;  %1002 = vmatprep.subr.bf16.mxu0 %v1205_v16  ;;  %v1235_v42 = vld [vmem:[%s1534_s0 + $0x54] ss:$20 sps:$4 sm:$0xff]   ;;  %v1239_v46 = vld [vmem:[%s1534_s0 + $0x50] ss:$20 sps:$4 sm:$0xff]   ;;  %v1246_v52 = vld [vmem:[%s1534_s0 + $0x78] ss:$20 sps:$4 sm:$0xff]  }
  0x23   :  { %1066 = vmatprep.subr.bf16.mxu1 %v1206_v17  ;;  %v1242_v48 = vld [vmem:[%s1534_s0 + $0x7c] ss:$20 sps:$4 sm:$0xff]   ;;  %v1255_v50 = vld [vmem:[#allocation2 + $0x120] sm:$0xff]   ;;  %v1262_v51 = vld [vmem:[#allocation2 + $0x128] sm:$0xff]  }
  0x24   :  { %v1247_v53 = vld [vmem:[%s1534_s0 + $0x80] ss:$20 sps:$4 sm:$0xff]   ;;  %v1249_v54 = vld [vmem:[%s1534_s0 + $0xa4] ss:$20 sps:$4 sm:$0xff]   ;;  %v1254_v59 = vld [vmem:[%s1534_s0 + $0xa8] ss:$20 sps:$4 sm:$0xff]  }
  0x25   :  { %1003 = vmatpush3.bf16.msra.mxu0 %v1207_v18  ;;  %v1269_v55 = vld [vmem:[#allocation2 + $0x130] sm:$0xff]   ;;  %v1251_v56 = vld [vmem:[%s1534_s0 + $0xac] ss:$20 sps:$4 sm:$0xff]   ;;  %v1276_v57 = vld [vmem:[#allocation2 + $0x138] sm:$0xff]  }
  0x26   :  { %1067 = vmatpush3.bf16.msra.mxu1 %v1208_v19  ;;  %1004 = vmatprep.subr.bf16.mxu0 %v1209_v20  ;;  %v1253_v58 = vld [vmem:[%s1534_s0 + $0xa0] ss:$20 sps:$4 sm:$0xff]   ;;  %v1260_v62 = vld [vmem:[%s1534_s0 + $0xc8] ss:$20 sps:$4 sm:$0xff]   ;;  %v1261_v63 = vld [vmem:[%s1534_s0 + $0xd0] ss:$20 sps:$4 sm:$0xff]  }
  0x27   :  { %1068 = vmatprep.subr.bf16.mxu1 %v1210_v21  ;;  %v1256_v60 = vld [vmem:[%s1534_s0 + $0xcc] ss:$20 sps:$4 sm:$0xff]   ;;  %v1258_v61 = vld [vmem:[%s1534_s0 + $0xd4] ss:$20 sps:$4 sm:$0xff]   ;;  %v1265_v1 = vld [vmem:[%s1534_s0 + $0xfc] ss:$20 sps:$4 sm:$0xff]  }
  0x28   :  { %v1263_v0 = vld [vmem:[%s1534_s0 + $0xf4] ss:$20 sps:$4 sm:$0xff]   ;;  %v1267_v2 = vld [vmem:[%s1534_s0 + $0xf0] ss:$20 sps:$4 sm:$0xff]   ;;  %v1268_v3 = vld [vmem:[%s1534_s0 + $0xf8] ss:$20 sps:$4 sm:$0xff]  }
  0x29   :  { %1005 = vmatpush3.bf16.msra.mxu0 %v1211_v22  ;;  %v1270_v4 = vld [vmem:[%s1534_s0 + $0x11c] ss:$20 sps:$4 sm:$0xff]   ;;  %v1272_v5 = vld [vmem:[%s1534_s0 + $0x124] ss:$20 sps:$4 sm:$0xff]   ;;  %v1275_v7 = vld [vmem:[%s1534_s0 + $0x120] ss:$20 sps:$4 sm:$0xff]  }
  0x2a   :  { %1069 = vmatpush3.bf16.msra.mxu1 %v1212_v23  ;;  %1006 = vmatprep.subr.bf16.mxu0 %v1213_v24  ;;  %v1274_v6 = vld [vmem:[%s1534_s0 + $0x118] ss:$20 sps:$4 sm:$0xff]   ;;  %v1277_v8 = vld [vmem:[%s1534_s0 + $0x10] ss:$20 sps:$4 sm:$0xff]   ;;  %v1281_v12 = vld [vmem:[%s1534_s0 + $0x60] ss:$20 sps:$4 sm:$0xff]  }
  0x2b   :  { %1070 = vmatprep.subr.bf16.mxu1 %v1214_v25  ;;  %v1278_v9 = vld [vmem:[%s1534_s0 + $0xb0] ss:$20 sps:$4 sm:$0xff]   ;;  %v1279_v10 = vld [vmem:[%s1534_s0 + $0x38] ss:$20 sps:$4 sm:$0xff]   ;;  %v1282_v13 = vld [vmem:[%s1534_s0 + $0x100] ss:$20 sps:$4 sm:$0xff]  }
  0x2c   :  { %v1280_v11 = vld [vmem:[%s1534_s0 + $0xd8] ss:$20 sps:$4 sm:$0xff]   ;;  %v1283_v14 = vld [vmem:[%s1534_s0 + $0x88] ss:$20 sps:$4 sm:$0xff]  }
  0x2d   :  { %1007 = vmatpush3.bf16.msra.mxu0 %v1215_v26  ;;  %v1284_v15 = vld [vmem:[%s1534_s0 + $0x128] ss:$20 sps:$4 sm:$0xff]  }
  0x2e   :  { %1071 = vmatpush3.bf16.msra.mxu1 %v1216_v27  ;;  %1008 = vmatprep.subr.bf16.mxu0 %v1217_v28 }
  0x2f   :  { %1072 = vmatprep.subr.bf16.mxu1 %v1218_v29 }
  0x31   :  { %1009 = vmatpush3.bf16.msra.mxu0 %v1219_v30 }
  0x32   :  { %1073 = vmatpush3.bf16.msra.mxu1 %v1220_v31  ;;  %1138 = vmatprep.subr.bf16.mxu0 %v1227_v36 }
  0x33   :  { %1170 = vmatprep.subr.bf16.mxu1 %v1227_v36 }
  0x34   :  { %635 = vmatmul.mubr.bf16.vlgmr.msra.gmra.mrb[0].mxu0 %v1221_v32 }
  0x35   :  { %732 = vmatmul.mubr.bf16.vlgmr.msra.gmra.mrb[0].mxu1 %v1224_v34  ;;  %1139 = vmatpush3.bf16.msra.mxu0 %v1227_v36 }
  0x36   :  { %1178 = vmatpush3.bf16.msra.mxu1 %v1227_v36  ;;  %642 = vmatprep.mubr.bf16.mxu0 %v1228_v37 }
  0x37   :  { %739 = vmatprep.mubr.bf16.mxu1 %v1230_v38  ;;  %1140 = vmatprep.subr.bf16.mxu0 %v1234_v39 }
  0x38   :  { %1171 = vmatprep.subr.bf16.mxu1 %v1234_v39 }
  0x39   :  { %1141 = vmatpush3.bf16.msra.mxu0 %v1234_v39 }
  0x3a   :  { %1179 = vmatpush3.bf16.msra.mxu1 %v1234_v39  ;;  %1142 = vmatprep.subr.bf16.mxu0 %v1241_v44 }
  0x3b   :  { %1172 = vmatprep.subr.bf16.mxu1 %v1241_v44 }
  0x3c   :  { %643 = vmatmul.mubr.bf16.gmra.mrb[4].mxu0 %v1232_v40 }
  0x3d   :  { %740 = vmatmul.mubr.bf16.gmra.mrb[4].mxu1 %v1233_v41  ;;  %650 = vmatprep.mubr.bf16.mxu0 %v1235_v42 }
  0x3e   :  { %747 = vmatprep.mubr.bf16.mxu1 %v1237_v43  ;;  %1143 = vmatpush3.bf16.msra.mxu0 %v1241_v44 }
  0x3f   :  { %1180 = vmatpush3.bf16.msra.mxu1 %v1241_v44  ;;  %1144 = vmatprep.subr.bf16.mxu0 %v1248_v45 }
  0x40   :  { %1173 = vmatprep.subr.bf16.mxu1 %v1248_v45 }
  0x42   :  { %1145 = vmatpush3.bf16.msra.mxu0 %v1248_v45 }
  0x43   :  { %1181 = vmatpush3.bf16.msra.mxu1 %v1248_v45  ;;  %1146 = vmatprep.subr.bf16.mxu0 %v1255_v50 }
  0x44   :  { %651 = vmatmul.mubr.bf16.gmra.mrb[8].mxu0 %v1239_v46  ;;  %1174 = vmatprep.subr.bf16.mxu1 %v1255_v50 }
  0x45   :  { %748 = vmatmul.mubr.bf16.gmra.mrb[8].mxu1 %v1240_v47  ;;  %658 = vmatprep.mubr.bf16.mxu0 %v1242_v48 }
  0x46   :  { %755 = vmatprep.mubr.bf16.mxu1 %v1244_v49  ;;  %1147 = vmatpush3.bf16.msra.mxu0 %v1255_v50 }
  0x47   :  { %1182 = vmatpush3.bf16.msra.mxu1 %v1255_v50  ;;  %1148 = vmatprep.subr.bf16.mxu0 %v1262_v51 }
  0x48   :  { %1175 = vmatprep.subr.bf16.mxu1 %v1262_v51 }
  0x4a   :  { %1149 = vmatpush3.bf16.msra.mxu0 %v1262_v51 }
  0x4b   :  { %1183 = vmatpush3.bf16.msra.mxu1 %v1262_v51  ;;  %1150 = vmatprep.subr.bf16.mxu0 %v1269_v55 }
  0x4c   :  { %659 = vmatmul.mubr.bf16.gmra.mrb[12].mxu0 %v1246_v52  ;;  %1176 = vmatprep.subr.bf16.mxu1 %v1269_v55 }
  0x4d   :  { %756 = vmatmul.mubr.bf16.gmra.mrb[12].mxu1 %v1247_v53  ;;  %666 = vmatprep.mubr.bf16.mxu0 %v1249_v54 }
  0x4e   :  { %763 = vmatprep.mubr.bf16.mxu1 %v1251_v56  ;;  %1151 = vmatpush3.bf16.msra.mxu0 %v1269_v55 }
  0x4f   :  { %1184 = vmatpush3.bf16.msra.mxu1 %v1269_v55  ;;  %1152 = vmatprep.subr.bf16.mxu0 %v1276_v57 }
  0x50   :  { %1177 = vmatprep.subr.bf16.mxu1 %v1276_v57 }
  0x52   :  { %1153 = vmatpush3.bf16.msra.mxu0 %v1276_v57 }
  0x53   :  { %1185 = vmatpush3.bf16.msra.mxu1 %v1276_v57 }
  0x54   :  { %667 = vmatmul.mubr.bf16.gmra.mrb[16].mxu0 %v1253_v58 }
  0x55   :  { %764 = vmatmul.mubr.bf16.gmra.mrb[16].mxu1 %v1254_v59  ;;  %674 = vmatprep.mubr.bf16.mxu0 %v1256_v60 }
  0x56   :  { %771 = vmatprep.mubr.bf16.mxu1 %v1258_v61 }
  0x5c   :  { %675 = vmatmul.mubr.bf16.gmra.mrb[20].mxu0 %v1260_v62 }
  0x5d   :  { %772 = vmatmul.mubr.bf16.gmra.mrb[20].mxu1 %v1261_v63  ;;  %682 = vmatprep.mubr.bf16.mxu0 %v1263_v0 }
  0x5e   :  { %779 = vmatprep.mubr.bf16.mxu1 %v1265_v1 }
  0x64   :  { %683 = vmatmul.mubr.bf16.gmra.mrb[24].mxu0 %v1267_v2 }
  0x65   :  { %780 = vmatmul.mubr.bf16.gmra.mrb[24].mxu1 %v1268_v3  ;;  %690 = vmatprep.mubr.bf16.mxu0 %v1270_v4 }
  0x66   :  { %787 = vmatprep.mubr.bf16.mxu1 %v1272_v5 }
  0x6c   :  { %691 = vmatmul.mubr.bf16.gmra.mrb[28].mxu0 %v1274_v6 }
  0x6d   :  { %788 = vmatmul.mubr.bf16.gmra.mrb[28].mxu1 %v1275_v7  ;;  %1154 = vmatprep.mubr.bf16.mxu0 %v1277_v8 }
  0x6e   :  { %1162 = vmatprep.mubr.bf16.mxu1 %v1278_v9 }
  0x74   :  { %1155 = vmatmul.mubr.bf16.vlgmr.msra.gmra.mrb[32].mxu0 %v1279_v10 }
  0x75   :  { %1163 = vmatmul.mubr.bf16.vlgmr.msra.gmra.mrb[32].mxu1 %v1280_v11  ;;  %1158 = vmatprep.mubr.bf16.mxu0 %v1281_v12 }
  0x76   :  { %1166 = vmatprep.mubr.bf16.mxu1 %v1282_v13 }
  0x7c   :  { %1159 = vmatmul.mubr.bf16.gmra.mrb[36].mxu0 %v1283_v14 }
  0x7d   :  { %1167 = vmatmul.mubr.bf16.gmra.mrb[36].mxu1 %v1284_v15 }
 0x107   :  { %v1010_v16 = vpop.f32.mrb[0].mxu0 }
 0x108   :  { %v1074_v17 = vpop.f32.mrb[0].mxu1  ;;  %v1011_v18 = vpop.f32.mrb[1].mxu0 }
 0x109   :  { %v1012_v19 = vadd.f32 %v1011_v18, %v1010_v16  ;;  %v1075_v20 = vpop.f32.mrb[1].mxu1  ;;  %v1013_v21 = vpop.f32.mrb[2].mxu0 }
 0x10a   :  { %v1076_v22 = vadd.f32 %v1075_v20, %v1074_v17  ;;  %v1077_v23 = vpop.f32.mrb[2].mxu1  ;;  %v1014_v24 = vpop.f32.mrb[3].mxu0 }
 0x10b   :  { %v1015_v25 = vadd.f32 %v1014_v24, %v1013_v21  ;;  %v1078_v26 = vpop.f32.mrb[3].mxu1 }
 0x10c   :  { %v1079_v27 = vadd.f32 %v1078_v26, %v1077_v23  ;;  %v1459_v28 = vadd.f32 %v1076_v22, %v1012_v19 }
 0x10e   :  { %v1461_v29 = vadd.f32 %v1079_v27, %v1015_v25 }
 0x10f   :  { %v1016_v30 = vpop.f32.mrb[4].mxu0 }
 0x110   :  { %v1080_v31 = vpop.f32.mrb[4].mxu1  ;;  %v1017_v32 = vpop.f32.mrb[5].mxu0 }
 0x111   :  { %v1018_v33 = vadd.f32 %v1017_v32, %v1016_v30  ;;  %v1081_v34 = vpop.f32.mrb[5].mxu1  ;;  %v1019_v35 = vpop.f32.mrb[6].mxu0 }
 0x112   :  { %v1082_v36 = vadd.f32 %v1081_v34, %v1080_v31  ;;  %v1083_v37 = vpop.f32.mrb[6].mxu1  ;;  %v1020_v38 = vpop.f32.mrb[7].mxu0 }
 0x113   :  { %v1021_v39 = vadd.f32 %v1020_v38, %v1019_v35  ;;  %v1084_v40 = vpop.f32.mrb[7].mxu1 }
 0x114   :  { %v1085_v41 = vadd.f32 %v1084_v40, %v1083_v37  ;;  %v1463_v42 = vadd.f32 %v1082_v36, %v1018_v33 }
 0x116   :  { %v1465_v43 = vadd.f32 %v1085_v41, %v1021_v39 }
 0x117   :  { %v1022_v44 = vpop.f32.mrb[8].mxu0 }
 0x118   :  { %v1086_v45 = vpop.f32.mrb[8].mxu1  ;;  %v1023_v46 = vpop.f32.mrb[9].mxu0 }
 0x119   :  { %v1024_v47 = vadd.f32 %v1023_v46, %v1022_v44  ;;  %v1087_v48 = vpop.f32.mrb[9].mxu1  ;;  %v1025_v49 = vpop.f32.mrb[10].mxu0 }
 0x11a   :  { %v1088_v50 = vadd.f32 %v1087_v48, %v1086_v45  ;;  %v1089_v51 = vpop.f32.mrb[10].mxu1  ;;  %v1026_v52 = vpop.f32.mrb[11].mxu0 }
 0x11b   :  { %v1027_v53 = vadd.f32 %v1026_v52, %v1025_v49  ;;  %v1090_v54 = vpop.f32.mrb[11].mxu1 }
 0x11c   :  { %v1091_v55 = vadd.f32 %v1090_v54, %v1089_v51  ;;  %v1467_v56 = vadd.f32 %v1088_v50, %v1024_v47 }
 0x11e   :  { %v1469_v57 = vadd.f32 %v1091_v55, %v1027_v53 }
 0x11f   :  { %v1028_v58 = vpop.f32.mrb[12].mxu0 }
 0x120   :  { %v1092_v59 = vpop.f32.mrb[12].mxu1  ;;  %v1029_v60 = vpop.f32.mrb[13].mxu0 }
 0x121   :  { %v1030_v61 = vadd.f32 %v1029_v60, %v1028_v58  ;;  %v1093_v62 = vpop.f32.mrb[13].mxu1  ;;  %v1031_v63 = vpop.f32.mrb[14].mxu0 }
 0x122   :  { %v1094_v0 = vadd.f32 %v1093_v62, %v1092_v59  ;;  %v1095_v1 = vpop.f32.mrb[14].mxu1  ;;  %v1032_v2 = vpop.f32.mrb[15].mxu0 }
 0x123   :  { %v1033_v3 = vadd.f32 %v1032_v2, %v1031_v63  ;;  %v1096_v4 = vpop.f32.mrb[15].mxu1 }
 0x124   :  { %v1097_v5 = vadd.f32 %v1096_v4, %v1095_v1  ;;  %v1471_v6 = vadd.f32 %v1094_v0, %v1030_v61 }
 0x126   :  { %v1473_v7 = vadd.f32 %v1097_v5, %v1033_v3 }
 0x127   :  { %v1034_v8 = vpop.f32.mrb[16].mxu0 }
 0x128   :  { %v1098_v9 = vpop.f32.mrb[16].mxu1  ;;  %v1035_v10 = vpop.f32.mrb[17].mxu0 }
 0x129   :  { %v1036_v11 = vadd.f32 %v1035_v10, %v1034_v8  ;;  %v1099_v12 = vpop.f32.mrb[17].mxu1  ;;  %v1037_v13 = vpop.f32.mrb[18].mxu0 }
 0x12a   :  { %v1100_v14 = vadd.f32 %v1099_v12, %v1098_v9  ;;  %v1101_v15 = vpop.f32.mrb[18].mxu1  ;;  %v1038_v16 = vpop.f32.mrb[19].mxu0 }
 0x12b   :  { %v1039_v17 = vadd.f32 %v1038_v16, %v1037_v13  ;;  %v1102_v18 = vpop.f32.mrb[19].mxu1 }
 0x12c   :  { %v1103_v19 = vadd.f32 %v1102_v18, %v1101_v15  ;;  %v766_v20 = vadd.f32 %v1100_v14, %v1036_v11 }
 0x12e   :  { %v1475_v21 = vadd.f32 %v1103_v19, %v1039_v17 }
 0x12f   :  { %v1040_v22 = vpop.f32.mrb[20].mxu0 }
 0x130   :  { %v1104_v23 = vpop.f32.mrb[20].mxu1  ;;  %v1041_v24 = vpop.f32.mrb[21].mxu0 }
 0x131   :  { %v1042_v25 = vadd.f32 %v1041_v24, %v1040_v22  ;;  %v1105_v26 = vpop.f32.mrb[21].mxu1  ;;  %v1043_v27 = vpop.f32.mrb[22].mxu0 }
 0x132   :  { %v1106_v30 = vadd.f32 %v1105_v26, %v1104_v23  ;;  %v1107_v31 = vpop.f32.mrb[22].mxu1  ;;  %v1044_v32 = vpop.f32.mrb[23].mxu0 }
 0x133   :  { %v1045_v33 = vadd.f32 %v1044_v32, %v1043_v27  ;;  %v1108_v34 = vpop.f32.mrb[23].mxu1 }
 0x134   :  { %v1109_v35 = vadd.f32 %v1108_v34, %v1107_v31  ;;  %v774_v36 = vadd.f32 %v1106_v30, %v1042_v25 }
 0x136   :  { %v777_v37 = vadd.f32 %v1109_v35, %v1045_v33 }
 0x137   :  { %v1046_v38 = vpop.f32.mrb[24].mxu0 }
 0x138   :  { %v1110_v39 = vpop.f32.mrb[24].mxu1  ;;  %v1047_v40 = vpop.f32.mrb[25].mxu0 }
 0x139   :  { %v1048_v41 = vadd.f32 %v1047_v40, %v1046_v38  ;;  %v1111_v44 = vpop.f32.mrb[25].mxu1  ;;  %v1049_v45 = vpop.f32.mrb[26].mxu0 }
 0x13a   :  { %v1112_v46 = vadd.f32 %v1111_v44, %v1110_v39  ;;  %v1113_v47 = vpop.f32.mrb[26].mxu1  ;;  %v1050_v48 = vpop.f32.mrb[27].mxu0 }
 0x13b   :  { %v1051_v49 = vadd.f32 %v1050_v48, %v1049_v45  ;;  %v1114_v50 = vpop.f32.mrb[27].mxu1 }
 0x13c   :  { %v1115_v51 = vadd.f32 %v1114_v50, %v1113_v47  ;;  %v782_v52 = vadd.f32 %v1112_v46, %v1048_v41 }
 0x13e   :  { %v785_v53 = vadd.f32 %v1115_v51, %v1051_v49 }
 0x13f   :  { %v1052_v54 = vpop.f32.mrb[28].mxu0 }
 0x140   :  { %v1116_v55 = vpop.f32.mrb[28].mxu1  ;;  %v1053_v58 = vpop.f32.mrb[29].mxu0 }
 0x141   :  { %v1054_v59 = vadd.f32 %v1053_v58, %v1052_v54  ;;  %v1117_v60 = vpop.f32.mrb[29].mxu1  ;;  %v1055_v61 = vpop.f32.mrb[30].mxu0 }
 0x142   :  { %v1118_v62 = vadd.f32 %v1117_v60, %v1116_v55  ;;  %v1119_v63 = vpop.f32.mrb[30].mxu1  ;;  %v1056_v0 = vpop.f32.mrb[31].mxu0 }
 0x143   :  { %v1057_v1 = vadd.f32 %v1056_v0, %v1055_v61  ;;  %v1120_v2 = vpop.f32.mrb[31].mxu1 }
 0x144   :  { %v1121_v3 = vadd.f32 %v1120_v2, %v1119_v63  ;;  %v790_v4 = vadd.f32 %v1118_v62, %v1054_v59 }
 0x146   :  { %v793_v5 = vadd.f32 %v1121_v3, %v1057_v1 }
 0x147   :  { %v1156_v8 = vpop.f32.mrb[32].mxu0 }
 0x148   :  { %v839_v9 = vadd.f32 %v1156_v8, %v1463_v42  ;;  %v1164_v10 = vpop.f32.mrb[32].mxu1  ;;  %v830_v11 = vpop.f32.mrb[33].mxu0 }
 0x149   :  { %v871_v12 = vadd.f32 %v1164_v10, %v774_v36  ;;  %v831_v13 = vadd.f32 %v830_v11, %v1459_v28  ;;  %v862_v14 = vpop.f32.mrb[33].mxu1  ;;  %v1157_v15 = vpop.f32.mrb[34].mxu0 }
 0x14a   :  { %895 = vst [vmem:[%s1536_s2 + $0x10] sm:$0xff] %v839_v9  ;;  %v863_v16 = vadd.f32 %v862_v14, %v766_v20  ;;  %v842_v17 = vadd.f32 %v1157_v15, %v1465_v43  ;;  %v1165_v18 = vpop.f32.mrb[34].mxu1  ;;  %v833_v19 = vpop.f32.mrb[35].mxu0 }
 0x14b   :  { %903 = vst [vmem:[%s1536_s2 + $0x50] sm:$0xff] %v871_v12  ;;  %893 = vst [vmem:[%s1536_s2] sm:$0xff] %v831_v13  ;;  %v874_v28 = vadd.f32 %v1165_v18, %v777_v37  ;;  %v834_v42 = vadd.f32 %v833_v19, %v1461_v29  ;;  %v865_v22 = vpop.f32.mrb[35].mxu1 }
 0x14c   :  { %901 = vst [vmem:[%s1536_s2 + $0x40] sm:$0xff] %v863_v16  ;;  %896 = vst [vmem:[%s1536_s2 + $0x18] sm:$0xff] %v842_v17  ;;  %v866_v43 = vadd.f32 %v865_v22, %v1475_v21 }
 0x14d   :  { %904 = vst [vmem:[%s1536_s2 + $0x58] sm:$0xff] %v874_v28  ;;  %894 = vst [vmem:[%s1536_s2 + $0x8] sm:$0xff] %v834_v42 }
 0x14e   :  { %902 = vst [vmem:[%s1536_s2 + $0x48] sm:$0xff] %v866_v43 }
 0x14f   :  { %v1160_v29 = vpop.f32.mrb[36].mxu0 }
 0x150   :  { %v855_v20 = vadd.f32 %v1160_v29, %v1471_v6  ;;  %v1168_v23 = vpop.f32.mrb[36].mxu1  ;;  %v846_v24 = vpop.f32.mrb[37].mxu0 }
 0x151   :  { %v887_v25 = vadd.f32 %v1168_v23, %v790_v4  ;;  %v847_v21 = vadd.f32 %v846_v24, %v1467_v56  ;;  %v878_v26 = vpop.f32.mrb[37].mxu1  ;;  %v1161_v27 = vpop.f32.mrb[38].mxu0 }
 0x152   :  { %899 = vst [vmem:[%s1536_s2 + $0x30] sm:$0xff] %v855_v20  ;;  %v879_v30 = vadd.f32 %v878_v26, %v782_v52  ;;  %v858_v31 = vadd.f32 %v1161_v27, %v1473_v7  ;;  %v1169_v32 = vpop.f32.mrb[38].mxu1  ;;  %v849_v33 = vpop.f32.mrb[39].mxu0 }
 0x153   :  { %907 = vst [vmem:[%s1536_s2 + $0x70] sm:$0xff] %v887_v25  ;;  %897 = vst [vmem:[%s1536_s2 + $0x20] sm:$0xff] %v847_v21  ;;  %v890_v56 = vadd.f32 %v1169_v32, %v793_v5  ;;  %v850_v6 = vadd.f32 %v849_v33, %v1469_v57  ;;  %v881_v34 = vpop.f32.mrb[39].mxu1 }
 0x154   :  { %905 = vst [vmem:[%s1536_s2 + $0x60] sm:$0xff] %v879_v30  ;;  %900 = vst [vmem:[%s1536_s2 + $0x38] sm:$0xff] %v858_v31  ;;  %v882_v7 = vadd.f32 %v881_v34, %v785_v53 }
 0x155   :  { %908 = vst [vmem:[%s1536_s2 + $0x78] sm:$0xff] %v890_v56  ;;  %898 = vst [vmem:[%s1536_s2 + $0x28] sm:$0xff] %v850_v6 }
 0x156   :  { %906 = vst [vmem:[%s1536_s2 + $0x68] sm:$0xff] %v882_v7 }
 0x157   :  { %913 = vsyncpa [#allocation3], 1 }

// kernel: _lambda_.45
= control target key start
LH: loop header
LB: loop body
LE: loop exit
PB: predicated region body
PF: predicated region fallthrough
CT: control target
= control target key end

     0   :  { %s1597_s1 = inlined_call_operand.vmem [shape: bf16[640,128], index: 1, kind: input, shape index: {}]   ;;  %s1598_s0 = inlined_call_operand.vmem [shape: bf16[128,640], index: 0, kind: input, shape index: {}]   ;;  %s1599_s2 = inlined_call_operand.vmem [shape: f32[128,128], index: 2, kind: output, shape index: {}]  }
   0x1   :  { %v1171_v0 = vld [vmem:[%s1597_s1 + $0x40] sm:$0xff]   ;;  %v1175_v4 = vld [vmem:[%s1597_s1 + $0x48] sm:$0xff]   ;;  %v1179_v8 = vld [vmem:[%s1597_s1 + $0x50] sm:$0xff]  }
   0x2   :  { %v1172_v1 = vld [vmem:[%s1597_s1 + $0xc0] sm:$0xff]   ;;  %979 = vmatprep.subr.bf16.mxu0 %v1171_v0  ;;  %v1176_v5 = vld [vmem:[%s1597_s1 + $0xc8] sm:$0xff]   ;;  %v1180_v9 = vld [vmem:[%s1597_s1 + $0xd0] sm:$0xff]  }
   0x3   :  { %v1173_v2 = vld [vmem:[%s1597_s1] sm:$0xff]   ;;  %1043 = vmatprep.subr.bf16.mxu1 %v1172_v1  ;;  %v1177_v6 = vld [vmem:[%s1597_s1 + $0x8] sm:$0xff]   ;;  %v1181_v10 = vld [vmem:[%s1597_s1 + $0x10] sm:$0xff]  }
   0x4   :  { %v1174_v3 = vld [vmem:[%s1597_s1 + $0x80] sm:$0xff]   ;;  %980 = vmatpush3.bf16.msra.mxu0 %v1173_v2  ;;  %v1178_v7 = vld [vmem:[%s1597_s1 + $0x88] sm:$0xff]   ;;  %v1182_v11 = vld [vmem:[%s1597_s1 + $0x90] sm:$0xff]  }
   0x5   :  { %1044 = vmatpush3.bf16.msra.mxu1 %v1174_v3  ;;  %981 = vmatprep.subr.bf16.mxu0 %v1175_v4  ;;  %v1183_v12 = vld [vmem:[%s1597_s1 + $0x58] sm:$0xff]   ;;  %v1187_v16 = vld [vmem:[%s1597_s1 + $0x60] sm:$0xff]   ;;  %v1191_v20 = vld [vmem:[%s1597_s1 + $0x68] sm:$0xff]  }
   0x6   :  { %1045 = vmatprep.subr.bf16.mxu1 %v1176_v5  ;;  %v1184_v13 = vld [vmem:[%s1597_s1 + $0xd8] sm:$0xff]   ;;  %v1188_v17 = vld [vmem:[%s1597_s1 + $0xe0] sm:$0xff]   ;;  %v1192_v21 = vld [vmem:[%s1597_s1 + $0xe8] sm:$0xff]  }
   0x7   :  { %v1185_v14 = vld [vmem:[%s1597_s1 + $0x18] sm:$0xff]   ;;  %v1189_v18 = vld [vmem:[%s1597_s1 + $0x20] sm:$0xff]   ;;  %v1193_v22 = vld [vmem:[%s1597_s1 + $0x28] sm:$0xff]  }
   0x8   :  { %982 = vmatpush3.bf16.msra.mxu0 %v1177_v6  ;;  %v1186_v15 = vld [vmem:[%s1597_s1 + $0x98] sm:$0xff]   ;;  %v1190_v19 = vld [vmem:[%s1597_s1 + $0xa0] sm:$0xff]   ;;  %v1194_v23 = vld [vmem:[%s1597_s1 + $0xa8] sm:$0xff]  }
   0x9   :  { %1046 = vmatpush3.bf16.msra.mxu1 %v1178_v7  ;;  %983 = vmatprep.subr.bf16.mxu0 %v1179_v8  ;;  %v1195_v24 = vld [vmem:[%s1597_s1 + $0x70] sm:$0xff]   ;;  %v1199_v28 = vld [vmem:[%s1597_s1 + $0x78] sm:$0xff]   ;;  %v1208_v35 = vld [vmem:[%s1598_s0 + $0xc] ss:$20 sps:$4 sm:$0xff]  }
   0xa   :  { %1047 = vmatprep.subr.bf16.mxu1 %v1180_v9  ;;  %v1196_v25 = vld [vmem:[%s1597_s1 + $0xf0] sm:$0xff]   ;;  %v1200_v29 = vld [vmem:[%s1597_s1 + $0xf8] sm:$0xff]   ;;  %v1209_v36 = vld [vmem:[%s1597_s1 + $0x100] sm:$0xff]   ;;  %717 = vmatprep.mubr.bf16.mxu1 %v1208_v35 }
   0xb   :  { %v1197_v26 = vld [vmem:[%s1597_s1 + $0x30] sm:$0xff]   ;;  %v1201_v30 = vld [vmem:[%s1597_s1 + $0x38] sm:$0xff]   ;;  %v1210_v37 = vld [vmem:[%s1598_s0 + $0x2c] ss:$20 sps:$4 sm:$0xff]  }
   0xc   :  { %984 = vmatpush3.bf16.msra.mxu0 %v1181_v10  ;;  %v1198_v27 = vld [vmem:[%s1597_s1 + $0xb0] sm:$0xff]   ;;  %v1202_v31 = vld [vmem:[%s1597_s1 + $0xb8] sm:$0xff]   ;;  %v1216_v39 = vld [vmem:[%s1597_s1 + $0x108] sm:$0xff]  }
   0xd   :  { %1048 = vmatpush3.bf16.msra.mxu1 %v1182_v11  ;;  %985 = vmatprep.subr.bf16.mxu0 %v1183_v12  ;;  %v1203_v32 = vld [vmem:[%s1598_s0] ss:$20 sps:$4 sm:$0xff]   ;;  %v1205_v33 = vld [vmem:[%s1598_s0 + $0x4] ss:$20 sps:$4 sm:$0xff]   ;;  %v1206_v34 = vld [vmem:[%s1598_s0 + $0x8] ss:$20 sps:$4 sm:$0xff]  }
   0xe   :  { %1049 = vmatprep.subr.bf16.mxu1 %v1184_v13  ;;  %620 = vmatprep.mubr.bf16.mxu0 %v1205_v33  ;;  %v1212_v38 = vld [vmem:[%s1598_s0 + $0x34] ss:$20 sps:$4 sm:$0xff]   ;;  %v1215_v41 = vld [vmem:[%s1598_s0 + $0x30] ss:$20 sps:$4 sm:$0xff]   ;;  %v1230_v45 = vld [vmem:[%s1597_s1 + $0x118] sm:$0xff]  }
   0xf   :  { %v1214_v40 = vld [vmem:[%s1598_s0 + $0x28] ss:$20 sps:$4 sm:$0xff]   ;;  %v1223_v44 = vld [vmem:[%s1597_s1 + $0x110] sm:$0xff]   ;;  %v1222_v47 = vld [vmem:[%s1598_s0 + $0x58] ss:$20 sps:$4 sm:$0xff]  }
  0x10   :  { %986 = vmatpush3.bf16.msra.mxu0 %v1185_v14  ;;  %v1217_v42 = vld [vmem:[%s1598_s0 + $0x54] ss:$20 sps:$4 sm:$0xff]   ;;  %v1219_v43 = vld [vmem:[%s1598_s0 + $0x5c] ss:$20 sps:$4 sm:$0xff]   ;;  %v1226_v49 = vld [vmem:[%s1598_s0 + $0x84] ss:$20 sps:$4 sm:$0xff]  }
  0x11   :  { %1050 = vmatpush3.bf16.msra.mxu1 %v1186_v15  ;;  %987 = vmatprep.subr.bf16.mxu0 %v1187_v16  ;;  %v1221_v46 = vld [vmem:[%s1598_s0 + $0x50] ss:$20 sps:$4 sm:$0xff]   ;;  %v1244_v51 = vld [vmem:[%s1597_s1 + $0x128] sm:$0xff]   ;;  %v1229_v53 = vld [vmem:[%s1598_s0 + $0x80] ss:$20 sps:$4 sm:$0xff]  }
  0x12   :  { %1051 = vmatprep.subr.bf16.mxu1 %v1188_v17  ;;  %v1224_v48 = vld [vmem:[%s1598_s0 + $0x7c] ss:$20 sps:$4 sm:$0xff]   ;;  %v1237_v50 = vld [vmem:[%s1597_s1 + $0x120] sm:$0xff]   ;;  %v1228_v52 = vld [vmem:[%s1598_s0 + $0x78] ss:$20 sps:$4 sm:$0xff]  }
  0x13   :  { %v1231_v54 = vld [vmem:[%s1598_s0 + $0xa4] ss:$20 sps:$4 sm:$0xff]   ;;  %v1251_v55 = vld [vmem:[%s1597_s1 + $0x130] sm:$0xff]   ;;  %v1233_v56 = vld [vmem:[%s1598_s0 + $0xac] ss:$20 sps:$4 sm:$0xff]  }
  0x14   :  { %988 = vmatpush3.bf16.msra.mxu0 %v1189_v18  ;;  %v1258_v57 = vld [vmem:[%s1597_s1 + $0x138] sm:$0xff]   ;;  %v1235_v58 = vld [vmem:[%s1598_s0 + $0xa0] ss:$20 sps:$4 sm:$0xff]   ;;  %v1243_v63 = vld [vmem:[%s1598_s0 + $0xd0] ss:$20 sps:$4 sm:$0xff]  }
  0x15   :  { %1052 = vmatpush3.bf16.msra.mxu1 %v1190_v19  ;;  %989 = vmatprep.subr.bf16.mxu0 %v1191_v20  ;;  %v1236_v59 = vld [vmem:[%s1598_s0 + $0xa8] ss:$20 sps:$4 sm:$0xff]   ;;  %v1238_v60 = vld [vmem:[%s1598_s0 + $0xcc] ss:$20 sps:$4 sm:$0xff]   ;;  %v1249_v2 = vld [vmem:[%s1598_s0 + $0xf0] ss:$20 sps:$4 sm:$0xff]  }
  0x16   :  { %1053 = vmatprep.subr.bf16.mxu1 %v1192_v21  ;;  %v1240_v61 = vld [vmem:[%s1598_s0 + $0xd4] ss:$20 sps:$4 sm:$0xff]   ;;  %v1247_v1 = vld [vmem:[%s1598_s0 + $0xfc] ss:$20 sps:$4 sm:$0xff]   ;;  %v1250_v3 = vld [vmem:[%s1598_s0 + $0xf8] ss:$20 sps:$4 sm:$0xff]  }
  0x17   :  { %v1242_v62 = vld [vmem:[%s1598_s0 + $0xc8] ss:$20 sps:$4 sm:$0xff]   ;;  %v1254_v5 = vld [vmem:[%s1598_s0 + $0x124] ss:$20 sps:$4 sm:$0xff]   ;;  %v1257_v7 = vld [vmem:[%s1598_s0 + $0x120] ss:$20 sps:$4 sm:$0xff]  }
  0x18   :  { %990 = vmatpush3.bf16.msra.mxu0 %v1193_v22  ;;  %v1245_v0 = vld [vmem:[%s1598_s0 + $0xf4] ss:$20 sps:$4 sm:$0xff]   ;;  %v1252_v4 = vld [vmem:[%s1598_s0 + $0x11c] ss:$20 sps:$4 sm:$0xff]   ;;  %v1256_v6 = vld [vmem:[%s1598_s0 + $0x118] ss:$20 sps:$4 sm:$0xff]  }
  0x19   :  { %1054 = vmatpush3.bf16.msra.mxu1 %v1194_v23  ;;  %991 = vmatprep.subr.bf16.mxu0 %v1195_v24  ;;  %v1259_v8 = vld [vmem:[%s1598_s0 + $0x10] ss:$20 sps:$4 sm:$0xff]   ;;  %v1261_v10 = vld [vmem:[%s1598_s0 + $0x38] ss:$20 sps:$4 sm:$0xff]   ;;  %v1263_v12 = vld [vmem:[%s1598_s0 + $0x60] ss:$20 sps:$4 sm:$0xff]  }
  0x1a   :  { %1055 = vmatprep.subr.bf16.mxu1 %v1196_v25  ;;  %v1260_v9 = vld [vmem:[%s1598_s0 + $0xb0] ss:$20 sps:$4 sm:$0xff]   ;;  %v1262_v11 = vld [vmem:[%s1598_s0 + $0xd8] ss:$20 sps:$4 sm:$0xff]   ;;  %v1264_v13 = vld [vmem:[%s1598_s0 + $0x100] ss:$20 sps:$4 sm:$0xff]  }
  0x1b   :  { %v1265_v14 = vld [vmem:[%s1598_s0 + $0x88] ss:$20 sps:$4 sm:$0xff]  }
  0x1c   :  { %992 = vmatpush3.bf16.msra.mxu0 %v1197_v26  ;;  %v1266_v15 = vld [vmem:[%s1598_s0 + $0x128] ss:$20 sps:$4 sm:$0xff]  }
  0x1d   :  { %1056 = vmatpush3.bf16.msra.mxu1 %v1198_v27  ;;  %993 = vmatprep.subr.bf16.mxu0 %v1199_v28 }
  0x1e   :  { %1057 = vmatprep.subr.bf16.mxu1 %v1200_v29 }
  0x20   :  { %994 = vmatpush3.bf16.msra.mxu0 %v1201_v30 }
  0x21   :  { %1058 = vmatpush3.bf16.msra.mxu1 %v1202_v31  ;;  %1123 = vmatprep.subr.bf16.mxu0 %v1209_v36 }
  0x22   :  { %1155 = vmatprep.subr.bf16.mxu1 %v1209_v36 }
  0x23   :  { %621 = vmatmul.mubr.bf16.vlgmr.msra.gmra.mrb[0].mxu0 %v1203_v32 }
  0x24   :  { %718 = vmatmul.mubr.bf16.vlgmr.msra.gmra.mrb[0].mxu1 %v1206_v34  ;;  %1124 = vmatpush3.bf16.msra.mxu0 %v1209_v36 }
  0x25   :  { %1163 = vmatpush3.bf16.msra.mxu1 %v1209_v36  ;;  %628 = vmatprep.mubr.bf16.mxu0 %v1210_v37 }
  0x26   :  { %725 = vmatprep.mubr.bf16.mxu1 %v1212_v38  ;;  %1125 = vmatprep.subr.bf16.mxu0 %v1216_v39 }
  0x27   :  { %1156 = vmatprep.subr.bf16.mxu1 %v1216_v39 }
  0x28   :  { %1126 = vmatpush3.bf16.msra.mxu0 %v1216_v39 }
  0x29   :  { %1164 = vmatpush3.bf16.msra.mxu1 %v1216_v39  ;;  %1127 = vmatprep.subr.bf16.mxu0 %v1223_v44 }
  0x2a   :  { %1157 = vmatprep.subr.bf16.mxu1 %v1223_v44 }
  0x2b   :  { %629 = vmatmul.mubr.bf16.gmra.mrb[4].mxu0 %v1214_v40 }
  0x2c   :  { %726 = vmatmul.mubr.bf16.gmra.mrb[4].mxu1 %v1215_v41  ;;  %636 = vmatprep.mubr.bf16.mxu0 %v1217_v42 }
  0x2d   :  { %733 = vmatprep.mubr.bf16.mxu1 %v1219_v43  ;;  %1128 = vmatpush3.bf16.msra.mxu0 %v1223_v44 }
  0x2e   :  { %1165 = vmatpush3.bf16.msra.mxu1 %v1223_v44  ;;  %1129 = vmatprep.subr.bf16.mxu0 %v1230_v45 }
  0x2f   :  { %1158 = vmatprep.subr.bf16.mxu1 %v1230_v45 }
  0x31   :  { %1130 = vmatpush3.bf16.msra.mxu0 %v1230_v45 }
  0x32   :  { %1166 = vmatpush3.bf16.msra.mxu1 %v1230_v45  ;;  %1131 = vmatprep.subr.bf16.mxu0 %v1237_v50 }
  0x33   :  { %637 = vmatmul.mubr.bf16.gmra.mrb[8].mxu0 %v1221_v46  ;;  %1159 = vmatprep.subr.bf16.mxu1 %v1237_v50 }
  0x34   :  { %734 = vmatmul.mubr.bf16.gmra.mrb[8].mxu1 %v1222_v47  ;;  %644 = vmatprep.mubr.bf16.mxu0 %v1224_v48 }
  0x35   :  { %741 = vmatprep.mubr.bf16.mxu1 %v1226_v49  ;;  %1132 = vmatpush3.bf16.msra.mxu0 %v1237_v50 }
  0x36   :  { %1167 = vmatpush3.bf16.msra.mxu1 %v1237_v50  ;;  %1133 = vmatprep.subr.bf16.mxu0 %v1244_v51 }
  0x37   :  { %1160 = vmatprep.subr.bf16.mxu1 %v1244_v51 }
  0x39   :  { %1134 = vmatpush3.bf16.msra.mxu0 %v1244_v51 }
  0x3a   :  { %1168 = vmatpush3.bf16.msra.mxu1 %v1244_v51  ;;  %1135 = vmatprep.subr.bf16.mxu0 %v1251_v55 }
  0x3b   :  { %645 = vmatmul.mubr.bf16.gmra.mrb[12].mxu0 %v1228_v52  ;;  %1161 = vmatprep.subr.bf16.mxu1 %v1251_v55 }
  0x3c   :  { %742 = vmatmul.mubr.bf16.gmra.mrb[12].mxu1 %v1229_v53  ;;  %652 = vmatprep.mubr.bf16.mxu0 %v1231_v54 }
  0x3d   :  { %749 = vmatprep.mubr.bf16.mxu1 %v1233_v56  ;;  %1136 = vmatpush3.bf16.msra.mxu0 %v1251_v55 }
  0x3e   :  { %1169 = vmatpush3.bf16.msra.mxu1 %v1251_v55  ;;  %1137 = vmatprep.subr.bf16.mxu0 %v1258_v57 }
  0x3f   :  { %1162 = vmatprep.subr.bf16.mxu1 %v1258_v57 }
  0x41   :  { %1138 = vmatpush3.bf16.msra.mxu0 %v1258_v57 }
  0x42   :  { %1170 = vmatpush3.bf16.msra.mxu1 %v1258_v57 }
  0x43   :  { %653 = vmatmul.mubr.bf16.gmra.mrb[16].mxu0 %v1235_v58 }
  0x44   :  { %750 = vmatmul.mubr.bf16.gmra.mrb[16].mxu1 %v1236_v59  ;;  %660 = vmatprep.mubr.bf16.mxu0 %v1238_v60 }
  0x45   :  { %757 = vmatprep.mubr.bf16.mxu1 %v1240_v61 }
  0x4b   :  { %661 = vmatmul.mubr.bf16.gmra.mrb[20].mxu0 %v1242_v62 }
  0x4c   :  { %758 = vmatmul.mubr.bf16.gmra.mrb[20].mxu1 %v1243_v63  ;;  %668 = vmatprep.mubr.bf16.mxu0 %v1245_v0 }
  0x4d   :  { %765 = vmatprep.mubr.bf16.mxu1 %v1247_v1 }
  0x53   :  { %669 = vmatmul.mubr.bf16.gmra.mrb[24].mxu0 %v1249_v2 }
  0x54   :  { %766 = vmatmul.mubr.bf16.gmra.mrb[24].mxu1 %v1250_v3  ;;  %676 = vmatprep.mubr.bf16.mxu0 %v1252_v4 }
  0x55   :  { %773 = vmatprep.mubr.bf16.mxu1 %v1254_v5 }
  0x5b   :  { %677 = vmatmul.mubr.bf16.gmra.mrb[28].mxu0 %v1256_v6 }
  0x5c   :  { %774 = vmatmul.mubr.bf16.gmra.mrb[28].mxu1 %v1257_v7  ;;  %1139 = vmatprep.mubr.bf16.mxu0 %v1259_v8 }
  0x5d   :  { %1147 = vmatprep.mubr.bf16.mxu1 %v1260_v9 }
  0x63   :  { %1140 = vmatmul.mubr.bf16.vlgmr.msra.gmra.mrb[32].mxu0 %v1261_v10 }
  0x64   :  { %1148 = vmatmul.mubr.bf16.vlgmr.msra.gmra.mrb[32].mxu1 %v1262_v11  ;;  %1143 = vmatprep.mubr.bf16.mxu0 %v1263_v12 }
  0x65   :  { %1151 = vmatprep.mubr.bf16.mxu1 %v1264_v13 }
  0x6b   :  { %1144 = vmatmul.mubr.bf16.gmra.mrb[36].mxu0 %v1265_v14 }
  0x6c   :  { %1152 = vmatmul.mubr.bf16.gmra.mrb[36].mxu1 %v1266_v15 }
  0xf6   :  { %v995_v16 = vpop.f32.mrb[0].mxu0 }
  0xf7   :  { %v1059_v17 = vpop.f32.mrb[0].mxu1  ;;  %v996_v18 = vpop.f32.mrb[1].mxu0 }
  0xf8   :  { %v997_v19 = vadd.f32 %v996_v18, %v995_v16  ;;  %v1060_v20 = vpop.f32.mrb[1].mxu1  ;;  %v998_v21 = vpop.f32.mrb[2].mxu0 }
  0xf9   :  { %v1061_v22 = vadd.f32 %v1060_v20, %v1059_v17  ;;  %v1062_v23 = vpop.f32.mrb[2].mxu1  ;;  %v999_v24 = vpop.f32.mrb[3].mxu0 }
  0xfa   :  { %v1000_v25 = vadd.f32 %v999_v24, %v998_v21  ;;  %v1063_v26 = vpop.f32.mrb[3].mxu1 }
  0xfb   :  { %v1064_v27 = vadd.f32 %v1063_v26, %v1062_v23  ;;  %v1522_v28 = vadd.f32 %v1061_v22, %v997_v19 }
  0xfd   :  { %v1524_v29 = vadd.f32 %v1064_v27, %v1000_v25 }
  0xfe   :  { %v1001_v30 = vpop.f32.mrb[4].mxu0 }
  0xff   :  { %v1065_v31 = vpop.f32.mrb[4].mxu1  ;;  %v1002_v32 = vpop.f32.mrb[5].mxu0 }
 0x100   :  { %v1003_v33 = vadd.f32 %v1002_v32, %v1001_v30  ;;  %v1066_v34 = vpop.f32.mrb[5].mxu1  ;;  %v1004_v35 = vpop.f32.mrb[6].mxu0 }
 0x101   :  { %v1067_v36 = vadd.f32 %v1066_v34, %v1065_v31  ;;  %v1068_v37 = vpop.f32.mrb[6].mxu1  ;;  %v1005_v38 = vpop.f32.mrb[7].mxu0 }
 0x102   :  { %v1006_v39 = vadd.f32 %v1005_v38, %v1004_v35  ;;  %v1069_v40 = vpop.f32.mrb[7].mxu1 }
 0x103   :  { %v1070_v41 = vadd.f32 %v1069_v40, %v1068_v37  ;;  %v1526_v42 = vadd.f32 %v1067_v36, %v1003_v33 }
 0x105   :  { %v1528_v43 = vadd.f32 %v1070_v41, %v1006_v39 }
 0x106   :  { %v1007_v44 = vpop.f32.mrb[8].mxu0 }
 0x107   :  { %v1071_v45 = vpop.f32.mrb[8].mxu1  ;;  %v1008_v46 = vpop.f32.mrb[9].mxu0 }
 0x108   :  { %v1009_v47 = vadd.f32 %v1008_v46, %v1007_v44  ;;  %v1072_v48 = vpop.f32.mrb[9].mxu1  ;;  %v1010_v49 = vpop.f32.mrb[10].mxu0 }
 0x109   :  { %v1073_v50 = vadd.f32 %v1072_v48, %v1071_v45  ;;  %v1074_v51 = vpop.f32.mrb[10].mxu1  ;;  %v1011_v52 = vpop.f32.mrb[11].mxu0 }
 0x10a   :  { %v1012_v53 = vadd.f32 %v1011_v52, %v1010_v49  ;;  %v1075_v54 = vpop.f32.mrb[11].mxu1 }
 0x10b   :  { %v1076_v55 = vadd.f32 %v1075_v54, %v1074_v51  ;;  %v1530_v56 = vadd.f32 %v1073_v50, %v1009_v47 }
 0x10d   :  { %v1532_v57 = vadd.f32 %v1076_v55, %v1012_v53 }
 0x10e   :  { %v1013_v58 = vpop.f32.mrb[12].mxu0 }
 0x10f   :  { %v1077_v59 = vpop.f32.mrb[12].mxu1  ;;  %v1014_v60 = vpop.f32.mrb[13].mxu0 }
 0x110   :  { %v1015_v61 = vadd.f32 %v1014_v60, %v1013_v58  ;;  %v1078_v62 = vpop.f32.mrb[13].mxu1  ;;  %v1016_v63 = vpop.f32.mrb[14].mxu0 }
 0x111   :  { %v1079_v0 = vadd.f32 %v1078_v62, %v1077_v59  ;;  %v1080_v1 = vpop.f32.mrb[14].mxu1  ;;  %v1017_v2 = vpop.f32.mrb[15].mxu0 }
 0x112   :  { %v1018_v3 = vadd.f32 %v1017_v2, %v1016_v63  ;;  %v1081_v4 = vpop.f32.mrb[15].mxu1 }
 0x113   :  { %v1082_v5 = vadd.f32 %v1081_v4, %v1080_v1  ;;  %v1534_v6 = vadd.f32 %v1079_v0, %v1015_v61 }
 0x115   :  { %v1536_v7 = vadd.f32 %v1082_v5, %v1018_v3 }
 0x116   :  { %v1019_v8 = vpop.f32.mrb[16].mxu0 }
 0x117   :  { %v1083_v9 = vpop.f32.mrb[16].mxu1  ;;  %v1020_v10 = vpop.f32.mrb[17].mxu0 }
 0x118   :  { %v1021_v11 = vadd.f32 %v1020_v10, %v1019_v8  ;;  %v1084_v12 = vpop.f32.mrb[17].mxu1  ;;  %v1022_v13 = vpop.f32.mrb[18].mxu0 }
 0x119   :  { %v1085_v14 = vadd.f32 %v1084_v12, %v1083_v9  ;;  %v1086_v15 = vpop.f32.mrb[18].mxu1  ;;  %v1023_v16 = vpop.f32.mrb[19].mxu0 }
 0x11a   :  { %v1024_v17 = vadd.f32 %v1023_v16, %v1022_v13  ;;  %v1087_v18 = vpop.f32.mrb[19].mxu1 }
 0x11b   :  { %v1088_v19 = vadd.f32 %v1087_v18, %v1086_v15  ;;  %v752_v20 = vadd.f32 %v1085_v14, %v1021_v11 }
 0x11d   :  { %v1538_v21 = vadd.f32 %v1088_v19, %v1024_v17 }
 0x11e   :  { %v1025_v22 = vpop.f32.mrb[20].mxu0 }
 0x11f   :  { %v1089_v23 = vpop.f32.mrb[20].mxu1  ;;  %v1026_v24 = vpop.f32.mrb[21].mxu0 }
 0x120   :  { %v1027_v25 = vadd.f32 %v1026_v24, %v1025_v22  ;;  %v1090_v26 = vpop.f32.mrb[21].mxu1  ;;  %v1028_v27 = vpop.f32.mrb[22].mxu0 }
 0x121   :  { %v1091_v30 = vadd.f32 %v1090_v26, %v1089_v23  ;;  %v1092_v31 = vpop.f32.mrb[22].mxu1  ;;  %v1029_v32 = vpop.f32.mrb[23].mxu0 }
 0x122   :  { %v1030_v33 = vadd.f32 %v1029_v32, %v1028_v27  ;;  %v1093_v34 = vpop.f32.mrb[23].mxu1 }
 0x123   :  { %v1094_v35 = vadd.f32 %v1093_v34, %v1092_v31  ;;  %v760_v36 = vadd.f32 %v1091_v30, %v1027_v25 }
 0x125   :  { %v763_v37 = vadd.f32 %v1094_v35, %v1030_v33 }
 0x126   :  { %v1031_v38 = vpop.f32.mrb[24].mxu0 }
 0x127   :  { %v1095_v39 = vpop.f32.mrb[24].mxu1  ;;  %v1032_v40 = vpop.f32.mrb[25].mxu0 }
 0x128   :  { %v1033_v41 = vadd.f32 %v1032_v40, %v1031_v38  ;;  %v1096_v44 = vpop.f32.mrb[25].mxu1  ;;  %v1034_v45 = vpop.f32.mrb[26].mxu0 }
 0x129   :  { %v1097_v46 = vadd.f32 %v1096_v44, %v1095_v39  ;;  %v1098_v47 = vpop.f32.mrb[26].mxu1  ;;  %v1035_v48 = vpop.f32.mrb[27].mxu0 }
 0x12a   :  { %v1036_v49 = vadd.f32 %v1035_v48, %v1034_v45  ;;  %v1099_v50 = vpop.f32.mrb[27].mxu1 }
 0x12b   :  { %v1100_v51 = vadd.f32 %v1099_v50, %v1098_v47  ;;  %v768_v52 = vadd.f32 %v1097_v46, %v1033_v41 }
 0x12d   :  { %v771_v53 = vadd.f32 %v1100_v51, %v1036_v49 }
 0x12e   :  { %v1037_v54 = vpop.f32.mrb[28].mxu0 }
 0x12f   :  { %v1101_v55 = vpop.f32.mrb[28].mxu1  ;;  %v1038_v58 = vpop.f32.mrb[29].mxu0 }
 0x130   :  { %v1039_v59 = vadd.f32 %v1038_v58, %v1037_v54  ;;  %v1102_v60 = vpop.f32.mrb[29].mxu1  ;;  %v1040_v61 = vpop.f32.mrb[30].mxu0 }
 0x131   :  { %v1103_v62 = vadd.f32 %v1102_v60, %v1101_v55  ;;  %v1104_v63 = vpop.f32.mrb[30].mxu1  ;;  %v1041_v0 = vpop.f32.mrb[31].mxu0 }
 0x132   :  { %v1042_v1 = vadd.f32 %v1041_v0, %v1040_v61  ;;  %v1105_v2 = vpop.f32.mrb[31].mxu1 }
 0x133   :  { %v1106_v3 = vadd.f32 %v1105_v2, %v1104_v63  ;;  %v776_v4 = vadd.f32 %v1103_v62, %v1039_v59 }
 0x135   :  { %v779_v5 = vadd.f32 %v1106_v3, %v1042_v1 }
 0x136   :  { %v1141_v8 = vpop.f32.mrb[32].mxu0 }
 0x137   :  { %v825_v9 = vadd.f32 %v1141_v8, %v1526_v42  ;;  %v1149_v10 = vpop.f32.mrb[32].mxu1  ;;  %v816_v11 = vpop.f32.mrb[33].mxu0 }
 0x138   :  { %v857_v12 = vadd.f32 %v1149_v10, %v760_v36  ;;  %v817_v13 = vadd.f32 %v816_v11, %v1522_v28  ;;  %v848_v14 = vpop.f32.mrb[33].mxu1  ;;  %v1142_v15 = vpop.f32.mrb[34].mxu0 }
 0x139   :  { %881 = vst [vmem:[%s1599_s2 + $0x10] sm:$0xff] %v825_v9  ;;  %v849_v16 = vadd.f32 %v848_v14, %v752_v20  ;;  %v828_v17 = vadd.f32 %v1142_v15, %v1528_v43  ;;  %v1150_v18 = vpop.f32.mrb[34].mxu1  ;;  %v819_v19 = vpop.f32.mrb[35].mxu0 }
 0x13a   :  { %889 = vst [vmem:[%s1599_s2 + $0x50] sm:$0xff] %v857_v12  ;;  %879 = vst [vmem:[%s1599_s2] sm:$0xff] %v817_v13  ;;  %v860_v28 = vadd.f32 %v1150_v18, %v763_v37  ;;  %v820_v42 = vadd.f32 %v819_v19, %v1524_v29  ;;  %v851_v22 = vpop.f32.mrb[35].mxu1 }
 0x13b   :  { %887 = vst [vmem:[%s1599_s2 + $0x40] sm:$0xff] %v849_v16  ;;  %882 = vst [vmem:[%s1599_s2 + $0x18] sm:$0xff] %v828_v17  ;;  %v852_v43 = vadd.f32 %v851_v22, %v1538_v21 }
 0x13c   :  { %890 = vst [vmem:[%s1599_s2 + $0x58] sm:$0xff] %v860_v28  ;;  %880 = vst [vmem:[%s1599_s2 + $0x8] sm:$0xff] %v820_v42 }
 0x13d   :  { %888 = vst [vmem:[%s1599_s2 + $0x48] sm:$0xff] %v852_v43 }
 0x13e   :  { %v1145_v29 = vpop.f32.mrb[36].mxu0 }
 0x13f   :  { %v841_v20 = vadd.f32 %v1145_v29, %v1534_v6  ;;  %v1153_v23 = vpop.f32.mrb[36].mxu1  ;;  %v832_v24 = vpop.f32.mrb[37].mxu0 }
 0x140   :  { %v873_v25 = vadd.f32 %v1153_v23, %v776_v4  ;;  %v833_v21 = vadd.f32 %v832_v24, %v1530_v56  ;;  %v864_v26 = vpop.f32.mrb[37].mxu1  ;;  %v1146_v27 = vpop.f32.mrb[38].mxu0 }
 0x141   :  { %885 = vst [vmem:[%s1599_s2 + $0x30] sm:$0xff] %v841_v20  ;;  %v865_v30 = vadd.f32 %v864_v26, %v768_v52  ;;  %v844_v31 = vadd.f32 %v1146_v27, %v1536_v7  ;;  %v1154_v32 = vpop.f32.mrb[38].mxu1  ;;  %v835_v33 = vpop.f32.mrb[39].mxu0 }
 0x142   :  { %893 = vst [vmem:[%s1599_s2 + $0x70] sm:$0xff] %v873_v25  ;;  %883 = vst [vmem:[%s1599_s2 + $0x20] sm:$0xff] %v833_v21  ;;  %v876_v56 = vadd.f32 %v1154_v32, %v779_v5  ;;  %v836_v6 = vadd.f32 %v835_v33, %v1532_v57  ;;  %v867_v34 = vpop.f32.mrb[39].mxu1 }
 0x143   :  { %891 = vst [vmem:[%s1599_s2 + $0x60] sm:$0xff] %v865_v30  ;;  %886 = vst [vmem:[%s1599_s2 + $0x38] sm:$0xff] %v844_v31  ;;  %v868_v7 = vadd.f32 %v867_v34, %v771_v53 }
 0x144   :  { %894 = vst [vmem:[%s1599_s2 + $0x78] sm:$0xff] %v876_v56  ;;  %884 = vst [vmem:[%s1599_s2 + $0x28] sm:$0xff] %v836_v6 }
 0x145   :  { %892 = vst [vmem:[%s1599_s2 + $0x68] sm:$0xff] %v868_v7 }

// kernel: _lambda_.50
= control target key start
LH: loop header
LB: loop body
LE: loop exit
PB: predicated region body
PF: predicated region fallthrough
CT: control target
= control target key end

     0   :  { %s664_s1 = inlined_call_operand.vmem [shape: bf16[256,128], index: 1, kind: input, shape index: {}]   ;;  %s665_s0 = inlined_call_operand.vmem [shape: bf16[128,256], index: 0, kind: input, shape index: {}]   ;;  %s666_s2 = inlined_call_operand.vmem [shape: f32[128,128], index: 2, kind: output, shape index: {}]  }
   0x1   :  { %v465_v0 = vld [vmem:[%s664_s1 + $0x40] sm:$0xff]   ;;  %v467_v2 = vld [vmem:[%s664_s1 + $0x48] sm:$0xff]   ;;  %v469_v4 = vld [vmem:[%s664_s1 + $0x50] sm:$0xff]  }
   0x2   :  { %v466_v1 = vld [vmem:[%s664_s1] sm:$0xff]   ;;  %385 = vmatprep.subr.bf16.mxu0 %v465_v0  ;;  %449 = vmatprep.subr.bf16.mxu1 %v465_v0  ;;  %v468_v3 = vld [vmem:[%s664_s1 + $0x8] sm:$0xff]   ;;  %v470_v5 = vld [vmem:[%s664_s1 + $0x10] sm:$0xff]  }
   0x3   :  { %386 = vmatpush3.bf16.msra.mxu0 %v466_v1  ;;  %457 = vmatpush3.bf16.msra.mxu1 %v466_v1  ;;  %v471_v6 = vld [vmem:[%s664_s1 + $0x58] sm:$0xff]   ;;  %v473_v8 = vld [vmem:[%s664_s1 + $0x60] sm:$0xff]   ;;  %v475_v10 = vld [vmem:[%s664_s1 + $0x68] sm:$0xff]  }
   0x4   :  { %387 = vmatprep.subr.bf16.mxu0 %v467_v2  ;;  %450 = vmatprep.subr.bf16.mxu1 %v467_v2  ;;  %v472_v7 = vld [vmem:[%s664_s1 + $0x18] sm:$0xff]   ;;  %v474_v9 = vld [vmem:[%s664_s1 + $0x20] sm:$0xff]   ;;  %v476_v13 = vld [vmem:[%s664_s1 + $0x28] sm:$0xff]  }
   0x5   :  { %v483_v11 = vld [vmem:[%s665_s0 + $0x4] ss:$8 sps:$4 sm:$0xff]   ;;  %v477_v14 = vld [vmem:[%s664_s1 + $0x70] sm:$0xff]   ;;  %v479_v16 = vld [vmem:[%s664_s1 + $0x78] sm:$0xff]  }
   0x6   :  { %v486_v12 = vld [vmem:[%s665_s0 + $0x44] ss:$8 sps:$4 sm:$0xff]   ;;  %268 = vmatprep.mubr.bf16.mxu0 %v483_v11  ;;  %v478_v15 = vld [vmem:[%s664_s1 + $0x30] sm:$0xff]   ;;  %v480_v17 = vld [vmem:[%s664_s1 + $0x38] sm:$0xff]  }
   0x7   :  { %388 = vmatpush3.bf16.msra.mxu0 %v468_v3  ;;  %458 = vmatpush3.bf16.msra.mxu1 %v468_v3  ;;  %v481_v18 = vld [vmem:[%s665_s0] ss:$8 sps:$4 sm:$0xff]   ;;  %v487_v20 = vld [vmem:[%s665_s0 + $0x14] ss:$8 sps:$4 sm:$0xff]   ;;  %v491_v22 = vld [vmem:[%s665_s0 + $0x10] ss:$8 sps:$4 sm:$0xff]  }
   0x8   :  { %389 = vmatprep.subr.bf16.mxu0 %v469_v4  ;;  %451 = vmatprep.subr.bf16.mxu1 %v469_v4  ;;  %v484_v19 = vld [vmem:[%s665_s0 + $0x40] ss:$8 sps:$4 sm:$0xff]   ;;  %v489_v21 = vld [vmem:[%s665_s0 + $0x54] ss:$8 sps:$4 sm:$0xff]   ;;  %v492_v23 = vld [vmem:[%s665_s0 + $0x50] ss:$8 sps:$4 sm:$0xff]  }
   0x9   :  { %300 = vmatprep.mubr.bf16.mxu1 %v486_v12  ;;  %v493_v24 = vld [vmem:[%s665_s0 + $0x24] ss:$8 sps:$4 sm:$0xff]   ;;  %v497_v26 = vld [vmem:[%s665_s0 + $0x20] ss:$8 sps:$4 sm:$0xff]   ;;  %v499_v28 = vld [vmem:[%s665_s0 + $0x34] ss:$8 sps:$4 sm:$0xff]  }
   0xa   :  { %v495_v25 = vld [vmem:[%s665_s0 + $0x64] ss:$8 sps:$4 sm:$0xff]   ;;  %v498_v27 = vld [vmem:[%s665_s0 + $0x60] ss:$8 sps:$4 sm:$0xff]   ;;  %v501_v29 = vld [vmem:[%s665_s0 + $0x74] ss:$8 sps:$4 sm:$0xff]  }
   0xb   :  { %390 = vmatpush3.bf16.msra.mxu0 %v470_v5  ;;  %459 = vmatpush3.bf16.msra.mxu1 %v470_v5  ;;  %v503_v30 = vld [vmem:[%s665_s0 + $0x30] ss:$8 sps:$4 sm:$0xff]  }
   0xc   :  { %391 = vmatprep.subr.bf16.mxu0 %v471_v6  ;;  %452 = vmatprep.subr.bf16.mxu1 %v471_v6  ;;  %v504_v31 = vld [vmem:[%s665_s0 + $0x70] ss:$8 sps:$4 sm:$0xff]  }
   0xf   :  { %392 = vmatpush3.bf16.msra.mxu0 %v472_v7  ;;  %460 = vmatpush3.bf16.msra.mxu1 %v472_v7 }
  0x10   :  { %393 = vmatprep.subr.bf16.mxu0 %v473_v8  ;;  %453 = vmatprep.subr.bf16.mxu1 %v473_v8 }
  0x13   :  { %394 = vmatpush3.bf16.msra.mxu0 %v474_v9  ;;  %461 = vmatpush3.bf16.msra.mxu1 %v474_v9 }
  0x14   :  { %395 = vmatprep.subr.bf16.mxu0 %v475_v10  ;;  %454 = vmatprep.subr.bf16.mxu1 %v475_v10 }
  0x17   :  { %396 = vmatpush3.bf16.msra.mxu0 %v476_v13  ;;  %462 = vmatpush3.bf16.msra.mxu1 %v476_v13 }
  0x18   :  { %397 = vmatprep.subr.bf16.mxu0 %v477_v14  ;;  %455 = vmatprep.subr.bf16.mxu1 %v477_v14 }
  0x1b   :  { %398 = vmatpush3.bf16.msra.mxu0 %v478_v15  ;;  %463 = vmatpush3.bf16.msra.mxu1 %v478_v15 }
  0x1c   :  { %399 = vmatprep.subr.bf16.mxu0 %v479_v16  ;;  %456 = vmatprep.subr.bf16.mxu1 %v479_v16 }
  0x1f   :  { %400 = vmatpush3.bf16.msra.mxu0 %v480_v17  ;;  %464 = vmatpush3.bf16.msra.mxu1 %v480_v17 }
  0x22   :  { %269 = vmatmul.mubr.bf16.vlgmr.msra.gmra.mrb[0].mxu0 %v481_v18  ;;  %301 = vmatmul.mubr.bf16.vlgmr.msra.gmra.mrb[0].mxu1 %v484_v19 }
  0x23   :  { %276 = vmatprep.mubr.bf16.mxu0 %v487_v20  ;;  %308 = vmatprep.mubr.bf16.mxu1 %v489_v21 }
  0x2a   :  { %277 = vmatmul.mubr.bf16.gmra.mrb[4].mxu0 %v491_v22  ;;  %309 = vmatmul.mubr.bf16.gmra.mrb[4].mxu1 %v492_v23 }
  0x2b   :  { %284 = vmatprep.mubr.bf16.mxu0 %v493_v24  ;;  %316 = vmatprep.mubr.bf16.mxu1 %v495_v25 }
  0x32   :  { %285 = vmatmul.mubr.bf16.gmra.mrb[8].mxu0 %v497_v26  ;;  %317 = vmatmul.mubr.bf16.gmra.mrb[8].mxu1 %v498_v27 }
  0x33   :  { %292 = vmatprep.mubr.bf16.mxu0 %v499_v28  ;;  %324 = vmatprep.mubr.bf16.mxu1 %v501_v29 }
  0x3a   :  { %293 = vmatmul.mubr.bf16.gmra.mrb[12].mxu0 %v503_v30  ;;  %325 = vmatmul.mubr.bf16.gmra.mrb[12].mxu1 %v504_v31 }
  0xf5   :  { %v401_v32 = vpop.f32.mrb[0].mxu0  ;;  %v425_v33 = vpop.f32.mrb[0].mxu1 }
  0xf6   :  { %v402_v34 = vpop.f32.mrb[1].mxu0  ;;  %v426_v35 = vpop.f32.mrb[1].mxu1 }
  0xf7   :  { %v403_v36 = vadd.f32 %v402_v34, %v401_v32  ;;  %v427_v37 = vadd.f32 %v426_v35, %v425_v33  ;;  %v404_v38 = vpop.f32.mrb[2].mxu0  ;;  %v428_v39 = vpop.f32.mrb[2].mxu1 }
  0xf8   :  { %v405_v40 = vpop.f32.mrb[3].mxu0  ;;  %v429_v41 = vpop.f32.mrb[3].mxu1 }
  0xf9   :  { %333 = vst [vmem:[%s666_s2] sm:$0xff] %v403_v36  ;;  %341 = vst [vmem:[%s666_s2 + $0x40] sm:$0xff] %v427_v37  ;;  %v406_v42 = vadd.f32 %v405_v40, %v404_v38  ;;  %v430_v43 = vadd.f32 %v429_v41, %v428_v39 }
  0xfb   :  { %334 = vst [vmem:[%s666_s2 + $0x8] sm:$0xff] %v406_v42  ;;  %342 = vst [vmem:[%s666_s2 + $0x48] sm:$0xff] %v430_v43 }
  0xfd   :  { %v407_v44 = vpop.f32.mrb[4].mxu0  ;;  %v431_v45 = vpop.f32.mrb[4].mxu1 }
  0xfe   :  { %v408_v46 = vpop.f32.mrb[5].mxu0  ;;  %v432_v47 = vpop.f32.mrb[5].mxu1 }
  0xff   :  { %v409_v48 = vadd.f32 %v408_v46, %v407_v44  ;;  %v433_v49 = vadd.f32 %v432_v47, %v431_v45  ;;  %v410_v50 = vpop.f32.mrb[6].mxu0  ;;  %v434_v51 = vpop.f32.mrb[6].mxu1 }
 0x100   :  { %v411_v52 = vpop.f32.mrb[7].mxu0  ;;  %v435_v53 = vpop.f32.mrb[7].mxu1 }
 0x101   :  { %335 = vst [vmem:[%s666_s2 + $0x10] sm:$0xff] %v409_v48  ;;  %343 = vst [vmem:[%s666_s2 + $0x50] sm:$0xff] %v433_v49  ;;  %v412_v54 = vadd.f32 %v411_v52, %v410_v50  ;;  %v436_v55 = vadd.f32 %v435_v53, %v434_v51 }
 0x103   :  { %336 = vst [vmem:[%s666_s2 + $0x18] sm:$0xff] %v412_v54  ;;  %344 = vst [vmem:[%s666_s2 + $0x58] sm:$0xff] %v436_v55 }
 0x105   :  { %v413_v56 = vpop.f32.mrb[8].mxu0  ;;  %v437_v57 = vpop.f32.mrb[8].mxu1 }
 0x106   :  { %v414_v58 = vpop.f32.mrb[9].mxu0  ;;  %v438_v59 = vpop.f32.mrb[9].mxu1 }
 0x107   :  { %v415_v60 = vadd.f32 %v414_v58, %v413_v56  ;;  %v439_v61 = vadd.f32 %v438_v59, %v437_v57  ;;  %v416_v62 = vpop.f32.mrb[10].mxu0  ;;  %v440_v63 = vpop.f32.mrb[10].mxu1 }
 0x108   :  { %v417_v0 = vpop.f32.mrb[11].mxu0  ;;  %v441_v1 = vpop.f32.mrb[11].mxu1 }
 0x109   :  { %337 = vst [vmem:[%s666_s2 + $0x20] sm:$0xff] %v415_v60  ;;  %345 = vst [vmem:[%s666_s2 + $0x60] sm:$0xff] %v439_v61  ;;  %v418_v2 = vadd.f32 %v417_v0, %v416_v62  ;;  %v442_v3 = vadd.f32 %v441_v1, %v440_v63 }
 0x10b   :  { %338 = vst [vmem:[%s666_s2 + $0x28] sm:$0xff] %v418_v2  ;;  %346 = vst [vmem:[%s666_s2 + $0x68] sm:$0xff] %v442_v3 }
 0x10d   :  { %v419_v4 = vpop.f32.mrb[12].mxu0  ;;  %v443_v5 = vpop.f32.mrb[12].mxu1 }
 0x10e   :  { %v420_v6 = vpop.f32.mrb[13].mxu0  ;;  %v444_v7 = vpop.f32.mrb[13].mxu1 }
 0x10f   :  { %v421_v8 = vadd.f32 %v420_v6, %v419_v4  ;;  %v445_v9 = vadd.f32 %v444_v7, %v443_v5  ;;  %v422_v10 = vpop.f32.mrb[14].mxu0  ;;  %v446_v11 = vpop.f32.mrb[14].mxu1 }
 0x110   :  { %v423_v12 = vpop.f32.mrb[15].mxu0  ;;  %v447_v13 = vpop.f32.mrb[15].mxu1 }
 0x111   :  { %339 = vst [vmem:[%s666_s2 + $0x30] sm:$0xff] %v421_v8  ;;  %347 = vst [vmem:[%s666_s2 + $0x70] sm:$0xff] %v445_v9  ;;  %v424_v14 = vadd.f32 %v423_v12, %v422_v10  ;;  %v448_v15 = vadd.f32 %v447_v13, %v446_v11 }
 0x113   :  { %340 = vst [vmem:[%s666_s2 + $0x38] sm:$0xff] %v424_v14  ;;  %348 = vst [vmem:[%s666_s2 + $0x78] sm:$0xff] %v448_v15 }

// kernel: _lambda_.51
= control target key start
LH: loop header
LB: loop body
LE: loop exit
PB: predicated region body
PF: predicated region fallthrough
CT: control target
= control target key end

     0   :  { %s480_s0 = inlined_call_operand.vmem [shape: f32[256,128], index: 0, kind: input, shape index: {}]   ;;  %s481_s1 = inlined_call_operand.vmem [shape: f32[1,128], index: 1, kind: input, shape index: {}]   ;;  %s482_s2 = inlined_call_operand.vmem [shape: f32[1,128], index: 2, kind: input, shape index: {}]   ;;  %s483_s3 = inlined_call_operand.vmem [shape: f32[256,128], index: 3, kind: output, shape index: {}]  }
   0x1   :  { %v14_v0 = vld [vmem:[%s480_s0] sm:$0xff]  ;;  %v15_v4 = vld [vmem:[%s480_s0 + $0x8] sm:$0xff]  ;;  %v16_v5 = vld [vmem:[%s480_s0 + $0x10] sm:$0xff] }
   0x2   :  { %v220_v1 = vld [vmem:[%s481_s1] ss:$0 sm:$0xff]  ;;  %v17_v6 = vld [vmem:[%s480_s0 + $0x18] sm:$0xff]  ;;  %v19_v11 = vld [vmem:[%s480_s0 + $0x28] sm:$0xff] }
   0x3   :  { %v225_v2 = vld [vmem:[%s482_s2] ss:$0 sm:$0xff]  ;;  %v53_v3 = vmul.f32 %v220_v1, %v14_v0  ;;  %v54_v7 = vmul.f32 %v220_v1, %v15_v4  ;;  %v55_v8 = vmul.f32 %v220_v1, %v16_v5  ;;  %v56_v9 = vmul.f32 %v220_v1, %v17_v6  ;;  %v20_v12 = vld [vmem:[%s480_s0 + $0x30] sm:$0xff]  ;;  %v21_v17 = vld [vmem:[%s480_s0 + $0x38] sm:$0xff] }
   0x4   :  { %v18_v10 = vld [vmem:[%s480_s0 + $0x20] sm:$0xff]  ;;  %v58_v15 = vmul.f32 %v220_v1, %v19_v11  ;;  %v59_v16 = vmul.f32 %v220_v1, %v20_v12  ;;  %v60_v21 = vmul.f32 %v220_v1, %v21_v17  ;;  %v23_v27 = vld [vmem:[%s480_s0 + $0x48] sm:$0xff]  ;;  %v24_v28 = vld [vmem:[%s480_s0 + $0x50] sm:$0xff] }
   0x5   :  { %v92_v13 = vadd.f32 %v225_v2, %v53_v3  ;;  %v57_v14 = vmul.f32 %v220_v1, %v18_v10  ;;  %v93_v18 = vadd.f32 %v225_v2, %v54_v7  ;;  %v94_v19 = vadd.f32 %v225_v2, %v55_v8  ;;  %v22_v22 = vld [vmem:[%s480_s0 + $0x40] sm:$0xff]  ;;  %v25_v29 = vld [vmem:[%s480_s0 + $0x58] sm:$0xff]  ;;  %v27_v35 = vld [vmem:[%s480_s0 + $0x68] sm:$0xff] }
   0x6   :  { %v95_v20 = vadd.f32 %v225_v2, %v56_v9  ;;  %v97_v25 = vadd.f32 %v225_v2, %v58_v15  ;;  %v98_v26 = vadd.f32 %v225_v2, %v59_v16  ;;  %v99_v33 = vadd.f32 %v225_v2, %v60_v21  ;;  %v26_v34 = vld [vmem:[%s480_s0 + $0x60] sm:$0xff]  ;;  %v28_v36 = vld [vmem:[%s480_s0 + $0x70] sm:$0xff]  ;;  %v29_v41 = vld [vmem:[%s480_s0 + $0x78] sm:$0xff] }
   0x7   :  { %v124_v23 = vmax.f32 %v92_v13, 0.0  ;;  %v96_v24 = vadd.f32 %v225_v2, %v57_v14  ;;  %v125_v30 = vmax.f32 %v93_v18, 0.0  ;;  %v126_v31 = vmax.f32 %v94_v19, 0.0  ;;  %v30_v54 = vld [vmem:[%s480_s0 + $0x80] sm:$0xff]  ;;  %v31_v59 = vld [vmem:[%s480_s0 + $0x88] sm:$0xff]  ;;  %v32_v60 = vld [vmem:[%s480_s0 + $0x90] sm:$0xff] }
   0x8   :  { %v127_v32 = vmax.f32 %v95_v20, 0.0  ;;  %v129_v38 = vmax.f32 %v97_v25, 0.0  ;;  %v130_v39 = vmax.f32 %v98_v26, 0.0  ;;  %v61_v40 = vmul.f32 %v220_v1, %v22_v22  ;;  %v33_v61 = vld [vmem:[%s480_s0 + $0x98] sm:$0xff]  ;;  %v34_v4 = vld [vmem:[%s480_s0 + $0xa0] sm:$0xff]  ;;  %v35_v5 = vld [vmem:[%s480_s0 + $0xa8] sm:$0xff] }
   0x9   :  { %156 = vst [vmem:[%s483_s3] sm:$0xff] %v124_v23  ;;  %v128_v37 = vmax.f32 %v96_v24, 0.0  ;;  %157 = vst [vmem:[%s483_s3 + $0x8] sm:$0xff] %v125_v30  ;;  %v131_v42 = vmax.f32 %v99_v33, 0.0  ;;  %v62_v43 = vmul.f32 %v220_v1, %v23_v27  ;;  %v63_v44 = vmul.f32 %v220_v1, %v24_v28  ;;  %v36_v6 = vld [vmem:[%s480_s0 + $0xb0] sm:$0xff]  ;;  %v37_v11 = vld [vmem:[%s480_s0 + $0xb8] sm:$0xff] }
   0xa   :  { %158 = vst [vmem:[%s483_s3 + $0x10] sm:$0xff] %v126_v31  ;;  %159 = vst [vmem:[%s483_s3 + $0x18] sm:$0xff] %v127_v32  ;;  %v64_v45 = vmul.f32 %v220_v1, %v25_v29  ;;  %v100_v46 = vadd.f32 %v225_v2, %v61_v40  ;;  %v65_v47 = vmul.f32 %v220_v1, %v26_v34  ;;  %v38_v24 = vld [vmem:[%s480_s0 + $0xc0] sm:$0xff]  ;;  %v39_v29 = vld [vmem:[%s480_s0 + $0xc8] sm:$0xff] }
   0xb   :  { %160 = vst [vmem:[%s483_s3 + $0x20] sm:$0xff] %v128_v37  ;;  %161 = vst [vmem:[%s483_s3 + $0x28] sm:$0xff] %v129_v38  ;;  %v66_v48 = vmul.f32 %v220_v1, %v27_v35  ;;  %v67_v49 = vmul.f32 %v220_v1, %v28_v36  ;;  %v101_v50 = vadd.f32 %v225_v2, %v62_v43  ;;  %v40_v30 = vld [vmem:[%s480_s0 + $0xd0] sm:$0xff]  ;;  %v41_v31 = vld [vmem:[%s480_s0 + $0xd8] sm:$0xff] }
   0xc   :  { %162 = vst [vmem:[%s483_s3 + $0x30] sm:$0xff] %v130_v39  ;;  %163 = vst [vmem:[%s483_s3 + $0x38] sm:$0xff] %v131_v42  ;;  %v102_v51 = vadd.f32 %v225_v2, %v63_v44  ;;  %v103_v52 = vadd.f32 %v225_v2, %v64_v45  ;;  %v68_v53 = vmul.f32 %v220_v1, %v29_v41  ;;  %v132_v55 = vmax.f32 %v100_v46, 0.0  ;;  %v42_v36 = vld [vmem:[%s480_s0 + $0xe0] sm:$0xff]  ;;  %v43_v37 = vld [vmem:[%s480_s0 + $0xe8] sm:$0xff] }
   0xd   :  { %v104_v56 = vadd.f32 %v225_v2, %v65_v47  ;;  %v105_v57 = vadd.f32 %v225_v2, %v66_v48  ;;  %v106_v58 = vadd.f32 %v225_v2, %v67_v49  ;;  %v133_v62 = vmax.f32 %v101_v50, 0.0  ;;  %v44_v38 = vld [vmem:[%s480_s0 + $0xf0] sm:$0xff]  ;;  %v45_v43 = vld [vmem:[%s480_s0 + $0xf8] sm:$0xff] }
   0xe   :  { %v134_v63 = vmax.f32 %v102_v51, 0.0  ;;  %v135_v0 = vmax.f32 %v103_v52, 0.0  ;;  %v107_v3 = vadd.f32 %v225_v2, %v68_v53  ;;  %164 = vst [vmem:[%s483_s3 + $0x40] sm:$0xff] %v132_v55  ;;  %v69_v10 = vmul.f32 %v220_v1, %v30_v54 }
   0xf   :  { %v136_v7 = vmax.f32 %v104_v56, 0.0  ;;  %v137_v8 = vmax.f32 %v105_v57, 0.0  ;;  %v138_v9 = vmax.f32 %v106_v58, 0.0  ;;  %165 = vst [vmem:[%s483_s3 + $0x48] sm:$0xff] %v133_v62  ;;  %v70_v13 = vmul.f32 %v220_v1, %v31_v59 }
  0x10   :  { %166 = vst [vmem:[%s483_s3 + $0x50] sm:$0xff] %v134_v63  ;;  %167 = vst [vmem:[%s483_s3 + $0x58] sm:$0xff] %v135_v0  ;;  %v139_v12 = vmax.f32 %v107_v3, 0.0  ;;  %v71_v14 = vmul.f32 %v220_v1, %v32_v60  ;;  %v72_v15 = vmul.f32 %v220_v1, %v33_v61  ;;  %v108_v16 = vadd.f32 %v225_v2, %v69_v10 }
  0x11   :  { %168 = vst [vmem:[%s483_s3 + $0x60] sm:$0xff] %v136_v7  ;;  %169 = vst [vmem:[%s483_s3 + $0x68] sm:$0xff] %v137_v8  ;;  %v73_v17 = vmul.f32 %v220_v1, %v34_v4  ;;  %v74_v18 = vmul.f32 %v220_v1, %v35_v5  ;;  %v75_v19 = vmul.f32 %v220_v1, %v36_v6 }
  0x12   :  { %170 = vst [vmem:[%s483_s3 + $0x70] sm:$0xff] %v138_v9  ;;  %171 = vst [vmem:[%s483_s3 + $0x78] sm:$0xff] %v139_v12  ;;  %v109_v20 = vadd.f32 %v225_v2, %v70_v13  ;;  %v110_v21 = vadd.f32 %v225_v2, %v71_v14  ;;  %v111_v22 = vadd.f32 %v225_v2, %v72_v15  ;;  %v140_v25 = vmax.f32 %v108_v16, 0.0 }
  0x13   :  { %v76_v23 = vmul.f32 %v220_v1, %v37_v11  ;;  %v112_v26 = vadd.f32 %v225_v2, %v73_v17  ;;  %v113_v27 = vadd.f32 %v225_v2, %v74_v18  ;;  %v114_v28 = vadd.f32 %v225_v2, %v75_v19 }
  0x14   :  { %v141_v32 = vmax.f32 %v109_v20, 0.0  ;;  %v142_v33 = vmax.f32 %v110_v21, 0.0  ;;  %v143_v34 = vmax.f32 %v111_v22, 0.0  ;;  %172 = vst [vmem:[%s483_s3 + $0x80] sm:$0xff] %v140_v25  ;;  %v77_v42 = vmul.f32 %v220_v1, %v38_v24 }
  0x15   :  { %v115_v35 = vadd.f32 %v225_v2, %v76_v23  ;;  %v144_v39 = vmax.f32 %v112_v26, 0.0  ;;  %v145_v40 = vmax.f32 %v113_v27, 0.0  ;;  %v146_v41 = vmax.f32 %v114_v28, 0.0 }
  0x16   :  { %173 = vst [vmem:[%s483_s3 + $0x88] sm:$0xff] %v141_v32  ;;  %174 = vst [vmem:[%s483_s3 + $0x90] sm:$0xff] %v142_v33  ;;  %v78_v45 = vmul.f32 %v220_v1, %v39_v29  ;;  %v79_v46 = vmul.f32 %v220_v1, %v40_v30  ;;  %v80_v47 = vmul.f32 %v220_v1, %v41_v31 }
  0x17   :  { %175 = vst [vmem:[%s483_s3 + $0x98] sm:$0xff] %v143_v34  ;;  %v147_v44 = vmax.f32 %v115_v35, 0.0  ;;  %176 = vst [vmem:[%s483_s3 + $0xa0] sm:$0xff] %v144_v39  ;;  %v116_v48 = vadd.f32 %v225_v2, %v77_v42  ;;  %v81_v49 = vmul.f32 %v220_v1, %v42_v36  ;;  %v82_v50 = vmul.f32 %v220_v1, %v43_v37 }
  0x18   :  { %177 = vst [vmem:[%s483_s3 + $0xa8] sm:$0xff] %v145_v40  ;;  %178 = vst [vmem:[%s483_s3 + $0xb0] sm:$0xff] %v146_v41  ;;  %v83_v51 = vmul.f32 %v220_v1, %v44_v38  ;;  %v117_v52 = vadd.f32 %v225_v2, %v78_v45  ;;  %v118_v53 = vadd.f32 %v225_v2, %v79_v46 }
  0x19   :  { %179 = vst [vmem:[%s483_s3 + $0xb8] sm:$0xff] %v147_v44  ;;  %v119_v54 = vadd.f32 %v225_v2, %v80_v47  ;;  %v84_v55 = vmul.f32 %v220_v1, %v45_v43  ;;  %v148_v56 = vmax.f32 %v116_v48, 0.0  ;;  %v120_v57 = vadd.f32 %v225_v2, %v81_v49 }
  0x1a   :  { %v121_v58 = vadd.f32 %v225_v2, %v82_v50  ;;  %v122_v59 = vadd.f32 %v225_v2, %v83_v51  ;;  %v149_v60 = vmax.f32 %v117_v52, 0.0  ;;  %v150_v61 = vmax.f32 %v118_v53, 0.0 }
  0x1b   :  { %v151_v62 = vmax.f32 %v119_v54, 0.0  ;;  %v123_v63 = vadd.f32 %v225_v2, %v84_v55  ;;  %180 = vst [vmem:[%s483_s3 + $0xc0] sm:$0xff] %v148_v56  ;;  %v152_v0 = vmax.f32 %v120_v57, 0.0 }
  0x1c   :  { %v153_v3 = vmax.f32 %v121_v58, 0.0  ;;  %v154_v4 = vmax.f32 %v122_v59, 0.0  ;;  %181 = vst [vmem:[%s483_s3 + $0xc8] sm:$0xff] %v149_v60  ;;  %182 = vst [vmem:[%s483_s3 + $0xd0] sm:$0xff] %v150_v61 }
  0x1d   :  { %183 = vst [vmem:[%s483_s3 + $0xd8] sm:$0xff] %v151_v62  ;;  %v155_v1 = vmax.f32 %v123_v63, 0.0  ;;  %184 = vst [vmem:[%s483_s3 + $0xe0] sm:$0xff] %v152_v0 }
  0x1e   :  { %185 = vst [vmem:[%s483_s3 + $0xe8] sm:$0xff] %v153_v3  ;;  %186 = vst [vmem:[%s483_s3 + $0xf0] sm:$0xff] %v154_v4 }
  0x1f   :  { %187 = vst [vmem:[%s483_s3 + $0xf8] sm:$0xff] %v155_v1 }

// kernel: _lambda_.55
= control target key start
LH: loop header
LB: loop body
LE: loop exit
PB: predicated region body
PF: predicated region fallthrough
CT: control target
= control target key end

     0   :  { %v1106_v0 = vmov 0   ;;  %s1586_s1 = inlined_call_operand.vmem [shape: bf16[256,128], index: 1, kind: input, shape index: {}]   ;;  %s1587_s0 = inlined_call_operand.vmem [shape: bf16[512,256], index: 0, kind: input, shape index: {}]   ;;  %s1588_s2 = inlined_call_operand.vmem [shape: f32[512,128], index: 2, kind: output, shape index: {}]  }
   0x1   :  { %524 = vmatprep.subr.bf16.mxu0 %v1106_v0  ;;  %961 = vmatprep.subr.bf16.mxu1 %v1106_v0  ;;  %v994_v1 = vld [vmem:[%s1586_s1] sm:$0xff]   ;;  %v995_v2 = vld [vmem:[%s1586_s1 + $0x8] sm:$0xff]   ;;  %v996_v3 = vld [vmem:[%s1586_s1 + $0x10] sm:$0xff]  }
   0x2   :  { %525 = vmatpush1.bf16.msra.mxu0 %v994_v1  ;;  %977 = vmatpush1.bf16.msra.mxu1 %v994_v1  ;;  %v997_v4 = vld [vmem:[%s1586_s1 + $0x18] sm:$0xff]   ;;  %v998_v5 = vld [vmem:[%s1586_s1 + $0x20] sm:$0xff]   ;;  %v999_v7 = vld [vmem:[%s1586_s1 + $0x28] sm:$0xff]  }
   0x3   :  { %526 = vmatprep.subr.bf16.mxu0 %v1106_v0  ;;  %962 = vmatprep.subr.bf16.mxu1 %v1106_v0  ;;  %v1012_v6 = vld [vmem:[%s1587_s0 + $0x4] ss:$8 sps:$4 sm:$0xff]   ;;  %v1000_v9 = vld [vmem:[%s1586_s1 + $0x30] sm:$0xff]   ;;  %v1001_v10 = vld [vmem:[%s1586_s1 + $0x38] sm:$0xff]  }
   0x4   :  { %v1015_v8 = vld [vmem:[%s1587_s0 + $0x104] ss:$8 sps:$4 sm:$0xff]   ;;  %556 = vmatprep.mubr.bf16.mxu0 %v1012_v6  ;;  %v1004_v13 = vld [vmem:[%s1586_s1 + $0x50] sm:$0xff]   ;;  %v1005_v14 = vld [vmem:[%s1586_s1 + $0x58] sm:$0xff]  }
   0x5   :  { %684 = vmatprep.mubr.bf16.mxu1 %v1015_v8  ;;  %v1002_v11 = vld [vmem:[%s1586_s1 + $0x40] sm:$0xff]   ;;  %v1003_v12 = vld [vmem:[%s1586_s1 + $0x48] sm:$0xff]   ;;  %v1008_v17 = vld [vmem:[%s1586_s1 + $0x70] sm:$0xff]  }
   0x6   :  { %527 = vmatpush1.bf16.msra.mxu0 %v995_v2  ;;  %978 = vmatpush1.bf16.msra.mxu1 %v995_v2  ;;  %v1006_v15 = vld [vmem:[%s1586_s1 + $0x60] sm:$0xff]   ;;  %v1007_v16 = vld [vmem:[%s1586_s1 + $0x68] sm:$0xff]   ;;  %v1009_v18 = vld [vmem:[%s1586_s1 + $0x78] sm:$0xff]  }
   0x7   :  { %528 = vmatprep.subr.bf16.mxu0 %v1106_v0  ;;  %963 = vmatprep.subr.bf16.mxu1 %v1106_v0  ;;  %v1010_v19 = vld [vmem:[%s1587_s0] ss:$8 sps:$4 sm:$0xff]   ;;  %v1016_v21 = vld [vmem:[%s1587_s0 + $0x14] ss:$8 sps:$4 sm:$0xff]   ;;  %v1020_v23 = vld [vmem:[%s1587_s0 + $0x10] ss:$8 sps:$4 sm:$0xff]  }
   0x8   :  { %v1013_v20 = vld [vmem:[%s1587_s0 + $0x100] ss:$8 sps:$4 sm:$0xff]   ;;  %v1018_v22 = vld [vmem:[%s1587_s0 + $0x114] ss:$8 sps:$4 sm:$0xff]   ;;  %v1021_v24 = vld [vmem:[%s1587_s0 + $0x110] ss:$8 sps:$4 sm:$0xff]  }
   0x9   :  { %v1022_v25 = vld [vmem:[%s1587_s0 + $0x24] ss:$8 sps:$4 sm:$0xff]   ;;  %v1026_v27 = vld [vmem:[%s1587_s0 + $0x20] ss:$8 sps:$4 sm:$0xff]   ;;  %v1028_v29 = vld [vmem:[%s1587_s0 + $0x34] ss:$8 sps:$4 sm:$0xff]  }
   0xa   :  { %529 = vmatpush1.bf16.msra.mxu0 %v996_v3  ;;  %979 = vmatpush1.bf16.msra.mxu1 %v996_v3  ;;  %v1024_v26 = vld [vmem:[%s1587_s0 + $0x124] ss:$8 sps:$4 sm:$0xff]   ;;  %v1027_v28 = vld [vmem:[%s1587_s0 + $0x120] ss:$8 sps:$4 sm:$0xff]   ;;  %v1030_v30 = vld [vmem:[%s1587_s0 + $0x134] ss:$8 sps:$4 sm:$0xff]  }
   0xb   :  { %530 = vmatprep.subr.bf16.mxu0 %v1106_v0  ;;  %964 = vmatprep.subr.bf16.mxu1 %v1106_v0  ;;  %v1032_v31 = vld [vmem:[%s1587_s0 + $0x30] ss:$8 sps:$4 sm:$0xff]   ;;  %v1034_v33 = vld [vmem:[%s1587_s0 + $0x44] ss:$8 sps:$4 sm:$0xff]   ;;  %v1038_v35 = vld [vmem:[%s1587_s0 + $0x40] ss:$8 sps:$4 sm:$0xff]  }
   0xc   :  { %v1033_v32 = vld [vmem:[%s1587_s0 + $0x130] ss:$8 sps:$4 sm:$0xff]   ;;  %v1036_v34 = vld [vmem:[%s1587_s0 + $0x144] ss:$8 sps:$4 sm:$0xff]   ;;  %v1039_v36 = vld [vmem:[%s1587_s0 + $0x140] ss:$8 sps:$4 sm:$0xff]  }
   0xd   :  { %v1040_v37 = vld [vmem:[%s1587_s0 + $0x54] ss:$8 sps:$4 sm:$0xff]   ;;  %v1044_v39 = vld [vmem:[%s1587_s0 + $0x50] ss:$8 sps:$4 sm:$0xff]   ;;  %v1046_v41 = vld [vmem:[%s1587_s0 + $0x64] ss:$8 sps:$4 sm:$0xff]  }
   0xe   :  { %531 = vmatpush1.bf16.msra.mxu0 %v997_v4  ;;  %980 = vmatpush1.bf16.msra.mxu1 %v997_v4  ;;  %v1042_v38 = vld [vmem:[%s1587_s0 + $0x154] ss:$8 sps:$4 sm:$0xff]   ;;  %v1045_v40 = vld [vmem:[%s1587_s0 + $0x150] ss:$8 sps:$4 sm:$0xff]   ;;  %v1048_v42 = vld [vmem:[%s1587_s0 + $0x164] ss:$8 sps:$4 sm:$0xff]  }
   0xf   :  { %532 = vmatprep.subr.bf16.mxu0 %v1106_v0  ;;  %965 = vmatprep.subr.bf16.mxu1 %v1106_v0  ;;  %v1050_v43 = vld [vmem:[%s1587_s0 + $0x60] ss:$8 sps:$4 sm:$0xff]   ;;  %v1052_v45 = vld [vmem:[%s1587_s0 + $0x74] ss:$8 sps:$4 sm:$0xff]   ;;  %v1056_v47 = vld [vmem:[%s1587_s0 + $0x70] ss:$8 sps:$4 sm:$0xff]  }
  0x10   :  { %v1051_v44 = vld [vmem:[%s1587_s0 + $0x160] ss:$8 sps:$4 sm:$0xff]   ;;  %v1054_v46 = vld [vmem:[%s1587_s0 + $0x174] ss:$8 sps:$4 sm:$0xff]   ;;  %v1057_v48 = vld [vmem:[%s1587_s0 + $0x170] ss:$8 sps:$4 sm:$0xff]  }
  0x11   :  { %v1058_v49 = vld [vmem:[%s1587_s0 + $0x84] ss:$8 sps:$4 sm:$0xff]   ;;  %v1062_v51 = vld [vmem:[%s1587_s0 + $0x80] ss:$8 sps:$4 sm:$0xff]   ;;  %v1064_v53 = vld [vmem:[%s1587_s0 + $0x94] ss:$8 sps:$4 sm:$0xff]  }
  0x12   :  { %533 = vmatpush1.bf16.msra.mxu0 %v998_v5  ;;  %981 = vmatpush1.bf16.msra.mxu1 %v998_v5  ;;  %v1060_v50 = vld [vmem:[%s1587_s0 + $0x184] ss:$8 sps:$4 sm:$0xff]   ;;  %v1063_v52 = vld [vmem:[%s1587_s0 + $0x180] ss:$8 sps:$4 sm:$0xff]   ;;  %v1066_v54 = vld [vmem:[%s1587_s0 + $0x194] ss:$8 sps:$4 sm:$0xff]  }
  0x13   :  { %534 = vmatprep.subr.bf16.mxu0 %v1106_v0  ;;  %966 = vmatprep.subr.bf16.mxu1 %v1106_v0  ;;  %v1068_v55 = vld [vmem:[%s1587_s0 + $0x90] ss:$8 sps:$4 sm:$0xff]   ;;  %v1070_v57 = vld [vmem:[%s1587_s0 + $0xa4] ss:$8 sps:$4 sm:$0xff]   ;;  %v1074_v59 = vld [vmem:[%s1587_s0 + $0xa0] ss:$8 sps:$4 sm:$0xff]  }
  0x14   :  { %v1069_v56 = vld [vmem:[%s1587_s0 + $0x190] ss:$8 sps:$4 sm:$0xff]   ;;  %v1072_v58 = vld [vmem:[%s1587_s0 + $0x1a4] ss:$8 sps:$4 sm:$0xff]   ;;  %v1075_v60 = vld [vmem:[%s1587_s0 + $0x1a0] ss:$8 sps:$4 sm:$0xff]  }
  0x15   :  { %v1076_v61 = vld [vmem:[%s1587_s0 + $0xb4] ss:$8 sps:$4 sm:$0xff]   ;;  %v1080_v63 = vld [vmem:[%s1587_s0 + $0xb0] ss:$8 sps:$4 sm:$0xff]   ;;  %v1082_v1 = vld [vmem:[%s1587_s0 + $0xc4] ss:$8 sps:$4 sm:$0xff]  }
  0x16   :  { %535 = vmatpush1.bf16.msra.mxu0 %v999_v7  ;;  %982 = vmatpush1.bf16.msra.mxu1 %v999_v7  ;;  %v1078_v62 = vld [vmem:[%s1587_s0 + $0x1b4] ss:$8 sps:$4 sm:$0xff]   ;;  %v1084_v2 = vld [vmem:[%s1587_s0 + $0x1c4] ss:$8 sps:$4 sm:$0xff]   ;;  %v1086_v3 = vld [vmem:[%s1587_s0 + $0xc0] ss:$8 sps:$4 sm:$0xff]  }
  0x17   :  { %536 = vmatprep.subr.bf16.mxu0 %v1106_v0  ;;  %967 = vmatprep.subr.bf16.mxu1 %v1106_v0  ;;  %v1087_v4 = vld [vmem:[%s1587_s0 + $0x1c0] ss:$8 sps:$4 sm:$0xff]   ;;  %v1088_v5 = vld [vmem:[%s1587_s0 + $0xd4] ss:$8 sps:$4 sm:$0xff]   ;;  %v1092_v7 = vld [vmem:[%s1587_s0 + $0xd0] ss:$8 sps:$4 sm:$0xff]  }
  0x18   :  { %v1090_v6 = vld [vmem:[%s1587_s0 + $0x1d4] ss:$8 sps:$4 sm:$0xff]   ;;  %v1093_v8 = vld [vmem:[%s1587_s0 + $0x1d0] ss:$8 sps:$4 sm:$0xff]  }
  0x1a   :  { %537 = vmatpush1.bf16.msra.mxu0 %v1000_v9  ;;  %983 = vmatpush1.bf16.msra.mxu1 %v1000_v9  ;;  %v1094_v9 = vld [vmem:[%s1587_s0 + $0xe4] ss:$8 sps:$4 sm:$0xff]  }
  0x1b   :  { %538 = vmatprep.subr.bf16.mxu0 %v1106_v0  ;;  %968 = vmatprep.subr.bf16.mxu1 %v1106_v0 }
  0x1e   :  { %539 = vmatpush1.bf16.msra.mxu0 %v1001_v10  ;;  %984 = vmatpush1.bf16.msra.mxu1 %v1001_v10  ;;  %v1096_v10 = vld [vmem:[%s1587_s0 + $0x1e4] ss:$8 sps:$4 sm:$0xff]  }
  0x1f   :  { %540 = vmatprep.subr.bf16.mxu0 %v1106_v0  ;;  %969 = vmatprep.subr.bf16.mxu1 %v1106_v0 }
  0x22   :  { %541 = vmatpush1.bf16.msra.mxu0 %v1002_v11  ;;  %985 = vmatpush1.bf16.msra.mxu1 %v1002_v11  ;;  %v1098_v11 = vld [vmem:[%s1587_s0 + $0xe0] ss:$8 sps:$4 sm:$0xff]  }
  0x23   :  { %542 = vmatprep.subr.bf16.mxu0 %v1106_v0  ;;  %970 = vmatprep.subr.bf16.mxu1 %v1106_v0 }
  0x26   :  { %543 = vmatpush1.bf16.msra.mxu0 %v1003_v12  ;;  %986 = vmatpush1.bf16.msra.mxu1 %v1003_v12  ;;  %v1099_v12 = vld [vmem:[%s1587_s0 + $0x1e0] ss:$8 sps:$4 sm:$0xff]  }
  0x27   :  { %544 = vmatprep.subr.bf16.mxu0 %v1106_v0  ;;  %971 = vmatprep.subr.bf16.mxu1 %v1106_v0 }
  0x2a   :  { %545 = vmatpush1.bf16.msra.mxu0 %v1004_v13  ;;  %987 = vmatpush1.bf16.msra.mxu1 %v1004_v13  ;;  %v1100_v13 = vld [vmem:[%s1587_s0 + $0xf4] ss:$8 sps:$4 sm:$0xff]  }
  0x2b   :  { %546 = vmatprep.subr.bf16.mxu0 %v1106_v0  ;;  %972 = vmatprep.subr.bf16.mxu1 %v1106_v0 }
  0x2e   :  { %547 = vmatpush1.bf16.msra.mxu0 %v1005_v14  ;;  %988 = vmatpush1.bf16.msra.mxu1 %v1005_v14  ;;  %v1102_v14 = vld [vmem:[%s1587_s0 + $0x1f4] ss:$8 sps:$4 sm:$0xff]  }
  0x2f   :  { %548 = vmatprep.subr.bf16.mxu0 %v1106_v0  ;;  %973 = vmatprep.subr.bf16.mxu1 %v1106_v0 }
  0x32   :  { %549 = vmatpush1.bf16.msra.mxu0 %v1006_v15  ;;  %989 = vmatpush1.bf16.msra.mxu1 %v1006_v15  ;;  %v1104_v15 = vld [vmem:[%s1587_s0 + $0xf0] ss:$8 sps:$4 sm:$0xff]  }
  0x33   :  { %550 = vmatprep.subr.bf16.mxu0 %v1106_v0  ;;  %974 = vmatprep.subr.bf16.mxu1 %v1106_v0 }
  0x36   :  { %551 = vmatpush1.bf16.msra.mxu0 %v1007_v16  ;;  %990 = vmatpush1.bf16.msra.mxu1 %v1007_v16  ;;  %v1105_v16 = vld [vmem:[%s1587_s0 + $0x1f0] ss:$8 sps:$4 sm:$0xff]  }
  0x37   :  { %552 = vmatprep.subr.bf16.mxu0 %v1106_v0  ;;  %975 = vmatprep.subr.bf16.mxu1 %v1106_v0 }
  0x3a   :  { %553 = vmatpush1.bf16.msra.mxu0 %v1008_v17  ;;  %991 = vmatpush1.bf16.msra.mxu1 %v1008_v17 }
  0x3b   :  { %554 = vmatprep.subr.bf16.mxu0 %v1106_v0  ;;  %976 = vmatprep.subr.bf16.mxu1 %v1106_v0  ;;  %v1081_v0 = vld [vmem:[%s1587_s0 + $0x1b0] ss:$8 sps:$4 sm:$0xff]  }
  0x3e   :  { %555 = vmatpush1.bf16.msra.mxu0 %v1009_v18  ;;  %992 = vmatpush1.bf16.msra.mxu1 %v1009_v18 }
  0x41   :  { %557 = vmatmul.mubr.bf16.vlgmr.msra.gmra.mrb[0].mxu0 %v1010_v19  ;;  %685 = vmatmul.mubr.bf16.vlgmr.msra.gmra.mrb[0].mxu1 %v1013_v20 }
  0x42   :  { %564 = vmatprep.mubr.bf16.mxu0 %v1016_v21  ;;  %692 = vmatprep.mubr.bf16.mxu1 %v1018_v22 }
  0x49   :  { %565 = vmatmul.mubr.bf16.gmra.mrb[4].mxu0 %v1020_v23  ;;  %693 = vmatmul.mubr.bf16.gmra.mrb[4].mxu1 %v1021_v24 }
  0x4a   :  { %572 = vmatprep.mubr.bf16.mxu0 %v1022_v25  ;;  %700 = vmatprep.mubr.bf16.mxu1 %v1024_v26 }
  0x51   :  { %573 = vmatmul.mubr.bf16.gmra.mrb[8].mxu0 %v1026_v27  ;;  %701 = vmatmul.mubr.bf16.gmra.mrb[8].mxu1 %v1027_v28 }
  0x52   :  { %580 = vmatprep.mubr.bf16.mxu0 %v1028_v29  ;;  %708 = vmatprep.mubr.bf16.mxu1 %v1030_v30 }
  0x59   :  { %581 = vmatmul.mubr.bf16.gmra.mrb[12].mxu0 %v1032_v31  ;;  %709 = vmatmul.mubr.bf16.gmra.mrb[12].mxu1 %v1033_v32 }
  0x5a   :  { %588 = vmatprep.mubr.bf16.mxu0 %v1034_v33  ;;  %716 = vmatprep.mubr.bf16.mxu1 %v1036_v34 }
  0x61   :  { %589 = vmatmul.mubr.bf16.gmra.mrb[16].mxu0 %v1038_v35  ;;  %717 = vmatmul.mubr.bf16.gmra.mrb[16].mxu1 %v1039_v36 }
  0x62   :  { %596 = vmatprep.mubr.bf16.mxu0 %v1040_v37  ;;  %724 = vmatprep.mubr.bf16.mxu1 %v1042_v38 }
  0x69   :  { %597 = vmatmul.mubr.bf16.gmra.mrb[20].mxu0 %v1044_v39  ;;  %725 = vmatmul.mubr.bf16.gmra.mrb[20].mxu1 %v1045_v40 }
  0x6a   :  { %604 = vmatprep.mubr.bf16.mxu0 %v1046_v41  ;;  %732 = vmatprep.mubr.bf16.mxu1 %v1048_v42 }
  0x71   :  { %605 = vmatmul.mubr.bf16.gmra.mrb[24].mxu0 %v1050_v43  ;;  %733 = vmatmul.mubr.bf16.gmra.mrb[24].mxu1 %v1051_v44 }
  0x72   :  { %612 = vmatprep.mubr.bf16.mxu0 %v1052_v45  ;;  %740 = vmatprep.mubr.bf16.mxu1 %v1054_v46 }
  0x79   :  { %613 = vmatmul.mubr.bf16.gmra.mrb[28].mxu0 %v1056_v47  ;;  %741 = vmatmul.mubr.bf16.gmra.mrb[28].mxu1 %v1057_v48 }
  0x7a   :  { %620 = vmatprep.mubr.bf16.mxu0 %v1058_v49  ;;  %748 = vmatprep.mubr.bf16.mxu1 %v1060_v50 }
  0x81   :  { %621 = vmatmul.mubr.bf16.gmra.mrb[32].mxu0 %v1062_v51  ;;  %749 = vmatmul.mubr.bf16.gmra.mrb[32].mxu1 %v1063_v52 }
  0x82   :  { %628 = vmatprep.mubr.bf16.mxu0 %v1064_v53  ;;  %756 = vmatprep.mubr.bf16.mxu1 %v1066_v54 }
  0x89   :  { %629 = vmatmul.mubr.bf16.gmra.mrb[36].mxu0 %v1068_v55  ;;  %757 = vmatmul.mubr.bf16.gmra.mrb[36].mxu1 %v1069_v56 }
  0x8a   :  { %636 = vmatprep.mubr.bf16.mxu0 %v1070_v57  ;;  %764 = vmatprep.mubr.bf16.mxu1 %v1072_v58 }
  0x91   :  { %637 = vmatmul.mubr.bf16.gmra.mrb[40].mxu0 %v1074_v59  ;;  %765 = vmatmul.mubr.bf16.gmra.mrb[40].mxu1 %v1075_v60 }
  0x92   :  { %644 = vmatprep.mubr.bf16.mxu0 %v1076_v61  ;;  %772 = vmatprep.mubr.bf16.mxu1 %v1078_v62 }
  0x99   :  { %645 = vmatmul.mubr.bf16.gmra.mrb[44].mxu0 %v1080_v63  ;;  %773 = vmatmul.mubr.bf16.gmra.mrb[44].mxu1 %v1081_v0 }
  0x9a   :  { %652 = vmatprep.mubr.bf16.mxu0 %v1082_v1  ;;  %780 = vmatprep.mubr.bf16.mxu1 %v1084_v2 }
  0xa1   :  { %653 = vmatmul.mubr.bf16.gmra.mrb[48].mxu0 %v1086_v3  ;;  %781 = vmatmul.mubr.bf16.gmra.mrb[48].mxu1 %v1087_v4 }
  0xa2   :  { %660 = vmatprep.mubr.bf16.mxu0 %v1088_v5  ;;  %788 = vmatprep.mubr.bf16.mxu1 %v1090_v6 }
  0xa9   :  { %661 = vmatmul.mubr.bf16.gmra.mrb[52].mxu0 %v1092_v7  ;;  %789 = vmatmul.mubr.bf16.gmra.mrb[52].mxu1 %v1093_v8 }
  0xaa   :  { %668 = vmatprep.mubr.bf16.mxu0 %v1094_v9  ;;  %796 = vmatprep.mubr.bf16.mxu1 %v1096_v10 }
  0xb1   :  { %669 = vmatmul.mubr.bf16.gmra.mrb[56].mxu0 %v1098_v11  ;;  %797 = vmatmul.mubr.bf16.gmra.mrb[56].mxu1 %v1099_v12 }
  0xb2   :  { %676 = vmatprep.mubr.bf16.mxu0 %v1100_v13  ;;  %804 = vmatprep.mubr.bf16.mxu1 %v1102_v14 }
  0xb9   :  { %677 = vmatmul.mubr.bf16.gmra.mrb[60].mxu0 %v1104_v15  ;;  %805 = vmatmul.mubr.bf16.gmra.mrb[60].mxu1 %v1105_v16 }
 0x114   :  { %v558_v17 = vpop.f32.mrb[0].mxu0  ;;  %v686_v18 = vpop.f32.mrb[0].mxu1 }
 0x115   :  { %813 = vst [vmem:[%s1588_s2] sm:$0xff] %v558_v17  ;;  %845 = vst [vmem:[%s1588_s2 + $0x100] sm:$0xff] %v686_v18  ;;  %v560_v19 = vpop.f32.mrb[1].mxu0  ;;  %v688_v20 = vpop.f32.mrb[1].mxu1 }
 0x116   :  { %v561_v21 = vpop.f32.mrb[2].mxu0  ;;  %v689_v22 = vpop.f32.mrb[2].mxu1 }
 0x117   :  { %814 = vst [vmem:[%s1588_s2 + $0x8] sm:$0xff] %v561_v21  ;;  %846 = vst [vmem:[%s1588_s2 + $0x108] sm:$0xff] %v689_v22  ;;  %v563_v23 = vpop.f32.mrb[3].mxu0  ;;  %v691_v24 = vpop.f32.mrb[3].mxu1 }
 0x11c   :  { %v566_v25 = vpop.f32.mrb[4].mxu0  ;;  %v694_v26 = vpop.f32.mrb[4].mxu1 }
 0x11d   :  { %815 = vst [vmem:[%s1588_s2 + $0x10] sm:$0xff] %v566_v25  ;;  %847 = vst [vmem:[%s1588_s2 + $0x110] sm:$0xff] %v694_v26  ;;  %v568_v27 = vpop.f32.mrb[5].mxu0  ;;  %v696_v28 = vpop.f32.mrb[5].mxu1 }
 0x11e   :  { %v569_v29 = vpop.f32.mrb[6].mxu0  ;;  %v697_v30 = vpop.f32.mrb[6].mxu1 }
 0x11f   :  { %816 = vst [vmem:[%s1588_s2 + $0x18] sm:$0xff] %v569_v29  ;;  %848 = vst [vmem:[%s1588_s2 + $0x118] sm:$0xff] %v697_v30  ;;  %v571_v31 = vpop.f32.mrb[7].mxu0  ;;  %v699_v32 = vpop.f32.mrb[7].mxu1 }
 0x124   :  { %v574_v33 = vpop.f32.mrb[8].mxu0  ;;  %v702_v34 = vpop.f32.mrb[8].mxu1 }
 0x125   :  { %817 = vst [vmem:[%s1588_s2 + $0x20] sm:$0xff] %v574_v33  ;;  %849 = vst [vmem:[%s1588_s2 + $0x120] sm:$0xff] %v702_v34  ;;  %v576_v35 = vpop.f32.mrb[9].mxu0  ;;  %v704_v36 = vpop.f32.mrb[9].mxu1 }
 0x126   :  { %v577_v37 = vpop.f32.mrb[10].mxu0  ;;  %v705_v38 = vpop.f32.mrb[10].mxu1 }
 0x127   :  { %818 = vst [vmem:[%s1588_s2 + $0x28] sm:$0xff] %v577_v37  ;;  %850 = vst [vmem:[%s1588_s2 + $0x128] sm:$0xff] %v705_v38  ;;  %v579_v39 = vpop.f32.mrb[11].mxu0  ;;  %v707_v40 = vpop.f32.mrb[11].mxu1 }
 0x12c   :  { %v582_v41 = vpop.f32.mrb[12].mxu0  ;;  %v710_v42 = vpop.f32.mrb[12].mxu1 }
 0x12d   :  { %819 = vst [vmem:[%s1588_s2 + $0x30] sm:$0xff] %v582_v41  ;;  %851 = vst [vmem:[%s1588_s2 + $0x130] sm:$0xff] %v710_v42  ;;  %v584_v43 = vpop.f32.mrb[13].mxu0  ;;  %v712_v44 = vpop.f32.mrb[13].mxu1 }
 0x12e   :  { %v585_v45 = vpop.f32.mrb[14].mxu0  ;;  %v713_v46 = vpop.f32.mrb[14].mxu1 }
 0x12f   :  { %820 = vst [vmem:[%s1588_s2 + $0x38] sm:$0xff] %v585_v45  ;;  %852 = vst [vmem:[%s1588_s2 + $0x138] sm:$0xff] %v713_v46  ;;  %v587_v47 = vpop.f32.mrb[15].mxu0  ;;  %v715_v48 = vpop.f32.mrb[15].mxu1 }
 0x134   :  { %v590_v49 = vpop.f32.mrb[16].mxu0  ;;  %v718_v50 = vpop.f32.mrb[16].mxu1 }
 0x135   :  { %821 = vst [vmem:[%s1588_s2 + $0x40] sm:$0xff] %v590_v49  ;;  %853 = vst [vmem:[%s1588_s2 + $0x140] sm:$0xff] %v718_v50  ;;  %v592_v51 = vpop.f32.mrb[17].mxu0  ;;  %v720_v52 = vpop.f32.mrb[17].mxu1 }
 0x136   :  { %v593_v53 = vpop.f32.mrb[18].mxu0  ;;  %v721_v54 = vpop.f32.mrb[18].mxu1 }
 0x137   :  { %822 = vst [vmem:[%s1588_s2 + $0x48] sm:$0xff] %v593_v53  ;;  %854 = vst [vmem:[%s1588_s2 + $0x148] sm:$0xff] %v721_v54  ;;  %v595_v55 = vpop.f32.mrb[19].mxu0  ;;  %v723_v56 = vpop.f32.mrb[19].mxu1 }
 0x13c   :  { %v598_v57 = vpop.f32.mrb[20].mxu0  ;;  %v726_v58 = vpop.f32.mrb[20].mxu1 }
 0x13d   :  { %823 = vst [vmem:[%s1588_s2 + $0x50] sm:$0xff] %v598_v57  ;;  %855 = vst [vmem:[%s1588_s2 + $0x150] sm:$0xff] %v726_v58  ;;  %v600_v59 = vpop.f32.mrb[21].mxu0  ;;  %v728_v60 = vpop.f32.mrb[21].mxu1 }
 0x13e   :  { %v601_v61 = vpop.f32.mrb[22].mxu0  ;;  %v729_v62 = vpop.f32.mrb[22].mxu1 }
 0x13f   :  { %824 = vst [vmem:[%s1588_s2 + $0x58] sm:$0xff] %v601_v61  ;;  %856 = vst [vmem:[%s1588_s2 + $0x158] sm:$0xff] %v729_v62  ;;  %v603_v63 = vpop.f32.mrb[23].mxu0  ;;  %v731_v0 = vpop.f32.mrb[23].mxu1 }
 0x144   :  { %v606_v1 = vpop.f32.mrb[24].mxu0  ;;  %v734_v2 = vpop.f32.mrb[24].mxu1 }
 0x145   :  { %825 = vst [vmem:[%s1588_s2 + $0x60] sm:$0xff] %v606_v1  ;;  %857 = vst [vmem:[%s1588_s2 + $0x160] sm:$0xff] %v734_v2  ;;  %v608_v3 = vpop.f32.mrb[25].mxu0  ;;  %v736_v4 = vpop.f32.mrb[25].mxu1 }
 0x146   :  { %v609_v5 = vpop.f32.mrb[26].mxu0  ;;  %v737_v6 = vpop.f32.mrb[26].mxu1 }
 0x147   :  { %826 = vst [vmem:[%s1588_s2 + $0x68] sm:$0xff] %v609_v5  ;;  %858 = vst [vmem:[%s1588_s2 + $0x168] sm:$0xff] %v737_v6  ;;  %v611_v7 = vpop.f32.mrb[27].mxu0  ;;  %v739_v8 = vpop.f32.mrb[27].mxu1 }
 0x14c   :  { %v614_v9 = vpop.f32.mrb[28].mxu0  ;;  %v742_v10 = vpop.f32.mrb[28].mxu1 }
 0x14d   :  { %827 = vst [vmem:[%s1588_s2 + $0x70] sm:$0xff] %v614_v9  ;;  %859 = vst [vmem:[%s1588_s2 + $0x170] sm:$0xff] %v742_v10  ;;  %v616_v11 = vpop.f32.mrb[29].mxu0  ;;  %v744_v12 = vpop.f32.mrb[29].mxu1 }
 0x14e   :  { %v617_v13 = vpop.f32.mrb[30].mxu0  ;;  %v745_v14 = vpop.f32.mrb[30].mxu1 }
 0x14f   :  { %828 = vst [vmem:[%s1588_s2 + $0x78] sm:$0xff] %v617_v13  ;;  %860 = vst [vmem:[%s1588_s2 + $0x178] sm:$0xff] %v745_v14  ;;  %v619_v15 = vpop.f32.mrb[31].mxu0  ;;  %v747_v16 = vpop.f32.mrb[31].mxu1 }
 0x154   :  { %v622_v17 = vpop.f32.mrb[32].mxu0  ;;  %v750_v18 = vpop.f32.mrb[32].mxu1 }
 0x155   :  { %829 = vst [vmem:[%s1588_s2 + $0x80] sm:$0xff] %v622_v17  ;;  %861 = vst [vmem:[%s1588_s2 + $0x180] sm:$0xff] %v750_v18  ;;  %v624_v19 = vpop.f32.mrb[33].mxu0  ;;  %v752_v20 = vpop.f32.mrb[33].mxu1 }
 0x156   :  { %v625_v21 = vpop.f32.mrb[34].mxu0  ;;  %v753_v22 = vpop.f32.mrb[34].mxu1 }
 0x157   :  { %830 = vst [vmem:[%s1588_s2 + $0x88] sm:$0xff] %v625_v21  ;;  %862 = vst [vmem:[%s1588_s2 + $0x188] sm:$0xff] %v753_v22  ;;  %v627_v23 = vpop.f32.mrb[35].mxu0  ;;  %v755_v24 = vpop.f32.mrb[35].mxu1 }
 0x15c   :  { %v630_v25 = vpop.f32.mrb[36].mxu0  ;;  %v758_v26 = vpop.f32.mrb[36].mxu1 }
 0x15d   :  { %831 = vst [vmem:[%s1588_s2 + $0x90] sm:$0xff] %v630_v25  ;;  %863 = vst [vmem:[%s1588_s2 + $0x190] sm:$0xff] %v758_v26  ;;  %v632_v27 = vpop.f32.mrb[37].mxu0  ;;  %v760_v28 = vpop.f32.mrb[37].mxu1 }
 0x15e   :  { %v633_v29 = vpop.f32.mrb[38].mxu0  ;;  %v761_v30 = vpop.f32.mrb[38].mxu1 }
 0x15f   :  { %832 = vst [vmem:[%s1588_s2 + $0x98] sm:$0xff] %v633_v29  ;;  %864 = vst [vmem:[%s1588_s2 + $0x198] sm:$0xff] %v761_v30  ;;  %v635_v31 = vpop.f32.mrb[39].mxu0  ;;  %v763_v32 = vpop.f32.mrb[39].mxu1 }
 0x164   :  { %v638_v33 = vpop.f32.mrb[40].mxu0  ;;  %v766_v34 = vpop.f32.mrb[40].mxu1 }
 0x165   :  { %833 = vst [vmem:[%s1588_s2 + $0xa0] sm:$0xff] %v638_v33  ;;  %865 = vst [vmem:[%s1588_s2 + $0x1a0] sm:$0xff] %v766_v34  ;;  %v640_v35 = vpop.f32.mrb[41].mxu0  ;;  %v768_v36 = vpop.f32.mrb[41].mxu1 }
 0x166   :  { %v641_v37 = vpop.f32.mrb[42].mxu0  ;;  %v769_v38 = vpop.f32.mrb[42].mxu1 }
 0x167   :  { %834 = vst [vmem:[%s1588_s2 + $0xa8] sm:$0xff] %v641_v37  ;;  %866 = vst [vmem:[%s1588_s2 + $0x1a8] sm:$0xff] %v769_v38  ;;  %v643_v39 = vpop.f32.mrb[43].mxu0  ;;  %v771_v40 = vpop.f32.mrb[43].mxu1 }
 0x16c   :  { %v646_v41 = vpop.f32.mrb[44].mxu0  ;;  %v774_v42 = vpop.f32.mrb[44].mxu1 }
 0x16d   :  { %835 = vst [vmem:[%s1588_s2 + $0xb0] sm:$0xff] %v646_v41  ;;  %867 = vst [vmem:[%s1588_s2 + $0x1b0] sm:$0xff] %v774_v42  ;;  %v648_v43 = vpop.f32.mrb[45].mxu0  ;;  %v776_v44 = vpop.f32.mrb[45].mxu1 }
 0x16e   :  { %v649_v45 = vpop.f32.mrb[46].mxu0  ;;  %v777_v46 = vpop.f32.mrb[46].mxu1 }
 0x16f   :  { %836 = vst [vmem:[%s1588_s2 + $0xb8] sm:$0xff] %v649_v45  ;;  %868 = vst [vmem:[%s1588_s2 + $0x1b8] sm:$0xff] %v777_v46  ;;  %v651_v47 = vpop.f32.mrb[47].mxu0  ;;  %v779_v48 = vpop.f32.mrb[47].mxu1 }
 0x174   :  { %v654_v49 = vpop.f32.mrb[48].mxu0  ;;  %v782_v50 = vpop.f32.mrb[48].mxu1 }
 0x175   :  { %837 = vst [vmem:[%s1588_s2 + $0xc0] sm:$0xff] %v654_v49  ;;  %869 = vst [vmem:[%s1588_s2 + $0x1c0] sm:$0xff] %v782_v50  ;;  %v656_v51 = vpop.f32.mrb[49].mxu0  ;;  %v784_v52 = vpop.f32.mrb[49].mxu1 }
 0x176   :  { %v657_v53 = vpop.f32.mrb[50].mxu0  ;;  %v785_v54 = vpop.f32.mrb[50].mxu1 }
 0x177   :  { %838 = vst [vmem:[%s1588_s2 + $0xc8] sm:$0xff] %v657_v53  ;;  %870 = vst [vmem:[%s1588_s2 + $0x1c8] sm:$0xff] %v785_v54  ;;  %v659_v55 = vpop.f32.mrb[51].mxu0  ;;  %v787_v56 = vpop.f32.mrb[51].mxu1 }
 0x17c   :  { %v662_v57 = vpop.f32.mrb[52].mxu0  ;;  %v790_v58 = vpop.f32.mrb[52].mxu1 }
 0x17d   :  { %839 = vst [vmem:[%s1588_s2 + $0xd0] sm:$0xff] %v662_v57  ;;  %871 = vst [vmem:[%s1588_s2 + $0x1d0] sm:$0xff] %v790_v58  ;;  %v664_v59 = vpop.f32.mrb[53].mxu0  ;;  %v792_v60 = vpop.f32.mrb[53].mxu1 }
 0x17e   :  { %v665_v61 = vpop.f32.mrb[54].mxu0  ;;  %v793_v62 = vpop.f32.mrb[54].mxu1 }
 0x17f   :  { %840 = vst [vmem:[%s1588_s2 + $0xd8] sm:$0xff] %v665_v61  ;;  %872 = vst [vmem:[%s1588_s2 + $0x1d8] sm:$0xff] %v793_v62  ;;  %v667_v63 = vpop.f32.mrb[55].mxu0  ;;  %v795_v0 = vpop.f32.mrb[55].mxu1 }
 0x184   :  { %v670_v1 = vpop.f32.mrb[56].mxu0  ;;  %v798_v2 = vpop.f32.mrb[56].mxu1 }
 0x185   :  { %841 = vst [vmem:[%s1588_s2 + $0xe0] sm:$0xff] %v670_v1  ;;  %873 = vst [vmem:[%s1588_s2 + $0x1e0] sm:$0xff] %v798_v2  ;;  %v672_v3 = vpop.f32.mrb[57].mxu0  ;;  %v800_v4 = vpop.f32.mrb[57].mxu1 }
 0x186   :  { %v673_v5 = vpop.f32.mrb[58].mxu0  ;;  %v801_v6 = vpop.f32.mrb[58].mxu1 }
 0x187   :  { %842 = vst [vmem:[%s1588_s2 + $0xe8] sm:$0xff] %v673_v5  ;;  %874 = vst [vmem:[%s1588_s2 + $0x1e8] sm:$0xff] %v801_v6  ;;  %v675_v7 = vpop.f32.mrb[59].mxu0  ;;  %v803_v8 = vpop.f32.mrb[59].mxu1 }
 0x18c   :  { %v678_v9 = vpop.f32.mrb[60].mxu0  ;;  %v806_v10 = vpop.f32.mrb[60].mxu1 }
 0x18d   :  { %843 = vst [vmem:[%s1588_s2 + $0xf0] sm:$0xff] %v678_v9  ;;  %875 = vst [vmem:[%s1588_s2 + $0x1f0] sm:$0xff] %v806_v10  ;;  %v680_v11 = vpop.f32.mrb[61].mxu0  ;;  %v808_v12 = vpop.f32.mrb[61].mxu1 }
 0x18e   :  { %v681_v13 = vpop.f32.mrb[62].mxu0  ;;  %v809_v14 = vpop.f32.mrb[62].mxu1 }
 0x18f   :  { %844 = vst [vmem:[%s1588_s2 + $0xf8] sm:$0xff] %v681_v13  ;;  %876 = vst [vmem:[%s1588_s2 + $0x1f8] sm:$0xff] %v809_v14  ;;  %v683_v15 = vpop.f32.mrb[63].mxu0  ;;  %v811_v16 = vpop.f32.mrb[63].mxu1 }

// kernel: _lambda_.56
= control target key start
LH: loop header
LB: loop body
LE: loop exit
PB: predicated region body
PF: predicated region fallthrough
CT: control target
= control target key end

     0   :  { %s613_s12 = smov 0   ;;  %s900_s0 = inlined_call_operand.vmem [shape: f32[1024,128], index: 0, kind: input, shape index: {}]   ;;  %s901_s1 = inlined_call_operand.vmem [shape: f32[1,128], index: 1, kind: input, shape index: {}]   ;;  %s902_s2 = inlined_call_operand.vmem [shape: f32[1,128], index: 2, kind: input, shape index: {}]   ;;  %s903_s3 = inlined_call_operand.vmem [shape: f32[1024,128], index: 3, kind: output, shape index: {}]  }
   0x1 LB: > { %s564_s13 = sadd.s32 4294967295, %s591_s12   ;;  %p568_p0 = scmp.ge.s32.totalorder %s591_s12, 1  ;;  %s591_s12 = sphi %s613_s12, %s13_s12  }
   0x2   : > { %p138_p1 = scmp.lt.s32.totalorder %s591_s12, 3 }
   0x4   : > { %p139_p2 = pnand %p568_p0, %p138_p1 }
   0x5   : > { %s569_s14 = sshll.u32 (!%p139_p2), %s564_s13, 6  ;;  %v624_v0 = vld [vmem:[%s901_s1] ss:$0 sm:$0xff] (!%p139_p2) }
   0x6   : > { %142 = sbr.rel (%p139_p2) target bundleno = 70 (0x46), region = 32  ;;  %p163_p3 = scmp.lt.s32.totalorder (!%p139_p2), %s569_s14, 127  ;;  %v634_v1 = vld [vmem:[%s902_s2] ss:$0 sm:$0xff] (!%p139_p2) }
   0xd   : > { %s905_s14 = smov (!%p163_p3, %s569_s14), 127 }
   0xe   : > { %s570_s15 = sshll.u32 %s905_s14, 3 }
   0xf   : > { %s629_s20 = scalar_lea.vmem %s900_s0, %s570_s15  ;;  %s657_s25 = scalar_lea.vmem %s903_s3, %s570_s15 }
  0x10   : > { %v174_v2 = vld [vmem:[%s629_s20] sm:$0xff]  ;;  %v175_v3 = vld [vmem:[%s629_s20 + $0x8] sm:$0xff]  ;;  %v176_v4 = vld [vmem:[%s629_s20 + $0x10] sm:$0xff] }
  0x11   : > { %v245_v5 = vmul.f32 %v624_v0, %v174_v2  ;;  %v246_v6 = vmul.f32 %v624_v0, %v175_v3  ;;  %v247_v7 = vmul.f32 %v624_v0, %v176_v4  ;;  %v177_v8 = vld [vmem:[%s629_s20 + $0x18] sm:$0xff]  ;;  %v178_v9 = vld [vmem:[%s629_s20 + $0x20] sm:$0xff]  ;;  %v179_v10 = vld [vmem:[%s629_s20 + $0x28] sm:$0xff] }
  0x12   : > { %v248_v11 = vmul.f32 %v624_v0, %v177_v8  ;;  %v249_v12 = vmul.f32 %v624_v0, %v178_v9  ;;  %v250_v13 = vmul.f32 %v624_v0, %v179_v10  ;;  %v180_v14 = vld [vmem:[%s629_s20 + $0x30] sm:$0xff]  ;;  %v181_v15 = vld [vmem:[%s629_s20 + $0x38] sm:$0xff]  ;;  %v182_v24 = vld [vmem:[%s629_s20 + $0x40] sm:$0xff] }
  0x13   : > { %v316_v16 = vadd.f32 %v634_v1, %v245_v5  ;;  %v317_v17 = vadd.f32 %v634_v1, %v246_v6  ;;  %v318_v18 = vadd.f32 %v634_v1, %v247_v7  ;;  %v251_v19 = vmul.f32 %v624_v0, %v180_v14  ;;  %v183_v25 = vld [vmem:[%s629_s20 + $0x48] sm:$0xff]  ;;  %v184_v26 = vld [vmem:[%s629_s20 + $0x50] sm:$0xff]  ;;  %v185_v31 = vld [vmem:[%s629_s20 + $0x58] sm:$0xff] }
  0x14   : > { %v319_v20 = vadd.f32 %v634_v1, %v248_v11  ;;  %v320_v21 = vadd.f32 %v634_v1, %v249_v12  ;;  %v321_v22 = vadd.f32 %v634_v1, %v250_v13  ;;  %v252_v23 = vmul.f32 %v624_v0, %v181_v15  ;;  %v186_v32 = vld [vmem:[%s629_s20 + $0x60] sm:$0xff]  ;;  %v187_v33 = vld [vmem:[%s629_s20 + $0x68] sm:$0xff]  ;;  %v188_v38 = vld [vmem:[%s629_s20 + $0x70] sm:$0xff] }
  0x15   : > { %v380_v27 = vmax.f32 %v316_v16, 0.0  ;;  %v381_v28 = vmax.f32 %v317_v17, 0.0  ;;  %v382_v29 = vmax.f32 %v318_v18, 0.0  ;;  %v322_v30 = vadd.f32 %v634_v1, %v251_v19  ;;  %v189_v43 = vld [vmem:[%s629_s20 + $0x78] sm:$0xff]  ;;  %v190_v56 = vld [vmem:[%s629_s20 + $0x80] sm:$0xff]  ;;  %v191_v57 = vld [vmem:[%s629_s20 + $0x88] sm:$0xff] }
  0x16   : > { %v383_v34 = vmax.f32 %v319_v20, 0.0  ;;  %v384_v35 = vmax.f32 %v320_v21, 0.0  ;;  %v385_v36 = vmax.f32 %v321_v22, 0.0  ;;  %v323_v37 = vadd.f32 %v634_v1, %v252_v23  ;;  %v192_v58 = vld [vmem:[%s629_s20 + $0x90] sm:$0xff]  ;;  %v193_v63 = vld [vmem:[%s629_s20 + $0x98] sm:$0xff]  ;;  %v194_v2 = vld [vmem:[%s629_s20 + $0xa0] sm:$0xff] }
  0x17   : > { %444 = vst [vmem:[%s657_s25] sm:$0xff] %v380_v27  ;;  %445 = vst [vmem:[%s657_s25 + $0x8] sm:$0xff] %v381_v28  ;;  %v386_v39 = vmax.f32 %v322_v30, 0.0  ;;  %v253_v40 = vmul.f32 %v624_v0, %v182_v24  ;;  %v254_v41 = vmul.f32 %v624_v0, %v183_v25  ;;  %v255_v42 = vmul.f32 %v624_v0, %v184_v26  ;;  %v195_v3 = vld [vmem:[%s629_s20 + $0xa8] sm:$0xff]  ;;  %v196_v8 = vld [vmem:[%s629_s20 + $0xb0] sm:$0xff] }
  0x18   : > { %446 = vst [vmem:[%s657_s25 + $0x10] sm:$0xff] %v382_v29  ;;  %447 = vst [vmem:[%s657_s25 + $0x18] sm:$0xff] %v383_v34  ;;  %v387_v44 = vmax.f32 %v323_v37, 0.0  ;;  %v256_v45 = vmul.f32 %v624_v0, %v185_v31  ;;  %v257_v46 = vmul.f32 %v624_v0, %v186_v32  ;;  %v258_v47 = vmul.f32 %v624_v0, %v187_v33  ;;  %v197_v13 = vld [vmem:[%s629_s20 + $0xb8] sm:$0xff]  ;;  %v198_v26 = vld [vmem:[%s629_s20 + $0xc0] sm:$0xff] }
  0x19   : > { %448 = vst [vmem:[%s657_s25 + $0x20] sm:$0xff] %v384_v35  ;;  %449 = vst [vmem:[%s657_s25 + $0x28] sm:$0xff] %v385_v36  ;;  %v324_v48 = vadd.f32 %v634_v1, %v253_v40  ;;  %v325_v49 = vadd.f32 %v634_v1, %v254_v41  ;;  %v326_v50 = vadd.f32 %v634_v1, %v255_v42  ;;  %v199_v27 = vld [vmem:[%s629_s20 + $0xc8] sm:$0xff]  ;;  %v200_v28 = vld [vmem:[%s629_s20 + $0xd0] sm:$0xff] }
  0x1a   : > { %450 = vst [vmem:[%s657_s25 + $0x30] sm:$0xff] %v386_v39  ;;  %v259_v51 = vmul.f32 %v624_v0, %v188_v38  ;;  %451 = vst [vmem:[%s657_s25 + $0x38] sm:$0xff] %v387_v44  ;;  %v327_v52 = vadd.f32 %v634_v1, %v256_v45  ;;  %v328_v53 = vadd.f32 %v634_v1, %v257_v46  ;;  %v201_v33 = vld [vmem:[%s629_s20 + $0xd8] sm:$0xff]  ;;  %v202_v34 = vld [vmem:[%s629_s20 + $0xe0] sm:$0xff] }
  0x1b   : > { %v329_v54 = vadd.f32 %v634_v1, %v258_v47  ;;  %v260_v55 = vmul.f32 %v624_v0, %v189_v43  ;;  %v388_v59 = vmax.f32 %v324_v48, 0.0  ;;  %v389_v60 = vmax.f32 %v325_v49, 0.0  ;;  %v203_v35 = vld [vmem:[%s629_s20 + $0xe8] sm:$0xff]  ;;  %v204_v40 = vld [vmem:[%s629_s20 + $0xf0] sm:$0xff]  ;;  %v205_v45 = vld [vmem:[%s629_s20 + $0xf8] sm:$0xff] }
  0x1c   : > { %v390_v61 = vmax.f32 %v326_v50, 0.0  ;;  %v330_v62 = vadd.f32 %v634_v1, %v259_v51  ;;  %v391_v4 = vmax.f32 %v327_v52, 0.0  ;;  %v392_v5 = vmax.f32 %v328_v53, 0.0 }
  0x1d   : > { %v393_v6 = vmax.f32 %v329_v54, 0.0  ;;  %v331_v7 = vadd.f32 %v634_v1, %v260_v55  ;;  %452 = vst [vmem:[%s657_s25 + $0x40] sm:$0xff] %v388_v59  ;;  %453 = vst [vmem:[%s657_s25 + $0x48] sm:$0xff] %v389_v60  ;;  %v261_v10 = vmul.f32 %v624_v0, %v190_v56  ;;  %v262_v11 = vmul.f32 %v624_v0, %v191_v57  ;;  %v207_v59 = vld [vmem:[%s629_s20 + $0x108] sm:$0xff]  ;;  %v208_v60 = vld [vmem:[%s629_s20 + $0x110] sm:$0xff] }
  0x1e   : > { %454 = vst [vmem:[%s657_s25 + $0x50] sm:$0xff] %v390_v61  ;;  %v394_v9 = vmax.f32 %v330_v62, 0.0  ;;  %v263_v12 = vmul.f32 %v624_v0, %v192_v58  ;;  %455 = vst [vmem:[%s657_s25 + $0x58] sm:$0xff] %v391_v4  ;;  %v264_v15 = vmul.f32 %v624_v0, %v193_v63  ;;  %v265_v16 = vmul.f32 %v624_v0, %v194_v2  ;;  %v206_v58 = vld [vmem:[%s629_s20 + $0x100] sm:$0xff] }
  0x1f   : > { %456 = vst [vmem:[%s657_s25 + $0x60] sm:$0xff] %v392_v5  ;;  %457 = vst [vmem:[%s657_s25 + $0x68] sm:$0xff] %v393_v6  ;;  %v395_v14 = vmax.f32 %v331_v7, 0.0  ;;  %v266_v17 = vmul.f32 %v624_v0, %v195_v3  ;;  %v332_v18 = vadd.f32 %v634_v1, %v261_v10  ;;  %v333_v19 = vadd.f32 %v634_v1, %v262_v11  ;;  %v209_v3 = vld [vmem:[%s629_s20 + $0x118] sm:$0xff]  ;;  %v210_v4 = vld [vmem:[%s629_s20 + $0x120] sm:$0xff] }
  0x20   : > { %458 = vst [vmem:[%s657_s25 + $0x70] sm:$0xff] %v394_v9  ;;  %v334_v20 = vadd.f32 %v634_v1, %v263_v12  ;;  %v267_v21 = vmul.f32 %v624_v0, %v196_v8  ;;  %v335_v22 = vadd.f32 %v634_v1, %v264_v15  ;;  %v336_v23 = vadd.f32 %v634_v1, %v265_v16  ;;  %v211_v5 = vld [vmem:[%s629_s20 + $0x128] sm:$0xff]  ;;  %v212_v10 = vld [vmem:[%s629_s20 + $0x130] sm:$0xff]  ;;  %v213_v15 = vld [vmem:[%s629_s20 + $0x138] sm:$0xff] }
  0x21   : > { %459 = vst [vmem:[%s657_s25 + $0x78] sm:$0xff] %v395_v14  ;;  %v337_v24 = vadd.f32 %v634_v1, %v266_v17  ;;  %v268_v25 = vmul.f32 %v624_v0, %v197_v13  ;;  %v396_v29 = vmax.f32 %v332_v18, 0.0  ;;  %v397_v30 = vmax.f32 %v333_v19, 0.0 }
  0x22   : > { %v398_v31 = vmax.f32 %v334_v20, 0.0  ;;  %v338_v32 = vadd.f32 %v634_v1, %v267_v21  ;;  %v399_v36 = vmax.f32 %v335_v22, 0.0  ;;  %v400_v37 = vmax.f32 %v336_v23, 0.0 }
  0x23   : > { %v401_v38 = vmax.f32 %v337_v24, 0.0  ;;  %v339_v39 = vadd.f32 %v634_v1, %v268_v25  ;;  %460 = vst [vmem:[%s657_s25 + $0x80] sm:$0xff] %v396_v29  ;;  %461 = vst [vmem:[%s657_s25 + $0x88] sm:$0xff] %v397_v30  ;;  %v269_v42 = vmul.f32 %v624_v0, %v198_v26  ;;  %v270_v43 = vmul.f32 %v624_v0, %v199_v27  ;;  %v215_v29 = vld [vmem:[%s629_s20 + $0x148] sm:$0xff]  ;;  %v216_v30 = vld [vmem:[%s629_s20 + $0x150] sm:$0xff] }
  0x24   : > { %462 = vst [vmem:[%s657_s25 + $0x90] sm:$0xff] %v398_v31  ;;  %v402_v41 = vmax.f32 %v338_v32, 0.0  ;;  %v271_v44 = vmul.f32 %v624_v0, %v200_v28  ;;  %463 = vst [vmem:[%s657_s25 + $0x98] sm:$0xff] %v399_v36  ;;  %v272_v47 = vmul.f32 %v624_v0, %v201_v33  ;;  %v273_v48 = vmul.f32 %v624_v0, %v202_v34  ;;  %v214_v28 = vld [vmem:[%s629_s20 + $0x140] sm:$0xff] }
  0x25   : > { %464 = vst [vmem:[%s657_s25 + $0xa0] sm:$0xff] %v400_v37  ;;  %465 = vst [vmem:[%s657_s25 + $0xa8] sm:$0xff] %v401_v38  ;;  %v403_v46 = vmax.f32 %v339_v39, 0.0  ;;  %v274_v49 = vmul.f32 %v624_v0, %v203_v35  ;;  %v340_v50 = vadd.f32 %v634_v1, %v269_v42  ;;  %v341_v51 = vadd.f32 %v634_v1, %v270_v43  ;;  %v217_v35 = vld [vmem:[%s629_s20 + $0x158] sm:$0xff]  ;;  %v218_v36 = vld [vmem:[%s629_s20 + $0x160] sm:$0xff] }
  0x26   : > { %466 = vst [vmem:[%s657_s25 + $0xb0] sm:$0xff] %v402_v41  ;;  %v342_v52 = vadd.f32 %v634_v1, %v271_v44  ;;  %v275_v53 = vmul.f32 %v624_v0, %v204_v40  ;;  %v343_v54 = vadd.f32 %v634_v1, %v272_v47  ;;  %v344_v55 = vadd.f32 %v634_v1, %v273_v48  ;;  %v219_v37 = vld [vmem:[%s629_s20 + $0x168] sm:$0xff]  ;;  %v220_v42 = vld [vmem:[%s629_s20 + $0x170] sm:$0xff]  ;;  %v221_v47 = vld [vmem:[%s629_s20 + $0x178] sm:$0xff] }
  0x27   : > { %467 = vst [vmem:[%s657_s25 + $0xb8] sm:$0xff] %v403_v46  ;;  %v345_v56 = vadd.f32 %v634_v1, %v274_v49  ;;  %v276_v57 = vmul.f32 %v624_v0, %v205_v45  ;;  %v404_v61 = vmax.f32 %v340_v50, 0.0  ;;  %v405_v62 = vmax.f32 %v341_v51, 0.0 }
  0x28   : > { %v406_v63 = vmax.f32 %v342_v52, 0.0  ;;  %v346_v2 = vadd.f32 %v634_v1, %v275_v53  ;;  %v407_v6 = vmax.f32 %v343_v54, 0.0  ;;  %v408_v7 = vmax.f32 %v344_v55, 0.0 }
  0x29   : > { %v409_v8 = vmax.f32 %v345_v56, 0.0  ;;  %v347_v9 = vadd.f32 %v634_v1, %v276_v57  ;;  %468 = vst [vmem:[%s657_s25 + $0xc0] sm:$0xff] %v404_v61  ;;  %469 = vst [vmem:[%s657_s25 + $0xc8] sm:$0xff] %v405_v62  ;;  %v277_v12 = vmul.f32 %v624_v0, %v206_v58  ;;  %v278_v13 = vmul.f32 %v624_v0, %v207_v59  ;;  %v223_v61 = vld [vmem:[%s629_s20 + $0x188] sm:$0xff]  ;;  %v224_v62 = vld [vmem:[%s629_s20 + $0x190] sm:$0xff] }
  0x2a   : > { %470 = vst [vmem:[%s657_s25 + $0xd0] sm:$0xff] %v406_v63  ;;  %v410_v11 = vmax.f32 %v346_v2, 0.0  ;;  %v279_v14 = vmul.f32 %v624_v0, %v208_v60  ;;  %471 = vst [vmem:[%s657_s25 + $0xd8] sm:$0xff] %v407_v6  ;;  %v280_v17 = vmul.f32 %v624_v0, %v209_v3  ;;  %v281_v18 = vmul.f32 %v624_v0, %v210_v4  ;;  %v222_v60 = vld [vmem:[%s629_s20 + $0x180] sm:$0xff] }
  0x2b   : > { %472 = vst [vmem:[%s657_s25 + $0xe0] sm:$0xff] %v408_v7  ;;  %473 = vst [vmem:[%s657_s25 + $0xe8] sm:$0xff] %v409_v8  ;;  %v411_v16 = vmax.f32 %v347_v9, 0.0  ;;  %v282_v19 = vmul.f32 %v624_v0, %v211_v5  ;;  %v348_v20 = vadd.f32 %v634_v1, %v277_v12  ;;  %v349_v21 = vadd.f32 %v634_v1, %v278_v13  ;;  %v225_v5 = vld [vmem:[%s629_s20 + $0x198] sm:$0xff]  ;;  %v226_v6 = vld [vmem:[%s629_s20 + $0x1a0] sm:$0xff] }
  0x2c   : > { %474 = vst [vmem:[%s657_s25 + $0xf0] sm:$0xff] %v410_v11  ;;  %v350_v22 = vadd.f32 %v634_v1, %v279_v14  ;;  %v283_v23 = vmul.f32 %v624_v0, %v212_v10  ;;  %v351_v24 = vadd.f32 %v634_v1, %v280_v17  ;;  %v352_v25 = vadd.f32 %v634_v1, %v281_v18  ;;  %v227_v7 = vld [vmem:[%s629_s20 + $0x1a8] sm:$0xff]  ;;  %v228_v12 = vld [vmem:[%s629_s20 + $0x1b0] sm:$0xff]  ;;  %v229_v17 = vld [vmem:[%s629_s20 + $0x1b8] sm:$0xff] }
  0x2d   : > { %475 = vst [vmem:[%s657_s25 + $0xf8] sm:$0xff] %v411_v16  ;;  %v353_v26 = vadd.f32 %v634_v1, %v282_v19  ;;  %v284_v27 = vmul.f32 %v624_v0, %v213_v15  ;;  %v412_v31 = vmax.f32 %v348_v20, 0.0  ;;  %v413_v32 = vmax.f32 %v349_v21, 0.0 }
  0x2e   : > { %v414_v33 = vmax.f32 %v350_v22, 0.0  ;;  %v354_v34 = vadd.f32 %v634_v1, %v283_v23  ;;  %v415_v38 = vmax.f32 %v351_v24, 0.0  ;;  %v416_v39 = vmax.f32 %v352_v25, 0.0 }
  0x2f   : > { %v417_v40 = vmax.f32 %v353_v26, 0.0  ;;  %v355_v41 = vadd.f32 %v634_v1, %v284_v27  ;;  %476 = vst [vmem:[%s657_s25 + $0x100] sm:$0xff] %v412_v31  ;;  %477 = vst [vmem:[%s657_s25 + $0x108] sm:$0xff] %v413_v32  ;;  %v285_v44 = vmul.f32 %v624_v0, %v214_v28  ;;  %v286_v45 = vmul.f32 %v624_v0, %v215_v29  ;;  %v231_v31 = vld [vmem:[%s629_s20 + $0x1c8] sm:$0xff]  ;;  %v232_v32 = vld [vmem:[%s629_s20 + $0x1d0] sm:$0xff] }
  0x30   : > { %478 = vst [vmem:[%s657_s25 + $0x110] sm:$0xff] %v414_v33  ;;  %v418_v43 = vmax.f32 %v354_v34, 0.0  ;;  %v287_v46 = vmul.f32 %v624_v0, %v216_v30  ;;  %479 = vst [vmem:[%s657_s25 + $0x118] sm:$0xff] %v415_v38  ;;  %v288_v49 = vmul.f32 %v624_v0, %v217_v35  ;;  %v289_v50 = vmul.f32 %v624_v0, %v218_v36  ;;  %v230_v30 = vld [vmem:[%s629_s20 + $0x1c0] sm:$0xff] }
  0x31   : > { %480 = vst [vmem:[%s657_s25 + $0x120] sm:$0xff] %v416_v39  ;;  %481 = vst [vmem:[%s657_s25 + $0x128] sm:$0xff] %v417_v40  ;;  %v419_v48 = vmax.f32 %v355_v41, 0.0  ;;  %v290_v51 = vmul.f32 %v624_v0, %v219_v37  ;;  %v356_v52 = vadd.f32 %v634_v1, %v285_v44  ;;  %v357_v53 = vadd.f32 %v634_v1, %v286_v45  ;;  %v233_v37 = vld [vmem:[%s629_s20 + $0x1d8] sm:$0xff]  ;;  %v234_v38 = vld [vmem:[%s629_s20 + $0x1e0] sm:$0xff] }
  0x32   : > { %482 = vst [vmem:[%s657_s25 + $0x130] sm:$0xff] %v418_v43  ;;  %v358_v54 = vadd.f32 %v634_v1, %v287_v46  ;;  %v291_v55 = vmul.f32 %v624_v0, %v220_v42  ;;  %v359_v56 = vadd.f32 %v634_v1, %v288_v49  ;;  %v360_v57 = vadd.f32 %v634_v1, %v289_v50  ;;  %v235_v39 = vld [vmem:[%s629_s20 + $0x1e8] sm:$0xff]  ;;  %v236_v44 = vld [vmem:[%s629_s20 + $0x1f0] sm:$0xff]  ;;  %v237_v49 = vld [vmem:[%s629_s20 + $0x1f8] sm:$0xff] }
  0x33   : > { %483 = vst [vmem:[%s657_s25 + $0x138] sm:$0xff] %v419_v48  ;;  %v361_v58 = vadd.f32 %v634_v1, %v290_v51  ;;  %v292_v59 = vmul.f32 %v624_v0, %v221_v47  ;;  %v420_v63 = vmax.f32 %v356_v52, 0.0  ;;  %v421_v2 = vmax.f32 %v357_v53, 0.0 }
  0x34   : > { %v422_v3 = vmax.f32 %v358_v54, 0.0  ;;  %v362_v4 = vadd.f32 %v634_v1, %v291_v55  ;;  %v423_v8 = vmax.f32 %v359_v56, 0.0  ;;  %v424_v9 = vmax.f32 %v360_v57, 0.0 }
  0x35   : > { %v425_v10 = vmax.f32 %v361_v58, 0.0  ;;  %v363_v11 = vadd.f32 %v634_v1, %v292_v59  ;;  %484 = vst [vmem:[%s657_s25 + $0x140] sm:$0xff] %v420_v63  ;;  %485 = vst [vmem:[%s657_s25 + $0x148] sm:$0xff] %v421_v2  ;;  %v293_v14 = vmul.f32 %v624_v0, %v222_v60  ;;  %v294_v15 = vmul.f32 %v624_v0, %v223_v61 }
  0x36   : > { %486 = vst [vmem:[%s657_s25 + $0x150] sm:$0xff] %v422_v3  ;;  %v426_v13 = vmax.f32 %v362_v4, 0.0  ;;  %v295_v16 = vmul.f32 %v624_v0, %v224_v62  ;;  %487 = vst [vmem:[%s657_s25 + $0x158] sm:$0xff] %v423_v8  ;;  %v296_v19 = vmul.f32 %v624_v0, %v225_v5  ;;  %v297_v20 = vmul.f32 %v624_v0, %v226_v6 }
  0x37   : > { %488 = vst [vmem:[%s657_s25 + $0x160] sm:$0xff] %v424_v9  ;;  %489 = vst [vmem:[%s657_s25 + $0x168] sm:$0xff] %v425_v10  ;;  %v427_v18 = vmax.f32 %v363_v11, 0.0  ;;  %v298_v21 = vmul.f32 %v624_v0, %v227_v7  ;;  %v364_v22 = vadd.f32 %v634_v1, %v293_v14  ;;  %v365_v23 = vadd.f32 %v634_v1, %v294_v15 }
  0x38   : > { %490 = vst [vmem:[%s657_s25 + $0x170] sm:$0xff] %v426_v13  ;;  %v366_v24 = vadd.f32 %v634_v1, %v295_v16  ;;  %v299_v25 = vmul.f32 %v624_v0, %v228_v12  ;;  %v367_v26 = vadd.f32 %v634_v1, %v296_v19  ;;  %v368_v27 = vadd.f32 %v634_v1, %v297_v20 }
  0x39   : > { %491 = vst [vmem:[%s657_s25 + $0x178] sm:$0xff] %v427_v18  ;;  %v369_v28 = vadd.f32 %v634_v1, %v298_v21  ;;  %v300_v29 = vmul.f32 %v624_v0, %v229_v17  ;;  %v428_v33 = vmax.f32 %v364_v22, 0.0  ;;  %v429_v34 = vmax.f32 %v365_v23, 0.0 }
  0x3a   : > { %v430_v35 = vmax.f32 %v366_v24, 0.0  ;;  %v370_v36 = vadd.f32 %v634_v1, %v299_v25  ;;  %v431_v40 = vmax.f32 %v367_v26, 0.0  ;;  %v432_v41 = vmax.f32 %v368_v27, 0.0 }
  0x3b   : > { %v433_v42 = vmax.f32 %v369_v28, 0.0  ;;  %v371_v43 = vadd.f32 %v634_v1, %v300_v29  ;;  %492 = vst [vmem:[%s657_s25 + $0x180] sm:$0xff] %v428_v33  ;;  %493 = vst [vmem:[%s657_s25 + $0x188] sm:$0xff] %v429_v34  ;;  %v301_v46 = vmul.f32 %v624_v0, %v230_v30  ;;  %v302_v47 = vmul.f32 %v624_v0, %v231_v31 }
  0x3c   : > { %494 = vst [vmem:[%s657_s25 + $0x190] sm:$0xff] %v430_v35  ;;  %v434_v45 = vmax.f32 %v370_v36, 0.0  ;;  %v303_v48 = vmul.f32 %v624_v0, %v232_v32  ;;  %495 = vst [vmem:[%s657_s25 + $0x198] sm:$0xff] %v431_v40  ;;  %v304_v51 = vmul.f32 %v624_v0, %v233_v37  ;;  %v305_v52 = vmul.f32 %v624_v0, %v234_v38 }
  0x3d   : > { %496 = vst [vmem:[%s657_s25 + $0x1a0] sm:$0xff] %v432_v41  ;;  %497 = vst [vmem:[%s657_s25 + $0x1a8] sm:$0xff] %v433_v42  ;;  %v435_v50 = vmax.f32 %v371_v43, 0.0  ;;  %v306_v53 = vmul.f32 %v624_v0, %v235_v39  ;;  %v372_v54 = vadd.f32 %v634_v1, %v301_v46  ;;  %v373_v55 = vadd.f32 %v634_v1, %v302_v47 }
  0x3e   : > { %498 = vst [vmem:[%s657_s25 + $0x1b0] sm:$0xff] %v434_v45  ;;  %v374_v56 = vadd.f32 %v634_v1, %v303_v48  ;;  %v307_v57 = vmul.f32 %v624_v0, %v236_v44  ;;  %v375_v58 = vadd.f32 %v634_v1, %v304_v51  ;;  %v376_v59 = vadd.f32 %v634_v1, %v305_v52 }
  0x3f   : > { %499 = vst [vmem:[%s657_s25 + $0x1b8] sm:$0xff] %v435_v50  ;;  %v377_v60 = vadd.f32 %v634_v1, %v306_v53  ;;  %v308_v61 = vmul.f32 %v624_v0, %v237_v49  ;;  %v436_v62 = vmax.f32 %v372_v54, 0.0  ;;  %v437_v63 = vmax.f32 %v373_v55, 0.0 }
  0x40   : > { %v438_v2 = vmax.f32 %v374_v56, 0.0  ;;  %v378_v3 = vadd.f32 %v634_v1, %v307_v57  ;;  %v439_v4 = vmax.f32 %v375_v58, 0.0  ;;  %v440_v5 = vmax.f32 %v376_v59, 0.0 }
  0x41   : > { %v441_v6 = vmax.f32 %v377_v60, 0.0  ;;  %v379_v7 = vadd.f32 %v634_v1, %v308_v61  ;;  %500 = vst [vmem:[%s657_s25 + $0x1c0] sm:$0xff] %v436_v62  ;;  %501 = vst [vmem:[%s657_s25 + $0x1c8] sm:$0xff] %v437_v63 }
  0x42   : > { %502 = vst [vmem:[%s657_s25 + $0x1d0] sm:$0xff] %v438_v2  ;;  %v442_v8 = vmax.f32 %v378_v3, 0.0  ;;  %503 = vst [vmem:[%s657_s25 + $0x1d8] sm:$0xff] %v439_v4 }
  0x43   : > { %504 = vst [vmem:[%s657_s25 + $0x1e0] sm:$0xff] %v440_v5  ;;  %505 = vst [vmem:[%s657_s25 + $0x1e8] sm:$0xff] %v441_v6  ;;  %v443_v0 = vmax.f32 %v379_v7, 0.0 }
  0x44   : > { %506 = vst [vmem:[%s657_s25 + $0x1f0] sm:$0xff] %v442_v8 }
  0x45   : > { %507 = vst [vmem:[%s657_s25 + $0x1f8] sm:$0xff] %v443_v0 }
  0x46 PF: > { %s13_s12 = sadd.s32 1, %s591_s12  }
  0x47   : > { %p10_p4 = scmp.ge.s32.totalorder %s13_s12, 4  }
  0x49   :  { %12 = sbr.rel (!%p10_p4) target bundleno = 1 (0x1), region = 62 }

// kernel: _lambda_.57
= control target key start
LH: loop header
LB: loop body
LE: loop exit
PB: predicated region body
PF: predicated region fallthrough
CT: control target
= control target key end

     0   :  { %s9207_s12 = smov 0   ;;  %s9209_s13 = smov 0   ;;  %s11668_s0 = inlined_call_operand.vmem [shape: bf16[2048,5376], index: 0, kind: input, shape index: {}]   ;;  %s11669_s1 = inlined_call_operand.vmem [shape: bf16[5376,128], index: 1, kind: input, shape index: {}]   ;;  %s11670_s2 = inlined_call_operand.vmem [shape: f32[1,128], index: 2, kind: input, shape index: {}]   ;;  %s11671_s3 = inlined_call_operand.vmem [shape: f32[2048,128], index: 3, kind: output, shape index: {}]  }
   0x1   :  { %s9211_s14 = smov 0   ;;  %s9213_s15 = smov 0  }
   0x2   :  { %s9215_s16 = smov 0   ;;  %s9217_s17 = smov 0  }
   0x3   :  { %s9219_s18 = smov 0  }
   0x4 LB: > { %s25_s19 = sadd.s32 1, %s9175_s16  ;;  %s32_s20 = sadd.s32 1, %s9179_s17  ;;  %s9183_s18 = sphi %s9219_s18, %s13_s18   ;;  %s9179_s17 = sphi %s9217_s17, %s11790_s17   ;;  %s9175_s16 = sphi %s9215_s16, %s11789_s16   ;;  %s9171_s15 = sphi %s9213_s15, %s11788_s15   ;;  %s9167_s14 = sphi %s9211_s14, %s11787_s14   ;;  %s9163_s13 = sphi %s9209_s13, %s11786_s13   ;;  %s9159_s12 = sphi %s9207_s12, %s11785_s12  }
   0x5   : > { %p26_p0 = scmp.ge.s32.totalorder %s25_s19, 3  ;;  %p48_p1 = scmp.ne.s32.totalorder %s9163_s13, %s9159_s12 }
   0x6   : > { %p49_p2 = scmp.eq.s32.totalorder %s9183_s18, 0  ;;  %s41_s24 = sadd.s32 1, %s9163_s13 }
   0x7   : > { %s11792_s19 = smov (%p26_p0, %s25_s19), 0  ;;  %s11794_s20 = smov (!%p26_p0, %s32_s20), %s9179_s17 }
   0x8   : > { %p50_p3 = por %p49_p2, %p48_p1  ;;  %p34_p4 = scmp.ge.s32.totalorder %s11794_s20, 4 }
   0x9   : > { %s37_s21 = ssub.s32 %s9175_s16, %s11792_s19  ;;  %p7551_p6 = scmp.ge.s32.totalorder %s9183_s18, 12 }
   0xa   : > { %s11796_s20 = smov (%p34_p4, %s11794_s20), 0 }
   0xb   : > { %s36_s22 = ssub.s32 %s9179_s17, %s11796_s20  ;;  %162 = sbr.rel (%p7551_p6) target bundleno = 251 (0xfb), region = 20 }
   0xc   : > { %s38_s23 = sor.u32 %s37_s21, %s36_s22 }
   0xd   : > { %p39_p5 = scmp.eq.s32.totalorder %s38_s23, 0 }
   0xf   : > { %s9258_s25 = scalar_select %p39_p5, %s9163_s13, %s41_s24  }
  0x12   : > { %165 = sbr.rel (!%p50_p3) target bundleno = 251 (0xfb), region = 24  ;;  %s167_s26 = sand.u32 (%p50_p3), 1, %s9163_s13  }
  0x13   : > { %s171_s27 = smul.u32 (%p50_p3), 14, %s9175_s16 }
  0x14   : > { %s8156_s28 = smul.u32 (%p50_p3), 3584, %s167_s26 }
  0x15   : > { %s8157_s29 = smul.u32 (%p50_p3), 2688, %s9179_s17 }
  0x16   : > { %s9272_s8 = scalar_lea.vmem (%p50_p3), [#allocation3], %s8156_s28 }
  0x17   : > { %s173_s30 = sadd.s32 (%p50_p3), %s8157_s29, %s171_s27 }
  0x18   : > { %s7554_s4 = sshll.u32 (%p50_p3), %s173_s30, 2 }
  0x19   : > { %s9267_s7 = scalar_lea.vmem %s11668_s0, %s7554_s4 }
  0x1a   : > { %v188_v0 = vld [vmem:[%s9267_s7] sm:$0xff]  ;;  %v190_v1 = vld [vmem:[%s9267_s7 + $0x8] sm:$0xff]  ;;  %v192_v2 = vld [vmem:[%s9267_s7 + $0x10] sm:$0xff] }
  0x1b   : > { %189 = vst [vmem:[%s9272_s8] sm:$0xff] %v188_v0  ;;  %191 = vst [vmem:[%s9272_s8 + $0x8] sm:$0xff] %v190_v1  ;;  %v194_v3 = vld [vmem:[%s9267_s7 + $0x18] sm:$0xff]  ;;  %v196_v4 = vld [vmem:[%s9267_s7 + $0x20] sm:$0xff] }
  0x1c   : > { %193 = vst [vmem:[%s9272_s8 + $0x10] sm:$0xff] %v192_v2  ;;  %v198_v5 = vld [vmem:[%s9267_s7 + $0x28] sm:$0xff]  ;;  %195 = vst [vmem:[%s9272_s8 + $0x18] sm:$0xff] %v194_v3  ;;  %v200_v6 = vld [vmem:[%s9267_s7 + $0x30] sm:$0xff] }
  0x1d   : > { %197 = vst [vmem:[%s9272_s8 + $0x20] sm:$0xff] %v196_v4  ;;  %199 = vst [vmem:[%s9272_s8 + $0x28] sm:$0xff] %v198_v5  ;;  %v202_v7 = vld [vmem:[%s9267_s7 + $0xa8] sm:$0xff]  ;;  %v204_v8 = vld [vmem:[%s9267_s7 + $0xb0] sm:$0xff] }
  0x1e   : > { %201 = vst [vmem:[%s9272_s8 + $0x30] sm:$0xff] %v200_v6  ;;  %203 = vst [vmem:[%s9272_s8 + $0x38] sm:$0xff] %v202_v7  ;;  %v206_v9 = vld [vmem:[%s9267_s7 + $0xb8] sm:$0xff]  ;;  %v208_v10 = vld [vmem:[%s9267_s7 + $0xc0] sm:$0xff] }
  0x1f   : > { %205 = vst [vmem:[%s9272_s8 + $0x40] sm:$0xff] %v204_v8  ;;  %v210_v11 = vld [vmem:[%s9267_s7 + $0xc8] sm:$0xff]  ;;  %207 = vst [vmem:[%s9272_s8 + $0x48] sm:$0xff] %v206_v9  ;;  %v212_v12 = vld [vmem:[%s9267_s7 + $0xd0] sm:$0xff] }
  0x20   : > { %209 = vst [vmem:[%s9272_s8 + $0x50] sm:$0xff] %v208_v10  ;;  %211 = vst [vmem:[%s9272_s8 + $0x58] sm:$0xff] %v210_v11  ;;  %v214_v13 = vld [vmem:[%s9267_s7 + $0xd8] sm:$0xff]  ;;  %v216_v14 = vld [vmem:[%s9267_s7 + $0x150] sm:$0xff] }
  0x21   : > { %213 = vst [vmem:[%s9272_s8 + $0x60] sm:$0xff] %v212_v12  ;;  %215 = vst [vmem:[%s9272_s8 + $0x68] sm:$0xff] %v214_v13  ;;  %v218_v15 = vld [vmem:[%s9267_s7 + $0x158] sm:$0xff]  ;;  %v220_v16 = vld [vmem:[%s9267_s7 + $0x160] sm:$0xff] }
  0x22   : > { %217 = vst [vmem:[%s9272_s8 + $0x70] sm:$0xff] %v216_v14  ;;  %v222_v17 = vld [vmem:[%s9267_s7 + $0x168] sm:$0xff]  ;;  %219 = vst [vmem:[%s9272_s8 + $0x78] sm:$0xff] %v218_v15  ;;  %v224_v18 = vld [vmem:[%s9267_s7 + $0x170] sm:$0xff] }
  0x23   : > { %221 = vst [vmem:[%s9272_s8 + $0x80] sm:$0xff] %v220_v16  ;;  %223 = vst [vmem:[%s9272_s8 + $0x88] sm:$0xff] %v222_v17  ;;  %v226_v19 = vld [vmem:[%s9267_s7 + $0x178] sm:$0xff]  ;;  %v228_v20 = vld [vmem:[%s9267_s7 + $0x180] sm:$0xff] }
  0x24   : > { %225 = vst [vmem:[%s9272_s8 + $0x90] sm:$0xff] %v224_v18  ;;  %227 = vst [vmem:[%s9272_s8 + $0x98] sm:$0xff] %v226_v19  ;;  %v230_v21 = vld [vmem:[%s9267_s7 + $0x1f8] sm:$0xff]  ;;  %v232_v22 = vld [vmem:[%s9267_s7 + $0x200] sm:$0xff] }
  0x25   : > { %229 = vst [vmem:[%s9272_s8 + $0xa0] sm:$0xff] %v228_v20  ;;  %v234_v23 = vld [vmem:[%s9267_s7 + $0x208] sm:$0xff]  ;;  %231 = vst [vmem:[%s9272_s8 + $0xa8] sm:$0xff] %v230_v21  ;;  %v236_v24 = vld [vmem:[%s9267_s7 + $0x210] sm:$0xff] }
  0x26   : > { %233 = vst [vmem:[%s9272_s8 + $0xb0] sm:$0xff] %v232_v22  ;;  %235 = vst [vmem:[%s9272_s8 + $0xb8] sm:$0xff] %v234_v23  ;;  %v238_v25 = vld [vmem:[%s9267_s7 + $0x218] sm:$0xff]  ;;  %v240_v26 = vld [vmem:[%s9267_s7 + $0x220] sm:$0xff] }
  0x27   : > { %237 = vst [vmem:[%s9272_s8 + $0xc0] sm:$0xff] %v236_v24  ;;  %239 = vst [vmem:[%s9272_s8 + $0xc8] sm:$0xff] %v238_v25  ;;  %v242_v27 = vld [vmem:[%s9267_s7 + $0x228] sm:$0xff]  ;;  %v244_v28 = vld [vmem:[%s9267_s7 + $0x2a0] sm:$0xff] }
  0x28   : > { %241 = vst [vmem:[%s9272_s8 + $0xd0] sm:$0xff] %v240_v26  ;;  %v246_v29 = vld [vmem:[%s9267_s7 + $0x2a8] sm:$0xff]  ;;  %243 = vst [vmem:[%s9272_s8 + $0xd8] sm:$0xff] %v242_v27  ;;  %v248_v30 = vld [vmem:[%s9267_s7 + $0x2b0] sm:$0xff] }
  0x29   : > { %245 = vst [vmem:[%s9272_s8 + $0xe0] sm:$0xff] %v244_v28  ;;  %247 = vst [vmem:[%s9272_s8 + $0xe8] sm:$0xff] %v246_v29  ;;  %v250_v31 = vld [vmem:[%s9267_s7 + $0x2b8] sm:$0xff]  ;;  %v252_v32 = vld [vmem:[%s9267_s7 + $0x2c0] sm:$0xff] }
  0x2a   : > { %249 = vst [vmem:[%s9272_s8 + $0xf0] sm:$0xff] %v248_v30  ;;  %251 = vst [vmem:[%s9272_s8 + $0xf8] sm:$0xff] %v250_v31  ;;  %v254_v33 = vld [vmem:[%s9267_s7 + $0x2c8] sm:$0xff]  ;;  %v256_v34 = vld [vmem:[%s9267_s7 + $0x2d0] sm:$0xff] }
  0x2b   : > { %253 = vst [vmem:[%s9272_s8 + $0x100] sm:$0xff] %v252_v32  ;;  %v258_v35 = vld [vmem:[%s9267_s7 + $0x348] sm:$0xff]  ;;  %255 = vst [vmem:[%s9272_s8 + $0x108] sm:$0xff] %v254_v33  ;;  %v260_v36 = vld [vmem:[%s9267_s7 + $0x350] sm:$0xff] }
  0x2c   : > { %257 = vst [vmem:[%s9272_s8 + $0x110] sm:$0xff] %v256_v34  ;;  %259 = vst [vmem:[%s9272_s8 + $0x118] sm:$0xff] %v258_v35  ;;  %v262_v37 = vld [vmem:[%s9267_s7 + $0x358] sm:$0xff]  ;;  %v264_v38 = vld [vmem:[%s9267_s7 + $0x360] sm:$0xff] }
  0x2d   : > { %261 = vst [vmem:[%s9272_s8 + $0x120] sm:$0xff] %v260_v36  ;;  %263 = vst [vmem:[%s9272_s8 + $0x128] sm:$0xff] %v262_v37  ;;  %v266_v39 = vld [vmem:[%s9267_s7 + $0x368] sm:$0xff]  ;;  %v268_v40 = vld [vmem:[%s9267_s7 + $0x370] sm:$0xff] }
  0x2e   : > { %265 = vst [vmem:[%s9272_s8 + $0x130] sm:$0xff] %v264_v38  ;;  %v270_v41 = vld [vmem:[%s9267_s7 + $0x378] sm:$0xff]  ;;  %267 = vst [vmem:[%s9272_s8 + $0x138] sm:$0xff] %v266_v39  ;;  %v272_v42 = vld [vmem:[%s9267_s7 + $0x3f0] sm:$0xff] }
  0x2f   : > { %269 = vst [vmem:[%s9272_s8 + $0x140] sm:$0xff] %v268_v40  ;;  %271 = vst [vmem:[%s9272_s8 + $0x148] sm:$0xff] %v270_v41  ;;  %v274_v43 = vld [vmem:[%s9267_s7 + $0x3f8] sm:$0xff]  ;;  %v276_v44 = vld [vmem:[%s9267_s7 + $0x400] sm:$0xff] }
  0x30   : > { %273 = vst [vmem:[%s9272_s8 + $0x150] sm:$0xff] %v272_v42  ;;  %275 = vst [vmem:[%s9272_s8 + $0x158] sm:$0xff] %v274_v43  ;;  %v278_v45 = vld [vmem:[%s9267_s7 + $0x408] sm:$0xff]  ;;  %v280_v46 = vld [vmem:[%s9267_s7 + $0x410] sm:$0xff] }
  0x31   : > { %277 = vst [vmem:[%s9272_s8 + $0x160] sm:$0xff] %v276_v44  ;;  %v282_v47 = vld [vmem:[%s9267_s7 + $0x418] sm:$0xff]  ;;  %279 = vst [vmem:[%s9272_s8 + $0x168] sm:$0xff] %v278_v45  ;;  %v284_v48 = vld [vmem:[%s9267_s7 + $0x420] sm:$0xff] }
  0x32   : > { %281 = vst [vmem:[%s9272_s8 + $0x170] sm:$0xff] %v280_v46  ;;  %283 = vst [vmem:[%s9272_s8 + $0x178] sm:$0xff] %v282_v47  ;;  %v286_v49 = vld [vmem:[%s9267_s7 + $0x498] sm:$0xff]  ;;  %v288_v50 = vld [vmem:[%s9267_s7 + $0x4a0] sm:$0xff] }
  0x33   : > { %285 = vst [vmem:[%s9272_s8 + $0x180] sm:$0xff] %v284_v48  ;;  %287 = vst [vmem:[%s9272_s8 + $0x188] sm:$0xff] %v286_v49  ;;  %v290_v51 = vld [vmem:[%s9267_s7 + $0x4a8] sm:$0xff]  ;;  %v292_v52 = vld [vmem:[%s9267_s7 + $0x4b0] sm:$0xff] }
  0x34   : > { %289 = vst [vmem:[%s9272_s8 + $0x190] sm:$0xff] %v288_v50  ;;  %v294_v53 = vld [vmem:[%s9267_s7 + $0x4b8] sm:$0xff]  ;;  %291 = vst [vmem:[%s9272_s8 + $0x198] sm:$0xff] %v290_v51  ;;  %v296_v54 = vld [vmem:[%s9267_s7 + $0x4c0] sm:$0xff] }
  0x35   : > { %293 = vst [vmem:[%s9272_s8 + $0x1a0] sm:$0xff] %v292_v52  ;;  %295 = vst [vmem:[%s9272_s8 + $0x1a8] sm:$0xff] %v294_v53  ;;  %v298_v55 = vld [vmem:[%s9267_s7 + $0x4c8] sm:$0xff]  ;;  %v300_v56 = vld [vmem:[%s9267_s7 + $0x540] sm:$0xff] }
  0x36   : > { %297 = vst [vmem:[%s9272_s8 + $0x1b0] sm:$0xff] %v296_v54  ;;  %299 = vst [vmem:[%s9272_s8 + $0x1b8] sm:$0xff] %v298_v55  ;;  %v302_v57 = vld [vmem:[%s9267_s7 + $0x548] sm:$0xff]  ;;  %v304_v58 = vld [vmem:[%s9267_s7 + $0x550] sm:$0xff] }
  0x37   : > { %301 = vst [vmem:[%s9272_s8 + $0x1c0] sm:$0xff] %v300_v56  ;;  %v306_v59 = vld [vmem:[%s9267_s7 + $0x558] sm:$0xff]  ;;  %303 = vst [vmem:[%s9272_s8 + $0x1c8] sm:$0xff] %v302_v57  ;;  %v308_v60 = vld [vmem:[%s9267_s7 + $0x560] sm:$0xff] }
  0x38   : > { %305 = vst [vmem:[%s9272_s8 + $0x1d0] sm:$0xff] %v304_v58  ;;  %307 = vst [vmem:[%s9272_s8 + $0x1d8] sm:$0xff] %v306_v59  ;;  %v310_v61 = vld [vmem:[%s9267_s7 + $0x568] sm:$0xff]  ;;  %v312_v62 = vld [vmem:[%s9267_s7 + $0x570] sm:$0xff] }
  0x39   : > { %309 = vst [vmem:[%s9272_s8 + $0x1e0] sm:$0xff] %v308_v60  ;;  %311 = vst [vmem:[%s9272_s8 + $0x1e8] sm:$0xff] %v310_v61  ;;  %v314_v63 = vld [vmem:[%s9267_s7 + $0x5e8] sm:$0xff]  ;;  %v316_v0 = vld [vmem:[%s9267_s7 + $0x5f0] sm:$0xff] }
  0x3a   : > { %313 = vst [vmem:[%s9272_s8 + $0x1f0] sm:$0xff] %v312_v62  ;;  %v318_v1 = vld [vmem:[%s9267_s7 + $0x5f8] sm:$0xff]  ;;  %315 = vst [vmem:[%s9272_s8 + $0x1f8] sm:$0xff] %v314_v63  ;;  %v320_v2 = vld [vmem:[%s9267_s7 + $0x600] sm:$0xff] }
  0x3b   : > { %317 = vst [vmem:[%s9272_s8 + $0x200] sm:$0xff] %v316_v0  ;;  %319 = vst [vmem:[%s9272_s8 + $0x208] sm:$0xff] %v318_v1  ;;  %v322_v3 = vld [vmem:[%s9267_s7 + $0x608] sm:$0xff]  ;;  %v324_v4 = vld [vmem:[%s9267_s7 + $0x610] sm:$0xff] }
  0x3c   : > { %321 = vst [vmem:[%s9272_s8 + $0x210] sm:$0xff] %v320_v2  ;;  %323 = vst [vmem:[%s9272_s8 + $0x218] sm:$0xff] %v322_v3  ;;  %v326_v5 = vld [vmem:[%s9267_s7 + $0x618] sm:$0xff]  ;;  %v328_v6 = vld [vmem:[%s9267_s7 + $0x690] sm:$0xff] }
  0x3d   : > { %325 = vst [vmem:[%s9272_s8 + $0x220] sm:$0xff] %v324_v4  ;;  %v330_v7 = vld [vmem:[%s9267_s7 + $0x698] sm:$0xff]  ;;  %327 = vst [vmem:[%s9272_s8 + $0x228] sm:$0xff] %v326_v5  ;;  %v332_v8 = vld [vmem:[%s9267_s7 + $0x6a0] sm:$0xff] }
  0x3e   : > { %329 = vst [vmem:[%s9272_s8 + $0x230] sm:$0xff] %v328_v6  ;;  %331 = vst [vmem:[%s9272_s8 + $0x238] sm:$0xff] %v330_v7  ;;  %v334_v9 = vld [vmem:[%s9267_s7 + $0x6a8] sm:$0xff]  ;;  %v336_v10 = vld [vmem:[%s9267_s7 + $0x6b0] sm:$0xff] }
  0x3f   : > { %333 = vst [vmem:[%s9272_s8 + $0x240] sm:$0xff] %v332_v8  ;;  %335 = vst [vmem:[%s9272_s8 + $0x248] sm:$0xff] %v334_v9  ;;  %v338_v11 = vld [vmem:[%s9267_s7 + $0x6b8] sm:$0xff]  ;;  %v340_v12 = vld [vmem:[%s9267_s7 + $0x6c0] sm:$0xff] }
  0x40   : > { %337 = vst [vmem:[%s9272_s8 + $0x250] sm:$0xff] %v336_v10  ;;  %v342_v13 = vld [vmem:[%s9267_s7 + $0x738] sm:$0xff]  ;;  %339 = vst [vmem:[%s9272_s8 + $0x258] sm:$0xff] %v338_v11  ;;  %v344_v14 = vld [vmem:[%s9267_s7 + $0x740] sm:$0xff] }
  0x41   : > { %341 = vst [vmem:[%s9272_s8 + $0x260] sm:$0xff] %v340_v12  ;;  %343 = vst [vmem:[%s9272_s8 + $0x268] sm:$0xff] %v342_v13  ;;  %v346_v15 = vld [vmem:[%s9267_s7 + $0x748] sm:$0xff]  ;;  %v348_v16 = vld [vmem:[%s9267_s7 + $0x750] sm:$0xff] }
  0x42   : > { %345 = vst [vmem:[%s9272_s8 + $0x270] sm:$0xff] %v344_v14  ;;  %347 = vst [vmem:[%s9272_s8 + $0x278] sm:$0xff] %v346_v15  ;;  %v350_v17 = vld [vmem:[%s9267_s7 + $0x758] sm:$0xff]  ;;  %v352_v18 = vld [vmem:[%s9267_s7 + $0x760] sm:$0xff] }
  0x43   : > { %349 = vst [vmem:[%s9272_s8 + $0x280] sm:$0xff] %v348_v16  ;;  %v354_v19 = vld [vmem:[%s9267_s7 + $0x768] sm:$0xff]  ;;  %351 = vst [vmem:[%s9272_s8 + $0x288] sm:$0xff] %v350_v17  ;;  %v356_v20 = vld [vmem:[%s9267_s7 + $0x7e0] sm:$0xff] }
  0x44   : > { %353 = vst [vmem:[%s9272_s8 + $0x290] sm:$0xff] %v352_v18  ;;  %355 = vst [vmem:[%s9272_s8 + $0x298] sm:$0xff] %v354_v19  ;;  %v358_v21 = vld [vmem:[%s9267_s7 + $0x7e8] sm:$0xff]  ;;  %v360_v22 = vld [vmem:[%s9267_s7 + $0x7f0] sm:$0xff] }
  0x45   : > { %357 = vst [vmem:[%s9272_s8 + $0x2a0] sm:$0xff] %v356_v20  ;;  %359 = vst [vmem:[%s9272_s8 + $0x2a8] sm:$0xff] %v358_v21  ;;  %v362_v23 = vld [vmem:[%s9267_s7 + $0x7f8] sm:$0xff]  ;;  %v364_v24 = vld [vmem:[%s9267_s7 + $0x800] sm:$0xff] }
  0x46   : > { %361 = vst [vmem:[%s9272_s8 + $0x2b0] sm:$0xff] %v360_v22  ;;  %v366_v25 = vld [vmem:[%s9267_s7 + $0x808] sm:$0xff]  ;;  %363 = vst [vmem:[%s9272_s8 + $0x2b8] sm:$0xff] %v362_v23  ;;  %v368_v26 = vld [vmem:[%s9267_s7 + $0x810] sm:$0xff] }
  0x47   : > { %365 = vst [vmem:[%s9272_s8 + $0x2c0] sm:$0xff] %v364_v24  ;;  %367 = vst [vmem:[%s9272_s8 + $0x2c8] sm:$0xff] %v366_v25  ;;  %v370_v27 = vld [vmem:[%s9267_s7 + $0x888] sm:$0xff]  ;;  %v372_v28 = vld [vmem:[%s9267_s7 + $0x890] sm:$0xff] }
  0x48   : > { %369 = vst [vmem:[%s9272_s8 + $0x2d0] sm:$0xff] %v368_v26  ;;  %371 = vst [vmem:[%s9272_s8 + $0x2d8] sm:$0xff] %v370_v27  ;;  %v374_v29 = vld [vmem:[%s9267_s7 + $0x898] sm:$0xff]  ;;  %v376_v30 = vld [vmem:[%s9267_s7 + $0x8a0] sm:$0xff] }
  0x49   : > { %373 = vst [vmem:[%s9272_s8 + $0x2e0] sm:$0xff] %v372_v28  ;;  %v378_v31 = vld [vmem:[%s9267_s7 + $0x8a8] sm:$0xff]  ;;  %375 = vst [vmem:[%s9272_s8 + $0x2e8] sm:$0xff] %v374_v29  ;;  %v380_v32 = vld [vmem:[%s9267_s7 + $0x8b0] sm:$0xff] }
  0x4a   : > { %377 = vst [vmem:[%s9272_s8 + $0x2f0] sm:$0xff] %v376_v30  ;;  %379 = vst [vmem:[%s9272_s8 + $0x2f8] sm:$0xff] %v378_v31  ;;  %v382_v33 = vld [vmem:[%s9267_s7 + $0x8b8] sm:$0xff]  ;;  %v384_v34 = vld [vmem:[%s9267_s7 + $0x930] sm:$0xff] }
  0x4b   : > { %381 = vst [vmem:[%s9272_s8 + $0x300] sm:$0xff] %v380_v32  ;;  %383 = vst [vmem:[%s9272_s8 + $0x308] sm:$0xff] %v382_v33  ;;  %v386_v35 = vld [vmem:[%s9267_s7 + $0x938] sm:$0xff]  ;;  %v388_v36 = vld [vmem:[%s9267_s7 + $0x940] sm:$0xff] }
  0x4c   : > { %385 = vst [vmem:[%s9272_s8 + $0x310] sm:$0xff] %v384_v34  ;;  %v390_v37 = vld [vmem:[%s9267_s7 + $0x948] sm:$0xff]  ;;  %387 = vst [vmem:[%s9272_s8 + $0x318] sm:$0xff] %v386_v35  ;;  %v392_v38 = vld [vmem:[%s9267_s7 + $0x950] sm:$0xff] }
  0x4d   : > { %389 = vst [vmem:[%s9272_s8 + $0x320] sm:$0xff] %v388_v36  ;;  %391 = vst [vmem:[%s9272_s8 + $0x328] sm:$0xff] %v390_v37  ;;  %v394_v39 = vld [vmem:[%s9267_s7 + $0x958] sm:$0xff]  ;;  %v396_v40 = vld [vmem:[%s9267_s7 + $0x960] sm:$0xff] }
  0x4e   : > { %393 = vst [vmem:[%s9272_s8 + $0x330] sm:$0xff] %v392_v38  ;;  %395 = vst [vmem:[%s9272_s8 + $0x338] sm:$0xff] %v394_v39  ;;  %v398_v41 = vld [vmem:[%s9267_s7 + $0x9d8] sm:$0xff]  ;;  %v400_v42 = vld [vmem:[%s9267_s7 + $0x9e0] sm:$0xff] }
  0x4f   : > { %397 = vst [vmem:[%s9272_s8 + $0x340] sm:$0xff] %v396_v40  ;;  %v402_v43 = vld [vmem:[%s9267_s7 + $0x9e8] sm:$0xff]  ;;  %399 = vst [vmem:[%s9272_s8 + $0x348] sm:$0xff] %v398_v41  ;;  %v404_v44 = vld [vmem:[%s9267_s7 + $0x9f0] sm:$0xff] }
  0x50   : > { %401 = vst [vmem:[%s9272_s8 + $0x350] sm:$0xff] %v400_v42  ;;  %403 = vst [vmem:[%s9272_s8 + $0x358] sm:$0xff] %v402_v43  ;;  %v406_v45 = vld [vmem:[%s9267_s7 + $0x9f8] sm:$0xff]  ;;  %v408_v46 = vld [vmem:[%s9267_s7 + $0xa00] sm:$0xff] }
  0x51   : > { %405 = vst [vmem:[%s9272_s8 + $0x360] sm:$0xff] %v404_v44  ;;  %407 = vst [vmem:[%s9272_s8 + $0x368] sm:$0xff] %v406_v45  ;;  %v410_v47 = vld [vmem:[%s9267_s7 + $0xa08] sm:$0xff]  ;;  %v412_v48 = vld [vmem:[%s9267_s7 + $0xa80] sm:$0xff] }
  0x52   : > { %409 = vst [vmem:[%s9272_s8 + $0x370] sm:$0xff] %v408_v46  ;;  %v414_v49 = vld [vmem:[%s9267_s7 + $0xa88] sm:$0xff]  ;;  %411 = vst [vmem:[%s9272_s8 + $0x378] sm:$0xff] %v410_v47  ;;  %v416_v50 = vld [vmem:[%s9267_s7 + $0xa90] sm:$0xff] }
  0x53   : > { %413 = vst [vmem:[%s9272_s8 + $0x380] sm:$0xff] %v412_v48  ;;  %415 = vst [vmem:[%s9272_s8 + $0x388] sm:$0xff] %v414_v49  ;;  %v418_v51 = vld [vmem:[%s9267_s7 + $0xa98] sm:$0xff]  ;;  %v420_v52 = vld [vmem:[%s9267_s7 + $0xaa0] sm:$0xff] }
  0x54   : > { %417 = vst [vmem:[%s9272_s8 + $0x390] sm:$0xff] %v416_v50  ;;  %419 = vst [vmem:[%s9272_s8 + $0x398] sm:$0xff] %v418_v51  ;;  %v422_v53 = vld [vmem:[%s9267_s7 + $0xaa8] sm:$0xff]  ;;  %v424_v54 = vld [vmem:[%s9267_s7 + $0xab0] sm:$0xff] }
  0x55   : > { %421 = vst [vmem:[%s9272_s8 + $0x3a0] sm:$0xff] %v420_v52  ;;  %v426_v55 = vld [vmem:[%s9267_s7 + $0xb28] sm:$0xff]  ;;  %423 = vst [vmem:[%s9272_s8 + $0x3a8] sm:$0xff] %v422_v53  ;;  %v428_v56 = vld [vmem:[%s9267_s7 + $0xb30] sm:$0xff] }
  0x56   : > { %425 = vst [vmem:[%s9272_s8 + $0x3b0] sm:$0xff] %v424_v54  ;;  %427 = vst [vmem:[%s9272_s8 + $0x3b8] sm:$0xff] %v426_v55  ;;  %v430_v57 = vld [vmem:[%s9267_s7 + $0xb38] sm:$0xff]  ;;  %v432_v58 = vld [vmem:[%s9267_s7 + $0xb40] sm:$0xff] }
  0x57   : > { %429 = vst [vmem:[%s9272_s8 + $0x3c0] sm:$0xff] %v428_v56  ;;  %431 = vst [vmem:[%s9272_s8 + $0x3c8] sm:$0xff] %v430_v57  ;;  %v434_v59 = vld [vmem:[%s9267_s7 + $0xb48] sm:$0xff]  ;;  %v436_v60 = vld [vmem:[%s9267_s7 + $0xb50] sm:$0xff] }
  0x58   : > { %433 = vst [vmem:[%s9272_s8 + $0x3d0] sm:$0xff] %v432_v58  ;;  %v438_v61 = vld [vmem:[%s9267_s7 + $0xb58] sm:$0xff]  ;;  %435 = vst [vmem:[%s9272_s8 + $0x3d8] sm:$0xff] %v434_v59  ;;  %v440_v62 = vld [vmem:[%s9267_s7 + $0xbd0] sm:$0xff] }
  0x59   : > { %437 = vst [vmem:[%s9272_s8 + $0x3e0] sm:$0xff] %v436_v60  ;;  %439 = vst [vmem:[%s9272_s8 + $0x3e8] sm:$0xff] %v438_v61  ;;  %v442_v63 = vld [vmem:[%s9267_s7 + $0xbd8] sm:$0xff]  ;;  %v444_v0 = vld [vmem:[%s9267_s7 + $0xbe0] sm:$0xff] }
  0x5a   : > { %441 = vst [vmem:[%s9272_s8 + $0x3f0] sm:$0xff] %v440_v62  ;;  %443 = vst [vmem:[%s9272_s8 + $0x3f8] sm:$0xff] %v442_v63  ;;  %v446_v1 = vld [vmem:[%s9267_s7 + $0xbe8] sm:$0xff]  ;;  %v448_v2 = vld [vmem:[%s9267_s7 + $0xbf0] sm:$0xff] }
  0x5b   : > { %445 = vst [vmem:[%s9272_s8 + $0x400] sm:$0xff] %v444_v0  ;;  %v450_v3 = vld [vmem:[%s9267_s7 + $0xbf8] sm:$0xff]  ;;  %447 = vst [vmem:[%s9272_s8 + $0x408] sm:$0xff] %v446_v1  ;;  %v452_v4 = vld [vmem:[%s9267_s7 + $0xc00] sm:$0xff] }
  0x5c   : > { %449 = vst [vmem:[%s9272_s8 + $0x410] sm:$0xff] %v448_v2  ;;  %451 = vst [vmem:[%s9272_s8 + $0x418] sm:$0xff] %v450_v3  ;;  %v454_v5 = vld [vmem:[%s9267_s7 + $0xc78] sm:$0xff]  ;;  %v456_v6 = vld [vmem:[%s9267_s7 + $0xc80] sm:$0xff] }
  0x5d   : > { %453 = vst [vmem:[%s9272_s8 + $0x420] sm:$0xff] %v452_v4  ;;  %455 = vst [vmem:[%s9272_s8 + $0x428] sm:$0xff] %v454_v5  ;;  %v458_v7 = vld [vmem:[%s9267_s7 + $0xc88] sm:$0xff]  ;;  %v460_v8 = vld [vmem:[%s9267_s7 + $0xc90] sm:$0xff] }
  0x5e   : > { %457 = vst [vmem:[%s9272_s8 + $0x430] sm:$0xff] %v456_v6  ;;  %v462_v9 = vld [vmem:[%s9267_s7 + $0xc98] sm:$0xff]  ;;  %459 = vst [vmem:[%s9272_s8 + $0x438] sm:$0xff] %v458_v7  ;;  %v464_v10 = vld [vmem:[%s9267_s7 + $0xca0] sm:$0xff] }
  0x5f   : > { %461 = vst [vmem:[%s9272_s8 + $0x440] sm:$0xff] %v460_v8  ;;  %463 = vst [vmem:[%s9272_s8 + $0x448] sm:$0xff] %v462_v9  ;;  %v466_v11 = vld [vmem:[%s9267_s7 + $0xca8] sm:$0xff]  ;;  %v468_v12 = vld [vmem:[%s9267_s7 + $0xd20] sm:$0xff] }
  0x60   : > { %465 = vst [vmem:[%s9272_s8 + $0x450] sm:$0xff] %v464_v10  ;;  %467 = vst [vmem:[%s9272_s8 + $0x458] sm:$0xff] %v466_v11  ;;  %v470_v13 = vld [vmem:[%s9267_s7 + $0xd28] sm:$0xff]  ;;  %v472_v14 = vld [vmem:[%s9267_s7 + $0xd30] sm:$0xff] }
  0x61   : > { %469 = vst [vmem:[%s9272_s8 + $0x460] sm:$0xff] %v468_v12  ;;  %v474_v15 = vld [vmem:[%s9267_s7 + $0xd38] sm:$0xff]  ;;  %471 = vst [vmem:[%s9272_s8 + $0x468] sm:$0xff] %v470_v13  ;;  %v476_v16 = vld [vmem:[%s9267_s7 + $0xd40] sm:$0xff] }
  0x62   : > { %473 = vst [vmem:[%s9272_s8 + $0x470] sm:$0xff] %v472_v14  ;;  %475 = vst [vmem:[%s9272_s8 + $0x478] sm:$0xff] %v474_v15  ;;  %v478_v17 = vld [vmem:[%s9267_s7 + $0xd48] sm:$0xff]  ;;  %v480_v18 = vld [vmem:[%s9267_s7 + $0xd50] sm:$0xff] }
  0x63   : > { %477 = vst [vmem:[%s9272_s8 + $0x480] sm:$0xff] %v476_v16  ;;  %479 = vst [vmem:[%s9272_s8 + $0x488] sm:$0xff] %v478_v17  ;;  %v482_v19 = vld [vmem:[%s9267_s7 + $0xdc8] sm:$0xff]  ;;  %v484_v20 = vld [vmem:[%s9267_s7 + $0xdd0] sm:$0xff] }
  0x64   : > { %481 = vst [vmem:[%s9272_s8 + $0x490] sm:$0xff] %v480_v18  ;;  %v486_v21 = vld [vmem:[%s9267_s7 + $0xdd8] sm:$0xff]  ;;  %483 = vst [vmem:[%s9272_s8 + $0x498] sm:$0xff] %v482_v19  ;;  %v488_v22 = vld [vmem:[%s9267_s7 + $0xde0] sm:$0xff] }
  0x65   : > { %485 = vst [vmem:[%s9272_s8 + $0x4a0] sm:$0xff] %v484_v20  ;;  %487 = vst [vmem:[%s9272_s8 + $0x4a8] sm:$0xff] %v486_v21  ;;  %v490_v23 = vld [vmem:[%s9267_s7 + $0xde8] sm:$0xff]  ;;  %v492_v24 = vld [vmem:[%s9267_s7 + $0xdf0] sm:$0xff] }
  0x66   : > { %489 = vst [vmem:[%s9272_s8 + $0x4b0] sm:$0xff] %v488_v22  ;;  %491 = vst [vmem:[%s9272_s8 + $0x4b8] sm:$0xff] %v490_v23  ;;  %v494_v25 = vld [vmem:[%s9267_s7 + $0xdf8] sm:$0xff]  ;;  %v496_v26 = vld [vmem:[%s9267_s7 + $0xe70] sm:$0xff] }
  0x67   : > { %493 = vst [vmem:[%s9272_s8 + $0x4c0] sm:$0xff] %v492_v24  ;;  %v498_v27 = vld [vmem:[%s9267_s7 + $0xe78] sm:$0xff]  ;;  %495 = vst [vmem:[%s9272_s8 + $0x4c8] sm:$0xff] %v494_v25  ;;  %v500_v28 = vld [vmem:[%s9267_s7 + $0xe80] sm:$0xff] }
  0x68   : > { %497 = vst [vmem:[%s9272_s8 + $0x4d0] sm:$0xff] %v496_v26  ;;  %499 = vst [vmem:[%s9272_s8 + $0x4d8] sm:$0xff] %v498_v27  ;;  %v502_v29 = vld [vmem:[%s9267_s7 + $0xe88] sm:$0xff]  ;;  %v504_v30 = vld [vmem:[%s9267_s7 + $0xe90] sm:$0xff] }
  0x69   : > { %501 = vst [vmem:[%s9272_s8 + $0x4e0] sm:$0xff] %v500_v28  ;;  %503 = vst [vmem:[%s9272_s8 + $0x4e8] sm:$0xff] %v502_v29  ;;  %v506_v31 = vld [vmem:[%s9267_s7 + $0xe98] sm:$0xff]  ;;  %v508_v32 = vld [vmem:[%s9267_s7 + $0xea0] sm:$0xff] }
  0x6a   : > { %505 = vst [vmem:[%s9272_s8 + $0x4f0] sm:$0xff] %v504_v30  ;;  %v510_v33 = vld [vmem:[%s9267_s7 + $0xf18] sm:$0xff]  ;;  %507 = vst [vmem:[%s9272_s8 + $0x4f8] sm:$0xff] %v506_v31  ;;  %v512_v34 = vld [vmem:[%s9267_s7 + $0xf20] sm:$0xff] }
  0x6b   : > { %509 = vst [vmem:[%s9272_s8 + $0x500] sm:$0xff] %v508_v32  ;;  %511 = vst [vmem:[%s9272_s8 + $0x508] sm:$0xff] %v510_v33  ;;  %v514_v35 = vld [vmem:[%s9267_s7 + $0xf28] sm:$0xff]  ;;  %v516_v36 = vld [vmem:[%s9267_s7 + $0xf30] sm:$0xff] }
  0x6c   : > { %513 = vst [vmem:[%s9272_s8 + $0x510] sm:$0xff] %v512_v34  ;;  %515 = vst [vmem:[%s9272_s8 + $0x518] sm:$0xff] %v514_v35  ;;  %v518_v37 = vld [vmem:[%s9267_s7 + $0xf38] sm:$0xff]  ;;  %v520_v38 = vld [vmem:[%s9267_s7 + $0xf40] sm:$0xff] }
  0x6d   : > { %517 = vst [vmem:[%s9272_s8 + $0x520] sm:$0xff] %v516_v36  ;;  %v522_v39 = vld [vmem:[%s9267_s7 + $0xf48] sm:$0xff]  ;;  %519 = vst [vmem:[%s9272_s8 + $0x528] sm:$0xff] %v518_v37  ;;  %v524_v40 = vld [vmem:[%s9267_s7 + $0xfc0] sm:$0xff] }
  0x6e   : > { %521 = vst [vmem:[%s9272_s8 + $0x530] sm:$0xff] %v520_v38  ;;  %523 = vst [vmem:[%s9272_s8 + $0x538] sm:$0xff] %v522_v39  ;;  %v526_v41 = vld [vmem:[%s9267_s7 + $0xfc8] sm:$0xff]  ;;  %v528_v42 = vld [vmem:[%s9267_s7 + $0xfd0] sm:$0xff] }
  0x6f   : > { %525 = vst [vmem:[%s9272_s8 + $0x540] sm:$0xff] %v524_v40  ;;  %527 = vst [vmem:[%s9272_s8 + $0x548] sm:$0xff] %v526_v41  ;;  %v530_v43 = vld [vmem:[%s9267_s7 + $0xfd8] sm:$0xff]  ;;  %v532_v44 = vld [vmem:[%s9267_s7 + $0xfe0] sm:$0xff] }
  0x70   : > { %529 = vst [vmem:[%s9272_s8 + $0x550] sm:$0xff] %v528_v42  ;;  %v534_v45 = vld [vmem:[%s9267_s7 + $0xfe8] sm:$0xff]  ;;  %531 = vst [vmem:[%s9272_s8 + $0x558] sm:$0xff] %v530_v43  ;;  %v536_v46 = vld [vmem:[%s9267_s7 + $0xff0] sm:$0xff] }
  0x71   : > { %533 = vst [vmem:[%s9272_s8 + $0x560] sm:$0xff] %v532_v44  ;;  %535 = vst [vmem:[%s9272_s8 + $0x568] sm:$0xff] %v534_v45  ;;  %v538_v47 = vld [vmem:[%s9267_s7 + $0x1068] sm:$0xff]  ;;  %v540_v48 = vld [vmem:[%s9267_s7 + $0x1070] sm:$0xff] }
  0x72   : > { %537 = vst [vmem:[%s9272_s8 + $0x570] sm:$0xff] %v536_v46  ;;  %539 = vst [vmem:[%s9272_s8 + $0x578] sm:$0xff] %v538_v47  ;;  %v542_v49 = vld [vmem:[%s9267_s7 + $0x1078] sm:$0xff]  ;;  %v544_v50 = vld [vmem:[%s9267_s7 + $0x1080] sm:$0xff] }
  0x73   : > { %541 = vst [vmem:[%s9272_s8 + $0x580] sm:$0xff] %v540_v48  ;;  %v546_v51 = vld [vmem:[%s9267_s7 + $0x1088] sm:$0xff]  ;;  %543 = vst [vmem:[%s9272_s8 + $0x588] sm:$0xff] %v542_v49  ;;  %v548_v52 = vld [vmem:[%s9267_s7 + $0x1090] sm:$0xff] }
  0x74   : > { %545 = vst [vmem:[%s9272_s8 + $0x590] sm:$0xff] %v544_v50  ;;  %547 = vst [vmem:[%s9272_s8 + $0x598] sm:$0xff] %v546_v51  ;;  %v550_v53 = vld [vmem:[%s9267_s7 + $0x1098] sm:$0xff]  ;;  %v552_v54 = vld [vmem:[%s9267_s7 + $0x1110] sm:$0xff] }
  0x75   : > { %549 = vst [vmem:[%s9272_s8 + $0x5a0] sm:$0xff] %v548_v52  ;;  %551 = vst [vmem:[%s9272_s8 + $0x5a8] sm:$0xff] %v550_v53  ;;  %v554_v55 = vld [vmem:[%s9267_s7 + $0x1118] sm:$0xff]  ;;  %v556_v56 = vld [vmem:[%s9267_s7 + $0x1120] sm:$0xff] }
  0x76   : > { %553 = vst [vmem:[%s9272_s8 + $0x5b0] sm:$0xff] %v552_v54  ;;  %v558_v57 = vld [vmem:[%s9267_s7 + $0x1128] sm:$0xff]  ;;  %555 = vst [vmem:[%s9272_s8 + $0x5b8] sm:$0xff] %v554_v55  ;;  %v560_v58 = vld [vmem:[%s9267_s7 + $0x1130] sm:$0xff] }
  0x77   : > { %557 = vst [vmem:[%s9272_s8 + $0x5c0] sm:$0xff] %v556_v56  ;;  %559 = vst [vmem:[%s9272_s8 + $0x5c8] sm:$0xff] %v558_v57  ;;  %v562_v59 = vld [vmem:[%s9267_s7 + $0x1138] sm:$0xff]  ;;  %v564_v60 = vld [vmem:[%s9267_s7 + $0x1140] sm:$0xff] }
  0x78   : > { %561 = vst [vmem:[%s9272_s8 + $0x5d0] sm:$0xff] %v560_v58  ;;  %563 = vst [vmem:[%s9272_s8 + $0x5d8] sm:$0xff] %v562_v59  ;;  %v566_v61 = vld [vmem:[%s9267_s7 + $0x11b8] sm:$0xff]  ;;  %v568_v62 = vld [vmem:[%s9267_s7 + $0x11c0] sm:$0xff] }
  0x79   : > { %565 = vst [vmem:[%s9272_s8 + $0x5e0] sm:$0xff] %v564_v60  ;;  %v570_v63 = vld [vmem:[%s9267_s7 + $0x11c8] sm:$0xff]  ;;  %567 = vst [vmem:[%s9272_s8 + $0x5e8] sm:$0xff] %v566_v61  ;;  %v572_v0 = vld [vmem:[%s9267_s7 + $0x11d0] sm:$0xff] }
  0x7a   : > { %569 = vst [vmem:[%s9272_s8 + $0x5f0] sm:$0xff] %v568_v62  ;;  %571 = vst [vmem:[%s9272_s8 + $0x5f8] sm:$0xff] %v570_v63  ;;  %v574_v1 = vld [vmem:[%s9267_s7 + $0x11d8] sm:$0xff]  ;;  %v576_v2 = vld [vmem:[%s9267_s7 + $0x11e0] sm:$0xff] }
  0x7b   : > { %573 = vst [vmem:[%s9272_s8 + $0x600] sm:$0xff] %v572_v0  ;;  %575 = vst [vmem:[%s9272_s8 + $0x608] sm:$0xff] %v574_v1  ;;  %v578_v3 = vld [vmem:[%s9267_s7 + $0x11e8] sm:$0xff]  ;;  %v580_v4 = vld [vmem:[%s9267_s7 + $0x1260] sm:$0xff] }
  0x7c   : > { %577 = vst [vmem:[%s9272_s8 + $0x610] sm:$0xff] %v576_v2  ;;  %v582_v5 = vld [vmem:[%s9267_s7 + $0x1268] sm:$0xff]  ;;  %579 = vst [vmem:[%s9272_s8 + $0x618] sm:$0xff] %v578_v3  ;;  %v584_v6 = vld [vmem:[%s9267_s7 + $0x1270] sm:$0xff] }
  0x7d   : > { %581 = vst [vmem:[%s9272_s8 + $0x620] sm:$0xff] %v580_v4  ;;  %583 = vst [vmem:[%s9272_s8 + $0x628] sm:$0xff] %v582_v5  ;;  %v586_v7 = vld [vmem:[%s9267_s7 + $0x1278] sm:$0xff]  ;;  %v588_v8 = vld [vmem:[%s9267_s7 + $0x1280] sm:$0xff] }
  0x7e   : > { %585 = vst [vmem:[%s9272_s8 + $0x630] sm:$0xff] %v584_v6  ;;  %587 = vst [vmem:[%s9272_s8 + $0x638] sm:$0xff] %v586_v7  ;;  %v590_v9 = vld [vmem:[%s9267_s7 + $0x1288] sm:$0xff]  ;;  %v592_v10 = vld [vmem:[%s9267_s7 + $0x1290] sm:$0xff] }
  0x7f   : > { %589 = vst [vmem:[%s9272_s8 + $0x640] sm:$0xff] %v588_v8  ;;  %v594_v11 = vld [vmem:[%s9267_s7 + $0x1308] sm:$0xff]  ;;  %591 = vst [vmem:[%s9272_s8 + $0x648] sm:$0xff] %v590_v9  ;;  %v596_v12 = vld [vmem:[%s9267_s7 + $0x1310] sm:$0xff] }
  0x80   : > { %593 = vst [vmem:[%s9272_s8 + $0x650] sm:$0xff] %v592_v10  ;;  %595 = vst [vmem:[%s9272_s8 + $0x658] sm:$0xff] %v594_v11  ;;  %v598_v13 = vld [vmem:[%s9267_s7 + $0x1318] sm:$0xff]  ;;  %v600_v14 = vld [vmem:[%s9267_s7 + $0x1320] sm:$0xff] }
  0x81   : > { %597 = vst [vmem:[%s9272_s8 + $0x660] sm:$0xff] %v596_v12  ;;  %599 = vst [vmem:[%s9272_s8 + $0x668] sm:$0xff] %v598_v13  ;;  %v602_v15 = vld [vmem:[%s9267_s7 + $0x1328] sm:$0xff]  ;;  %v604_v16 = vld [vmem:[%s9267_s7 + $0x1330] sm:$0xff] }
  0x82   : > { %601 = vst [vmem:[%s9272_s8 + $0x670] sm:$0xff] %v600_v14  ;;  %v606_v17 = vld [vmem:[%s9267_s7 + $0x1338] sm:$0xff]  ;;  %603 = vst [vmem:[%s9272_s8 + $0x678] sm:$0xff] %v602_v15  ;;  %v608_v18 = vld [vmem:[%s9267_s7 + $0x13b0] sm:$0xff] }
  0x83   : > { %605 = vst [vmem:[%s9272_s8 + $0x680] sm:$0xff] %v604_v16  ;;  %607 = vst [vmem:[%s9272_s8 + $0x688] sm:$0xff] %v606_v17  ;;  %v610_v19 = vld [vmem:[%s9267_s7 + $0x13b8] sm:$0xff]  ;;  %v612_v20 = vld [vmem:[%s9267_s7 + $0x13c0] sm:$0xff] }
  0x84   : > { %609 = vst [vmem:[%s9272_s8 + $0x690] sm:$0xff] %v608_v18  ;;  %611 = vst [vmem:[%s9272_s8 + $0x698] sm:$0xff] %v610_v19  ;;  %v614_v21 = vld [vmem:[%s9267_s7 + $0x13c8] sm:$0xff]  ;;  %v616_v22 = vld [vmem:[%s9267_s7 + $0x13d0] sm:$0xff] }
  0x85   : > { %613 = vst [vmem:[%s9272_s8 + $0x6a0] sm:$0xff] %v612_v20  ;;  %v618_v23 = vld [vmem:[%s9267_s7 + $0x13d8] sm:$0xff]  ;;  %615 = vst [vmem:[%s9272_s8 + $0x6a8] sm:$0xff] %v614_v21  ;;  %v620_v24 = vld [vmem:[%s9267_s7 + $0x13e0] sm:$0xff] }
  0x86   : > { %617 = vst [vmem:[%s9272_s8 + $0x6b0] sm:$0xff] %v616_v22  ;;  %619 = vst [vmem:[%s9272_s8 + $0x6b8] sm:$0xff] %v618_v23  ;;  %v622_v25 = vld [vmem:[%s9267_s7 + $0x1458] sm:$0xff]  ;;  %v624_v26 = vld [vmem:[%s9267_s7 + $0x1460] sm:$0xff] }
  0x87   : > { %621 = vst [vmem:[%s9272_s8 + $0x6c0] sm:$0xff] %v620_v24  ;;  %623 = vst [vmem:[%s9272_s8 + $0x6c8] sm:$0xff] %v622_v25  ;;  %v626_v27 = vld [vmem:[%s9267_s7 + $0x1468] sm:$0xff]  ;;  %v628_v28 = vld [vmem:[%s9267_s7 + $0x1470] sm:$0xff] }
  0x88   : > { %625 = vst [vmem:[%s9272_s8 + $0x6d0] sm:$0xff] %v624_v26  ;;  %v630_v29 = vld [vmem:[%s9267_s7 + $0x1478] sm:$0xff]  ;;  %627 = vst [vmem:[%s9272_s8 + $0x6d8] sm:$0xff] %v626_v27  ;;  %v632_v30 = vld [vmem:[%s9267_s7 + $0x1480] sm:$0xff] }
  0x89   : > { %629 = vst [vmem:[%s9272_s8 + $0x6e0] sm:$0xff] %v628_v28  ;;  %631 = vst [vmem:[%s9272_s8 + $0x6e8] sm:$0xff] %v630_v29  ;;  %v634_v31 = vld [vmem:[%s9267_s7 + $0x1488] sm:$0xff]  ;;  %v636_v32 = vld [vmem:[%s9267_s7 + $0x1500] sm:$0xff] }
  0x8a   : > { %633 = vst [vmem:[%s9272_s8 + $0x6f0] sm:$0xff] %v632_v30  ;;  %635 = vst [vmem:[%s9272_s8 + $0x6f8] sm:$0xff] %v634_v31  ;;  %v638_v33 = vld [vmem:[%s9267_s7 + $0x1508] sm:$0xff]  ;;  %v640_v34 = vld [vmem:[%s9267_s7 + $0x1510] sm:$0xff] }
  0x8b   : > { %637 = vst [vmem:[%s9272_s8 + $0x700] sm:$0xff] %v636_v32  ;;  %v642_v35 = vld [vmem:[%s9267_s7 + $0x1518] sm:$0xff]  ;;  %639 = vst [vmem:[%s9272_s8 + $0x708] sm:$0xff] %v638_v33  ;;  %v644_v36 = vld [vmem:[%s9267_s7 + $0x1520] sm:$0xff] }
  0x8c   : > { %641 = vst [vmem:[%s9272_s8 + $0x710] sm:$0xff] %v640_v34  ;;  %643 = vst [vmem:[%s9272_s8 + $0x718] sm:$0xff] %v642_v35  ;;  %v646_v37 = vld [vmem:[%s9267_s7 + $0x1528] sm:$0xff]  ;;  %v648_v38 = vld [vmem:[%s9267_s7 + $0x1530] sm:$0xff] }
  0x8d   : > { %645 = vst [vmem:[%s9272_s8 + $0x720] sm:$0xff] %v644_v36  ;;  %647 = vst [vmem:[%s9272_s8 + $0x728] sm:$0xff] %v646_v37  ;;  %v650_v39 = vld [vmem:[%s9267_s7 + $0x15a8] sm:$0xff]  ;;  %v652_v40 = vld [vmem:[%s9267_s7 + $0x15b0] sm:$0xff] }
  0x8e   : > { %649 = vst [vmem:[%s9272_s8 + $0x730] sm:$0xff] %v648_v38  ;;  %v654_v41 = vld [vmem:[%s9267_s7 + $0x15b8] sm:$0xff]  ;;  %651 = vst [vmem:[%s9272_s8 + $0x738] sm:$0xff] %v650_v39  ;;  %v656_v42 = vld [vmem:[%s9267_s7 + $0x15c0] sm:$0xff] }
  0x8f   : > { %653 = vst [vmem:[%s9272_s8 + $0x740] sm:$0xff] %v652_v40  ;;  %655 = vst [vmem:[%s9272_s8 + $0x748] sm:$0xff] %v654_v41  ;;  %v658_v43 = vld [vmem:[%s9267_s7 + $0x15c8] sm:$0xff]  ;;  %v660_v44 = vld [vmem:[%s9267_s7 + $0x15d0] sm:$0xff] }
  0x90   : > { %657 = vst [vmem:[%s9272_s8 + $0x750] sm:$0xff] %v656_v42  ;;  %659 = vst [vmem:[%s9272_s8 + $0x758] sm:$0xff] %v658_v43  ;;  %v662_v45 = vld [vmem:[%s9267_s7 + $0x15d8] sm:$0xff]  ;;  %v664_v46 = vld [vmem:[%s9267_s7 + $0x1650] sm:$0xff] }
  0x91   : > { %661 = vst [vmem:[%s9272_s8 + $0x760] sm:$0xff] %v660_v44  ;;  %v666_v47 = vld [vmem:[%s9267_s7 + $0x1658] sm:$0xff]  ;;  %663 = vst [vmem:[%s9272_s8 + $0x768] sm:$0xff] %v662_v45  ;;  %v668_v48 = vld [vmem:[%s9267_s7 + $0x1660] sm:$0xff] }
  0x92   : > { %665 = vst [vmem:[%s9272_s8 + $0x770] sm:$0xff] %v664_v46  ;;  %667 = vst [vmem:[%s9272_s8 + $0x778] sm:$0xff] %v666_v47  ;;  %v670_v49 = vld [vmem:[%s9267_s7 + $0x1668] sm:$0xff]  ;;  %v672_v50 = vld [vmem:[%s9267_s7 + $0x1670] sm:$0xff] }
  0x93   : > { %669 = vst [vmem:[%s9272_s8 + $0x780] sm:$0xff] %v668_v48  ;;  %671 = vst [vmem:[%s9272_s8 + $0x788] sm:$0xff] %v670_v49  ;;  %v674_v51 = vld [vmem:[%s9267_s7 + $0x1678] sm:$0xff]  ;;  %v676_v52 = vld [vmem:[%s9267_s7 + $0x1680] sm:$0xff] }
  0x94   : > { %673 = vst [vmem:[%s9272_s8 + $0x790] sm:$0xff] %v672_v50  ;;  %v678_v53 = vld [vmem:[%s9267_s7 + $0x16f8] sm:$0xff]  ;;  %675 = vst [vmem:[%s9272_s8 + $0x798] sm:$0xff] %v674_v51  ;;  %v680_v54 = vld [vmem:[%s9267_s7 + $0x1700] sm:$0xff] }
  0x95   : > { %677 = vst [vmem:[%s9272_s8 + $0x7a0] sm:$0xff] %v676_v52  ;;  %679 = vst [vmem:[%s9272_s8 + $0x7a8] sm:$0xff] %v678_v53  ;;  %v682_v55 = vld [vmem:[%s9267_s7 + $0x1708] sm:$0xff]  ;;  %v684_v56 = vld [vmem:[%s9267_s7 + $0x1710] sm:$0xff] }
  0x96   : > { %681 = vst [vmem:[%s9272_s8 + $0x7b0] sm:$0xff] %v680_v54  ;;  %683 = vst [vmem:[%s9272_s8 + $0x7b8] sm:$0xff] %v682_v55  ;;  %v686_v57 = vld [vmem:[%s9267_s7 + $0x1718] sm:$0xff]  ;;  %v688_v58 = vld [vmem:[%s9267_s7 + $0x1720] sm:$0xff] }
  0x97   : > { %685 = vst [vmem:[%s9272_s8 + $0x7c0] sm:$0xff] %v684_v56  ;;  %v690_v59 = vld [vmem:[%s9267_s7 + $0x1728] sm:$0xff]  ;;  %687 = vst [vmem:[%s9272_s8 + $0x7c8] sm:$0xff] %v686_v57  ;;  %v692_v60 = vld [vmem:[%s9267_s7 + $0x17a0] sm:$0xff] }
  0x98   : > { %689 = vst [vmem:[%s9272_s8 + $0x7d0] sm:$0xff] %v688_v58  ;;  %691 = vst [vmem:[%s9272_s8 + $0x7d8] sm:$0xff] %v690_v59  ;;  %v694_v61 = vld [vmem:[%s9267_s7 + $0x17a8] sm:$0xff]  ;;  %v696_v62 = vld [vmem:[%s9267_s7 + $0x17b0] sm:$0xff] }
  0x99   : > { %693 = vst [vmem:[%s9272_s8 + $0x7e0] sm:$0xff] %v692_v60  ;;  %695 = vst [vmem:[%s9272_s8 + $0x7e8] sm:$0xff] %v694_v61  ;;  %v698_v63 = vld [vmem:[%s9267_s7 + $0x17b8] sm:$0xff]  ;;  %v700_v0 = vld [vmem:[%s9267_s7 + $0x17c0] sm:$0xff] }
  0x9a   : > { %697 = vst [vmem:[%s9272_s8 + $0x7f0] sm:$0xff] %v696_v62  ;;  %v702_v1 = vld [vmem:[%s9267_s7 + $0x17c8] sm:$0xff]  ;;  %699 = vst [vmem:[%s9272_s8 + $0x7f8] sm:$0xff] %v698_v63  ;;  %v704_v2 = vld [vmem:[%s9267_s7 + $0x17d0] sm:$0xff] }
  0x9b   : > { %701 = vst [vmem:[%s9272_s8 + $0x800] sm:$0xff] %v700_v0  ;;  %703 = vst [vmem:[%s9272_s8 + $0x808] sm:$0xff] %v702_v1  ;;  %v706_v3 = vld [vmem:[%s9267_s7 + $0x1848] sm:$0xff]  ;;  %v708_v4 = vld [vmem:[%s9267_s7 + $0x1850] sm:$0xff] }
  0x9c   : > { %705 = vst [vmem:[%s9272_s8 + $0x810] sm:$0xff] %v704_v2  ;;  %707 = vst [vmem:[%s9272_s8 + $0x818] sm:$0xff] %v706_v3  ;;  %v710_v5 = vld [vmem:[%s9267_s7 + $0x1858] sm:$0xff]  ;;  %v712_v6 = vld [vmem:[%s9267_s7 + $0x1860] sm:$0xff] }
  0x9d   : > { %709 = vst [vmem:[%s9272_s8 + $0x820] sm:$0xff] %v708_v4  ;;  %v714_v7 = vld [vmem:[%s9267_s7 + $0x1868] sm:$0xff]  ;;  %711 = vst [vmem:[%s9272_s8 + $0x828] sm:$0xff] %v710_v5  ;;  %v716_v8 = vld [vmem:[%s9267_s7 + $0x1870] sm:$0xff] }
  0x9e   : > { %713 = vst [vmem:[%s9272_s8 + $0x830] sm:$0xff] %v712_v6  ;;  %715 = vst [vmem:[%s9272_s8 + $0x838] sm:$0xff] %v714_v7  ;;  %v718_v9 = vld [vmem:[%s9267_s7 + $0x1878] sm:$0xff]  ;;  %v720_v10 = vld [vmem:[%s9267_s7 + $0x18f0] sm:$0xff] }
  0x9f   : > { %717 = vst [vmem:[%s9272_s8 + $0x840] sm:$0xff] %v716_v8  ;;  %719 = vst [vmem:[%s9272_s8 + $0x848] sm:$0xff] %v718_v9  ;;  %v722_v11 = vld [vmem:[%s9267_s7 + $0x18f8] sm:$0xff]  ;;  %v724_v12 = vld [vmem:[%s9267_s7 + $0x1900] sm:$0xff] }
  0xa0   : > { %721 = vst [vmem:[%s9272_s8 + $0x850] sm:$0xff] %v720_v10  ;;  %v726_v13 = vld [vmem:[%s9267_s7 + $0x1908] sm:$0xff]  ;;  %723 = vst [vmem:[%s9272_s8 + $0x858] sm:$0xff] %v722_v11  ;;  %v728_v14 = vld [vmem:[%s9267_s7 + $0x1910] sm:$0xff] }
  0xa1   : > { %725 = vst [vmem:[%s9272_s8 + $0x860] sm:$0xff] %v724_v12  ;;  %727 = vst [vmem:[%s9272_s8 + $0x868] sm:$0xff] %v726_v13  ;;  %v730_v15 = vld [vmem:[%s9267_s7 + $0x1918] sm:$0xff]  ;;  %v732_v16 = vld [vmem:[%s9267_s7 + $0x1920] sm:$0xff] }
  0xa2   : > { %729 = vst [vmem:[%s9272_s8 + $0x870] sm:$0xff] %v728_v14  ;;  %731 = vst [vmem:[%s9272_s8 + $0x878] sm:$0xff] %v730_v15  ;;  %v734_v17 = vld [vmem:[%s9267_s7 + $0x1998] sm:$0xff]  ;;  %v736_v18 = vld [vmem:[%s9267_s7 + $0x19a0] sm:$0xff] }
  0xa3   : > { %733 = vst [vmem:[%s9272_s8 + $0x880] sm:$0xff] %v732_v16  ;;  %v738_v19 = vld [vmem:[%s9267_s7 + $0x19a8] sm:$0xff]  ;;  %735 = vst [vmem:[%s9272_s8 + $0x888] sm:$0xff] %v734_v17  ;;  %v740_v20 = vld [vmem:[%s9267_s7 + $0x19b0] sm:$0xff] }
  0xa4   : > { %737 = vst [vmem:[%s9272_s8 + $0x890] sm:$0xff] %v736_v18  ;;  %739 = vst [vmem:[%s9272_s8 + $0x898] sm:$0xff] %v738_v19  ;;  %v742_v21 = vld [vmem:[%s9267_s7 + $0x19b8] sm:$0xff]  ;;  %v744_v22 = vld [vmem:[%s9267_s7 + $0x19c0] sm:$0xff] }
  0xa5   : > { %741 = vst [vmem:[%s9272_s8 + $0x8a0] sm:$0xff] %v740_v20  ;;  %743 = vst [vmem:[%s9272_s8 + $0x8a8] sm:$0xff] %v742_v21  ;;  %v746_v23 = vld [vmem:[%s9267_s7 + $0x19c8] sm:$0xff]  ;;  %v748_v24 = vld [vmem:[%s9267_s7 + $0x1a40] sm:$0xff] }
  0xa6   : > { %745 = vst [vmem:[%s9272_s8 + $0x8b0] sm:$0xff] %v744_v22  ;;  %v750_v25 = vld [vmem:[%s9267_s7 + $0x1a48] sm:$0xff]  ;;  %747 = vst [vmem:[%s9272_s8 + $0x8b8] sm:$0xff] %v746_v23  ;;  %v752_v26 = vld [vmem:[%s9267_s7 + $0x1a50] sm:$0xff] }
  0xa7   : > { %749 = vst [vmem:[%s9272_s8 + $0x8c0] sm:$0xff] %v748_v24  ;;  %751 = vst [vmem:[%s9272_s8 + $0x8c8] sm:$0xff] %v750_v25  ;;  %v754_v27 = vld [vmem:[%s9267_s7 + $0x1a58] sm:$0xff]  ;;  %v756_v28 = vld [vmem:[%s9267_s7 + $0x1a60] sm:$0xff] }
  0xa8   : > { %753 = vst [vmem:[%s9272_s8 + $0x8d0] sm:$0xff] %v752_v26  ;;  %755 = vst [vmem:[%s9272_s8 + $0x8d8] sm:$0xff] %v754_v27  ;;  %v758_v29 = vld [vmem:[%s9267_s7 + $0x1a68] sm:$0xff]  ;;  %v760_v30 = vld [vmem:[%s9267_s7 + $0x1a70] sm:$0xff] }
  0xa9   : > { %757 = vst [vmem:[%s9272_s8 + $0x8e0] sm:$0xff] %v756_v28  ;;  %v762_v31 = vld [vmem:[%s9267_s7 + $0x1ae8] sm:$0xff]  ;;  %759 = vst [vmem:[%s9272_s8 + $0x8e8] sm:$0xff] %v758_v29  ;;  %v764_v32 = vld [vmem:[%s9267_s7 + $0x1af0] sm:$0xff] }
  0xaa   : > { %761 = vst [vmem:[%s9272_s8 + $0x8f0] sm:$0xff] %v760_v30  ;;  %763 = vst [vmem:[%s9272_s8 + $0x8f8] sm:$0xff] %v762_v31  ;;  %v766_v33 = vld [vmem:[%s9267_s7 + $0x1af8] sm:$0xff]  ;;  %v768_v34 = vld [vmem:[%s9267_s7 + $0x1b00] sm:$0xff] }
  0xab   : > { %765 = vst [vmem:[%s9272_s8 + $0x900] sm:$0xff] %v764_v32  ;;  %767 = vst [vmem:[%s9272_s8 + $0x908] sm:$0xff] %v766_v33  ;;  %v770_v35 = vld [vmem:[%s9267_s7 + $0x1b08] sm:$0xff]  ;;  %v772_v36 = vld [vmem:[%s9267_s7 + $0x1b10] sm:$0xff] }
  0xac   : > { %769 = vst [vmem:[%s9272_s8 + $0x910] sm:$0xff] %v768_v34  ;;  %v774_v37 = vld [vmem:[%s9267_s7 + $0x1b18] sm:$0xff]  ;;  %771 = vst [vmem:[%s9272_s8 + $0x918] sm:$0xff] %v770_v35  ;;  %v776_v38 = vld [vmem:[%s9267_s7 + $0x1b90] sm:$0xff] }
  0xad   : > { %773 = vst [vmem:[%s9272_s8 + $0x920] sm:$0xff] %v772_v36  ;;  %775 = vst [vmem:[%s9272_s8 + $0x928] sm:$0xff] %v774_v37  ;;  %v778_v39 = vld [vmem:[%s9267_s7 + $0x1b98] sm:$0xff]  ;;  %v780_v40 = vld [vmem:[%s9267_s7 + $0x1ba0] sm:$0xff] }
  0xae   : > { %777 = vst [vmem:[%s9272_s8 + $0x930] sm:$0xff] %v776_v38  ;;  %779 = vst [vmem:[%s9272_s8 + $0x938] sm:$0xff] %v778_v39  ;;  %v782_v41 = vld [vmem:[%s9267_s7 + $0x1ba8] sm:$0xff]  ;;  %v784_v42 = vld [vmem:[%s9267_s7 + $0x1bb0] sm:$0xff] }
  0xaf   : > { %781 = vst [vmem:[%s9272_s8 + $0x940] sm:$0xff] %v780_v40  ;;  %v786_v43 = vld [vmem:[%s9267_s7 + $0x1bb8] sm:$0xff]  ;;  %783 = vst [vmem:[%s9272_s8 + $0x948] sm:$0xff] %v782_v41  ;;  %v788_v44 = vld [vmem:[%s9267_s7 + $0x1bc0] sm:$0xff] }
  0xb0   : > { %785 = vst [vmem:[%s9272_s8 + $0x950] sm:$0xff] %v784_v42  ;;  %787 = vst [vmem:[%s9272_s8 + $0x958] sm:$0xff] %v786_v43  ;;  %v790_v45 = vld [vmem:[%s9267_s7 + $0x1c38] sm:$0xff]  ;;  %v792_v46 = vld [vmem:[%s9267_s7 + $0x1c40] sm:$0xff] }
  0xb1   : > { %789 = vst [vmem:[%s9272_s8 + $0x960] sm:$0xff] %v788_v44  ;;  %791 = vst [vmem:[%s9272_s8 + $0x968] sm:$0xff] %v790_v45  ;;  %v794_v47 = vld [vmem:[%s9267_s7 + $0x1c48] sm:$0xff]  ;;  %v796_v48 = vld [vmem:[%s9267_s7 + $0x1c50] sm:$0xff] }
  0xb2   : > { %793 = vst [vmem:[%s9272_s8 + $0x970] sm:$0xff] %v792_v46  ;;  %v798_v49 = vld [vmem:[%s9267_s7 + $0x1c58] sm:$0xff]  ;;  %795 = vst [vmem:[%s9272_s8 + $0x978] sm:$0xff] %v794_v47  ;;  %v800_v50 = vld [vmem:[%s9267_s7 + $0x1c60] sm:$0xff] }
  0xb3   : > { %797 = vst [vmem:[%s9272_s8 + $0x980] sm:$0xff] %v796_v48  ;;  %799 = vst [vmem:[%s9272_s8 + $0x988] sm:$0xff] %v798_v49  ;;  %v802_v51 = vld [vmem:[%s9267_s7 + $0x1c68] sm:$0xff]  ;;  %v804_v52 = vld [vmem:[%s9267_s7 + $0x1ce0] sm:$0xff] }
  0xb4   : > { %801 = vst [vmem:[%s9272_s8 + $0x990] sm:$0xff] %v800_v50  ;;  %803 = vst [vmem:[%s9272_s8 + $0x998] sm:$0xff] %v802_v51  ;;  %v806_v53 = vld [vmem:[%s9267_s7 + $0x1ce8] sm:$0xff]  ;;  %v808_v54 = vld [vmem:[%s9267_s7 + $0x1cf0] sm:$0xff] }
  0xb5   : > { %805 = vst [vmem:[%s9272_s8 + $0x9a0] sm:$0xff] %v804_v52  ;;  %v810_v55 = vld [vmem:[%s9267_s7 + $0x1cf8] sm:$0xff]  ;;  %807 = vst [vmem:[%s9272_s8 + $0x9a8] sm:$0xff] %v806_v53  ;;  %v812_v56 = vld [vmem:[%s9267_s7 + $0x1d00] sm:$0xff] }
  0xb6   : > { %809 = vst [vmem:[%s9272_s8 + $0x9b0] sm:$0xff] %v808_v54  ;;  %811 = vst [vmem:[%s9272_s8 + $0x9b8] sm:$0xff] %v810_v55  ;;  %v814_v57 = vld [vmem:[%s9267_s7 + $0x1d08] sm:$0xff]  ;;  %v816_v58 = vld [vmem:[%s9267_s7 + $0x1d10] sm:$0xff] }
  0xb7   : > { %813 = vst [vmem:[%s9272_s8 + $0x9c0] sm:$0xff] %v812_v56  ;;  %815 = vst [vmem:[%s9272_s8 + $0x9c8] sm:$0xff] %v814_v57  ;;  %v818_v59 = vld [vmem:[%s9267_s7 + $0x1d88] sm:$0xff]  ;;  %v820_v60 = vld [vmem:[%s9267_s7 + $0x1d90] sm:$0xff] }
  0xb8   : > { %817 = vst [vmem:[%s9272_s8 + $0x9d0] sm:$0xff] %v816_v58  ;;  %v822_v61 = vld [vmem:[%s9267_s7 + $0x1d98] sm:$0xff]  ;;  %819 = vst [vmem:[%s9272_s8 + $0x9d8] sm:$0xff] %v818_v59  ;;  %v824_v62 = vld [vmem:[%s9267_s7 + $0x1da0] sm:$0xff] }
  0xb9   : > { %821 = vst [vmem:[%s9272_s8 + $0x9e0] sm:$0xff] %v820_v60  ;;  %823 = vst [vmem:[%s9272_s8 + $0x9e8] sm:$0xff] %v822_v61  ;;  %v826_v63 = vld [vmem:[%s9267_s7 + $0x1da8] sm:$0xff]  ;;  %v828_v0 = vld [vmem:[%s9267_s7 + $0x1db0] sm:$0xff] }
  0xba   : > { %825 = vst [vmem:[%s9272_s8 + $0x9f0] sm:$0xff] %v824_v62  ;;  %827 = vst [vmem:[%s9272_s8 + $0x9f8] sm:$0xff] %v826_v63  ;;  %v830_v1 = vld [vmem:[%s9267_s7 + $0x1db8] sm:$0xff]  ;;  %v832_v2 = vld [vmem:[%s9267_s7 + $0x1e30] sm:$0xff] }
  0xbb   : > { %829 = vst [vmem:[%s9272_s8 + $0xa00] sm:$0xff] %v828_v0  ;;  %v834_v3 = vld [vmem:[%s9267_s7 + $0x1e38] sm:$0xff]  ;;  %831 = vst [vmem:[%s9272_s8 + $0xa08] sm:$0xff] %v830_v1  ;;  %v836_v4 = vld [vmem:[%s9267_s7 + $0x1e40] sm:$0xff] }
  0xbc   : > { %833 = vst [vmem:[%s9272_s8 + $0xa10] sm:$0xff] %v832_v2  ;;  %835 = vst [vmem:[%s9272_s8 + $0xa18] sm:$0xff] %v834_v3  ;;  %v838_v5 = vld [vmem:[%s9267_s7 + $0x1e48] sm:$0xff]  ;;  %v840_v6 = vld [vmem:[%s9267_s7 + $0x1e50] sm:$0xff] }
  0xbd   : > { %837 = vst [vmem:[%s9272_s8 + $0xa20] sm:$0xff] %v836_v4  ;;  %839 = vst [vmem:[%s9272_s8 + $0xa28] sm:$0xff] %v838_v5  ;;  %v842_v7 = vld [vmem:[%s9267_s7 + $0x1e58] sm:$0xff]  ;;  %v844_v8 = vld [vmem:[%s9267_s7 + $0x1e60] sm:$0xff] }
  0xbe   : > { %841 = vst [vmem:[%s9272_s8 + $0xa30] sm:$0xff] %v840_v6  ;;  %v846_v9 = vld [vmem:[%s9267_s7 + $0x1ed8] sm:$0xff]  ;;  %843 = vst [vmem:[%s9272_s8 + $0xa38] sm:$0xff] %v842_v7  ;;  %v848_v10 = vld [vmem:[%s9267_s7 + $0x1ee0] sm:$0xff] }
  0xbf   : > { %845 = vst [vmem:[%s9272_s8 + $0xa40] sm:$0xff] %v844_v8  ;;  %847 = vst [vmem:[%s9272_s8 + $0xa48] sm:$0xff] %v846_v9  ;;  %v850_v11 = vld [vmem:[%s9267_s7 + $0x1ee8] sm:$0xff]  ;;  %v852_v12 = vld [vmem:[%s9267_s7 + $0x1ef0] sm:$0xff] }
  0xc0   : > { %849 = vst [vmem:[%s9272_s8 + $0xa50] sm:$0xff] %v848_v10  ;;  %851 = vst [vmem:[%s9272_s8 + $0xa58] sm:$0xff] %v850_v11  ;;  %v854_v13 = vld [vmem:[%s9267_s7 + $0x1ef8] sm:$0xff]  ;;  %v856_v14 = vld [vmem:[%s9267_s7 + $0x1f00] sm:$0xff] }
  0xc1   : > { %853 = vst [vmem:[%s9272_s8 + $0xa60] sm:$0xff] %v852_v12  ;;  %v858_v15 = vld [vmem:[%s9267_s7 + $0x1f08] sm:$0xff]  ;;  %855 = vst [vmem:[%s9272_s8 + $0xa68] sm:$0xff] %v854_v13  ;;  %v860_v16 = vld [vmem:[%s9267_s7 + $0x1f80] sm:$0xff] }
  0xc2   : > { %857 = vst [vmem:[%s9272_s8 + $0xa70] sm:$0xff] %v856_v14  ;;  %859 = vst [vmem:[%s9272_s8 + $0xa78] sm:$0xff] %v858_v15  ;;  %v862_v17 = vld [vmem:[%s9267_s7 + $0x1f88] sm:$0xff]  ;;  %v864_v18 = vld [vmem:[%s9267_s7 + $0x1f90] sm:$0xff] }
  0xc3   : > { %861 = vst [vmem:[%s9272_s8 + $0xa80] sm:$0xff] %v860_v16  ;;  %863 = vst [vmem:[%s9272_s8 + $0xa88] sm:$0xff] %v862_v17  ;;  %v866_v19 = vld [vmem:[%s9267_s7 + $0x1f98] sm:$0xff]  ;;  %v868_v20 = vld [vmem:[%s9267_s7 + $0x1fa0] sm:$0xff] }
  0xc4   : > { %865 = vst [vmem:[%s9272_s8 + $0xa90] sm:$0xff] %v864_v18  ;;  %v870_v21 = vld [vmem:[%s9267_s7 + $0x1fa8] sm:$0xff]  ;;  %867 = vst [vmem:[%s9272_s8 + $0xa98] sm:$0xff] %v866_v19  ;;  %v872_v22 = vld [vmem:[%s9267_s7 + $0x1fb0] sm:$0xff] }
  0xc5   : > { %869 = vst [vmem:[%s9272_s8 + $0xaa0] sm:$0xff] %v868_v20  ;;  %871 = vst [vmem:[%s9272_s8 + $0xaa8] sm:$0xff] %v870_v21  ;;  %v874_v23 = vld [vmem:[%s9267_s7 + $0x2028] sm:$0xff]  ;;  %v876_v24 = vld [vmem:[%s9267_s7 + $0x2030] sm:$0xff] }
  0xc6   : > { %873 = vst [vmem:[%s9272_s8 + $0xab0] sm:$0xff] %v872_v22  ;;  %875 = vst [vmem:[%s9272_s8 + $0xab8] sm:$0xff] %v874_v23  ;;  %v878_v25 = vld [vmem:[%s9267_s7 + $0x2038] sm:$0xff]  ;;  %v880_v26 = vld [vmem:[%s9267_s7 + $0x2040] sm:$0xff] }
  0xc7   : > { %877 = vst [vmem:[%s9272_s8 + $0xac0] sm:$0xff] %v876_v24  ;;  %v882_v27 = vld [vmem:[%s9267_s7 + $0x2048] sm:$0xff]  ;;  %879 = vst [vmem:[%s9272_s8 + $0xac8] sm:$0xff] %v878_v25  ;;  %v884_v28 = vld [vmem:[%s9267_s7 + $0x2050] sm:$0xff] }
  0xc8   : > { %881 = vst [vmem:[%s9272_s8 + $0xad0] sm:$0xff] %v880_v26  ;;  %883 = vst [vmem:[%s9272_s8 + $0xad8] sm:$0xff] %v882_v27  ;;  %v886_v29 = vld [vmem:[%s9267_s7 + $0x2058] sm:$0xff]  ;;  %v888_v30 = vld [vmem:[%s9267_s7 + $0x20d0] sm:$0xff] }
  0xc9   : > { %885 = vst [vmem:[%s9272_s8 + $0xae0] sm:$0xff] %v884_v28  ;;  %887 = vst [vmem:[%s9272_s8 + $0xae8] sm:$0xff] %v886_v29  ;;  %v890_v31 = vld [vmem:[%s9267_s7 + $0x20d8] sm:$0xff]  ;;  %v892_v32 = vld [vmem:[%s9267_s7 + $0x20e0] sm:$0xff] }
  0xca   : > { %889 = vst [vmem:[%s9272_s8 + $0xaf0] sm:$0xff] %v888_v30  ;;  %v894_v33 = vld [vmem:[%s9267_s7 + $0x20e8] sm:$0xff]  ;;  %891 = vst [vmem:[%s9272_s8 + $0xaf8] sm:$0xff] %v890_v31  ;;  %v896_v34 = vld [vmem:[%s9267_s7 + $0x20f0] sm:$0xff] }
  0xcb   : > { %893 = vst [vmem:[%s9272_s8 + $0xb00] sm:$0xff] %v892_v32  ;;  %895 = vst [vmem:[%s9272_s8 + $0xb08] sm:$0xff] %v894_v33  ;;  %v898_v35 = vld [vmem:[%s9267_s7 + $0x20f8] sm:$0xff]  ;;  %v900_v36 = vld [vmem:[%s9267_s7 + $0x2100] sm:$0xff] }
  0xcc   : > { %897 = vst [vmem:[%s9272_s8 + $0xb10] sm:$0xff] %v896_v34  ;;  %899 = vst [vmem:[%s9272_s8 + $0xb18] sm:$0xff] %v898_v35  ;;  %v902_v37 = vld [vmem:[%s9267_s7 + $0x2178] sm:$0xff]  ;;  %v904_v38 = vld [vmem:[%s9267_s7 + $0x2180] sm:$0xff] }
  0xcd   : > { %901 = vst [vmem:[%s9272_s8 + $0xb20] sm:$0xff] %v900_v36  ;;  %v906_v39 = vld [vmem:[%s9267_s7 + $0x2188] sm:$0xff]  ;;  %903 = vst [vmem:[%s9272_s8 + $0xb28] sm:$0xff] %v902_v37  ;;  %v908_v40 = vld [vmem:[%s9267_s7 + $0x2190] sm:$0xff] }
  0xce   : > { %905 = vst [vmem:[%s9272_s8 + $0xb30] sm:$0xff] %v904_v38  ;;  %907 = vst [vmem:[%s9272_s8 + $0xb38] sm:$0xff] %v906_v39  ;;  %v910_v41 = vld [vmem:[%s9267_s7 + $0x2198] sm:$0xff]  ;;  %v912_v42 = vld [vmem:[%s9267_s7 + $0x21a0] sm:$0xff] }
  0xcf   : > { %909 = vst [vmem:[%s9272_s8 + $0xb40] sm:$0xff] %v908_v40  ;;  %911 = vst [vmem:[%s9272_s8 + $0xb48] sm:$0xff] %v910_v41  ;;  %v914_v43 = vld [vmem:[%s9267_s7 + $0x21a8] sm:$0xff]  ;;  %v916_v44 = vld [vmem:[%s9267_s7 + $0x2220] sm:$0xff] }
  0xd0   : > { %913 = vst [vmem:[%s9272_s8 + $0xb50] sm:$0xff] %v912_v42  ;;  %v918_v45 = vld [vmem:[%s9267_s7 + $0x2228] sm:$0xff]  ;;  %915 = vst [vmem:[%s9272_s8 + $0xb58] sm:$0xff] %v914_v43  ;;  %v920_v46 = vld [vmem:[%s9267_s7 + $0x2230] sm:$0xff] }
  0xd1   : > { %917 = vst [vmem:[%s9272_s8 + $0xb60] sm:$0xff] %v916_v44  ;;  %919 = vst [vmem:[%s9272_s8 + $0xb68] sm:$0xff] %v918_v45  ;;  %v922_v47 = vld [vmem:[%s9267_s7 + $0x2238] sm:$0xff]  ;;  %v924_v48 = vld [vmem:[%s9267_s7 + $0x2240] sm:$0xff] }
  0xd2   : > { %921 = vst [vmem:[%s9272_s8 + $0xb70] sm:$0xff] %v920_v46  ;;  %923 = vst [vmem:[%s9272_s8 + $0xb78] sm:$0xff] %v922_v47  ;;  %v926_v49 = vld [vmem:[%s9267_s7 + $0x2248] sm:$0xff]  ;;  %v928_v50 = vld [vmem:[%s9267_s7 + $0x2250] sm:$0xff] }
  0xd3   : > { %925 = vst [vmem:[%s9272_s8 + $0xb80] sm:$0xff] %v924_v48  ;;  %v930_v51 = vld [vmem:[%s9267_s7 + $0x22c8] sm:$0xff]  ;;  %927 = vst [vmem:[%s9272_s8 + $0xb88] sm:$0xff] %v926_v49  ;;  %v932_v52 = vld [vmem:[%s9267_s7 + $0x22d0] sm:$0xff] }
  0xd4   : > { %929 = vst [vmem:[%s9272_s8 + $0xb90] sm:$0xff] %v928_v50  ;;  %931 = vst [vmem:[%s9272_s8 + $0xb98] sm:$0xff] %v930_v51  ;;  %v934_v53 = vld [vmem:[%s9267_s7 + $0x22d8] sm:$0xff]  ;;  %v936_v54 = vld [vmem:[%s9267_s7 + $0x22e0] sm:$0xff] }
  0xd5   : > { %933 = vst [vmem:[%s9272_s8 + $0xba0] sm:$0xff] %v932_v52  ;;  %935 = vst [vmem:[%s9272_s8 + $0xba8] sm:$0xff] %v934_v53  ;;  %v938_v55 = vld [vmem:[%s9267_s7 + $0x22e8] sm:$0xff]  ;;  %v940_v56 = vld [vmem:[%s9267_s7 + $0x22f0] sm:$0xff] }
  0xd6   : > { %937 = vst [vmem:[%s9272_s8 + $0xbb0] sm:$0xff] %v936_v54  ;;  %v942_v57 = vld [vmem:[%s9267_s7 + $0x22f8] sm:$0xff]  ;;  %939 = vst [vmem:[%s9272_s8 + $0xbb8] sm:$0xff] %v938_v55  ;;  %v944_v58 = vld [vmem:[%s9267_s7 + $0x2370] sm:$0xff] }
  0xd7   : > { %941 = vst [vmem:[%s9272_s8 + $0xbc0] sm:$0xff] %v940_v56  ;;  %943 = vst [vmem:[%s9272_s8 + $0xbc8] sm:$0xff] %v942_v57  ;;  %v946_v59 = vld [vmem:[%s9267_s7 + $0x2378] sm:$0xff]  ;;  %v948_v60 = vld [vmem:[%s9267_s7 + $0x2380] sm:$0xff] }
  0xd8   : > { %945 = vst [vmem:[%s9272_s8 + $0xbd0] sm:$0xff] %v944_v58  ;;  %947 = vst [vmem:[%s9272_s8 + $0xbd8] sm:$0xff] %v946_v59  ;;  %v950_v61 = vld [vmem:[%s9267_s7 + $0x2388] sm:$0xff]  ;;  %v952_v62 = vld [vmem:[%s9267_s7 + $0x2390] sm:$0xff] }
  0xd9   : > { %949 = vst [vmem:[%s9272_s8 + $0xbe0] sm:$0xff] %v948_v60  ;;  %v954_v63 = vld [vmem:[%s9267_s7 + $0x2398] sm:$0xff]  ;;  %951 = vst [vmem:[%s9272_s8 + $0xbe8] sm:$0xff] %v950_v61  ;;  %v956_v0 = vld [vmem:[%s9267_s7 + $0x23a0] sm:$0xff] }
  0xda   : > { %953 = vst [vmem:[%s9272_s8 + $0xbf0] sm:$0xff] %v952_v62  ;;  %955 = vst [vmem:[%s9272_s8 + $0xbf8] sm:$0xff] %v954_v63  ;;  %v958_v1 = vld [vmem:[%s9267_s7 + $0x2418] sm:$0xff]  ;;  %v960_v2 = vld [vmem:[%s9267_s7 + $0x2420] sm:$0xff] }
  0xdb   : > { %957 = vst [vmem:[%s9272_s8 + $0xc00] sm:$0xff] %v956_v0  ;;  %959 = vst [vmem:[%s9272_s8 + $0xc08] sm:$0xff] %v958_v1  ;;  %v962_v3 = vld [vmem:[%s9267_s7 + $0x2428] sm:$0xff]  ;;  %v964_v4 = vld [vmem:[%s9267_s7 + $0x2430] sm:$0xff] }
  0xdc   : > { %961 = vst [vmem:[%s9272_s8 + $0xc10] sm:$0xff] %v960_v2  ;;  %v966_v5 = vld [vmem:[%s9267_s7 + $0x2438] sm:$0xff]  ;;  %963 = vst [vmem:[%s9272_s8 + $0xc18] sm:$0xff] %v962_v3  ;;  %v968_v6 = vld [vmem:[%s9267_s7 + $0x2440] sm:$0xff] }
  0xdd   : > { %965 = vst [vmem:[%s9272_s8 + $0xc20] sm:$0xff] %v964_v4  ;;  %967 = vst [vmem:[%s9272_s8 + $0xc28] sm:$0xff] %v966_v5  ;;  %v970_v7 = vld [vmem:[%s9267_s7 + $0x2448] sm:$0xff]  ;;  %v972_v8 = vld [vmem:[%s9267_s7 + $0x24c0] sm:$0xff] }
  0xde   : > { %969 = vst [vmem:[%s9272_s8 + $0xc30] sm:$0xff] %v968_v6  ;;  %971 = vst [vmem:[%s9272_s8 + $0xc38] sm:$0xff] %v970_v7  ;;  %v974_v9 = vld [vmem:[%s9267_s7 + $0x24c8] sm:$0xff]  ;;  %v976_v10 = vld [vmem:[%s9267_s7 + $0x24d0] sm:$0xff] }
  0xdf   : > { %973 = vst [vmem:[%s9272_s8 + $0xc40] sm:$0xff] %v972_v8  ;;  %v978_v11 = vld [vmem:[%s9267_s7 + $0x24d8] sm:$0xff]  ;;  %975 = vst [vmem:[%s9272_s8 + $0xc48] sm:$0xff] %v974_v9  ;;  %v980_v12 = vld [vmem:[%s9267_s7 + $0x24e0] sm:$0xff] }
  0xe0   : > { %977 = vst [vmem:[%s9272_s8 + $0xc50] sm:$0xff] %v976_v10  ;;  %979 = vst [vmem:[%s9272_s8 + $0xc58] sm:$0xff] %v978_v11  ;;  %v982_v13 = vld [vmem:[%s9267_s7 + $0x24e8] sm:$0xff]  ;;  %v984_v14 = vld [vmem:[%s9267_s7 + $0x24f0] sm:$0xff] }
  0xe1   : > { %981 = vst [vmem:[%s9272_s8 + $0xc60] sm:$0xff] %v980_v12  ;;  %983 = vst [vmem:[%s9272_s8 + $0xc68] sm:$0xff] %v982_v13  ;;  %v986_v15 = vld [vmem:[%s9267_s7 + $0x2568] sm:$0xff]  ;;  %v988_v16 = vld [vmem:[%s9267_s7 + $0x2570] sm:$0xff] }
  0xe2   : > { %985 = vst [vmem:[%s9272_s8 + $0xc70] sm:$0xff] %v984_v14  ;;  %v990_v17 = vld [vmem:[%s9267_s7 + $0x2578] sm:$0xff]  ;;  %987 = vst [vmem:[%s9272_s8 + $0xc78] sm:$0xff] %v986_v15  ;;  %v992_v18 = vld [vmem:[%s9267_s7 + $0x2580] sm:$0xff] }
  0xe3   : > { %989 = vst [vmem:[%s9272_s8 + $0xc80] sm:$0xff] %v988_v16  ;;  %991 = vst [vmem:[%s9272_s8 + $0xc88] sm:$0xff] %v990_v17  ;;  %v994_v19 = vld [vmem:[%s9267_s7 + $0x2588] sm:$0xff]  ;;  %v996_v20 = vld [vmem:[%s9267_s7 + $0x2590] sm:$0xff] }
  0xe4   : > { %993 = vst [vmem:[%s9272_s8 + $0xc90] sm:$0xff] %v992_v18  ;;  %995 = vst [vmem:[%s9272_s8 + $0xc98] sm:$0xff] %v994_v19  ;;  %v998_v21 = vld [vmem:[%s9267_s7 + $0x2598] sm:$0xff]  ;;  %v1000_v22 = vld [vmem:[%s9267_s7 + $0x2610] sm:$0xff] }
  0xe5   : > { %997 = vst [vmem:[%s9272_s8 + $0xca0] sm:$0xff] %v996_v20  ;;  %v1002_v23 = vld [vmem:[%s9267_s7 + $0x2618] sm:$0xff]  ;;  %999 = vst [vmem:[%s9272_s8 + $0xca8] sm:$0xff] %v998_v21  ;;  %v1004_v24 = vld [vmem:[%s9267_s7 + $0x2620] sm:$0xff] }
  0xe6   : > { %1001 = vst [vmem:[%s9272_s8 + $0xcb0] sm:$0xff] %v1000_v22  ;;  %1003 = vst [vmem:[%s9272_s8 + $0xcb8] sm:$0xff] %v1002_v23  ;;  %v1006_v25 = vld [vmem:[%s9267_s7 + $0x2628] sm:$0xff]  ;;  %v1008_v26 = vld [vmem:[%s9267_s7 + $0x2630] sm:$0xff] }
  0xe7   : > { %1005 = vst [vmem:[%s9272_s8 + $0xcc0] sm:$0xff] %v1004_v24  ;;  %1007 = vst [vmem:[%s9272_s8 + $0xcc8] sm:$0xff] %v1006_v25  ;;  %v1010_v27 = vld [vmem:[%s9267_s7 + $0x2638] sm:$0xff]  ;;  %v1012_v28 = vld [vmem:[%s9267_s7 + $0x2640] sm:$0xff] }
  0xe8   : > { %1009 = vst [vmem:[%s9272_s8 + $0xcd0] sm:$0xff] %v1008_v26  ;;  %v1014_v29 = vld [vmem:[%s9267_s7 + $0x26b8] sm:$0xff]  ;;  %1011 = vst [vmem:[%s9272_s8 + $0xcd8] sm:$0xff] %v1010_v27  ;;  %v1016_v30 = vld [vmem:[%s9267_s7 + $0x26c0] sm:$0xff] }
  0xe9   : > { %1013 = vst [vmem:[%s9272_s8 + $0xce0] sm:$0xff] %v1012_v28  ;;  %1015 = vst [vmem:[%s9272_s8 + $0xce8] sm:$0xff] %v1014_v29  ;;  %v1018_v31 = vld [vmem:[%s9267_s7 + $0x26c8] sm:$0xff]  ;;  %v1020_v32 = vld [vmem:[%s9267_s7 + $0x26d0] sm:$0xff] }
  0xea   : > { %1017 = vst [vmem:[%s9272_s8 + $0xcf0] sm:$0xff] %v1016_v30  ;;  %1019 = vst [vmem:[%s9272_s8 + $0xcf8] sm:$0xff] %v1018_v31  ;;  %v1022_v33 = vld [vmem:[%s9267_s7 + $0x26d8] sm:$0xff]  ;;  %v1024_v34 = vld [vmem:[%s9267_s7 + $0x26e0] sm:$0xff] }
  0xeb   : > { %1021 = vst [vmem:[%s9272_s8 + $0xd00] sm:$0xff] %v1020_v32  ;;  %v1026_v35 = vld [vmem:[%s9267_s7 + $0x26e8] sm:$0xff]  ;;  %1023 = vst [vmem:[%s9272_s8 + $0xd08] sm:$0xff] %v1022_v33  ;;  %v1028_v36 = vld [vmem:[%s9267_s7 + $0x2760] sm:$0xff] }
  0xec   : > { %1025 = vst [vmem:[%s9272_s8 + $0xd10] sm:$0xff] %v1024_v34  ;;  %1027 = vst [vmem:[%s9272_s8 + $0xd18] sm:$0xff] %v1026_v35  ;;  %v1030_v37 = vld [vmem:[%s9267_s7 + $0x2768] sm:$0xff]  ;;  %v1032_v38 = vld [vmem:[%s9267_s7 + $0x2770] sm:$0xff] }
  0xed   : > { %1029 = vst [vmem:[%s9272_s8 + $0xd20] sm:$0xff] %v1028_v36  ;;  %1031 = vst [vmem:[%s9272_s8 + $0xd28] sm:$0xff] %v1030_v37  ;;  %v1034_v39 = vld [vmem:[%s9267_s7 + $0x2778] sm:$0xff]  ;;  %v1036_v40 = vld [vmem:[%s9267_s7 + $0x2780] sm:$0xff] }
  0xee   : > { %1033 = vst [vmem:[%s9272_s8 + $0xd30] sm:$0xff] %v1032_v38  ;;  %v1038_v41 = vld [vmem:[%s9267_s7 + $0x2788] sm:$0xff]  ;;  %1035 = vst [vmem:[%s9272_s8 + $0xd38] sm:$0xff] %v1034_v39  ;;  %v1040_v42 = vld [vmem:[%s9267_s7 + $0x2790] sm:$0xff] }
  0xef   : > { %1037 = vst [vmem:[%s9272_s8 + $0xd40] sm:$0xff] %v1036_v40  ;;  %1039 = vst [vmem:[%s9272_s8 + $0xd48] sm:$0xff] %v1038_v41  ;;  %v1042_v43 = vld [vmem:[%s9267_s7 + $0x2808] sm:$0xff]  ;;  %v1044_v44 = vld [vmem:[%s9267_s7 + $0x2810] sm:$0xff] }
  0xf0   : > { %1041 = vst [vmem:[%s9272_s8 + $0xd50] sm:$0xff] %v1040_v42  ;;  %1043 = vst [vmem:[%s9272_s8 + $0xd58] sm:$0xff] %v1042_v43  ;;  %v1046_v45 = vld [vmem:[%s9267_s7 + $0x2818] sm:$0xff]  ;;  %v1048_v46 = vld [vmem:[%s9267_s7 + $0x2820] sm:$0xff] }
  0xf1   : > { %1045 = vst [vmem:[%s9272_s8 + $0xd60] sm:$0xff] %v1044_v44  ;;  %v1050_v47 = vld [vmem:[%s9267_s7 + $0x2828] sm:$0xff]  ;;  %1047 = vst [vmem:[%s9272_s8 + $0xd68] sm:$0xff] %v1046_v45  ;;  %v1052_v48 = vld [vmem:[%s9267_s7 + $0x2830] sm:$0xff] }
  0xf2   : > { %1049 = vst [vmem:[%s9272_s8 + $0xd70] sm:$0xff] %v1048_v46  ;;  %1051 = vst [vmem:[%s9272_s8 + $0xd78] sm:$0xff] %v1050_v47  ;;  %v1054_v49 = vld [vmem:[%s9267_s7 + $0x2838] sm:$0xff]  ;;  %v1056_v50 = vld [vmem:[%s9267_s7 + $0x28b0] sm:$0xff] }
  0xf3   : > { %1053 = vst [vmem:[%s9272_s8 + $0xd80] sm:$0xff] %v1052_v48  ;;  %1055 = vst [vmem:[%s9272_s8 + $0xd88] sm:$0xff] %v1054_v49  ;;  %v1058_v51 = vld [vmem:[%s9267_s7 + $0x28b8] sm:$0xff]  ;;  %v1060_v52 = vld [vmem:[%s9267_s7 + $0x28c0] sm:$0xff] }
  0xf4   : > { %1057 = vst [vmem:[%s9272_s8 + $0xd90] sm:$0xff] %v1056_v50  ;;  %v1062_v53 = vld [vmem:[%s9267_s7 + $0x28c8] sm:$0xff]  ;;  %1059 = vst [vmem:[%s9272_s8 + $0xd98] sm:$0xff] %v1058_v51  ;;  %v1064_v54 = vld [vmem:[%s9267_s7 + $0x28d0] sm:$0xff] }
  0xf5   : > { %1061 = vst [vmem:[%s9272_s8 + $0xda0] sm:$0xff] %v1060_v52  ;;  %1063 = vst [vmem:[%s9272_s8 + $0xda8] sm:$0xff] %v1062_v53  ;;  %v1066_v55 = vld [vmem:[%s9267_s7 + $0x28d8] sm:$0xff]  ;;  %v1068_v56 = vld [vmem:[%s9267_s7 + $0x28e0] sm:$0xff] }
  0xf6   : > { %1065 = vst [vmem:[%s9272_s8 + $0xdb0] sm:$0xff] %v1064_v54  ;;  %1067 = vst [vmem:[%s9272_s8 + $0xdb8] sm:$0xff] %v1066_v55  ;;  %v1070_v57 = vld [vmem:[%s9267_s7 + $0x2958] sm:$0xff]  ;;  %v1072_v58 = vld [vmem:[%s9267_s7 + $0x2960] sm:$0xff] }
  0xf7   : > { %1069 = vst [vmem:[%s9272_s8 + $0xdc0] sm:$0xff] %v1068_v56  ;;  %v1074_v59 = vld [vmem:[%s9267_s7 + $0x2968] sm:$0xff]  ;;  %1071 = vst [vmem:[%s9272_s8 + $0xdc8] sm:$0xff] %v1070_v57  ;;  %v1076_v60 = vld [vmem:[%s9267_s7 + $0x2970] sm:$0xff] }
  0xf8   : > { %1073 = vst [vmem:[%s9272_s8 + $0xdd0] sm:$0xff] %v1072_v58  ;;  %1075 = vst [vmem:[%s9272_s8 + $0xdd8] sm:$0xff] %v1074_v59  ;;  %v1078_v61 = vld [vmem:[%s9267_s7 + $0x2978] sm:$0xff]  ;;  %v1080_v62 = vld [vmem:[%s9267_s7 + $0x2980] sm:$0xff] }
  0xf9   : > { %1077 = vst [vmem:[%s9272_s8 + $0xde0] sm:$0xff] %v1076_v60  ;;  %1079 = vst [vmem:[%s9272_s8 + $0xde8] sm:$0xff] %v1078_v61  ;;  %v1082_v63 = vld [vmem:[%s9267_s7 + $0x2988] sm:$0xff] }
  0xfa   : > { %1081 = vst [vmem:[%s9272_s8 + $0xdf0] sm:$0xff] %v1080_v62  ;;  %1083 = vst [vmem:[%s9272_s8 + $0xdf8] sm:$0xff] %v1082_v63 }
  0xfb PF: > { %p7555_p7 = scmp.ge.s32.totalorder %s9183_s18, 1  ;;  %p1100_p8 = scmp.lt.s32.totalorder %s9183_s18, 13 }
  0xfd   : > { %p1101_p9 = pnand %p7555_p7, %p1100_p8 }
  0xff   : > { %1104 = sbr.rel (%p1101_p9) target bundleno = 1547 (0x60b), region = 51 }
 0x106   : > { %s1107_s9 = sand.u32 1, %s9159_s12   ;;  %s1146_s10 = smul.u32 224, %s9167_s14 }
 0x107   : > { %s8158_s11 = smul.u32 3584, %s1107_s9  ;;  %s7557_s21 = sshll.u32 %s9171_s15, 6 }
 0x108   : > { %p1147_p10 = scmp.lt.s32.totalorder %s1146_s10, 671  ;;  %p1159_p11 = scmp.lt.s32.totalorder %s7557_s21, 255 }
 0x109   : > { %s10182_s12 = scalar_lea.vmem [#allocation3], %s8158_s11  ;;  %p7559_p12 = scmp.ne.s32.totalorder %s9167_s14, 0 }
 0x10a   : > { %s11798_s10 = smov (!%p1147_p10, %s1146_s10), 671  ;;  %s11800_s21 = smov (!%p1159_p11, %s7557_s21), 255 }
 0x10b   : > { %s7556_s22 = sshll.u32 %s11798_s10, 2  ;;  %s7558_s27 = sshll.u32 %s11800_s21, 3  ;;  %v9185_v0 = vmov (!%p7559_p12), 0.0  }
 0x10c   : > { %s10175_s26 = scalar_lea.vmem %s11669_s1, %s7556_s22  ;;  %s10180_s30 = scalar_lea.vmem %s11671_s3, %s7558_s27  ;;  %1172 = vst [vmem:[#allocation2] sm:$0xff] (!%p7559_p12), %v9185_v0  ;;  %1173 = vst [vmem:[#allocation2 + $0x8] sm:$0xff] (!%p7559_p12), %v9185_v0 }
 0x10d   : > { %1171 = sbr.rel (%p7559_p12) target bundleno = 300 (0x12c), region = 59  ;;  %1174 = vst [vmem:[#allocation2 + $0x10] sm:$0xff] (!%p7559_p12), %v9185_v0  ;;  %1175 = vst [vmem:[#allocation2 + $0x18] sm:$0xff] (!%p7559_p12), %v9185_v0 }
 0x10e   : > { %1176 = vst [vmem:[#allocation2 + $0x20] sm:$0xff] (!%p7559_p12), %v9185_v0  ;;  %1177 = vst [vmem:[#allocation2 + $0x28] sm:$0xff] (!%p7559_p12), %v9185_v0 }
 0x10f   : > { %1178 = vst [vmem:[#allocation2 + $0x30] sm:$0xff] (!%p7559_p12), %v9185_v0  ;;  %1179 = vst [vmem:[#allocation2 + $0x38] sm:$0xff] (!%p7559_p12), %v9185_v0 }
 0x110   : > { %1180 = vst [vmem:[#allocation2 + $0x40] sm:$0xff] (!%p7559_p12), %v9185_v0  ;;  %1181 = vst [vmem:[#allocation2 + $0x48] sm:$0xff] (!%p7559_p12), %v9185_v0 }
 0x111   : > { %1182 = vst [vmem:[#allocation2 + $0x50] sm:$0xff] (!%p7559_p12), %v9185_v0  ;;  %1183 = vst [vmem:[#allocation2 + $0x58] sm:$0xff] (!%p7559_p12), %v9185_v0 }
 0x112   : > { %1184 = vst [vmem:[#allocation2 + $0x60] sm:$0xff] (!%p7559_p12), %v9185_v0  ;;  %1185 = vst [vmem:[#allocation2 + $0x68] sm:$0xff] (!%p7559_p12), %v9185_v0 }
 0x113   : > { %1186 = vst [vmem:[#allocation2 + $0x70] sm:$0xff] (!%p7559_p12), %v9185_v0  ;;  %1187 = vst [vmem:[#allocation2 + $0x78] sm:$0xff] (!%p7559_p12), %v9185_v0 }
 0x114   : > { %1188 = vst [vmem:[#allocation2 + $0x80] sm:$0xff] %v9185_v0  ;;  %1189 = vst [vmem:[#allocation2 + $0x88] sm:$0xff] %v9185_v0 }
 0x115   : > { %1190 = vst [vmem:[#allocation2 + $0x90] sm:$0xff] %v9185_v0  ;;  %1191 = vst [vmem:[#allocation2 + $0x98] sm:$0xff] %v9185_v0 }
 0x116   : > { %1192 = vst [vmem:[#allocation2 + $0xa0] sm:$0xff] %v9185_v0  ;;  %1193 = vst [vmem:[#allocation2 + $0xa8] sm:$0xff] %v9185_v0 }
 0x117   : > { %1194 = vst [vmem:[#allocation2 + $0xb0] sm:$0xff] %v9185_v0  ;;  %1195 = vst [vmem:[#allocation2 + $0xb8] sm:$0xff] %v9185_v0 }
 0x118   : > { %1196 = vst [vmem:[#allocation2 + $0xc0] sm:$0xff] %v9185_v0  ;;  %1197 = vst [vmem:[#allocation2 + $0xc8] sm:$0xff] %v9185_v0 }
 0x119   : > { %1198 = vst [vmem:[#allocation2 + $0xd0] sm:$0xff] %v9185_v0  ;;  %1199 = vst [vmem:[#allocation2 + $0xd8] sm:$0xff] %v9185_v0 }
 0x11a   : > { %1200 = vst [vmem:[#allocation2 + $0xe0] sm:$0xff] %v9185_v0  ;;  %1201 = vst [vmem:[#allocation2 + $0xe8] sm:$0xff] %v9185_v0 }
 0x11b   : > { %1202 = vst [vmem:[#allocation2 + $0xf0] sm:$0xff] %v9185_v0  ;;  %1203 = vst [vmem:[#allocation2 + $0xf8] sm:$0xff] %v9185_v0 }
 0x11c   : > { %1204 = vst [vmem:[#allocation2 + $0x100] sm:$0xff] %v9185_v0  ;;  %1205 = vst [vmem:[#allocation2 + $0x108] sm:$0xff] %v9185_v0 }
 0x11d   : > { %1206 = vst [vmem:[#allocation2 + $0x110] sm:$0xff] %v9185_v0  ;;  %1207 = vst [vmem:[#allocation2 + $0x118] sm:$0xff] %v9185_v0 }
 0x11e   : > { %1208 = vst [vmem:[#allocation2 + $0x120] sm:$0xff] %v9185_v0  ;;  %1209 = vst [vmem:[#allocation2 + $0x128] sm:$0xff] %v9185_v0 }
 0x11f   : > { %1210 = vst [vmem:[#allocation2 + $0x130] sm:$0xff] %v9185_v0  ;;  %1211 = vst [vmem:[#allocation2 + $0x138] sm:$0xff] %v9185_v0 }
 0x120   : > { %1212 = vst [vmem:[#allocation2 + $0x140] sm:$0xff] %v9185_v0  ;;  %1213 = vst [vmem:[#allocation2 + $0x148] sm:$0xff] %v9185_v0 }
 0x121   : > { %1214 = vst [vmem:[#allocation2 + $0x150] sm:$0xff] %v9185_v0  ;;  %1215 = vst [vmem:[#allocation2 + $0x158] sm:$0xff] %v9185_v0 }
 0x122   : > { %1216 = vst [vmem:[#allocation2 + $0x160] sm:$0xff] %v9185_v0  ;;  %1217 = vst [vmem:[#allocation2 + $0x168] sm:$0xff] %v9185_v0 }
 0x123   : > { %1218 = vst [vmem:[#allocation2 + $0x170] sm:$0xff] %v9185_v0  ;;  %1219 = vst [vmem:[#allocation2 + $0x178] sm:$0xff] %v9185_v0 }
 0x124   : > { %1220 = vst [vmem:[#allocation2 + $0x180] sm:$0xff] %v9185_v0  ;;  %1221 = vst [vmem:[#allocation2 + $0x188] sm:$0xff] %v9185_v0 }
 0x125   : > { %1222 = vst [vmem:[#allocation2 + $0x190] sm:$0xff] %v9185_v0  ;;  %1223 = vst [vmem:[#allocation2 + $0x198] sm:$0xff] %v9185_v0 }
 0x126   : > { %1224 = vst [vmem:[#allocation2 + $0x1a0] sm:$0xff] %v9185_v0  ;;  %1225 = vst [vmem:[#allocation2 + $0x1a8] sm:$0xff] %v9185_v0 }
 0x127   : > { %1226 = vst [vmem:[#allocation2 + $0x1b0] sm:$0xff] %v9185_v0  ;;  %1227 = vst [vmem:[#allocation2 + $0x1b8] sm:$0xff] %v9185_v0 }
 0x128   : > { %1228 = vst [vmem:[#allocation2 + $0x1c0] sm:$0xff] %v9185_v0  ;;  %1229 = vst [vmem:[#allocation2 + $0x1c8] sm:$0xff] %v9185_v0 }
 0x129   : > { %1230 = vst [vmem:[#allocation2 + $0x1d0] sm:$0xff] %v9185_v0  ;;  %1231 = vst [vmem:[#allocation2 + $0x1d8] sm:$0xff] %v9185_v0 }
 0x12a   : > { %1232 = vst [vmem:[#allocation2 + $0x1e0] sm:$0xff] %v9185_v0  ;;  %1233 = vst [vmem:[#allocation2 + $0x1e8] sm:$0xff] %v9185_v0 }
 0x12b   : > { %1234 = vst [vmem:[#allocation2 + $0x1f0] sm:$0xff] %v9185_v0  ;;  %1235 = vst [vmem:[#allocation2 + $0x1f8] sm:$0xff] %v9185_v0 }
 0x12c PF: > { %v8217_v1 = vld [vmem:[%s10175_s26] sm:$0xff]   ;;  %v11672_v2 = vmov 0   ;;  %v8218_v3 = vld [vmem:[%s10175_s26 + $0x8] sm:$0xff]   ;;  %v8219_v4 = vld [vmem:[%s10175_s26 + $0x10] sm:$0xff]   ;;  %p8120_p13 = scmp.ne.s32.totalorder %s9167_s14, 2 }
 0x12d   : > { %4884 = vmatprep.subr.bf16.mxu0 %v11672_v2  ;;  %8124 = vmatprep.subr.bf16.mxu1 %v11672_v2  ;;  %v8220_v5 = vld [vmem:[%s10175_s26 + $0x18] sm:$0xff]   ;;  %v8221_v6 = vld [vmem:[%s10175_s26 + $0x20] sm:$0xff]   ;;  %v8222_v8 = vld [vmem:[%s10175_s26 + $0x28] sm:$0xff]  }
 0x12e   : > { %4885 = vmatpush1.bf16.msra.mxu0 %v8217_v1  ;;  %8140 = vmatpush1.bf16.msra.mxu1 %v8217_v1  ;;  %v8235_v7 = vld [vmem:[%s10182_s12 + $0x4] ss:$56 sps:$4 sm:$0xff]   ;;  %v8223_v10 = vld [vmem:[%s10175_s26 + $0x30] sm:$0xff]   ;;  %v8226_v13 = vld [vmem:[%s10175_s26 + $0x48] sm:$0xff]  }
 0x12f   : > { %4886 = vmatprep.subr.bf16.mxu0 %v11672_v2  ;;  %8125 = vmatprep.subr.bf16.mxu1 %v11672_v2  ;;  %v8238_v9 = vld [vmem:[%s10182_s12 + $0x704] ss:$56 sps:$4 sm:$0xff]   ;;  %v8227_v14 = vld [vmem:[%s10175_s26 + $0x50] sm:$0xff]   ;;  %v8230_v17 = vld [vmem:[%s10175_s26 + $0x68] sm:$0xff]  }
 0x130   : > { %4916 = vmatprep.mubr.bf16.mxu0 %v8235_v7  ;;  %5044 = vmatprep.mubr.bf16.mxu1 %v8238_v9  ;;  %v8224_v11 = vld [vmem:[%s10175_s26 + $0x38] sm:$0xff]   ;;  %v8225_v12 = vld [vmem:[%s10175_s26 + $0x40] sm:$0xff]   ;;  %v8231_v18 = vld [vmem:[%s10175_s26 + $0x70] sm:$0xff]  }
 0x131   : > { %v8228_v15 = vld [vmem:[%s10175_s26 + $0x58] sm:$0xff]   ;;  %v8229_v16 = vld [vmem:[%s10175_s26 + $0x60] sm:$0xff]   ;;  %v8241_v24 = vld [vmem:[%s10182_s12 + $0x74] ss:$56 sps:$4 sm:$0xff]  }
 0x132   : > { %4887 = vmatpush1.bf16.msra.mxu0 %v8218_v3  ;;  %8141 = vmatpush1.bf16.msra.mxu1 %v8218_v3  ;;  %v8232_v19 = vld [vmem:[%s10175_s26 + $0x78] sm:$0xff]   ;;  %v8239_v22 = vld [vmem:[%s10175_s26 + $0x80] sm:$0xff]   ;;  %v8243_v25 = vld [vmem:[%s10182_s12 + $0x774] ss:$56 sps:$4 sm:$0xff]  }
 0x133   : > { %4888 = vmatprep.subr.bf16.mxu0 %v11672_v2  ;;  %8126 = vmatprep.subr.bf16.mxu1 %v11672_v2  ;;  %v8233_v20 = vld [vmem:[%s10182_s12] ss:$56 sps:$4 sm:$0xff]   ;;  %v8247_v26 = vld [vmem:[%s10175_s26 + $0x88] sm:$0xff]   ;;  %v8249_v30 = vld [vmem:[%s10182_s12 + $0xe4] ss:$56 sps:$4 sm:$0xff]  }
 0x134   : > { %v8236_v21 = vld [vmem:[%s10182_s12 + $0x700] ss:$56 sps:$4 sm:$0xff]   ;;  %v8248_v27 = vld [vmem:[%s10175_s26 + $0x108] sm:$0xff]   ;;  %v8251_v31 = vld [vmem:[%s10182_s12 + $0x7e4] ss:$56 sps:$4 sm:$0xff]  }
 0x135   : > { %v8240_v23 = vld [vmem:[%s10175_s26 + $0x100] sm:$0xff]   ;;  %v8245_v28 = vld [vmem:[%s10182_s12 + $0x70] ss:$56 sps:$4 sm:$0xff]   ;;  %v8263_v34 = vld [vmem:[%s10175_s26 + $0x98] sm:$0xff]  }
 0x136   : > { %4889 = vmatpush1.bf16.msra.mxu0 %v8219_v4  ;;  %8142 = vmatpush1.bf16.msra.mxu1 %v8219_v4  ;;  %v8246_v29 = vld [vmem:[%s10182_s12 + $0x770] ss:$56 sps:$4 sm:$0xff]   ;;  %v8253_v35 = vld [vmem:[%s10182_s12 + $0xe0] ss:$56 sps:$4 sm:$0xff]   ;;  %v8257_v38 = vld [vmem:[%s10182_s12 + $0x154] ss:$56 sps:$4 sm:$0xff]  }
 0x137   : > { %4890 = vmatprep.subr.bf16.mxu0 %v11672_v2  ;;  %8127 = vmatprep.subr.bf16.mxu1 %v11672_v2  ;;  %v8255_v32 = vld [vmem:[%s10175_s26 + $0x90] sm:$0xff]   ;;  %v8264_v36 = vld [vmem:[%s10175_s26 + $0x118] sm:$0xff]   ;;  %v8271_v40 = vld [vmem:[%s10175_s26 + $0xa0] sm:$0xff]  }
 0x138   : > { %v8256_v33 = vld [vmem:[%s10175_s26 + $0x110] sm:$0xff]   ;;  %v8254_v37 = vld [vmem:[%s10182_s12 + $0x7e0] ss:$56 sps:$4 sm:$0xff]   ;;  %v8279_v44 = vld [vmem:[%s10175_s26 + $0xa8] sm:$0xff]  }
 0x139   : > { %v8259_v39 = vld [vmem:[%s10182_s12 + $0x854] ss:$56 sps:$4 sm:$0xff]   ;;  %v8272_v41 = vld [vmem:[%s10175_s26 + $0x120] sm:$0xff]   ;;  %v8261_v42 = vld [vmem:[%s10182_s12 + $0x150] ss:$56 sps:$4 sm:$0xff]  }
 0x13a   : > { %4891 = vmatpush1.bf16.msra.mxu0 %v8220_v5  ;;  %8143 = vmatpush1.bf16.msra.mxu1 %v8220_v5  ;;  %v8262_v43 = vld [vmem:[%s10182_s12 + $0x850] ss:$56 sps:$4 sm:$0xff]   ;;  %v8265_v46 = vld [vmem:[%s10182_s12 + $0x1c4] ss:$56 sps:$4 sm:$0xff]   ;;  %v8269_v50 = vld [vmem:[%s10182_s12 + $0x1c0] ss:$56 sps:$4 sm:$0xff]  }
 0x13b   : > { %4892 = vmatprep.subr.bf16.mxu0 %v11672_v2  ;;  %8128 = vmatprep.subr.bf16.mxu1 %v11672_v2  ;;  %v8280_v45 = vld [vmem:[%s10175_s26 + $0x128] sm:$0xff]   ;;  %v8267_v47 = vld [vmem:[%s10182_s12 + $0x8c4] ss:$56 sps:$4 sm:$0xff]   ;;  %v8287_v48 = vld [vmem:[%s10175_s26 + $0xb0] sm:$0xff]  }
 0x13c   : > { %v8288_v49 = vld [vmem:[%s10175_s26 + $0x130] sm:$0xff]   ;;  %v8270_v51 = vld [vmem:[%s10182_s12 + $0x8c0] ss:$56 sps:$4 sm:$0xff]   ;;  %v8311_v58 = vld [vmem:[%s10175_s26 + $0xc8] sm:$0xff]  }
 0x13d   : > { %v8295_v52 = vld [vmem:[%s10175_s26 + $0xb8] sm:$0xff]   ;;  %v8273_v54 = vld [vmem:[%s10182_s12 + $0x234] ss:$56 sps:$4 sm:$0xff]   ;;  %v8303_v56 = vld [vmem:[%s10175_s26 + $0xc0] sm:$0xff]  }
 0x13e   : > { %4893 = vmatpush1.bf16.msra.mxu0 %v8221_v6  ;;  %8144 = vmatpush1.bf16.msra.mxu1 %v8221_v6  ;;  %v8296_v53 = vld [vmem:[%s10175_s26 + $0x138] sm:$0xff]   ;;  %v8275_v55 = vld [vmem:[%s10182_s12 + $0x934] ss:$56 sps:$4 sm:$0xff]   ;;  %v8304_v57 = vld [vmem:[%s10175_s26 + $0x140] sm:$0xff]  }
 0x13f   : > { %4894 = vmatprep.subr.bf16.mxu0 %v11672_v2  ;;  %8129 = vmatprep.subr.bf16.mxu1 %v11672_v2  ;;  %v8277_v59 = vld [vmem:[%s10182_s12 + $0x230] ss:$56 sps:$4 sm:$0xff]   ;;  %v8281_v62 = vld [vmem:[%s10182_s12 + $0x2a4] ss:$56 sps:$4 sm:$0xff]   ;;  %v8285_v3 = vld [vmem:[%s10182_s12 + $0x2a0] ss:$56 sps:$4 sm:$0xff]  }
 0x140   : > { %v8312_v60 = vld [vmem:[%s10175_s26 + $0x148] sm:$0xff]   ;;  %v8283_v63 = vld [vmem:[%s10182_s12 + $0x9a4] ss:$56 sps:$4 sm:$0xff]   ;;  %v8319_v0 = vld [vmem:[%s10175_s26 + $0xd0] sm:$0xff]  }
 0x141   : > { %v8278_v61 = vld [vmem:[%s10182_s12 + $0x930] ss:$56 sps:$4 sm:$0xff]   ;;  %v8286_v4 = vld [vmem:[%s10182_s12 + $0x9a0] ss:$56 sps:$4 sm:$0xff]   ;;  %v8289_v7 = vld [vmem:[%s10182_s12 + $0x314] ss:$56 sps:$4 sm:$0xff]  }
 0x142   : > { %4895 = vmatpush1.bf16.msra.mxu0 %v8222_v8  ;;  %8145 = vmatpush1.bf16.msra.mxu1 %v8222_v8  ;;  %v8320_v1 = vld [vmem:[%s10175_s26 + $0x150] sm:$0xff]   ;;  %v8327_v5 = vld [vmem:[%s10175_s26 + $0xd8] sm:$0xff]   ;;  %v8335_v9 = vld [vmem:[%s10175_s26 + $0xe0] sm:$0xff]  }
 0x143   : > { %4896 = vmatprep.subr.bf16.mxu0 %v11672_v2  ;;  %8130 = vmatprep.subr.bf16.mxu1 %v11672_v2  ;;  %v8328_v6 = vld [vmem:[%s10175_s26 + $0x158] sm:$0xff]   ;;  %v8291_v8 = vld [vmem:[%s10182_s12 + $0xa14] ss:$56 sps:$4 sm:$0xff]  }
 0x146   : > { %4897 = vmatpush1.bf16.msra.mxu0 %v8223_v10  ;;  %8146 = vmatpush1.bf16.msra.mxu1 %v8223_v10  ;;  %v8336_v10 = vld [vmem:[%s10175_s26 + $0x160] sm:$0xff]  }
 0x147   : > { %4898 = vmatprep.subr.bf16.mxu0 %v11672_v2  ;;  %8131 = vmatprep.subr.bf16.mxu1 %v11672_v2 }
 0x14a   : > { %4899 = vmatpush1.bf16.msra.mxu0 %v8224_v11  ;;  %8147 = vmatpush1.bf16.msra.mxu1 %v8224_v11  ;;  %v8343_v11 = vld [vmem:[%s10175_s26 + $0xe8] sm:$0xff]  }
 0x14b   : > { %4900 = vmatprep.subr.bf16.mxu0 %v11672_v2  ;;  %8132 = vmatprep.subr.bf16.mxu1 %v11672_v2 }
 0x14e   : > { %4901 = vmatpush1.bf16.msra.mxu0 %v8225_v12  ;;  %8148 = vmatpush1.bf16.msra.mxu1 %v8225_v12  ;;  %v8293_v12 = vld [vmem:[%s10182_s12 + $0x310] ss:$56 sps:$4 sm:$0xff]  }
 0x14f   : > { %4902 = vmatprep.subr.bf16.mxu0 %v11672_v2  ;;  %8133 = vmatprep.subr.bf16.mxu1 %v11672_v2 }
 0x152   : > { %4903 = vmatpush1.bf16.msra.mxu0 %v8226_v13  ;;  %8149 = vmatpush1.bf16.msra.mxu1 %v8226_v13  ;;  %v8344_v13 = vld [vmem:[%s10175_s26 + $0x168] sm:$0xff]  }
 0x153   : > { %4904 = vmatprep.subr.bf16.mxu0 %v11672_v2  ;;  %8134 = vmatprep.subr.bf16.mxu1 %v11672_v2 }
 0x156   : > { %4905 = vmatpush1.bf16.msra.mxu0 %v8227_v14  ;;  %8150 = vmatpush1.bf16.msra.mxu1 %v8227_v14  ;;  %v8294_v14 = vld [vmem:[%s10182_s12 + $0xa10] ss:$56 sps:$4 sm:$0xff]  }
 0x157   : > { %4906 = vmatprep.subr.bf16.mxu0 %v11672_v2  ;;  %8135 = vmatprep.subr.bf16.mxu1 %v11672_v2 }
 0x15a   : > { %4907 = vmatpush1.bf16.msra.mxu0 %v8228_v15  ;;  %8151 = vmatpush1.bf16.msra.mxu1 %v8228_v15  ;;  %v8297_v15 = vld [vmem:[%s10182_s12 + $0x384] ss:$56 sps:$4 sm:$0xff]  }
 0x15b   : > { %4908 = vmatprep.subr.bf16.mxu0 %v11672_v2  ;;  %8136 = vmatprep.subr.bf16.mxu1 %v11672_v2 }
 0x15e   : > { %4909 = vmatpush1.bf16.msra.mxu0 %v8229_v16  ;;  %8152 = vmatpush1.bf16.msra.mxu1 %v8229_v16  ;;  %v8299_v16 = vld [vmem:[%s10182_s12 + $0xa84] ss:$56 sps:$4 sm:$0xff]  }
 0x15f   : > { %4910 = vmatprep.subr.bf16.mxu0 %v11672_v2  ;;  %8137 = vmatprep.subr.bf16.mxu1 %v11672_v2 }
 0x162   : > { %4911 = vmatpush1.bf16.msra.mxu0 %v8230_v17  ;;  %8153 = vmatpush1.bf16.msra.mxu1 %v8230_v17  ;;  %v8351_v17 = vld [vmem:[%s10175_s26 + $0xf0] sm:$0xff]  }
 0x163   : > { %4912 = vmatprep.subr.bf16.mxu0 %v11672_v2  ;;  %8138 = vmatprep.subr.bf16.mxu1 %v11672_v2 }
 0x166   : > { %4913 = vmatpush1.bf16.msra.mxu0 %v8231_v18  ;;  %8154 = vmatpush1.bf16.msra.mxu1 %v8231_v18  ;;  %v8352_v18 = vld [vmem:[%s10175_s26 + $0x170] sm:$0xff]  }
 0x167   : > { %4914 = vmatprep.subr.bf16.mxu0 %v11672_v2  ;;  %8139 = vmatprep.subr.bf16.mxu1 %v11672_v2 }
 0x16a   : > { %4915 = vmatpush1.bf16.msra.mxu0 %v8232_v19  ;;  %8155 = vmatpush1.bf16.msra.mxu1 %v8232_v19  ;;  %v8359_v19 = vld [vmem:[%s10175_s26 + $0xf8] sm:$0xff]  }
 0x16b   : > { %5173 = vmatprep.subr.bf16.mxu1 %v11672_v2  ;;  %5462 = vmatprep.subr.bf16.mxu0 %v11672_v2 }
 0x16d   : > { %4917 = vmatmul.mubr.bf16.vlgmr.msra.gmra.mrb[0].mxu0 %v8233_v20  ;;  %5045 = vmatmul.mubr.bf16.vlgmr.msra.gmra.mrb[0].mxu1 %v8236_v21  ;;  %v8360_v20 = vld [vmem:[%s10175_s26 + $0x178] sm:$0xff]  }
 0x16e   : > { %5174 = vmatpush1.bf16.msra.mxu1 %v8239_v22  ;;  %5463 = vmatpush1.bf16.msra.mxu0 %v8240_v23  ;;  %v8301_v21 = vld [vmem:[%s10182_s12 + $0x380] ss:$56 sps:$4 sm:$0xff]   ;;  %v8305_v23 = vld [vmem:[%s10182_s12 + $0x3f4] ss:$56 sps:$4 sm:$0xff]  }
 0x16f   : > { %4924 = vmatprep.mubr.bf16.mxu0 %v8241_v24  ;;  %5052 = vmatprep.mubr.bf16.mxu1 %v8243_v25  ;;  %v8302_v22 = vld [vmem:[%s10182_s12 + $0xa80] ss:$56 sps:$4 sm:$0xff]   ;;  %v8307_v24 = vld [vmem:[%s10182_s12 + $0xaf4] ss:$56 sps:$4 sm:$0xff]   ;;  %v8309_v25 = vld [vmem:[%s10182_s12 + $0x3f0] ss:$56 sps:$4 sm:$0xff]  }
 0x170   : > { %5175 = vmatprep.subr.bf16.mxu1 %v11672_v2  ;;  %5464 = vmatprep.subr.bf16.mxu0 %v11672_v2 }
 0x172   : > { %5176 = vmatpush1.bf16.msra.mxu1 %v8247_v26  ;;  %5465 = vmatpush1.bf16.msra.mxu0 %v8248_v27  ;;  %v8310_v26 = vld [vmem:[%s10182_s12 + $0xaf0] ss:$56 sps:$4 sm:$0xff]   ;;  %v8313_v27 = vld [vmem:[%s10182_s12 + $0x464] ss:$56 sps:$4 sm:$0xff]  }
 0x173   : > { %5177 = vmatprep.subr.bf16.mxu1 %v11672_v2  ;;  %5466 = vmatprep.subr.bf16.mxu0 %v11672_v2 }
 0x175   : > { %4925 = vmatmul.mubr.bf16.gmra.mrb[4].mxu0 %v8245_v28  ;;  %5053 = vmatmul.mubr.bf16.gmra.mrb[4].mxu1 %v8246_v29  ;;  %v8315_v28 = vld [vmem:[%s10182_s12 + $0xb64] ss:$56 sps:$4 sm:$0xff]   ;;  %v8317_v29 = vld [vmem:[%s10182_s12 + $0x460] ss:$56 sps:$4 sm:$0xff]  }
 0x176   : > { %4932 = vmatprep.mubr.bf16.mxu0 %v8249_v30  ;;  %5060 = vmatprep.mubr.bf16.mxu1 %v8251_v31  ;;  %v8318_v30 = vld [vmem:[%s10182_s12 + $0xb60] ss:$56 sps:$4 sm:$0xff]   ;;  %v8321_v31 = vld [vmem:[%s10182_s12 + $0x4d4] ss:$56 sps:$4 sm:$0xff]  }
 0x177   : > { %5178 = vmatpush1.bf16.msra.mxu1 %v8255_v32  ;;  %5467 = vmatpush1.bf16.msra.mxu0 %v8256_v33  ;;  %v8323_v32 = vld [vmem:[%s10182_s12 + $0xbd4] ss:$56 sps:$4 sm:$0xff]   ;;  %v8325_v33 = vld [vmem:[%s10182_s12 + $0x4d0] ss:$56 sps:$4 sm:$0xff]  }
 0x178   : > { %5179 = vmatprep.subr.bf16.mxu1 %v11672_v2  ;;  %5468 = vmatprep.subr.bf16.mxu0 %v11672_v2 }
 0x17b   : > { %5180 = vmatpush1.bf16.msra.mxu1 %v8263_v34  ;;  %5469 = vmatpush1.bf16.msra.mxu0 %v8264_v36  ;;  %v8326_v34 = vld [vmem:[%s10182_s12 + $0xbd0] ss:$56 sps:$4 sm:$0xff]   ;;  %v8331_v36 = vld [vmem:[%s10182_s12 + $0xc44] ss:$56 sps:$4 sm:$0xff]  }
 0x17c   : > { %5181 = vmatprep.subr.bf16.mxu1 %v11672_v2  ;;  %5470 = vmatprep.subr.bf16.mxu0 %v11672_v2 }
 0x17d   : > { %4933 = vmatmul.mubr.bf16.gmra.mrb[8].mxu0 %v8253_v35  ;;  %5061 = vmatmul.mubr.bf16.gmra.mrb[8].mxu1 %v8254_v37  ;;  %v8329_v35 = vld [vmem:[%s10182_s12 + $0x544] ss:$56 sps:$4 sm:$0xff]   ;;  %v8333_v37 = vld [vmem:[%s10182_s12 + $0x540] ss:$56 sps:$4 sm:$0xff]  }
 0x17e   : > { %4940 = vmatprep.mubr.bf16.mxu0 %v8257_v38  ;;  %5068 = vmatprep.mubr.bf16.mxu1 %v8259_v39  ;;  %v8334_v38 = vld [vmem:[%s10182_s12 + $0xc40] ss:$56 sps:$4 sm:$0xff]   ;;  %v8337_v39 = vld [vmem:[%s10182_s12 + $0x5b4] ss:$56 sps:$4 sm:$0xff]  }
 0x17f   : > { %5182 = vmatpush1.bf16.msra.mxu1 %v8271_v40  ;;  %5471 = vmatpush1.bf16.msra.mxu0 %v8272_v41  ;;  %v8339_v40 = vld [vmem:[%s10182_s12 + $0xcb4] ss:$56 sps:$4 sm:$0xff]   ;;  %v8341_v41 = vld [vmem:[%s10182_s12 + $0x5b0] ss:$56 sps:$4 sm:$0xff]  }
 0x180   : > { %5183 = vmatprep.subr.bf16.mxu1 %v11672_v2  ;;  %5472 = vmatprep.subr.bf16.mxu0 %v11672_v2 }
 0x183   : > { %5184 = vmatpush1.bf16.msra.mxu1 %v8279_v44  ;;  %5473 = vmatpush1.bf16.msra.mxu0 %v8280_v45  ;;  %v8347_v44 = vld [vmem:[%s10182_s12 + $0xd24] ss:$56 sps:$4 sm:$0xff]   ;;  %v8349_v45 = vld [vmem:[%s10182_s12 + $0x620] ss:$56 sps:$4 sm:$0xff]  }
 0x184   : > { %5185 = vmatprep.subr.bf16.mxu1 %v11672_v2  ;;  %5474 = vmatprep.subr.bf16.mxu0 %v11672_v2 }
 0x185   : > { %4941 = vmatmul.mubr.bf16.gmra.mrb[12].mxu0 %v8261_v42  ;;  %5069 = vmatmul.mubr.bf16.gmra.mrb[12].mxu1 %v8262_v43  ;;  %v8342_v42 = vld [vmem:[%s10182_s12 + $0xcb0] ss:$56 sps:$4 sm:$0xff]   ;;  %v8345_v43 = vld [vmem:[%s10182_s12 + $0x624] ss:$56 sps:$4 sm:$0xff]  }
 0x186   : > { %4948 = vmatprep.mubr.bf16.mxu0 %v8265_v46  ;;  %5076 = vmatprep.mubr.bf16.mxu1 %v8267_v47  ;;  %v8350_v46 = vld [vmem:[%s10182_s12 + $0xd20] ss:$56 sps:$4 sm:$0xff]   ;;  %v8353_v47 = vld [vmem:[%s10182_s12 + $0x694] ss:$56 sps:$4 sm:$0xff]  }
 0x187   : > { %5186 = vmatpush1.bf16.msra.mxu1 %v8287_v48  ;;  %5475 = vmatpush1.bf16.msra.mxu0 %v8288_v49  ;;  %v8355_v48 = vld [vmem:[%s10182_s12 + $0xd94] ss:$56 sps:$4 sm:$0xff]   ;;  %v8357_v49 = vld [vmem:[%s10182_s12 + $0x690] ss:$56 sps:$4 sm:$0xff]  }
 0x188   : > { %5187 = vmatprep.subr.bf16.mxu1 %v11672_v2  ;;  %5476 = vmatprep.subr.bf16.mxu0 %v11672_v2 }
 0x18b   : > { %5188 = vmatpush1.bf16.msra.mxu1 %v8295_v52  ;;  %5477 = vmatpush1.bf16.msra.mxu0 %v8296_v53  ;;  %v8366_v52 = vld [vmem:[%s10182_s12 + $0x14] ss:$56 sps:$4 sm:$0xff]   ;;  %v8361_v53 = vld [vmem:[%s10182_s12 + $0x8] ss:$56 sps:$4 sm:$0xff]  }
 0x18c   : > { %5189 = vmatprep.subr.bf16.mxu1 %v11672_v2  ;;  %5478 = vmatprep.subr.bf16.mxu0 %v11672_v2 }
 0x18d   : > { %4949 = vmatmul.mubr.bf16.gmra.mrb[16].mxu0 %v8269_v50  ;;  %5077 = vmatmul.mubr.bf16.gmra.mrb[16].mxu1 %v8270_v51  ;;  %v8358_v50 = vld [vmem:[%s10182_s12 + $0xd90] ss:$56 sps:$4 sm:$0xff]   ;;  %v8363_v51 = vld [vmem:[%s10182_s12 + $0xc] ss:$56 sps:$4 sm:$0xff]  }
 0x18e   : > { %4956 = vmatprep.mubr.bf16.mxu0 %v8273_v54  ;;  %5084 = vmatprep.mubr.bf16.mxu1 %v8275_v55  ;;  %v8364_v54 = vld [vmem:[%s10182_s12 + $0x10] ss:$56 sps:$4 sm:$0xff]   ;;  %v8367_v55 = vld [vmem:[%s10175_s26 + $0x180] sm:$0xff]  }
 0x18f   : > { %5190 = vmatpush1.bf16.msra.mxu1 %v8303_v56  ;;  %5479 = vmatpush1.bf16.msra.mxu0 %v8304_v57  ;;  %v8368_v56 = vld [vmem:[%s10175_s26 + $0x200] sm:$0xff]   ;;  %v8369_v57 = vld [vmem:[%s10182_s12 + $0x7c] ss:$56 sps:$4 sm:$0xff]  }
 0x190   : > { %5191 = vmatprep.subr.bf16.mxu1 %v11672_v2  ;;  %5480 = vmatprep.subr.bf16.mxu0 %v11672_v2 }
 0x193   : > { %5192 = vmatpush1.bf16.msra.mxu1 %v8311_v58  ;;  %5481 = vmatpush1.bf16.msra.mxu0 %v8312_v60  ;;  %v8371_v58 = vld [vmem:[%s10182_s12 + $0x84] ss:$56 sps:$4 sm:$0xff]   ;;  %v8382_v60 = vld [vmem:[%s10175_s26 + $0x208] sm:$0xff]  }
 0x194   : > { %5193 = vmatprep.subr.bf16.mxu1 %v11672_v2  ;;  %5482 = vmatprep.subr.bf16.mxu0 %v11672_v2 }
 0x195   : > { %4957 = vmatmul.mubr.bf16.gmra.mrb[20].mxu0 %v8277_v59  ;;  %5085 = vmatmul.mubr.bf16.gmra.mrb[20].mxu1 %v8278_v61  ;;  %v8381_v59 = vld [vmem:[%s10175_s26 + $0x188] sm:$0xff]   ;;  %v8373_v61 = vld [vmem:[%s10182_s12 + $0x78] ss:$56 sps:$4 sm:$0xff]  }
 0x196   : > { %4964 = vmatprep.mubr.bf16.mxu0 %v8281_v62  ;;  %5092 = vmatprep.mubr.bf16.mxu1 %v8283_v63  ;;  %v8374_v62 = vld [vmem:[%s10182_s12 + $0x80] ss:$56 sps:$4 sm:$0xff]   ;;  %v8375_v63 = vld [vmem:[%s10182_s12 + $0xec] ss:$56 sps:$4 sm:$0xff]  }
 0x197   : > { %5194 = vmatpush1.bf16.msra.mxu1 %v8319_v0  ;;  %5483 = vmatpush1.bf16.msra.mxu0 %v8320_v1  ;;  %v8377_v0 = vld [vmem:[%s10182_s12 + $0xf4] ss:$56 sps:$4 sm:$0xff]  }
 0x198   : > { %5195 = vmatprep.subr.bf16.mxu1 %v11672_v2  ;;  %5484 = vmatprep.subr.bf16.mxu0 %v11672_v2  ;;  %v8395_v1 = vld [vmem:[%s10175_s26 + $0x190] sm:$0xff]  }
 0x19b   : > { %5196 = vmatpush1.bf16.msra.mxu1 %v8327_v5  ;;  %5485 = vmatpush1.bf16.msra.mxu0 %v8328_v6  ;;  %v8410_v5 = vld [vmem:[%s10175_s26 + $0x218] sm:$0xff]   ;;  %v8379_v6 = vld [vmem:[%s10182_s12 + $0xe8] ss:$56 sps:$4 sm:$0xff]  }
 0x19c   : > { %5197 = vmatprep.subr.bf16.mxu1 %v11672_v2  ;;  %5486 = vmatprep.subr.bf16.mxu0 %v11672_v2 }
 0x19d   : > { %4965 = vmatmul.mubr.bf16.gmra.mrb[24].mxu0 %v8285_v3  ;;  %5093 = vmatmul.mubr.bf16.gmra.mrb[24].mxu1 %v8286_v4  ;;  %v8396_v3 = vld [vmem:[%s10175_s26 + $0x210] sm:$0xff]   ;;  %v8409_v4 = vld [vmem:[%s10175_s26 + $0x198] sm:$0xff]  }
 0x19e   : > { %4972 = vmatprep.mubr.bf16.mxu0 %v8289_v7  ;;  %5100 = vmatprep.mubr.bf16.mxu1 %v8291_v8  ;;  %v8380_v7 = vld [vmem:[%s10182_s12 + $0xf0] ss:$56 sps:$4 sm:$0xff]   ;;  %v8383_v8 = vld [vmem:[%s10182_s12 + $0x15c] ss:$56 sps:$4 sm:$0xff]  }
 0x19f   : > { %5198 = vmatpush1.bf16.msra.mxu1 %v8335_v9  ;;  %5487 = vmatpush1.bf16.msra.mxu0 %v8336_v10  ;;  %v8385_v9 = vld [vmem:[%s10182_s12 + $0x164] ss:$56 sps:$4 sm:$0xff]  }
 0x1a0   : > { %5199 = vmatprep.subr.bf16.mxu1 %v11672_v2  ;;  %5488 = vmatprep.subr.bf16.mxu0 %v11672_v2  ;;  %v8423_v10 = vld [vmem:[%s10175_s26 + $0x1a0] sm:$0xff]  }
 0x1a3   : > { %5200 = vmatpush1.bf16.msra.mxu1 %v8343_v11  ;;  %5489 = vmatpush1.bf16.msra.mxu0 %v8344_v13  ;;  %v8424_v11 = vld [vmem:[%s10175_s26 + $0x220] sm:$0xff]   ;;  %v8438_v13 = vld [vmem:[%s10175_s26 + $0x228] sm:$0xff]  }
 0x1a4   : > { %5201 = vmatprep.subr.bf16.mxu1 %v11672_v2  ;;  %5490 = vmatprep.subr.bf16.mxu0 %v11672_v2 }
 0x1a5   : > { %4973 = vmatmul.mubr.bf16.gmra.mrb[28].mxu0 %v8293_v12  ;;  %5101 = vmatmul.mubr.bf16.gmra.mrb[28].mxu1 %v8294_v14  ;;  %v8437_v12 = vld [vmem:[%s10175_s26 + $0x1a8] sm:$0xff]   ;;  %v8387_v14 = vld [vmem:[%s10182_s12 + $0x158] ss:$56 sps:$4 sm:$0xff]  }
 0x1a6   : > { %4980 = vmatprep.mubr.bf16.mxu0 %v8297_v15  ;;  %5108 = vmatprep.mubr.bf16.mxu1 %v8299_v16  ;;  %v8388_v15 = vld [vmem:[%s10182_s12 + $0x160] ss:$56 sps:$4 sm:$0xff]   ;;  %v8389_v16 = vld [vmem:[%s10182_s12 + $0x1cc] ss:$56 sps:$4 sm:$0xff]  }
 0x1a7   : > { %5202 = vmatpush1.bf16.msra.mxu1 %v8351_v17  ;;  %5491 = vmatpush1.bf16.msra.mxu0 %v8352_v18  ;;  %v8391_v17 = vld [vmem:[%s10182_s12 + $0x1d4] ss:$56 sps:$4 sm:$0xff]  }
 0x1a8   : > { %5203 = vmatprep.subr.bf16.mxu1 %v11672_v2  ;;  %5492 = vmatprep.subr.bf16.mxu0 %v11672_v2  ;;  %v8451_v18 = vld [vmem:[%s10175_s26 + $0x1b0] sm:$0xff]  }
 0x1ab   : > { %5204 = vmatpush1.bf16.msra.mxu1 %v8359_v19  ;;  %5493 = vmatpush1.bf16.msra.mxu0 %v8360_v20  ;;  %v8452_v19 = vld [vmem:[%s10175_s26 + $0x230] sm:$0xff]   ;;  %v8465_v20 = vld [vmem:[%s10175_s26 + $0x1b8] sm:$0xff]  }
 0x1ac   : > { %5751 = vmatprep.subr.bf16.mxu1 %v11672_v2  ;;  %6040 = vmatprep.subr.bf16.mxu0 %v11672_v2 }
 0x1ad   : > { %4981 = vmatmul.mubr.bf16.gmra.mrb[32].mxu0 %v8301_v21  ;;  %5109 = vmatmul.mubr.bf16.gmra.mrb[32].mxu1 %v8302_v22  ;;  %v8466_v21 = vld [vmem:[%s10175_s26 + $0x238] sm:$0xff]   ;;  %v8393_v22 = vld [vmem:[%s10182_s12 + $0x1c8] ss:$56 sps:$4 sm:$0xff]  }
 0x1ae   : > { %4988 = vmatprep.mubr.bf16.mxu0 %v8305_v23  ;;  %5116 = vmatprep.mubr.bf16.mxu1 %v8307_v24  ;;  %v8394_v23 = vld [vmem:[%s10182_s12 + $0x1d0] ss:$56 sps:$4 sm:$0xff]   ;;  %v8397_v24 = vld [vmem:[%s10182_s12 + $0x23c] ss:$56 sps:$4 sm:$0xff]  }
 0x1b5   : > { %4989 = vmatmul.mubr.bf16.gmra.mrb[36].mxu0 %v8309_v25  ;;  %5117 = vmatmul.mubr.bf16.gmra.mrb[36].mxu1 %v8310_v26  ;;  %v8399_v25 = vld [vmem:[%s10182_s12 + $0x244] ss:$56 sps:$4 sm:$0xff]  }
 0x1b6   : > { %4996 = vmatprep.mubr.bf16.mxu0 %v8313_v27  ;;  %5124 = vmatprep.mubr.bf16.mxu1 %v8315_v28  ;;  %v8479_v26 = vld [vmem:[%s10175_s26 + $0x1c0] sm:$0xff]   ;;  %v8493_v28 = vld [vmem:[%s10175_s26 + $0x1c8] sm:$0xff]  }
 0x1b7   : > { %v8480_v27 = vld [vmem:[%s10175_s26 + $0x240] sm:$0xff]  }
 0x1bd   : > { %4997 = vmatmul.mubr.bf16.gmra.mrb[40].mxu0 %v8317_v29  ;;  %5125 = vmatmul.mubr.bf16.gmra.mrb[40].mxu1 %v8318_v30  ;;  %v8494_v29 = vld [vmem:[%s10175_s26 + $0x248] sm:$0xff]   ;;  %v8401_v30 = vld [vmem:[%s10182_s12 + $0x238] ss:$56 sps:$4 sm:$0xff]  }
 0x1be   : > { %5004 = vmatprep.mubr.bf16.mxu0 %v8321_v31  ;;  %5132 = vmatprep.mubr.bf16.mxu1 %v8323_v32  ;;  %v8402_v31 = vld [vmem:[%s10182_s12 + $0x240] ss:$56 sps:$4 sm:$0xff]   ;;  %v8403_v32 = vld [vmem:[%s10182_s12 + $0x2ac] ss:$56 sps:$4 sm:$0xff]  }
 0x1c5   : > { %5005 = vmatmul.mubr.bf16.gmra.mrb[44].mxu0 %v8325_v33  ;;  %5133 = vmatmul.mubr.bf16.gmra.mrb[44].mxu1 %v8326_v34  ;;  %v8405_v33 = vld [vmem:[%s10182_s12 + $0x2b4] ss:$56 sps:$4 sm:$0xff]  }
 0x1c6   : > { %5012 = vmatprep.mubr.bf16.mxu0 %v8329_v35  ;;  %5140 = vmatprep.mubr.bf16.mxu1 %v8331_v36  ;;  %v8507_v34 = vld [vmem:[%s10175_s26 + $0x1d0] sm:$0xff]   ;;  %v8407_v36 = vld [vmem:[%s10182_s12 + $0x2a8] ss:$56 sps:$4 sm:$0xff]  }
 0x1c7   : > { %v8508_v35 = vld [vmem:[%s10175_s26 + $0x250] sm:$0xff]  }
 0x1cd   : > { %5013 = vmatmul.mubr.bf16.gmra.mrb[48].mxu0 %v8333_v37  ;;  %5141 = vmatmul.mubr.bf16.gmra.mrb[48].mxu1 %v8334_v38  ;;  %v8408_v37 = vld [vmem:[%s10182_s12 + $0x2b0] ss:$56 sps:$4 sm:$0xff]   ;;  %v8411_v38 = vld [vmem:[%s10182_s12 + $0x31c] ss:$56 sps:$4 sm:$0xff]  }
 0x1ce   : > { %5020 = vmatprep.mubr.bf16.mxu0 %v8337_v39  ;;  %5148 = vmatprep.mubr.bf16.mxu1 %v8339_v40  ;;  %v8413_v39 = vld [vmem:[%s10182_s12 + $0x324] ss:$56 sps:$4 sm:$0xff]  }
 0x1cf   : > { %v8521_v40 = vld [vmem:[%s10175_s26 + $0x1d8] sm:$0xff]  }
 0x1d5   : > { %5021 = vmatmul.mubr.bf16.gmra.mrb[52].mxu0 %v8341_v41  ;;  %5149 = vmatmul.mubr.bf16.gmra.mrb[52].mxu1 %v8342_v42  ;;  %v8415_v41 = vld [vmem:[%s10182_s12 + $0x318] ss:$56 sps:$4 sm:$0xff]  }
 0x1d6   : > { %5028 = vmatprep.mubr.bf16.mxu0 %v8345_v43  ;;  %5156 = vmatprep.mubr.bf16.mxu1 %v8347_v44  ;;  %v8416_v42 = vld [vmem:[%s10182_s12 + $0x320] ss:$56 sps:$4 sm:$0xff]   ;;  %v8417_v44 = vld [vmem:[%s10182_s12 + $0x38c] ss:$56 sps:$4 sm:$0xff]  }
 0x1d7   : > { %v8522_v43 = vld [vmem:[%s10175_s26 + $0x258] sm:$0xff]  }
 0x1dd   : > { %5029 = vmatmul.mubr.bf16.gmra.mrb[56].mxu0 %v8349_v45  ;;  %5157 = vmatmul.mubr.bf16.gmra.mrb[56].mxu1 %v8350_v46  ;;  %v8419_v45 = vld [vmem:[%s10182_s12 + $0x394] ss:$56 sps:$4 sm:$0xff]   ;;  %v8421_v46 = vld [vmem:[%s10182_s12 + $0x388] ss:$56 sps:$4 sm:$0xff]  }
 0x1de   : > { %5036 = vmatprep.mubr.bf16.mxu0 %v8353_v47  ;;  %5164 = vmatprep.mubr.bf16.mxu1 %v8355_v48  ;;  %v8422_v47 = vld [vmem:[%s10182_s12 + $0x390] ss:$56 sps:$4 sm:$0xff]   ;;  %v8425_v48 = vld [vmem:[%s10182_s12 + $0x3fc] ss:$56 sps:$4 sm:$0xff]  }
 0x1e5   : > { %5037 = vmatmul.mubr.bf16.gmra.mrb[60].mxu0 %v8357_v49  ;;  %5165 = vmatmul.mubr.bf16.gmra.mrb[60].mxu1 %v8358_v50  ;;  %v8427_v49 = vld [vmem:[%s10182_s12 + $0x404] ss:$56 sps:$4 sm:$0xff]  }
 0x1e6   : > { %5205 = vmatprep.mubr.bf16.mxu1 %v8363_v51  ;;  %5494 = vmatprep.mubr.bf16.mxu0 %v8366_v52  ;;  %v8535_v50 = vld [vmem:[%s10175_s26 + $0x1e0] sm:$0xff]   ;;  %v8429_v51 = vld [vmem:[%s10182_s12 + $0x3f8] ss:$56 sps:$4 sm:$0xff]  }
 0x1e7   : > { %v8430_v52 = vld [vmem:[%s10182_s12 + $0x400] ss:$56 sps:$4 sm:$0xff]  }
 0x1ed   : > { %5206 = vmatmul.mubr.bf16.vlgmr.msra.gmra.mrb[64].mxu1 %v8361_v53  ;;  %5495 = vmatmul.mubr.bf16.vlgmr.msra.gmra.mrb[64].mxu0 %v8364_v54  ;;  %v8536_v53 = vld [vmem:[%s10175_s26 + $0x260] sm:$0xff]  }
 0x1ee   : > { %5752 = vmatpush1.bf16.msra.mxu1 %v8367_v55  ;;  %6041 = vmatpush1.bf16.msra.mxu0 %v8368_v56  ;;  %v8431_v54 = vld [vmem:[%s10182_s12 + $0x46c] ss:$56 sps:$4 sm:$0xff]   ;;  %v8435_v56 = vld [vmem:[%s10182_s12 + $0x468] ss:$56 sps:$4 sm:$0xff]  }
 0x1ef   : > { %5213 = vmatprep.mubr.bf16.mxu1 %v8369_v57  ;;  %5502 = vmatprep.mubr.bf16.mxu0 %v8371_v58  ;;  %v8433_v55 = vld [vmem:[%s10182_s12 + $0x474] ss:$56 sps:$4 sm:$0xff]   ;;  %v8436_v57 = vld [vmem:[%s10182_s12 + $0x470] ss:$56 sps:$4 sm:$0xff]  }
 0x1f0   : > { %5753 = vmatprep.subr.bf16.mxu1 %v11672_v2  ;;  %6042 = vmatprep.subr.bf16.mxu0 %v11672_v2  ;;  %v8439_v58 = vld [vmem:[%s10182_s12 + $0x4dc] ss:$56 sps:$4 sm:$0xff]  }
 0x1f2   : > { %5754 = vmatpush1.bf16.msra.mxu1 %v8381_v59  ;;  %6043 = vmatpush1.bf16.msra.mxu0 %v8382_v60  ;;  %v8441_v59 = vld [vmem:[%s10182_s12 + $0x4e4] ss:$56 sps:$4 sm:$0xff]   ;;  %v8549_v60 = vld [vmem:[%s10175_s26 + $0x1e8] sm:$0xff]  }
 0x1f3   : > { %5755 = vmatprep.subr.bf16.mxu1 %v11672_v2  ;;  %6044 = vmatprep.subr.bf16.mxu0 %v11672_v2 }
 0x1f5   : > { %5214 = vmatmul.mubr.bf16.gmra.mrb[68].mxu1 %v8373_v61  ;;  %5503 = vmatmul.mubr.bf16.gmra.mrb[68].mxu0 %v8374_v62  ;;  %v8443_v61 = vld [vmem:[%s10182_s12 + $0x4d8] ss:$56 sps:$4 sm:$0xff]  }
 0x1f6   : > { %5221 = vmatprep.mubr.bf16.mxu1 %v8375_v63  ;;  %5510 = vmatprep.mubr.bf16.mxu0 %v8377_v0  ;;  %v8444_v62 = vld [vmem:[%s10182_s12 + $0x4e0] ss:$56 sps:$4 sm:$0xff]  }
 0x1f7   : > { %5756 = vmatpush1.bf16.msra.mxu1 %v8395_v1  ;;  %6045 = vmatpush1.bf16.msra.mxu0 %v8396_v3 }
 0x1f8   : > { %5757 = vmatprep.subr.bf16.mxu1 %v11672_v2  ;;  %6046 = vmatprep.subr.bf16.mxu0 %v11672_v2 }
 0x1fb   : > { %5758 = vmatpush1.bf16.msra.mxu1 %v8409_v4  ;;  %6047 = vmatpush1.bf16.msra.mxu0 %v8410_v5  ;;  %v8550_v4 = vld [vmem:[%s10175_s26 + $0x268] sm:$0xff]  }
 0x1fc   : > { %5759 = vmatprep.subr.bf16.mxu1 %v11672_v2  ;;  %6048 = vmatprep.subr.bf16.mxu0 %v11672_v2 }
 0x1fd   : > { %5222 = vmatmul.mubr.bf16.gmra.mrb[72].mxu1 %v8379_v6  ;;  %5511 = vmatmul.mubr.bf16.gmra.mrb[72].mxu0 %v8380_v7  ;;  %v8445_v7 = vld [vmem:[%s10182_s12 + $0x54c] ss:$56 sps:$4 sm:$0xff]  }
 0x1fe   : > { %5229 = vmatprep.mubr.bf16.mxu1 %v8383_v8  ;;  %5518 = vmatprep.mubr.bf16.mxu0 %v8385_v9  ;;  %v8447_v8 = vld [vmem:[%s10182_s12 + $0x554] ss:$56 sps:$4 sm:$0xff]  }
 0x1ff   : > { %5760 = vmatpush1.bf16.msra.mxu1 %v8423_v10  ;;  %6049 = vmatpush1.bf16.msra.mxu0 %v8424_v11  ;;  %v8449_v11 = vld [vmem:[%s10182_s12 + $0x548] ss:$56 sps:$4 sm:$0xff]  }
 0x200   : > { %5761 = vmatprep.subr.bf16.mxu1 %v11672_v2  ;;  %6050 = vmatprep.subr.bf16.mxu0 %v11672_v2 }
 0x203   : > { %5762 = vmatpush1.bf16.msra.mxu1 %v8437_v12  ;;  %6051 = vmatpush1.bf16.msra.mxu0 %v8438_v13  ;;  %v8450_v12 = vld [vmem:[%s10182_s12 + $0x550] ss:$56 sps:$4 sm:$0xff]  }
 0x204   : > { %5763 = vmatprep.subr.bf16.mxu1 %v11672_v2  ;;  %6052 = vmatprep.subr.bf16.mxu0 %v11672_v2 }
 0x205   : > { %5230 = vmatmul.mubr.bf16.gmra.mrb[76].mxu1 %v8387_v14  ;;  %5519 = vmatmul.mubr.bf16.gmra.mrb[76].mxu0 %v8388_v15 }
 0x206   : > { %5237 = vmatprep.mubr.bf16.mxu1 %v8389_v16  ;;  %5526 = vmatprep.mubr.bf16.mxu0 %v8391_v17 }
 0x207   : > { %5764 = vmatpush1.bf16.msra.mxu1 %v8451_v18  ;;  %6053 = vmatpush1.bf16.msra.mxu0 %v8452_v19  ;;  %v8453_v19 = vld [vmem:[%s10182_s12 + $0x5bc] ss:$56 sps:$4 sm:$0xff]  }
 0x208   : > { %5765 = vmatprep.subr.bf16.mxu1 %v11672_v2  ;;  %6054 = vmatprep.subr.bf16.mxu0 %v11672_v2 }
 0x20b   : > { %5766 = vmatpush1.bf16.msra.mxu1 %v8465_v20  ;;  %6055 = vmatpush1.bf16.msra.mxu0 %v8466_v21  ;;  %v8455_v20 = vld [vmem:[%s10182_s12 + $0x5c4] ss:$56 sps:$4 sm:$0xff]  }
 0x20c   : > { %5767 = vmatprep.subr.bf16.mxu1 %v11672_v2  ;;  %6056 = vmatprep.subr.bf16.mxu0 %v11672_v2 }
 0x20d   : > { %5238 = vmatmul.mubr.bf16.gmra.mrb[80].mxu1 %v8393_v22  ;;  %5527 = vmatmul.mubr.bf16.gmra.mrb[80].mxu0 %v8394_v23  ;;  %v8563_v23 = vld [vmem:[%s10175_s26 + $0x1f0] sm:$0xff]  }
 0x20e   : > { %5245 = vmatprep.mubr.bf16.mxu1 %v8397_v24  ;;  %5534 = vmatprep.mubr.bf16.mxu0 %v8399_v25  ;;  %v8457_v24 = vld [vmem:[%s10182_s12 + $0x5b8] ss:$56 sps:$4 sm:$0xff]  }
 0x20f   : > { %5768 = vmatpush1.bf16.msra.mxu1 %v8479_v26  ;;  %6057 = vmatpush1.bf16.msra.mxu0 %v8480_v27  ;;  %v8458_v25 = vld [vmem:[%s10182_s12 + $0x5c0] ss:$56 sps:$4 sm:$0xff]  }
 0x210   : > { %5769 = vmatprep.subr.bf16.mxu1 %v11672_v2  ;;  %6058 = vmatprep.subr.bf16.mxu0 %v11672_v2 }
 0x213   : > { %5770 = vmatpush1.bf16.msra.mxu1 %v8493_v28  ;;  %6059 = vmatpush1.bf16.msra.mxu0 %v8494_v29 }
 0x214   : > { %5771 = vmatprep.subr.bf16.mxu1 %v11672_v2  ;;  %6060 = vmatprep.subr.bf16.mxu0 %v11672_v2 }
 0x215   : > { %5246 = vmatmul.mubr.bf16.gmra.mrb[84].mxu1 %v8401_v30  ;;  %5535 = vmatmul.mubr.bf16.gmra.mrb[84].mxu0 %v8402_v31  ;;  %v8564_v30 = vld [vmem:[%s10175_s26 + $0x270] sm:$0xff]  }
 0x216   : > { %5253 = vmatprep.mubr.bf16.mxu1 %v8403_v32  ;;  %5542 = vmatprep.mubr.bf16.mxu0 %v8405_v33  ;;  %v8459_v33 = vld [vmem:[%s10182_s12 + $0x62c] ss:$56 sps:$4 sm:$0xff]  }
 0x217   : > { %5772 = vmatpush1.bf16.msra.mxu1 %v8507_v34  ;;  %6061 = vmatpush1.bf16.msra.mxu0 %v8508_v35  ;;  %v8461_v34 = vld [vmem:[%s10182_s12 + $0x634] ss:$56 sps:$4 sm:$0xff]  }
 0x218   : > { %5773 = vmatprep.subr.bf16.mxu1 %v11672_v2  ;;  %6062 = vmatprep.subr.bf16.mxu0 %v11672_v2 }
 0x21b   : > { %5774 = vmatpush1.bf16.msra.mxu1 %v8521_v40  ;;  %6063 = vmatpush1.bf16.msra.mxu0 %v8522_v43 }
 0x21c   : > { %5775 = vmatprep.subr.bf16.mxu1 %v11672_v2  ;;  %6064 = vmatprep.subr.bf16.mxu0 %v11672_v2 }
 0x21d   : > { %5254 = vmatmul.mubr.bf16.gmra.mrb[88].mxu1 %v8407_v36  ;;  %5543 = vmatmul.mubr.bf16.gmra.mrb[88].mxu0 %v8408_v37  ;;  %v8463_v37 = vld [vmem:[%s10182_s12 + $0x628] ss:$56 sps:$4 sm:$0xff]  }
 0x21e   : > { %5261 = vmatprep.mubr.bf16.mxu1 %v8411_v38  ;;  %5550 = vmatprep.mubr.bf16.mxu0 %v8413_v39  ;;  %v8464_v38 = vld [vmem:[%s10182_s12 + $0x630] ss:$56 sps:$4 sm:$0xff]  }
 0x21f   : > { %5776 = vmatpush1.bf16.msra.mxu1 %v8535_v50  ;;  %6065 = vmatpush1.bf16.msra.mxu0 %v8536_v53  ;;  %v8471_v50 = vld [vmem:[%s10182_s12 + $0x698] ss:$56 sps:$4 sm:$0xff]  }
 0x220   : > { %5777 = vmatprep.subr.bf16.mxu1 %v11672_v2  ;;  %6066 = vmatprep.subr.bf16.mxu0 %v11672_v2 }
 0x223   : > { %5778 = vmatpush1.bf16.msra.mxu1 %v8549_v60  ;;  %6067 = vmatpush1.bf16.msra.mxu0 %v8550_v4  ;;  %v8475_v60 = vld [vmem:[%s10182_s12 + $0x714] ss:$56 sps:$4 sm:$0xff]  }
 0x224   : > { %5779 = vmatprep.subr.bf16.mxu1 %v11672_v2  ;;  %6068 = vmatprep.subr.bf16.mxu0 %v11672_v2 }
 0x225   : > { %5262 = vmatmul.mubr.bf16.gmra.mrb[92].mxu1 %v8415_v41  ;;  %5551 = vmatmul.mubr.bf16.gmra.mrb[92].mxu0 %v8416_v42 }
 0x226   : > { %5269 = vmatprep.mubr.bf16.mxu1 %v8417_v44  ;;  %5558 = vmatprep.mubr.bf16.mxu0 %v8419_v45  ;;  %v8467_v45 = vld [vmem:[%s10182_s12 + $0x69c] ss:$56 sps:$4 sm:$0xff]  }
 0x227   : > { %5780 = vmatpush1.bf16.msra.mxu1 %v8563_v23  ;;  %6069 = vmatpush1.bf16.msra.mxu0 %v8564_v30  ;;  %v8487_v30 = vld [vmem:[%s10182_s12 + $0x7ec] ss:$56 sps:$4 sm:$0xff]  }
 0x228   : > { %5781 = vmatprep.subr.bf16.mxu1 %v11672_v2  ;;  %6070 = vmatprep.subr.bf16.mxu0 %v11672_v2 }
 0x22d   : > { %5270 = vmatmul.mubr.bf16.gmra.mrb[96].mxu1 %v8421_v46  ;;  %5559 = vmatmul.mubr.bf16.gmra.mrb[96].mxu0 %v8422_v47  ;;  %v8469_v46 = vld [vmem:[%s10182_s12 + $0x6a4] ss:$56 sps:$4 sm:$0xff]  }
 0x22e   : > { %5277 = vmatprep.mubr.bf16.mxu1 %v8425_v48  ;;  %5566 = vmatprep.mubr.bf16.mxu0 %v8427_v49  ;;  %v8577_v49 = vld [vmem:[%s10175_s26 + $0x1f8] sm:$0xff]  }
 0x22f   : > { %5782 = vmatpush1.bf16.msra.mxu1 %v8577_v49  ;;  %v8497_v49 = vld [vmem:[%s10182_s12 + $0x864] ss:$56 sps:$4 sm:$0xff]  }
 0x230   : > { %6329 = vmatprep.subr.bf16.mxu1 %v11672_v2 }
 0x235   : > { %5278 = vmatmul.mubr.bf16.gmra.mrb[100].mxu1 %v8429_v51  ;;  %5567 = vmatmul.mubr.bf16.gmra.mrb[100].mxu0 %v8430_v52  ;;  %v8472_v51 = vld [vmem:[%s10182_s12 + $0x6a0] ss:$56 sps:$4 sm:$0xff]  }
 0x236   : > { %5285 = vmatprep.mubr.bf16.mxu1 %v8431_v54  ;;  %5574 = vmatprep.mubr.bf16.mxu0 %v8433_v55 }
 0x23d   : > { %5286 = vmatmul.mubr.bf16.gmra.mrb[104].mxu1 %v8435_v56  ;;  %5575 = vmatmul.mubr.bf16.gmra.mrb[104].mxu0 %v8436_v57  ;;  %v8578_v56 = vld [vmem:[%s10175_s26 + $0x278] sm:$0xff]  }
 0x23e   : > { %5293 = vmatprep.mubr.bf16.mxu1 %v8439_v58  ;;  %5582 = vmatprep.mubr.bf16.mxu0 %v8441_v59  ;;  %v8473_v59 = vld [vmem:[%s10182_s12 + $0x70c] ss:$56 sps:$4 sm:$0xff]  }
 0x23f   : > { %6071 = vmatpush1.bf16.msra.mxu0 %v8578_v56 }
 0x240   : > { %v10528_v63 = vpop.f32.mrb[0].mxu0  ;;  %v10530_v0 = vpop.f32.mrb[0].mxu1  ;;  %6618 = vmatprep.subr.bf16.mxu0 %v11672_v2  ;;  %v8534_v2 = vld [vmem:[%s10182_s12 + $0xa90] ss:$56 sps:$4 sm:$0xff]  }
 0x241   : > { %v4920_v1 = vpop.f32.mrb[1].mxu0  ;;  %v5048_v3 = vpop.f32.mrb[1].mxu1 }
 0x242   : > { %v10534_v5 = vpop.f32.mrb[2].mxu0  ;;  %v10536_v6 = vpop.f32.mrb[2].mxu1  ;;  %v8477_v1 = vld [vmem:[%s10182_s12 + $0x708] ss:$56 sps:$4 sm:$0xff]  }
 0x243   : > { %v4923_v9 = vpop.f32.mrb[3].mxu0  ;;  %v5051_v10 = vpop.f32.mrb[3].mxu1  ;;  %v8478_v3 = vld [vmem:[%s10182_s12 + $0x710] ss:$56 sps:$4 sm:$0xff]  }
 0x245   : > { %5294 = vmatmul.mubr.bf16.gmra.mrb[108].mxu1 %v8443_v61  ;;  %5583 = vmatmul.mubr.bf16.gmra.mrb[108].mxu0 %v8444_v62 }
 0x246   : > { %5301 = vmatprep.mubr.bf16.mxu1 %v8445_v7  ;;  %5590 = vmatprep.mubr.bf16.mxu0 %v8447_v8 }
 0x248   : > { %v10543_v13 = vpop.f32.mrb[4].mxu0  ;;  %v10545_v14 = vpop.f32.mrb[4].mxu1 }
 0x249   : > { %v4928_v15 = vpop.f32.mrb[5].mxu0  ;;  %v5056_v16 = vpop.f32.mrb[5].mxu1 }
 0x24a   : > { %v10547_v17 = vpop.f32.mrb[6].mxu0  ;;  %v10549_v18 = vpop.f32.mrb[6].mxu1  ;;  %v8483_v15 = vld [vmem:[%s10182_s12 + $0x784] ss:$56 sps:$4 sm:$0xff]  }
 0x24b   : > { %v4931_v21 = vpop.f32.mrb[7].mxu0  ;;  %v5059_v22 = vpop.f32.mrb[7].mxu1 }
 0x24d   : > { %5302 = vmatmul.mubr.bf16.gmra.mrb[112].mxu1 %v8449_v11  ;;  %5591 = vmatmul.mubr.bf16.gmra.mrb[112].mxu0 %v8450_v12  ;;  %v8481_v12 = vld [vmem:[%s10182_s12 + $0x77c] ss:$56 sps:$4 sm:$0xff]  }
 0x24e   : > { %5309 = vmatprep.mubr.bf16.mxu1 %v8453_v19  ;;  %5598 = vmatprep.mubr.bf16.mxu0 %v8455_v20 }
 0x250   : > { %v10556_v26 = vpop.f32.mrb[8].mxu0  ;;  %v10558_v27 = vpop.f32.mrb[8].mxu1 }
 0x251   : > { %v4936_v28 = vpop.f32.mrb[9].mxu0  ;;  %v5064_v29 = vpop.f32.mrb[9].mxu1 }
 0x252   : > { %v10562_v31 = vpop.f32.mrb[10].mxu0  ;;  %v10564_v32 = vpop.f32.mrb[10].mxu1 }
 0x253   : > { %v4939_v35 = vpop.f32.mrb[11].mxu0  ;;  %v5067_v36 = vpop.f32.mrb[11].mxu1 }
 0x255   : > { %5310 = vmatmul.mubr.bf16.gmra.mrb[116].mxu1 %v8457_v24  ;;  %5599 = vmatmul.mubr.bf16.gmra.mrb[116].mxu0 %v8458_v25  ;;  %v8485_v24 = vld [vmem:[%s10182_s12 + $0x778] ss:$56 sps:$4 sm:$0xff]  }
 0x256   : > { %5317 = vmatprep.mubr.bf16.mxu1 %v8459_v33  ;;  %5606 = vmatprep.mubr.bf16.mxu0 %v8461_v34  ;;  %v8486_v25 = vld [vmem:[%s10182_s12 + $0x780] ss:$56 sps:$4 sm:$0xff]   ;;  %v8489_v33 = vld [vmem:[%s10182_s12 + $0x7f4] ss:$56 sps:$4 sm:$0xff]  }
 0x258   : > { %v10571_v39 = vpop.f32.mrb[12].mxu0  ;;  %v10573_v40 = vpop.f32.mrb[12].mxu1 }
 0x259   : > { %v4944_v41 = vpop.f32.mrb[13].mxu0  ;;  %v5072_v42 = vpop.f32.mrb[13].mxu1 }
 0x25a   : > { %v10575_v43 = vpop.f32.mrb[14].mxu0  ;;  %v10577_v44 = vpop.f32.mrb[14].mxu1  ;;  %v8491_v42 = vld [vmem:[%s10182_s12 + $0x7e8] ss:$56 sps:$4 sm:$0xff]  }
 0x25b   : > { %v4947_v47 = vpop.f32.mrb[15].mxu0  ;;  %v5075_v48 = vpop.f32.mrb[15].mxu1 }
 0x25c   : > { %v8495_v48 = vld [vmem:[%s10182_s12 + $0x85c] ss:$56 sps:$4 sm:$0xff]  }
 0x25d   : > { %5318 = vmatmul.mubr.bf16.gmra.mrb[120].mxu1 %v8463_v37  ;;  %5607 = vmatmul.mubr.bf16.gmra.mrb[120].mxu0 %v8464_v38 }
 0x25e   : > { %5325 = vmatprep.mubr.bf16.mxu1 %v8467_v45  ;;  %5614 = vmatprep.mubr.bf16.mxu0 %v8469_v46  ;;  %v8492_v45 = vld [vmem:[%s10182_s12 + $0x7f0] ss:$56 sps:$4 sm:$0xff]  }
 0x260   : > { %v10584_v52 = vpop.f32.mrb[16].mxu0  ;;  %v10586_v53 = vpop.f32.mrb[16].mxu1 }
 0x261   : > { %v4952_v54 = vpop.f32.mrb[17].mxu0  ;;  %v5080_v55 = vpop.f32.mrb[17].mxu1 }
 0x262   : > { %v10590_v57 = vpop.f32.mrb[18].mxu0  ;;  %v10592_v58 = vpop.f32.mrb[18].mxu1 }
 0x263   : > { %v4955_v61 = vpop.f32.mrb[19].mxu0  ;;  %v5083_v62 = vpop.f32.mrb[19].mxu1 }
 0x264   : > { %v8500_v61 = vld [vmem:[%s10182_s12 + $0x860] ss:$56 sps:$4 sm:$0xff]  }
 0x265   : > { %5326 = vmatmul.mubr.bf16.gmra.mrb[124].mxu1 %v8471_v50  ;;  %5615 = vmatmul.mubr.bf16.gmra.mrb[124].mxu0 %v8472_v51 }
 0x266   : > { %5333 = vmatprep.mubr.bf16.mxu1 %v8473_v59  ;;  %5622 = vmatprep.mubr.bf16.mxu0 %v8475_v60  ;;  %v8499_v60 = vld [vmem:[%s10182_s12 + $0x858] ss:$56 sps:$4 sm:$0xff]  }
 0x268   : > { %v10599_v4 = vpop.f32.mrb[20].mxu0  ;;  %v10601_v7 = vpop.f32.mrb[20].mxu1 }
 0x269   : > { %v4960_v8 = vpop.f32.mrb[21].mxu0  ;;  %v5088_v9 = vpop.f32.mrb[21].mxu1 }
 0x26a   : > { %v10603_v10 = vpop.f32.mrb[22].mxu0  ;;  %v10605_v11 = vpop.f32.mrb[22].mxu1  ;;  %v8503_v8 = vld [vmem:[%s10182_s12 + $0x8d4] ss:$56 sps:$4 sm:$0xff]  }
 0x26b   : > { %v4963_v16 = vpop.f32.mrb[23].mxu0  ;;  %v5091_v19 = vpop.f32.mrb[23].mxu1 }
 0x26d   : > { %5334 = vmatmul.mubr.bf16.gmra.mrb[128].mxu1 %v8477_v1  ;;  %5623 = vmatmul.mubr.bf16.gmra.mrb[128].mxu0 %v8478_v3  ;;  %v8501_v3 = vld [vmem:[%s10182_s12 + $0x8cc] ss:$56 sps:$4 sm:$0xff]  }
 0x26e   : > { %5341 = vmatprep.mubr.bf16.mxu1 %v8481_v12  ;;  %5630 = vmatprep.mubr.bf16.mxu0 %v8483_v15 }
 0x270   : > { %v10609_v20 = vpop.f32.mrb[24].mxu0  ;;  %v10611_v21 = vpop.f32.mrb[24].mxu1 }
 0x271   : > { %v4968_v22 = vpop.f32.mrb[25].mxu0  ;;  %v5096_v23 = vpop.f32.mrb[25].mxu1 }
 0x272   : > { %v10615_v28 = vpop.f32.mrb[26].mxu0  ;;  %v10617_v29 = vpop.f32.mrb[26].mxu1  ;;  %v8505_v23 = vld [vmem:[%s10182_s12 + $0x8c8] ss:$56 sps:$4 sm:$0xff]  }
 0x273   : > { %v4971_v34 = vpop.f32.mrb[27].mxu0  ;;  %v5099_v35 = vpop.f32.mrb[27].mxu1 }
 0x274   : > { %v8511_v34 = vld [vmem:[%s10182_s12 + $0x944] ss:$56 sps:$4 sm:$0xff]  }
 0x275   : > { %5342 = vmatmul.mubr.bf16.gmra.mrb[132].mxu1 %v8485_v24  ;;  %5631 = vmatmul.mubr.bf16.gmra.mrb[132].mxu0 %v8486_v25  ;;  %v8506_v24 = vld [vmem:[%s10182_s12 + $0x8d0] ss:$56 sps:$4 sm:$0xff]  }
 0x276   : > { %5349 = vmatprep.mubr.bf16.mxu1 %v8487_v30  ;;  %5638 = vmatprep.mubr.bf16.mxu0 %v8489_v33  ;;  %v8509_v33 = vld [vmem:[%s10182_s12 + $0x93c] ss:$56 sps:$4 sm:$0xff]  }
 0x278   : > { %v10621_v36 = vpop.f32.mrb[28].mxu0  ;;  %v10623_v37 = vpop.f32.mrb[28].mxu1 }
 0x279   : > { %11674 = vst [vmem:[#allocation4_spill] sm:$0xff] %v10623_v37  ;;  %v4976_v38 = vpop.f32.mrb[29].mxu0  ;;  %v5104_v41 = vpop.f32.mrb[29].mxu1  ;;  %v8561_v37 = vld [vmem:[%s10182_s12 + $0xc48] ss:$56 sps:$4 sm:$0xff]  }
 0x27a   : > { %v10627_v46 = vpop.f32.mrb[30].mxu0  ;;  %v10629_v47 = vpop.f32.mrb[30].mxu1 }
 0x27b   : > { %11675 = vst [vmem:[#allocation5_spill] sm:$0xff] %v10629_v47  ;;  %v4979_v50 = vpop.f32.mrb[31].mxu0  ;;  %v5107_v51 = vpop.f32.mrb[31].mxu1  ;;  %v8559_v47 = vld [vmem:[%s10182_s12 + $0xc54] ss:$56 sps:$4 sm:$0xff]  }
 0x27c   : > { %v8514_v50 = vld [vmem:[%s10182_s12 + $0x940] ss:$56 sps:$4 sm:$0xff]  }
 0x27d   : > { %5350 = vmatmul.mubr.bf16.gmra.mrb[136].mxu1 %v8491_v42  ;;  %5639 = vmatmul.mubr.bf16.gmra.mrb[136].mxu0 %v8492_v45 }
 0x27e   : > { %5357 = vmatprep.mubr.bf16.mxu1 %v8495_v48  ;;  %5646 = vmatprep.mubr.bf16.mxu0 %v8497_v49  ;;  %v8513_v49 = vld [vmem:[%s10182_s12 + $0x938] ss:$56 sps:$4 sm:$0xff]  }
 0x280   : > { %v10633_v54 = vpop.f32.mrb[32].mxu0  ;;  %v10635_v55 = vpop.f32.mrb[32].mxu1 }
 0x281   : > { %11676 = vst [vmem:[#allocation6_spill] sm:$0xff] %v10635_v55  ;;  %v4984_v56 = vpop.f32.mrb[33].mxu0  ;;  %v5112_v59 = vpop.f32.mrb[33].mxu1  ;;  %v8557_v55 = vld [vmem:[%s10182_s12 + $0xc4c] ss:$56 sps:$4 sm:$0xff]  }
 0x282   : > { %v10639_v62 = vpop.f32.mrb[34].mxu0  ;;  %v10641_v1 = vpop.f32.mrb[34].mxu1  ;;  %v8515_v59 = vld [vmem:[%s10182_s12 + $0x9ac] ss:$56 sps:$4 sm:$0xff]  }
 0x283   : > { %11677 = vst [vmem:[#allocation7_spill] sm:$0xff] %v10641_v1  ;;  %v4987_v9 = vpop.f32.mrb[35].mxu0  ;;  %v5115_v12 = vpop.f32.mrb[35].mxu1 }
 0x285   : > { %5358 = vmatmul.mubr.bf16.gmra.mrb[140].mxu1 %v8499_v60  ;;  %5647 = vmatmul.mubr.bf16.gmra.mrb[140].mxu0 %v8500_v61  ;;  %v8517_v60 = vld [vmem:[%s10182_s12 + $0x9b4] ss:$56 sps:$4 sm:$0xff]  }
 0x286   : > { %5365 = vmatprep.mubr.bf16.mxu1 %v8501_v3  ;;  %5654 = vmatprep.mubr.bf16.mxu0 %v8503_v8 }
 0x288   : > { %v10645_v15 = vpop.f32.mrb[36].mxu0  ;;  %v10647_v16 = vpop.f32.mrb[36].mxu1 }
 0x289   : > { %11678 = vst [vmem:[#allocation8_spill] sm:$0xff] %v10647_v16  ;;  %v4992_v19 = vpop.f32.mrb[37].mxu0  ;;  %v5120_v22 = vpop.f32.mrb[37].mxu1  ;;  %v8556_v16 = vld [vmem:[%s10182_s12 + $0xbe0] ss:$56 sps:$4 sm:$0xff]  }
 0x28a   : > { %v10651_v25 = vpop.f32.mrb[38].mxu0  ;;  %v10653_v30 = vpop.f32.mrb[38].mxu1  ;;  %v8519_v22 = vld [vmem:[%s10182_s12 + $0x9a8] ss:$56 sps:$4 sm:$0xff]  }
 0x28b   : > { %11679 = vst [vmem:[#allocation9_spill] sm:$0xff] %v10653_v30  ;;  %v4995_v35 = vpop.f32.mrb[39].mxu0  ;;  %v5123_v38 = vpop.f32.mrb[39].mxu1  ;;  %v8555_v30 = vld [vmem:[%s10182_s12 + $0xbd8] ss:$56 sps:$4 sm:$0xff]  }
 0x28c   : > { %v8525_v35 = vld [vmem:[%s10182_s12 + $0xa24] ss:$56 sps:$4 sm:$0xff]  }
 0x28d   : > { %5366 = vmatmul.mubr.bf16.gmra.mrb[144].mxu1 %v8505_v23  ;;  %5655 = vmatmul.mubr.bf16.gmra.mrb[144].mxu0 %v8506_v24  ;;  %v8520_v23 = vld [vmem:[%s10182_s12 + $0x9b0] ss:$56 sps:$4 sm:$0xff]  }
 0x28e   : > { %5373 = vmatprep.mubr.bf16.mxu1 %v8509_v33  ;;  %5662 = vmatprep.mubr.bf16.mxu0 %v8511_v34  ;;  %v8523_v34 = vld [vmem:[%s10182_s12 + $0xa1c] ss:$56 sps:$4 sm:$0xff]  }
 0x290   : > { %v10657_v41 = vpop.f32.mrb[40].mxu0  ;;  %v10659_v42 = vpop.f32.mrb[40].mxu1 }
 0x291   : > { %11680 = vst [vmem:[#allocation10_spill] sm:$0xff] %v10659_v42  ;;  %v5000_v45 = vpop.f32.mrb[41].mxu0  ;;  %v5128_v48 = vpop.f32.mrb[41].mxu1 }
 0x292   : > { %v10663_v51 = vpop.f32.mrb[42].mxu0  ;;  %v10665_v56 = vpop.f32.mrb[42].mxu1 }
 0x293   : > { %11681 = vst [vmem:[#allocation11_spill] sm:$0xff] %v10665_v56  ;;  %v5003_v61 = vpop.f32.mrb[43].mxu0  ;;  %v5131_v3 = vpop.f32.mrb[43].mxu1  ;;  %v8548_v56 = vld [vmem:[%s10182_s12 + $0xb70] ss:$56 sps:$4 sm:$0xff]  }
 0x294   : > { %v8528_v61 = vld [vmem:[%s10182_s12 + $0xa20] ss:$56 sps:$4 sm:$0xff]  }
 0x295   : > { %5374 = vmatmul.mubr.bf16.gmra.mrb[148].mxu1 %v8513_v49  ;;  %5663 = vmatmul.mubr.bf16.gmra.mrb[148].mxu0 %v8514_v50 }
 0x296   : > { %5381 = vmatprep.mubr.bf16.mxu1 %v8515_v59  ;;  %5670 = vmatprep.mubr.bf16.mxu0 %v8517_v60  ;;  %v8527_v60 = vld [vmem:[%s10182_s12 + $0xa18] ss:$56 sps:$4 sm:$0xff]  }
 0x298   : > { %v10669_v8 = vpop.f32.mrb[44].mxu0  ;;  %v10671_v9 = vpop.f32.mrb[44].mxu1 }
 0x299   : > { %11682 = vst [vmem:[#allocation12_spill] sm:$0xff] %v10671_v9  ;;  %v5008_v12 = vpop.f32.mrb[45].mxu0  ;;  %v5136_v19 = vpop.f32.mrb[45].mxu1 }
 0x29a   : > { %v10675_v24 = vpop.f32.mrb[46].mxu0  ;;  %v10677_v33 = vpop.f32.mrb[46].mxu1  ;;  %v8529_v19 = vld [vmem:[%s10182_s12 + $0xa8c] ss:$56 sps:$4 sm:$0xff]  }
 0x29b   : > { %11683 = vst [vmem:[#allocation13_spill] sm:$0xff] %v10677_v33  ;;  %v5011_v38 = vpop.f32.mrb[47].mxu0  ;;  %v5139_v45 = vpop.f32.mrb[47].mxu1  ;;  %v8542_v33 = vld [vmem:[%s10182_s12 + $0xb00] ss:$56 sps:$4 sm:$0xff]  }
 0x29d   : > { %5382 = vmatmul.mubr.bf16.gmra.mrb[152].mxu1 %v8519_v22  ;;  %5671 = vmatmul.mubr.bf16.gmra.mrb[152].mxu0 %v8520_v23  ;;  %v8531_v22 = vld [vmem:[%s10182_s12 + $0xa94] ss:$56 sps:$4 sm:$0xff]  }
 0x29e   : > { %5389 = vmatprep.mubr.bf16.mxu1 %v8523_v34  ;;  %5678 = vmatprep.mubr.bf16.mxu0 %v8525_v35 }
 0x2a0   : > { %v10681_v48 = vpop.f32.mrb[48].mxu0  ;;  %v10683_v49 = vpop.f32.mrb[48].mxu1 }
 0x2a1   : > { %11684 = vst [vmem:[#allocation14_spill] sm:$0xff] %v10683_v49  ;;  %v5016_v50 = vpop.f32.mrb[49].mxu0  ;;  %v5144_v59 = vpop.f32.mrb[49].mxu1 }
 0x2a2   : > { %v10687_v3 = vpop.f32.mrb[50].mxu0  ;;  %v10689_v12 = vpop.f32.mrb[50].mxu1  ;;  %v8533_v59 = vld [vmem:[%s10182_s12 + $0xa88] ss:$56 sps:$4 sm:$0xff]  }
 0x2a3   : > { %11685 = vst [vmem:[#allocation15_spill] sm:$0xff] %v10689_v12  ;;  %v5019_v23 = vpop.f32.mrb[51].mxu0  ;;  %v5147_v34 = vpop.f32.mrb[51].mxu1 }
 0x2a4   : > { %v8537_v23 = vld [vmem:[%s10182_s12 + $0xafc] ss:$56 sps:$4 sm:$0xff]  }
 0x2a5   : > { %5390 = vmatmul.mubr.bf16.gmra.mrb[156].mxu1 %v8527_v60  ;;  %5679 = vmatmul.mubr.bf16.gmra.mrb[156].mxu0 %v8528_v61  ;;  %v8539_v60 = vld [vmem:[%s10182_s12 + $0xb04] ss:$56 sps:$4 sm:$0xff]  }
 0x2a6   : > { %5397 = vmatprep.mubr.bf16.mxu1 %v8529_v19  ;;  %5686 = vmatprep.mubr.bf16.mxu0 %v8531_v22 }
 0x2a8   : > { %v10693_v35 = vpop.f32.mrb[52].mxu0  ;;  %v10695_v38 = vpop.f32.mrb[52].mxu1 }
 0x2a9   : > { %11686 = vst [vmem:[#allocation16_spill] sm:$0xff] %v10695_v38  ;;  %v5024_v45 = vpop.f32.mrb[53].mxu0  ;;  %v5152_v50 = vpop.f32.mrb[53].mxu1  ;;  %v8541_v38 = vld [vmem:[%s10182_s12 + $0xaf8] ss:$56 sps:$4 sm:$0xff]  }
 0x2aa   : > { %v10699_v12 = vpop.f32.mrb[54].mxu0  ;;  %v10701_v49 = vpop.f32.mrb[54].mxu1 }
 0x2ab   : > { %11687 = vst [vmem:[#allocation17_spill] sm:$0xff] %v10701_v49  ;;  %v5027_v61 = vpop.f32.mrb[55].mxu0  ;;  %v5155_v19 = vpop.f32.mrb[55].mxu1 }
 0x2ac   : > { %v8543_v61 = vld [vmem:[%s10182_s12 + $0xb6c] ss:$56 sps:$4 sm:$0xff]  }
 0x2ad   : > { %5398 = vmatmul.mubr.bf16.gmra.mrb[160].mxu1 %v8533_v59  ;;  %5687 = vmatmul.mubr.bf16.gmra.mrb[160].mxu0 %v8534_v2  ;;  %v8545_v59 = vld [vmem:[%s10182_s12 + $0xb74] ss:$56 sps:$4 sm:$0xff]  }
 0x2ae   : > { %5405 = vmatprep.mubr.bf16.mxu1 %v8537_v23  ;;  %5694 = vmatprep.mubr.bf16.mxu0 %v8539_v60 }
 0x2b0   : > { %v10705_v22 = vpop.f32.mrb[56].mxu0  ;;  %v10707_v34 = vpop.f32.mrb[56].mxu1 }
 0x2b1   : > { %11688 = vst [vmem:[#allocation18_spill] sm:$0xff] %v10707_v34  ;;  %v5032_v45 = vpop.f32.mrb[57].mxu0  ;;  %v5160_v50 = vpop.f32.mrb[57].mxu1  ;;  %v8547_v34 = vld [vmem:[%s10182_s12 + $0xb68] ss:$56 sps:$4 sm:$0xff]  }
 0x2b2   : > { %v10711_v49 = vpop.f32.mrb[58].mxu0  ;;  %v10713_v9 = vpop.f32.mrb[58].mxu1 }
 0x2b3   : > { %11689 = vst [vmem:[#allocation19_spill] sm:$0xff] %v10713_v9  ;;  %v5035_v2 = vpop.f32.mrb[59].mxu0  ;;  %v5163_v23 = vpop.f32.mrb[59].mxu1 }
 0x2b4   : > { %v8551_v2 = vld [vmem:[%s10182_s12 + $0xbdc] ss:$56 sps:$4 sm:$0xff]  }
 0x2b5   : > { %5406 = vmatmul.mubr.bf16.gmra.mrb[164].mxu1 %v8541_v38  ;;  %5695 = vmatmul.mubr.bf16.gmra.mrb[164].mxu0 %v8542_v33  ;;  %v8553_v23 = vld [vmem:[%s10182_s12 + $0xbe4] ss:$56 sps:$4 sm:$0xff]  }
 0x2b6   : > { %5413 = vmatprep.mubr.bf16.mxu1 %v8543_v61  ;;  %5702 = vmatprep.mubr.bf16.mxu0 %v8545_v59 }
 0x2b8   : > { %v10717_v60 = vpop.f32.mrb[60].mxu0  ;;  %v10719_v19 = vpop.f32.mrb[60].mxu1 }
 0x2b9   : > { %11690 = vst [vmem:[#allocation20_spill] sm:$0xff] %v10719_v19  ;;  %v5040_v45 = vpop.f32.mrb[61].mxu0  ;;  %v5168_v50 = vpop.f32.mrb[61].mxu1 }
 0x2ba   : > { %v10723_v9 = vpop.f32.mrb[62].mxu0  ;;  %v10725_v42 = vpop.f32.mrb[62].mxu1 }
 0x2bb   : > { %11691 = vst [vmem:[#allocation21_spill] sm:$0xff] %v10725_v42  ;;  %v5043_v33 = vpop.f32.mrb[63].mxu0  ;;  %v5171_v38 = vpop.f32.mrb[63].mxu1 }
 0x2bd   : > { %5414 = vmatmul.mubr.bf16.gmra.mrb[168].mxu1 %v8547_v34  ;;  %5703 = vmatmul.mubr.bf16.gmra.mrb[168].mxu0 %v8548_v56 }
 0x2be   : > { %5421 = vmatprep.mubr.bf16.mxu1 %v8551_v2  ;;  %5710 = vmatprep.mubr.bf16.mxu0 %v8553_v23 }
 0x2c0   : > { %v5207_v61 = vpop.f32.mrb[64].mxu1  ;;  %v5496_v59 = vpop.f32.mrb[64].mxu0 }
 0x2c1   : > { %v5208_v45 = vadd.f32 %v5207_v61, %v10528_v63  ;;  %v5209_v50 = vpop.f32.mrb[65].mxu1  ;;  %v5498_v19 = vpop.f32.mrb[65].mxu0 }
 0x2c2   : > { %v5210_v1 = vpop.f32.mrb[66].mxu1  ;;  %v5499_v42 = vpop.f32.mrb[66].mxu0 }
 0x2c3   : > { %v5211_v33 = vadd.f32 %v5210_v1, %v10534_v5  ;;  %v5212_v34 = vpop.f32.mrb[67].mxu1  ;;  %v5501_v56 = vpop.f32.mrb[67].mxu0  ;;  %v10735_v2 = vadd.f32 %v5496_v59, %v5208_v45  ;;  %v8562_v5 = vld [vmem:[%s10182_s12 + $0xc50] ss:$56 sps:$4 sm:$0xff]   ;;  %v8567_v59 = vld [vmem:[%s10182_s12 + $0xcc4] ss:$56 sps:$4 sm:$0xff]  }
 0x2c4   : > { %v8565_v56 = vld [vmem:[%s10182_s12 + $0xcbc] ss:$56 sps:$4 sm:$0xff]  }
 0x2c5   : > { %5422 = vmatmul.mubr.bf16.gmra.mrb[172].mxu1 %v8555_v30  ;;  %5711 = vmatmul.mubr.bf16.gmra.mrb[172].mxu0 %v8556_v16  ;;  %v10737_v63 = vadd.f32 %v5499_v42, %v5211_v33 }
 0x2c6   : > { %5429 = vmatprep.mubr.bf16.mxu1 %v8557_v55  ;;  %5718 = vmatprep.mubr.bf16.mxu0 %v8559_v47 }
 0x2c8   : > { %v5215_v19 = vpop.f32.mrb[68].mxu1  ;;  %v5504_v23 = vpop.f32.mrb[68].mxu0 }
 0x2c9   : > { %v5216_v38 = vadd.f32 %v5215_v19, %v10543_v13  ;;  %v5217_v61 = vpop.f32.mrb[69].mxu1  ;;  %v5506_v50 = vpop.f32.mrb[69].mxu0 }
 0x2ca   : > { %v5218_v1 = vpop.f32.mrb[70].mxu1  ;;  %v5507_v34 = vpop.f32.mrb[70].mxu0  ;;  %v8569_v50 = vld [vmem:[%s10182_s12 + $0xcb8] ss:$56 sps:$4 sm:$0xff]  }
 0x2cb   : > { %v5219_v16 = vadd.f32 %v5218_v1, %v10547_v17  ;;  %v5220_v30 = vpop.f32.mrb[71].mxu1  ;;  %v5509_v42 = vpop.f32.mrb[71].mxu0  ;;  %v10745_v47 = vadd.f32 %v5504_v23, %v5216_v38  ;;  %v8570_v17 = vld [vmem:[%s10182_s12 + $0xcc0] ss:$56 sps:$4 sm:$0xff]   ;;  %v8573_v23 = vld [vmem:[%s10182_s12 + $0xd34] ss:$56 sps:$4 sm:$0xff]  }
 0x2cc   : > { %v8571_v42 = vld [vmem:[%s10182_s12 + $0xd2c] ss:$56 sps:$4 sm:$0xff]  }
 0x2cd   : > { %5430 = vmatmul.mubr.bf16.gmra.mrb[176].mxu1 %v8561_v37  ;;  %5719 = vmatmul.mubr.bf16.gmra.mrb[176].mxu0 %v8562_v5  ;;  %v10747_v13 = vadd.f32 %v5507_v34, %v5219_v16 }
 0x2ce   : > { %5437 = vmatprep.mubr.bf16.mxu1 %v8565_v56  ;;  %5726 = vmatprep.mubr.bf16.mxu0 %v8567_v59 }
 0x2d0   : > { %v5223_v55 = vpop.f32.mrb[72].mxu1  ;;  %v5512_v45 = vpop.f32.mrb[72].mxu0 }
 0x2d1   : > { %v5224_v33 = vadd.f32 %v5223_v55, %v10556_v26  ;;  %v5225_v19 = vpop.f32.mrb[73].mxu1  ;;  %v5514_v61 = vpop.f32.mrb[73].mxu0 }
 0x2d2   : > { %v5226_v1 = vpop.f32.mrb[74].mxu1  ;;  %v5515_v30 = vpop.f32.mrb[74].mxu0  ;;  %v8575_v61 = vld [vmem:[%s10182_s12 + $0xd28] ss:$56 sps:$4 sm:$0xff]  }
 0x2d3   : > { %v5227_v37 = vadd.f32 %v5226_v1, %v10562_v31  ;;  %v5228_v38 = vpop.f32.mrb[75].mxu1  ;;  %v5517_v5 = vpop.f32.mrb[75].mxu0  ;;  %v10755_v34 = vadd.f32 %v5512_v45, %v5224_v33  ;;  %v8576_v31 = vld [vmem:[%s10182_s12 + $0xd30] ss:$56 sps:$4 sm:$0xff]   ;;  %v8581_v45 = vld [vmem:[%s10182_s12 + $0xda4] ss:$56 sps:$4 sm:$0xff]  }
 0x2d4   : > { %v8579_v5 = vld [vmem:[%s10182_s12 + $0xd9c] ss:$56 sps:$4 sm:$0xff]  }
 0x2d5   : > { %5438 = vmatmul.mubr.bf16.gmra.mrb[180].mxu1 %v8569_v50  ;;  %5727 = vmatmul.mubr.bf16.gmra.mrb[180].mxu0 %v8570_v17  ;;  %v10757_v26 = vadd.f32 %v5515_v30, %v5227_v37 }
 0x2d6   : > { %5445 = vmatprep.mubr.bf16.mxu1 %v8571_v42  ;;  %5734 = vmatprep.mubr.bf16.mxu0 %v8573_v23 }
 0x2d8   : > { %v5231_v56 = vpop.f32.mrb[76].mxu1  ;;  %v5520_v59 = vpop.f32.mrb[76].mxu0 }
 0x2d9   : > { %v5232_v16 = vadd.f32 %v5231_v56, %v10571_v39  ;;  %v5233_v55 = vpop.f32.mrb[77].mxu1  ;;  %v5522_v19 = vpop.f32.mrb[77].mxu0 }
 0x2da   : > { %v5234_v1 = vpop.f32.mrb[78].mxu1  ;;  %v5523_v38 = vpop.f32.mrb[78].mxu0  ;;  %v8583_v19 = vld [vmem:[%s10182_s12 + $0xd98] ss:$56 sps:$4 sm:$0xff]  }
 0x2db   : > { %v5235_v33 = vadd.f32 %v5234_v1, %v10575_v43  ;;  %v5236_v50 = vpop.f32.mrb[79].mxu1  ;;  %v5525_v17 = vpop.f32.mrb[79].mxu0  ;;  %v10765_v30 = vadd.f32 %v5520_v59, %v5232_v16  ;;  %v8584_v43 = vld [vmem:[%s10182_s12 + $0xda0] ss:$56 sps:$4 sm:$0xff]   ;;  %v8590_v59 = vld [vmem:[%s10182_s12 + $0x24] ss:$56 sps:$4 sm:$0xff]  }
 0x2dc   : > { %v8587_v17 = vld [vmem:[%s10182_s12 + $0x1c] ss:$56 sps:$4 sm:$0xff]  }
 0x2dd   : > { %5446 = vmatmul.mubr.bf16.gmra.mrb[184].mxu1 %v8575_v61  ;;  %5735 = vmatmul.mubr.bf16.gmra.mrb[184].mxu0 %v8576_v31  ;;  %v10767_v39 = vadd.f32 %v5523_v38, %v5235_v33 }
 0x2de   : > { %5453 = vmatprep.mubr.bf16.mxu1 %v8579_v5  ;;  %5742 = vmatprep.mubr.bf16.mxu0 %v8581_v45 }
 0x2e0   : > { %v5239_v42 = vpop.f32.mrb[80].mxu1  ;;  %v5528_v23 = vpop.f32.mrb[80].mxu0 }
 0x2e1   : > { %v5240_v37 = vadd.f32 %v5239_v42, %v10584_v52  ;;  %v5241_v56 = vpop.f32.mrb[81].mxu1  ;;  %v5530_v55 = vpop.f32.mrb[81].mxu0 }
 0x2e2   : > { %v5242_v1 = vpop.f32.mrb[82].mxu1  ;;  %v5531_v50 = vpop.f32.mrb[82].mxu0  ;;  %v8585_v56 = vld [vmem:[%s10182_s12 + $0x18] ss:$56 sps:$4 sm:$0xff]  }
 0x2e3   : > { %v5243_v16 = vadd.f32 %v5242_v1, %v10590_v57  ;;  %v5244_v61 = vpop.f32.mrb[83].mxu1  ;;  %v5533_v31 = vpop.f32.mrb[83].mxu0  ;;  %v10775_v38 = vadd.f32 %v5528_v23, %v5240_v37  ;;  %v8588_v55 = vld [vmem:[%s10182_s12 + $0x20] ss:$56 sps:$4 sm:$0xff]  }
 0x2e4   : > { %v8605_v31 = vld [vmem:[%s10175_s26 + $0x288] sm:$0xff]  }
 0x2e5   : > { %5454 = vmatmul.mubr.bf16.gmra.mrb[188].mxu1 %v8583_v19  ;;  %5743 = vmatmul.mubr.bf16.gmra.mrb[188].mxu0 %v8584_v43  ;;  %v10777_v52 = vadd.f32 %v5531_v50, %v5243_v16  ;;  %v8591_v19 = vld [vmem:[%s10175_s26 + $0x280] sm:$0xff]   ;;  %v8595_v16 = vld [vmem:[%s10182_s12 + $0x94] ss:$56 sps:$4 sm:$0xff]  }
 0x2e6   : > { %5783 = vmatprep.mubr.bf16.mxu1 %v8587_v17  ;;  %6072 = vmatprep.mubr.bf16.mxu0 %v8590_v59  ;;  %v8592_v43 = vld [vmem:[%s10175_s26 + $0x300] sm:$0xff]  }
 0x2e7   : > { %v8593_v59 = vld [vmem:[%s10182_s12 + $0x8c] ss:$56 sps:$4 sm:$0xff]  }
 0x2e8   : > { %v5247_v5 = vpop.f32.mrb[84].mxu1  ;;  %v5536_v45 = vpop.f32.mrb[84].mxu0 }
 0x2e9   : > { %v5248_v33 = vadd.f32 %v5247_v5, %v10599_v4  ;;  %v5249_v42 = vpop.f32.mrb[85].mxu1  ;;  %v5538_v57 = vpop.f32.mrb[85].mxu0  ;;  %v8606_v5 = vld [vmem:[%s10175_s26 + $0x308] sm:$0xff]  }
 0x2ea   : > { %v5250_v23 = vpop.f32.mrb[86].mxu1  ;;  %v5539_v37 = vpop.f32.mrb[86].mxu0  ;;  %v11692_v57 = vmov 0  }
 0x2eb   : > { %v5251_v1 = vadd.f32 %v5250_v23, %v10603_v10  ;;  %v5252_v50 = vpop.f32.mrb[87].mxu1  ;;  %v5541_v17 = vpop.f32.mrb[87].mxu0  ;;  %v10787_v61 = vadd.f32 %v5536_v45, %v5248_v33  ;;  %v8598_v23 = vld [vmem:[%s10182_s12 + $0x90] ss:$56 sps:$4 sm:$0xff]  }
 0x2ed   : > { %5784 = vmatmul.mubr.bf16.vlgmr.msra.gmra.mrb[192].mxu1 %v8585_v56  ;;  %6073 = vmatmul.mubr.bf16.vlgmr.msra.gmra.mrb[192].mxu0 %v8588_v55  ;;  %v10789_v4 = vadd.f32 %v5539_v37, %v5251_v1  ;;  %v8597_v55 = vld [vmem:[%s10182_s12 + $0x88] ss:$56 sps:$4 sm:$0xff]   ;;  %v8601_v1 = vld [vmem:[%s10182_s12 + $0x104] ss:$56 sps:$4 sm:$0xff]  }
 0x2ee   : > { %6330 = vmatpush1.bf16.msra.mxu1 %v8591_v19  ;;  %6619 = vmatpush1.bf16.msra.mxu0 %v8592_v43  ;;  %v8599_v43 = vld [vmem:[%s10182_s12 + $0xfc] ss:$56 sps:$4 sm:$0xff]  }
 0x2ef   : > { %5791 = vmatprep.mubr.bf16.mxu1 %v8593_v59  ;;  %6080 = vmatprep.mubr.bf16.mxu0 %v8595_v16  ;;  %v8620_v16 = vld [vmem:[%s10175_s26 + $0x310] sm:$0xff]  }
 0x2f0   : > { %v5255_v10 = vpop.f32.mrb[88].mxu1  ;;  %v5544_v42 = vpop.f32.mrb[88].mxu0  ;;  %6331 = vmatprep.subr.bf16.mxu1 %v11692_v57  ;;  %6620 = vmatprep.subr.bf16.mxu0 %v11692_v57 }
 0x2f1   : > { %v5256_v45 = vadd.f32 %v5255_v10, %v10609_v20  ;;  %v5257_v33 = vpop.f32.mrb[89].mxu1  ;;  %v5546_v56 = vpop.f32.mrb[89].mxu0  ;;  %v8619_v20 = vld [vmem:[%s10175_s26 + $0x290] sm:$0xff]  }
 0x2f2   : > { %v5258_v37 = vpop.f32.mrb[90].mxu1  ;;  %v5547_v19 = vpop.f32.mrb[90].mxu0  ;;  %6332 = vmatpush1.bf16.msra.mxu1 %v8605_v31  ;;  %6621 = vmatpush1.bf16.msra.mxu0 %v8606_v5  ;;  %v8634_v5 = vld [vmem:[%s10175_s26 + $0x318] sm:$0xff]  }
 0x2f3   : > { %v5259_v50 = vadd.f32 %v5258_v37, %v10615_v28  ;;  %v5260_v17 = vpop.f32.mrb[91].mxu1  ;;  %v5549_v59 = vpop.f32.mrb[91].mxu0  ;;  %6333 = vmatprep.subr.bf16.mxu1 %v11692_v57  ;;  %6622 = vmatprep.subr.bf16.mxu0 %v11692_v57  ;;  %v10805_v10 = vadd.f32 %v5544_v42, %v5256_v45  ;;  %v8633_v28 = vld [vmem:[%s10175_s26 + $0x298] sm:$0xff]  }
 0x2f4   : > { %v8604_v37 = vld [vmem:[%s10182_s12 + $0x100] ss:$56 sps:$4 sm:$0xff]  }
 0x2f5   : > { %11693 = vst [vmem:[#allocation22_spill] sm:$0xff] %v10805_v10  ;;  %5792 = vmatmul.mubr.bf16.gmra.mrb[196].mxu1 %v8597_v55  ;;  %6081 = vmatmul.mubr.bf16.gmra.mrb[196].mxu0 %v8598_v23  ;;  %v10807_v31 = vadd.f32 %v5547_v19, %v5259_v50  ;;  %v8603_v23 = vld [vmem:[%s10182_s12 + $0xf8] ss:$56 sps:$4 sm:$0xff]   ;;  %v8609_v50 = vld [vmem:[%s10182_s12 + $0x174] ss:$56 sps:$4 sm:$0xff]  }
 0x2f6   : > { %5799 = vmatprep.mubr.bf16.mxu1 %v8599_v43  ;;  %6088 = vmatprep.mubr.bf16.mxu0 %v8601_v1  ;;  %v8607_v1 = vld [vmem:[%s10182_s12 + $0x16c] ss:$56 sps:$4 sm:$0xff]  }
 0x2f7   : > { %11694 = vst [vmem:[#allocation23_spill] sm:$0xff] %v10807_v31  ;;  %6334 = vmatpush1.bf16.msra.mxu1 %v8619_v20  ;;  %6623 = vmatpush1.bf16.msra.mxu0 %v8620_v16  ;;  %v8647_v16 = vld [vmem:[%s10175_s26 + $0x2a0] sm:$0xff]  }
 0x2f8   : > { %v5263_v33 = vpop.f32.mrb[92].mxu1  ;;  %v5552_v56 = vpop.f32.mrb[92].mxu0  ;;  %6335 = vmatprep.subr.bf16.mxu1 %v11692_v57  ;;  %6624 = vmatprep.subr.bf16.mxu0 %v11692_v57  ;;  %v8648_v31 = vld [vmem:[%s10175_s26 + $0x320] sm:$0xff]  }
 0x2f9   : > { %v5264_v42 = vadd.f32 %v5263_v33, %v10621_v36  ;;  %v5265_v45 = vpop.f32.mrb[93].mxu1  ;;  %v5554_v55 = vpop.f32.mrb[93].mxu0 }
 0x2fa   : > { %v5266_v19 = vpop.f32.mrb[94].mxu1  ;;  %v5555_v43 = vpop.f32.mrb[94].mxu0  ;;  %v8611_v55 = vld [vmem:[%s10182_s12 + $0x168] ss:$56 sps:$4 sm:$0xff]  }
 0x2fb   : > { %v5267_v17 = vadd.f32 %v5266_v19, %v10627_v46  ;;  %v5268_v59 = vpop.f32.mrb[95].mxu1  ;;  %v5557_v20 = vpop.f32.mrb[95].mxu0  ;;  %6336 = vmatpush1.bf16.msra.mxu1 %v8633_v28  ;;  %6625 = vmatpush1.bf16.msra.mxu0 %v8634_v5  ;;  %v10821_v10 = vadd.f32 %v5552_v56, %v5264_v42  ;;  %v8661_v46 = vld [vmem:[%s10175_s26 + $0x2a8] sm:$0xff]  }
 0x2fc   : > { %6337 = vmatprep.subr.bf16.mxu1 %v11692_v57  ;;  %6626 = vmatprep.subr.bf16.mxu0 %v11692_v57  ;;  %v8662_v28 = vld [vmem:[%s10175_s26 + $0x328] sm:$0xff]   ;;  %v8675_v59 = vld [vmem:[%s10175_s26 + $0x2b0] sm:$0xff]  }
 0x2fd   : > { %5800 = vmatmul.mubr.bf16.gmra.mrb[200].mxu1 %v8603_v23  ;;  %6089 = vmatmul.mubr.bf16.gmra.mrb[200].mxu0 %v8604_v37  ;;  %v10825_v36 = vadd.f32 %v5555_v43, %v5267_v17  ;;  %v8612_v23 = vld [vmem:[%s10182_s12 + $0x170] ss:$56 sps:$4 sm:$0xff]   ;;  %v8613_v43 = vld [vmem:[%s10182_s12 + $0x1dc] ss:$56 sps:$4 sm:$0xff]  }
 0x2fe   : > { %5807 = vmatprep.mubr.bf16.mxu1 %v8607_v1  ;;  %6096 = vmatprep.mubr.bf16.mxu0 %v8609_v50  ;;  %v8676_v20 = vld [vmem:[%s10175_s26 + $0x330] sm:$0xff]  }
 0x2ff   : > { %6338 = vmatpush1.bf16.msra.mxu1 %v8647_v16  ;;  %6627 = vmatpush1.bf16.msra.mxu0 %v8648_v31  ;;  %v8615_v31 = vld [vmem:[%s10182_s12 + $0x1e4] ss:$56 sps:$4 sm:$0xff]  }
 0x300   : > { %v5271_v5 = vpop.f32.mrb[96].mxu1  ;;  %v5560_v33 = vpop.f32.mrb[96].mxu0  ;;  %6339 = vmatprep.subr.bf16.mxu1 %v11692_v57  ;;  %6628 = vmatprep.subr.bf16.mxu0 %v11692_v57 }
 0x301   : > { %v5272_v56 = vadd.f32 %v5271_v5, %v10633_v54  ;;  %v5273_v42 = vpop.f32.mrb[97].mxu1  ;;  %v5562_v45 = vpop.f32.mrb[97].mxu0 }
 0x302   : > { %v5274_v37 = vpop.f32.mrb[98].mxu1  ;;  %v5563_v19 = vpop.f32.mrb[98].mxu0  ;;  %v8617_v45 = vld [vmem:[%s10182_s12 + $0x1d8] ss:$56 sps:$4 sm:$0xff]  }
 0x303   : > { %v5275_v1 = vadd.f32 %v5274_v37, %v10639_v62  ;;  %v5276_v50 = vpop.f32.mrb[99].mxu1  ;;  %v5565_v17 = vpop.f32.mrb[99].mxu0  ;;  %6340 = vmatpush1.bf16.msra.mxu1 %v8661_v46  ;;  %6629 = vmatpush1.bf16.msra.mxu0 %v8662_v28  ;;  %v10839_v16 = vadd.f32 %v5560_v33, %v5272_v56  ;;  %v8689_v62 = vld [vmem:[%s10175_s26 + $0x2b8] sm:$0xff]  }
 0x304   : > { %6341 = vmatprep.subr.bf16.mxu1 %v11692_v57  ;;  %6630 = vmatprep.subr.bf16.mxu0 %v11692_v57  ;;  %v8690_v46 = vld [vmem:[%s10175_s26 + $0x338] sm:$0xff]   ;;  %v8703_v17 = vld [vmem:[%s10175_s26 + $0x2c0] sm:$0xff]  }
 0x305   : > { %5808 = vmatmul.mubr.bf16.gmra.mrb[204].mxu1 %v8611_v55  ;;  %6097 = vmatmul.mubr.bf16.gmra.mrb[204].mxu0 %v8612_v23  ;;  %v10843_v54 = vadd.f32 %v5563_v19, %v5275_v1  ;;  %v8618_v55 = vld [vmem:[%s10182_s12 + $0x1e0] ss:$56 sps:$4 sm:$0xff]   ;;  %v8621_v19 = vld [vmem:[%s10182_s12 + $0x24c] ss:$56 sps:$4 sm:$0xff]  }
 0x306   : > { %5815 = vmatprep.mubr.bf16.mxu1 %v8613_v43  ;;  %6104 = vmatprep.mubr.bf16.mxu0 %v8615_v31  ;;  %v8623_v43 = vld [vmem:[%s10182_s12 + $0x254] ss:$56 sps:$4 sm:$0xff]  }
 0x307   : > { %6342 = vmatpush1.bf16.msra.mxu1 %v8675_v59  ;;  %6631 = vmatpush1.bf16.msra.mxu0 %v8676_v20  ;;  %v8704_v59 = vld [vmem:[%s10175_s26 + $0x340] sm:$0xff]  }
 0x308   : > { %v5279_v28 = vpop.f32.mrb[100].mxu1  ;;  %v5568_v5 = vpop.f32.mrb[100].mxu0  ;;  %6343 = vmatprep.subr.bf16.mxu1 %v11692_v57  ;;  %6632 = vmatprep.subr.bf16.mxu0 %v11692_v57 }
 0x309   : > { %v5280_v33 = vadd.f32 %v5279_v28, %v10645_v15  ;;  %v5281_v56 = vpop.f32.mrb[101].mxu1  ;;  %v5570_v42 = vpop.f32.mrb[101].mxu0 }
 0x30a   : > { %v5282_v23 = vpop.f32.mrb[102].mxu1  ;;  %v5571_v37 = vpop.f32.mrb[102].mxu0  ;;  %v8625_v42 = vld [vmem:[%s10182_s12 + $0x248] ss:$56 sps:$4 sm:$0xff]  }
 0x30b   : > { %v5283_v31 = vadd.f32 %v5282_v23, %v10651_v25  ;;  %v5284_v1 = vpop.f32.mrb[103].mxu1  ;;  %v5573_v50 = vpop.f32.mrb[103].mxu0  ;;  %6344 = vmatpush1.bf16.msra.mxu1 %v8689_v62  ;;  %6633 = vmatpush1.bf16.msra.mxu0 %v8690_v46  ;;  %v10857_v20 = vadd.f32 %v5568_v5, %v5280_v33  ;;  %v8717_v25 = vld [vmem:[%s10175_s26 + $0x2c8] sm:$0xff]  }
 0x30c   : > { %6345 = vmatprep.subr.bf16.mxu1 %v11692_v57  ;;  %6634 = vmatprep.subr.bf16.mxu0 %v11692_v57  ;;  %v8718_v62 = vld [vmem:[%s10175_s26 + $0x348] sm:$0xff]   ;;  %v8731_v50 = vld [vmem:[%s10175_s26 + $0x2d0] sm:$0xff]  }
 0x30d   : > { %5816 = vmatmul.mubr.bf16.gmra.mrb[208].mxu1 %v8617_v45  ;;  %6105 = vmatmul.mubr.bf16.gmra.mrb[208].mxu0 %v8618_v55  ;;  %v10861_v15 = vadd.f32 %v5571_v37, %v5283_v31  ;;  %v8626_v45 = vld [vmem:[%s10182_s12 + $0x250] ss:$56 sps:$4 sm:$0xff]   ;;  %v8627_v37 = vld [vmem:[%s10182_s12 + $0x2bc] ss:$56 sps:$4 sm:$0xff]  }
 0x30e   : > { %5823 = vmatprep.mubr.bf16.mxu1 %v8621_v19  ;;  %6112 = vmatprep.mubr.bf16.mxu0 %v8623_v43  ;;  %v8629_v19 = vld [vmem:[%s10182_s12 + $0x2c4] ss:$56 sps:$4 sm:$0xff]  }
 0x30f   : > { %6346 = vmatpush1.bf16.msra.mxu1 %v8703_v17  ;;  %6635 = vmatpush1.bf16.msra.mxu0 %v8704_v59  ;;  %v8732_v17 = vld [vmem:[%s10175_s26 + $0x350] sm:$0xff]  }
 0x310   : > { %v5287_v46 = vpop.f32.mrb[104].mxu1  ;;  %v5576_v28 = vpop.f32.mrb[104].mxu0  ;;  %6347 = vmatprep.subr.bf16.mxu1 %v11692_v57  ;;  %6636 = vmatprep.subr.bf16.mxu0 %v11692_v57 }
 0x311   : > { %v5288_v5 = vadd.f32 %v5287_v46, %v10657_v41  ;;  %v5289_v33 = vpop.f32.mrb[105].mxu1  ;;  %v5578_v56 = vpop.f32.mrb[105].mxu0 }
 0x312   : > { %v5290_v55 = vpop.f32.mrb[106].mxu1  ;;  %v5579_v23 = vpop.f32.mrb[106].mxu0  ;;  %v8632_v33 = vld [vmem:[%s10182_s12 + $0x2c0] ss:$56 sps:$4 sm:$0xff]  }
 0x313   : > { %v5291_v43 = vadd.f32 %v5290_v55, %v10663_v51  ;;  %v5292_v31 = vpop.f32.mrb[107].mxu1  ;;  %v5581_v1 = vpop.f32.mrb[107].mxu0  ;;  %6348 = vmatpush1.bf16.msra.mxu1 %v8717_v25  ;;  %6637 = vmatpush1.bf16.msra.mxu0 %v8718_v62  ;;  %v10875_v59 = vadd.f32 %v5576_v28, %v5288_v5  ;;  %v8631_v5 = vld [vmem:[%s10182_s12 + $0x2b8] ss:$56 sps:$4 sm:$0xff]   ;;  %v8637_v55 = vld [vmem:[%s10182_s12 + $0x334] ss:$56 sps:$4 sm:$0xff]  }
 0x314   : > { %6349 = vmatprep.subr.bf16.mxu1 %v11692_v57  ;;  %6638 = vmatprep.subr.bf16.mxu0 %v11692_v57 }
 0x315   : > { %5824 = vmatmul.mubr.bf16.gmra.mrb[212].mxu1 %v8625_v42  ;;  %6113 = vmatmul.mubr.bf16.gmra.mrb[212].mxu0 %v8626_v45  ;;  %v10879_v41 = vadd.f32 %v5579_v23, %v5291_v43  ;;  %v8635_v45 = vld [vmem:[%s10182_s12 + $0x32c] ss:$56 sps:$4 sm:$0xff]  }
 0x316   : > { %5831 = vmatprep.mubr.bf16.mxu1 %v8627_v37  ;;  %6120 = vmatprep.mubr.bf16.mxu0 %v8629_v19 }
 0x317   : > { %6350 = vmatpush1.bf16.msra.mxu1 %v8731_v50  ;;  %6639 = vmatpush1.bf16.msra.mxu0 %v8732_v17  ;;  %v8639_v17 = vld [vmem:[%s10182_s12 + $0x328] ss:$56 sps:$4 sm:$0xff]  }
 0x318   : > { %v5295_v51 = vpop.f32.mrb[108].mxu1  ;;  %v5584_v25 = vpop.f32.mrb[108].mxu0  ;;  %6351 = vmatprep.subr.bf16.mxu1 %v11692_v57  ;;  %6640 = vmatprep.subr.bf16.mxu0 %v11692_v57 }
 0x319   : > { %v5296_v62 = vadd.f32 %v5295_v51, %v10669_v8  ;;  %v5297_v46 = vpop.f32.mrb[109].mxu1  ;;  %v5586_v28 = vpop.f32.mrb[109].mxu0  ;;  %v8745_v8 = vld [vmem:[%s10175_s26 + $0x2d8] sm:$0xff]  }
 0x31a   : > { %v5298_v56 = vpop.f32.mrb[110].mxu1  ;;  %v5587_v42 = vpop.f32.mrb[110].mxu0  ;;  %v8746_v46 = vld [vmem:[%s10175_s26 + $0x358] sm:$0xff]  }
 0x31b   : > { %v5299_v23 = vadd.f32 %v5298_v56, %v10675_v24  ;;  %v5300_v37 = vpop.f32.mrb[111].mxu1  ;;  %v5589_v19 = vpop.f32.mrb[111].mxu0  ;;  %v10889_v43 = vadd.f32 %v5584_v25, %v5296_v62  ;;  %6352 = vmatpush1.bf16.msra.mxu1 %v8745_v8  ;;  %v8640_v62 = vld [vmem:[%s10182_s12 + $0x330] ss:$56 sps:$4 sm:$0xff]   ;;  %v8643_v56 = vld [vmem:[%s10182_s12 + $0x3a4] ss:$56 sps:$4 sm:$0xff]   ;;  %6641 = vmatpush1.bf16.msra.mxu0 %v8746_v46 }
 0x31c   : > { %6353 = vmatprep.subr.bf16.mxu1 %v11692_v57  ;;  %6642 = vmatprep.subr.bf16.mxu0 %v11692_v57  ;;  %v8649_v46 = vld [vmem:[%s10182_s12 + $0x40c] ss:$56 sps:$4 sm:$0xff]  }
 0x31d   : > { %5832 = vmatmul.mubr.bf16.gmra.mrb[216].mxu1 %v8631_v5  ;;  %6121 = vmatmul.mubr.bf16.gmra.mrb[216].mxu0 %v8632_v33  ;;  %v10892_v31 = vadd.f32 %v5587_v42, %v5299_v23  ;;  %v8641_v33 = vld [vmem:[%s10182_s12 + $0x39c] ss:$56 sps:$4 sm:$0xff]  }
 0x31e   : > { %5839 = vmatprep.mubr.bf16.mxu1 %v8635_v45  ;;  %6128 = vmatprep.mubr.bf16.mxu0 %v8637_v55 }
 0x320   : > { %v5303_v1 = vpop.f32.mrb[112].mxu1  ;;  %v5592_v50 = vpop.f32.mrb[112].mxu0 }
 0x321   : > { %v5304_v24 = vadd.f32 %v5303_v1, %v10681_v48  ;;  %v5305_v51 = vpop.f32.mrb[113].mxu1  ;;  %v5594_v25 = vpop.f32.mrb[113].mxu0 }
 0x322   : > { %v5306_v28 = vpop.f32.mrb[114].mxu1  ;;  %v5595_v5 = vpop.f32.mrb[114].mxu0  ;;  %v8645_v51 = vld [vmem:[%s10182_s12 + $0x398] ss:$56 sps:$4 sm:$0xff]  }
 0x323   : > { %v5307_v42 = vadd.f32 %v5306_v28, %v10687_v3  ;;  %v5308_v45 = vpop.f32.mrb[115].mxu1  ;;  %v5597_v55 = vpop.f32.mrb[115].mxu0  ;;  %v10902_v23 = vadd.f32 %v5592_v50, %v5304_v24  ;;  %v8646_v50 = vld [vmem:[%s10182_s12 + $0x3a0] ss:$56 sps:$4 sm:$0xff]   ;;  %v8651_v28 = vld [vmem:[%s10182_s12 + $0x414] ss:$56 sps:$4 sm:$0xff]  }
 0x324   : > { %v8653_v55 = vld [vmem:[%s10182_s12 + $0x408] ss:$56 sps:$4 sm:$0xff]  }
 0x325   : > { %5840 = vmatmul.mubr.bf16.gmra.mrb[220].mxu1 %v8639_v17  ;;  %6129 = vmatmul.mubr.bf16.gmra.mrb[220].mxu0 %v8640_v62  ;;  %v10905_v48 = vadd.f32 %v5595_v5, %v5307_v42 }
 0x326   : > { %5847 = vmatprep.mubr.bf16.mxu1 %v8641_v33  ;;  %6136 = vmatprep.mubr.bf16.mxu0 %v8643_v56 }
 0x328   : > { %v5311_v37 = vpop.f32.mrb[116].mxu1  ;;  %v5600_v19 = vpop.f32.mrb[116].mxu0 }
 0x329   : > { %v5312_v3 = vadd.f32 %v5311_v37, %v10693_v35  ;;  %v5313_v8 = vpop.f32.mrb[117].mxu1  ;;  %v5602_v1 = vpop.f32.mrb[117].mxu0  ;;  %v8759_v35 = vld [vmem:[%s10175_s26 + $0x2e0] sm:$0xff]  }
 0x32a   : > { %v5314_v24 = vpop.f32.mrb[118].mxu1  ;;  %v5603_v25 = vpop.f32.mrb[118].mxu0  ;;  %6354 = vmatpush1.bf16.msra.mxu1 %v8759_v35  ;;  %v8760_v8 = vld [vmem:[%s10175_s26 + $0x360] sm:$0xff]  }
 0x32b   : > { %v5315_v17 = vadd.f32 %v5314_v24, %v10699_v12  ;;  %v5316_v62 = vpop.f32.mrb[119].mxu1  ;;  %v5605_v5 = vpop.f32.mrb[119].mxu0  ;;  %v10913_v33 = vadd.f32 %v5600_v19, %v5312_v3  ;;  %6355 = vmatprep.subr.bf16.mxu1 %v11692_v57  ;;  %v8654_v3 = vld [vmem:[%s10182_s12 + $0x410] ss:$56 sps:$4 sm:$0xff]   ;;  %v8657_v24 = vld [vmem:[%s10182_s12 + $0x484] ss:$56 sps:$4 sm:$0xff]   ;;  %6643 = vmatpush1.bf16.msra.mxu0 %v8760_v8 }
 0x32c   : > { %6644 = vmatprep.subr.bf16.mxu0 %v11692_v57  ;;  %v8663_v8 = vld [vmem:[%s10182_s12 + $0x4ec] ss:$56 sps:$4 sm:$0xff]  }
 0x32d   : > { %5848 = vmatmul.mubr.bf16.gmra.mrb[224].mxu1 %v8645_v51  ;;  %6137 = vmatmul.mubr.bf16.gmra.mrb[224].mxu0 %v8646_v50  ;;  %v10916_v56 = vadd.f32 %v5603_v25, %v5315_v17  ;;  %v8655_v50 = vld [vmem:[%s10182_s12 + $0x47c] ss:$56 sps:$4 sm:$0xff]  }
 0x32e   : > { %5855 = vmatprep.mubr.bf16.mxu1 %v8649_v46  ;;  %6144 = vmatprep.mubr.bf16.mxu0 %v8651_v28 }
 0x330   : > { %v5319_v42 = vpop.f32.mrb[120].mxu1  ;;  %v5608_v45 = vpop.f32.mrb[120].mxu0 }
 0x331   : > { %v5320_v12 = vadd.f32 %v5319_v42, %v10705_v22  ;;  %v5321_v37 = vpop.f32.mrb[121].mxu1  ;;  %v5610_v19 = vpop.f32.mrb[121].mxu0 }
 0x332   : > { %v5322_v1 = vpop.f32.mrb[122].mxu1  ;;  %v5611_v51 = vpop.f32.mrb[122].mxu0  ;;  %v8659_v37 = vld [vmem:[%s10182_s12 + $0x478] ss:$56 sps:$4 sm:$0xff]  }
 0x333   : > { %v5323_v25 = vadd.f32 %v5322_v1, %v10711_v49  ;;  %v5324_v46 = vpop.f32.mrb[123].mxu1  ;;  %v5613_v28 = vpop.f32.mrb[123].mxu0  ;;  %v10926_v17 = vadd.f32 %v5608_v45, %v5320_v12  ;;  %v8660_v45 = vld [vmem:[%s10182_s12 + $0x480] ss:$56 sps:$4 sm:$0xff]   ;;  %v8665_v1 = vld [vmem:[%s10182_s12 + $0x4f4] ss:$56 sps:$4 sm:$0xff]  }
 0x335   : > { %5856 = vmatmul.mubr.bf16.gmra.mrb[228].mxu1 %v8653_v55  ;;  %6145 = vmatmul.mubr.bf16.gmra.mrb[228].mxu0 %v8654_v3  ;;  %v10929_v22 = vadd.f32 %v5611_v51, %v5323_v25 }
 0x336   : > { %5863 = vmatprep.mubr.bf16.mxu1 %v8655_v50  ;;  %6152 = vmatprep.mubr.bf16.mxu0 %v8657_v24 }
 0x338   : > { %v5327_v62 = vpop.f32.mrb[124].mxu1  ;;  %v5616_v5 = vpop.f32.mrb[124].mxu0 }
 0x339   : > { %v5328_v49 = vadd.f32 %v5327_v62, %v10717_v60  ;;  %v5329_v35 = vpop.f32.mrb[125].mxu1  ;;  %v5618_v42 = vpop.f32.mrb[125].mxu0  ;;  %v8773_v60 = vld [vmem:[%s10175_s26 + $0x2e8] sm:$0xff]  }
 0x33a   : > { %v5330_v12 = vpop.f32.mrb[126].mxu1  ;;  %v5619_v19 = vpop.f32.mrb[126].mxu0  ;;  %6356 = vmatpush1.bf16.msra.mxu1 %v8773_v60 }
 0x33b   : > { %v5331_v55 = vadd.f32 %v5330_v12, %v10723_v9  ;;  %v5332_v3 = vpop.f32.mrb[127].mxu1  ;;  %v5621_v51 = vpop.f32.mrb[127].mxu0  ;;  %v10937_v50 = vadd.f32 %v5616_v5, %v5328_v49  ;;  %6357 = vmatprep.subr.bf16.mxu1 %v11692_v57  ;;  %v8667_v5 = vld [vmem:[%s10182_s12 + $0x4e8] ss:$56 sps:$4 sm:$0xff]  }
 0x33c   : > { %v8668_v49 = vld [vmem:[%s10182_s12 + $0x4f0] ss:$56 sps:$4 sm:$0xff]  }
 0x33d   : > { %5864 = vmatmul.mubr.bf16.gmra.mrb[232].mxu1 %v8659_v37  ;;  %6153 = vmatmul.mubr.bf16.gmra.mrb[232].mxu0 %v8660_v45  ;;  %v10940_v24 = vadd.f32 %v5619_v19, %v5331_v55  ;;  %v8669_v37 = vld [vmem:[%s10182_s12 + $0x55c] ss:$56 sps:$4 sm:$0xff]  }
 0x33e   : > { %5871 = vmatprep.mubr.bf16.mxu1 %v8663_v8  ;;  %6160 = vmatprep.mubr.bf16.mxu0 %v8665_v1  ;;  %v8671_v45 = vld [vmem:[%s10182_s12 + $0x564] ss:$56 sps:$4 sm:$0xff]   ;;  %v8774_v1 = vld [vmem:[%s10175_s26 + $0x368] sm:$0xff]  }
 0x33f   : > { %6645 = vmatpush1.bf16.msra.mxu0 %v8774_v1 }
 0x340   : > { %v5335_v25 = vpop.f32.mrb[128].mxu1  ;;  %v5624_v46 = vpop.f32.mrb[128].mxu0  ;;  %6646 = vmatprep.subr.bf16.mxu0 %v11692_v57 }
 0x341   : > { %v5336_v9 = vadd.f32 %v5335_v25, %v10530_v0  ;;  %v5337_v28 = vpop.f32.mrb[129].mxu1  ;;  %v5626_v62 = vpop.f32.mrb[129].mxu0 }
 0x342   : > { %v5338_v35 = vpop.f32.mrb[130].mxu1  ;;  %v5627_v42 = vpop.f32.mrb[130].mxu0 }
 0x343   : > { %v5339_v12 = vadd.f32 %v5338_v35, %v10536_v6  ;;  %v5340_v19 = vpop.f32.mrb[131].mxu1  ;;  %v5629_v8 = vpop.f32.mrb[131].mxu0  ;;  %v10950_v55 = vadd.f32 %v5624_v46, %v5336_v9  ;;  %v8673_v46 = vld [vmem:[%s10182_s12 + $0x558] ss:$56 sps:$4 sm:$0xff]  }
 0x344   : > { %v8674_v9 = vld [vmem:[%s10182_s12 + $0x560] ss:$56 sps:$4 sm:$0xff]  }
 0x345   : > { %5872 = vmatmul.mubr.bf16.gmra.mrb[236].mxu1 %v8667_v5  ;;  %6161 = vmatmul.mubr.bf16.gmra.mrb[236].mxu0 %v8668_v49  ;;  %v10952_v0 = vadd.f32 %v5627_v42, %v5339_v12  ;;  %v8677_v5 = vld [vmem:[%s10182_s12 + $0x5cc] ss:$56 sps:$4 sm:$0xff]  }
 0x346   : > { %5879 = vmatprep.mubr.bf16.mxu1 %v8669_v37  ;;  %6168 = vmatprep.mubr.bf16.mxu0 %v8671_v45  ;;  %v8679_v49 = vld [vmem:[%s10182_s12 + $0x5d4] ss:$56 sps:$4 sm:$0xff]  }
 0x348   : > { %v5343_v3 = vpop.f32.mrb[132].mxu1  ;;  %v5632_v51 = vpop.f32.mrb[132].mxu0 }
 0x349   : > { %v5344_v6 = vadd.f32 %v5343_v3, %v10545_v14  ;;  %v5345_v60 = vpop.f32.mrb[133].mxu1  ;;  %v5634_v25 = vpop.f32.mrb[133].mxu0  ;;  %v8787_v14 = vld [vmem:[%s10175_s26 + $0x2f0] sm:$0xff]  }
 0x34a   : > { %v5346_v28 = vpop.f32.mrb[134].mxu1  ;;  %v5635_v62 = vpop.f32.mrb[134].mxu0  ;;  %6358 = vmatpush1.bf16.msra.mxu1 %v8787_v14 }
 0x34b   : > { %v5347_v35 = vadd.f32 %v5346_v28, %v10549_v18  ;;  %v5348_v42 = vpop.f32.mrb[135].mxu1  ;;  %v5637_v37 = vpop.f32.mrb[135].mxu0  ;;  %v10961_v45 = vadd.f32 %v5632_v51, %v5344_v6  ;;  %6359 = vmatprep.subr.bf16.mxu1 %v11692_v57  ;;  %v8681_v51 = vld [vmem:[%s10182_s12 + $0x5c8] ss:$56 sps:$4 sm:$0xff]  }
 0x34c   : > { %v8682_v6 = vld [vmem:[%s10182_s12 + $0x5d0] ss:$56 sps:$4 sm:$0xff]  }
 0x34d   : > { %5880 = vmatmul.mubr.bf16.gmra.mrb[240].mxu1 %v8673_v46  ;;  %6169 = vmatmul.mubr.bf16.gmra.mrb[240].mxu0 %v8674_v9  ;;  %v10964_v12 = vadd.f32 %v5635_v62, %v5347_v35  ;;  %v8683_v46 = vld [vmem:[%s10182_s12 + $0x63c] ss:$56 sps:$4 sm:$0xff]  }
 0x34e   : > { %5887 = vmatprep.mubr.bf16.mxu1 %v8677_v5  ;;  %6176 = vmatprep.mubr.bf16.mxu0 %v8679_v49  ;;  %v8685_v9 = vld [vmem:[%s10182_s12 + $0x644] ss:$56 sps:$4 sm:$0xff]   ;;  %v8788_v49 = vld [vmem:[%s10175_s26 + $0x370] sm:$0xff]  }
 0x34f   : > { %6647 = vmatpush1.bf16.msra.mxu0 %v8788_v49 }
 0x350   : > { %v5351_v19 = vpop.f32.mrb[136].mxu1  ;;  %v5640_v8 = vpop.f32.mrb[136].mxu0  ;;  %6648 = vmatprep.subr.bf16.mxu0 %v11692_v57 }
 0x351   : > { %v5352_v18 = vadd.f32 %v5351_v19, %v10558_v27  ;;  %v5353_v1 = vpop.f32.mrb[137].mxu1  ;;  %v5642_v3 = vpop.f32.mrb[137].mxu0 }
 0x352   : > { %v5354_v60 = vpop.f32.mrb[138].mxu1  ;;  %v5643_v25 = vpop.f32.mrb[138].mxu0 }
 0x353   : > { %v5355_v28 = vadd.f32 %v5354_v60, %v10564_v32  ;;  %v5356_v62 = vpop.f32.mrb[139].mxu1  ;;  %v5645_v5 = vpop.f32.mrb[139].mxu0  ;;  %v10974_v35 = vadd.f32 %v5640_v8, %v5352_v18  ;;  %v8687_v8 = vld [vmem:[%s10182_s12 + $0x638] ss:$56 sps:$4 sm:$0xff]  }
 0x354   : > { %v8688_v18 = vld [vmem:[%s10182_s12 + $0x640] ss:$56 sps:$4 sm:$0xff]  }
 0x355   : > { %5888 = vmatmul.mubr.bf16.gmra.mrb[244].mxu1 %v8681_v51  ;;  %6177 = vmatmul.mubr.bf16.gmra.mrb[244].mxu0 %v8682_v6  ;;  %v10976_v27 = vadd.f32 %v5643_v25, %v5355_v28  ;;  %v8691_v51 = vld [vmem:[%s10182_s12 + $0x6ac] ss:$56 sps:$4 sm:$0xff]  }
 0x356   : > { %5895 = vmatprep.mubr.bf16.mxu1 %v8683_v46  ;;  %6184 = vmatprep.mubr.bf16.mxu0 %v8685_v9  ;;  %v8693_v6 = vld [vmem:[%s10182_s12 + $0x6b4] ss:$56 sps:$4 sm:$0xff]  }
 0x358   : > { %v5359_v42 = vpop.f32.mrb[140].mxu1  ;;  %v5648_v37 = vpop.f32.mrb[140].mxu0 }
 0x359   : > { %v5360_v32 = vadd.f32 %v5359_v42, %v10573_v40  ;;  %v5361_v14 = vpop.f32.mrb[141].mxu1  ;;  %v5650_v19 = vpop.f32.mrb[141].mxu0  ;;  %v8801_v40 = vld [vmem:[%s10175_s26 + $0x2f8] sm:$0xff]   ;;  %v8695_v42 = vld [vmem:[%s10182_s12 + $0x6a8] ss:$56 sps:$4 sm:$0xff]  }
 0x35a   : > { %v5362_v1 = vpop.f32.mrb[142].mxu1  ;;  %v5651_v3 = vpop.f32.mrb[142].mxu0  ;;  %6360 = vmatpush1.bf16.msra.mxu1 %v8801_v40  ;;  %v8699_v19 = vld [vmem:[%s10182_s12 + $0x71c] ss:$56 sps:$4 sm:$0xff]  }
 0x35b   : > { %v5363_v60 = vadd.f32 %v5362_v1, %v10577_v44  ;;  %v5364_v25 = vpop.f32.mrb[143].mxu1  ;;  %v5653_v46 = vpop.f32.mrb[143].mxu0  ;;  %v10985_v9 = vadd.f32 %v5648_v37, %v5360_v32  ;;  %v8696_v37 = vld [vmem:[%s10182_s12 + $0x6b0] ss:$56 sps:$4 sm:$0xff]  }
 0x35d   : > { %5896 = vmatmul.mubr.bf16.gmra.mrb[248].mxu1 %v8687_v8  ;;  %6185 = vmatmul.mubr.bf16.gmra.mrb[248].mxu0 %v8688_v18  ;;  %v10988_v57 = vadd.f32 %v5651_v3, %v5363_v60  ;;  %v8702_v8 = vld [vmem:[%s10182_s12 + $0x724] ss:$56 sps:$4 sm:$0xff]  }
 0x35e   : > { %5903 = vmatprep.mubr.bf16.mxu1 %v8691_v51  ;;  %6192 = vmatprep.mubr.bf16.mxu0 %v8693_v6  ;;  %v8802_v51 = vld [vmem:[%s10175_s26 + $0x378] sm:$0xff]  }
 0x35f   : > { %6649 = vmatpush1.bf16.msra.mxu0 %v8802_v51 }
 0x360   : > { %v5367_v28 = vpop.f32.mrb[144].mxu1  ;;  %v5656_v62 = vpop.f32.mrb[144].mxu0 }
 0x361   : > { %v5368_v44 = vadd.f32 %v5367_v28, %v10586_v53  ;;  %v5369_v5 = vpop.f32.mrb[145].mxu1  ;;  %v5658_v49 = vpop.f32.mrb[145].mxu0  ;;  %v8697_v28 = vld [vmem:[%s10182_s12 + $0x718] ss:$56 sps:$4 sm:$0xff]  }
 0x362   : > { %v5370_v32 = vpop.f32.mrb[146].mxu1  ;;  %v5659_v14 = vpop.f32.mrb[146].mxu0  ;;  %v8700_v5 = vld [vmem:[%s10182_s12 + $0x720] ss:$56 sps:$4 sm:$0xff]  }
 0x363   : > { %v5371_v18 = vadd.f32 %v5370_v32, %v10592_v58  ;;  %v5372_v1 = vpop.f32.mrb[147].mxu1  ;;  %v5661_v3 = vpop.f32.mrb[147].mxu0  ;;  %v10997_v6 = vadd.f32 %v5656_v62, %v5368_v44  ;;  %v8707_v44 = vld [vmem:[%s10182_s12 + $0x78c] ss:$56 sps:$4 sm:$0xff]  }
 0x365   : > { %5904 = vmatmul.mubr.bf16.gmra.mrb[252].mxu1 %v8695_v42  ;;  %6193 = vmatmul.mubr.bf16.gmra.mrb[252].mxu0 %v8696_v37  ;;  %v10999_v53 = vadd.f32 %v5659_v14, %v5371_v18  ;;  %v8710_v42 = vld [vmem:[%s10182_s12 + $0x794] ss:$56 sps:$4 sm:$0xff]  }
 0x366   : > { %5911 = vmatprep.mubr.bf16.mxu1 %v8699_v19  ;;  %6200 = vmatprep.mubr.bf16.mxu0 %v8702_v8 }
 0x368   : > { %v5375_v60 = vpop.f32.mrb[148].mxu1  ;;  %v5664_v25 = vpop.f32.mrb[148].mxu0 }
 0x369   : > { %v5376_v58 = vadd.f32 %v5375_v60, %v10601_v7  ;;  %v5377_v46 = vpop.f32.mrb[149].mxu1  ;;  %v5666_v40 = vpop.f32.mrb[149].mxu0  ;;  %v8705_v60 = vld [vmem:[%s10182_s12 + $0x788] ss:$56 sps:$4 sm:$0xff]  }
 0x36a   : > { %v5378_v49 = vpop.f32.mrb[150].mxu1  ;;  %v5667_v62 = vpop.f32.mrb[150].mxu0 }
 0x36b   : > { %v5379_v37 = vadd.f32 %v5378_v49, %v10605_v11  ;;  %v5380_v32 = vpop.f32.mrb[151].mxu1  ;;  %v5669_v14 = vpop.f32.mrb[151].mxu0  ;;  %v11007_v19 = vadd.f32 %v5664_v25, %v5376_v58  ;;  %v8708_v11 = vld [vmem:[%s10182_s12 + $0x790] ss:$56 sps:$4 sm:$0xff]   ;;  %v8713_v49 = vld [vmem:[%s10182_s12 + $0x7fc] ss:$56 sps:$4 sm:$0xff]  }
 0x36c   : > { %v8716_v25 = vld [vmem:[%s10182_s12 + $0x804] ss:$56 sps:$4 sm:$0xff]  }
 0x36d   : > { %5912 = vmatmul.mubr.bf16.gmra.mrb[0].mxu1 %v8697_v28  ;;  %6201 = vmatmul.mubr.bf16.gmra.mrb[0].mxu0 %v8700_v5  ;;  %v11009_v7 = vadd.f32 %v5667_v62, %v5379_v37  ;;  %v11696_v37 = vld [vmem:[#allocation4_spill] sm:$0xff] }
 0x36e   : > { %5919 = vmatprep.mubr.bf16.mxu1 %v8707_v44  ;;  %6208 = vmatprep.mubr.bf16.mxu0 %v8710_v42 }
 0x370   : > { %v5383_v8 = vpop.f32.mrb[152].mxu1  ;;  %v5672_v18 = vpop.f32.mrb[152].mxu0 }
 0x371   : > { %v5384_v1 = vadd.f32 %v5383_v8, %v10611_v21  ;;  %v5385_v3 = vpop.f32.mrb[153].mxu1  ;;  %v5674_v51 = vpop.f32.mrb[153].mxu0 }
 0x372   : > { %v5386_v46 = vpop.f32.mrb[154].mxu1  ;;  %v5675_v40 = vpop.f32.mrb[154].mxu0  ;;  %v8711_v3 = vld [vmem:[%s10182_s12 + $0x7f8] ss:$56 sps:$4 sm:$0xff]  }
 0x373   : > { %v5387_v58 = vadd.f32 %v5386_v46, %v10617_v29  ;;  %v5388_v28 = vpop.f32.mrb[155].mxu1  ;;  %v5677_v5 = vpop.f32.mrb[155].mxu0  ;;  %v11017_v62 = vadd.f32 %v5672_v18, %v5384_v1  ;;  %v8714_v29 = vld [vmem:[%s10182_s12 + $0x800] ss:$56 sps:$4 sm:$0xff]   ;;  %v8724_v18 = vld [vmem:[%s10182_s12 + $0x874] ss:$56 sps:$4 sm:$0xff]  }
 0x374   : > { %v8721_v28 = vld [vmem:[%s10182_s12 + $0x86c] ss:$56 sps:$4 sm:$0xff]  }
 0x375   : > { %5920 = vmatmul.mubr.bf16.gmra.mrb[4].mxu1 %v8705_v60  ;;  %6209 = vmatmul.mubr.bf16.gmra.mrb[4].mxu0 %v8708_v11  ;;  %v11019_v21 = vadd.f32 %v5675_v40, %v5387_v58  ;;  %v11697_v1 = vld [vmem:[#allocation5_spill] sm:$0xff] }
 0x376   : > { %5927 = vmatprep.mubr.bf16.mxu1 %v8713_v49  ;;  %6216 = vmatprep.mubr.bf16.mxu0 %v8716_v25 }
 0x377   : > { %11695 = vst [vmem:[#allocation24_spill] sm:$0xff] %v11019_v21  ;;  %v8719_v21 = vld [vmem:[%s10182_s12 + $0x868] ss:$56 sps:$4 sm:$0xff]  }
 0x378   : > { %v5391_v44 = vpop.f32.mrb[156].mxu1  ;;  %v5680_v42 = vpop.f32.mrb[156].mxu0 }
 0x379   : > { %v5392_v32 = vadd.f32 %v5391_v44, %v11696_v37  ;;  %v5393_v14 = vpop.f32.mrb[157].mxu1  ;;  %v5682_v8 = vpop.f32.mrb[157].mxu0  ;;  %v11700_v44 = vld [vmem:[#allocation6_spill] sm:$0xff] }
 0x37a   : > { %v5394_v51 = vpop.f32.mrb[158].mxu1  ;;  %v5683_v46 = vpop.f32.mrb[158].mxu0 }
 0x37b   : > { %v5395_v60 = vadd.f32 %v5394_v51, %v11697_v1  ;;  %v5396_v11 = vpop.f32.mrb[159].mxu1  ;;  %v5685_v40 = vpop.f32.mrb[159].mxu0  ;;  %v11027_v49 = vadd.f32 %v5680_v42, %v5392_v32  ;;  %v8722_v51 = vld [vmem:[%s10182_s12 + $0x870] ss:$56 sps:$4 sm:$0xff]   ;;  %v8730_v42 = vld [vmem:[%s10182_s12 + $0x8e4] ss:$56 sps:$4 sm:$0xff]  }
 0x37c   : > { %v8727_v40 = vld [vmem:[%s10182_s12 + $0x8dc] ss:$56 sps:$4 sm:$0xff]  }
 0x37d   : > { %11698 = vst [vmem:[#allocation4_spill] sm:$0xff] %v11027_v49  ;;  %5928 = vmatmul.mubr.bf16.gmra.mrb[8].mxu1 %v8711_v3  ;;  %6217 = vmatmul.mubr.bf16.gmra.mrb[8].mxu0 %v8714_v29  ;;  %v11029_v25 = vadd.f32 %v5683_v46, %v5395_v60  ;;  %v11701_v32 = vld [vmem:[#allocation7_spill] sm:$0xff] }
 0x37e   : > { %5935 = vmatprep.mubr.bf16.mxu1 %v8721_v28  ;;  %6224 = vmatprep.mubr.bf16.mxu0 %v8724_v18  ;;  %v8725_v49 = vld [vmem:[%s10182_s12 + $0x8d8] ss:$56 sps:$4 sm:$0xff]  }
 0x37f   : > { %11699 = vst [vmem:[#allocation5_spill] sm:$0xff] %v11029_v25 }
 0x380   : > { %v5399_v58 = vpop.f32.mrb[160].mxu1  ;;  %v5688_v5 = vpop.f32.mrb[160].mxu0 }
 0x381   : > { %v5400_v37 = vadd.f32 %v5399_v58, %v11700_v44  ;;  %v5401_v14 = vpop.f32.mrb[161].mxu1  ;;  %v5690_v8 = vpop.f32.mrb[161].mxu0  ;;  %v11704_v44 = vld [vmem:[#allocation8_spill] sm:$0xff] }
 0x382   : > { %v5402_v1 = vpop.f32.mrb[162].mxu1  ;;  %v5691_v11 = vpop.f32.mrb[162].mxu0 }
 0x383   : > { %v5403_v3 = vadd.f32 %v5402_v1, %v11701_v32  ;;  %v5404_v29 = vpop.f32.mrb[163].mxu1  ;;  %v5693_v46 = vpop.f32.mrb[163].mxu0  ;;  %v11037_v28 = vadd.f32 %v5688_v5, %v5400_v37  ;;  %v8728_v1 = vld [vmem:[%s10182_s12 + $0x8e0] ss:$56 sps:$4 sm:$0xff]   ;;  %v8738_v5 = vld [vmem:[%s10182_s12 + $0x954] ss:$56 sps:$4 sm:$0xff]  }
 0x384   : > { %v8735_v46 = vld [vmem:[%s10182_s12 + $0x94c] ss:$56 sps:$4 sm:$0xff]  }
 0x385   : > { %11702 = vst [vmem:[#allocation6_spill] sm:$0xff] %v11037_v28  ;;  %5936 = vmatmul.mubr.bf16.gmra.mrb[12].mxu1 %v8719_v21  ;;  %6225 = vmatmul.mubr.bf16.gmra.mrb[12].mxu0 %v8722_v51  ;;  %v11039_v18 = vadd.f32 %v5691_v11, %v5403_v3  ;;  %v11705_v37 = vld [vmem:[#allocation9_spill] sm:$0xff] }
 0x386   : > { %5943 = vmatprep.mubr.bf16.mxu1 %v8727_v40  ;;  %6232 = vmatprep.mubr.bf16.mxu0 %v8730_v42  ;;  %v8733_v28 = vld [vmem:[%s10182_s12 + $0x948] ss:$56 sps:$4 sm:$0xff]  }
 0x387   : > { %11703 = vst [vmem:[#allocation7_spill] sm:$0xff] %v11039_v18 }
 0x388   : > { %v5407_v60 = vpop.f32.mrb[164].mxu1  ;;  %v5696_v58 = vpop.f32.mrb[164].mxu0 }
 0x389   : > { %v5408_v14 = vadd.f32 %v5407_v60, %v11704_v44  ;;  %v5409_v8 = vpop.f32.mrb[165].mxu1  ;;  %v5698_v25 = vpop.f32.mrb[165].mxu0  ;;  %v11708_v60 = vld [vmem:[#allocation10_spill] sm:$0xff] }
 0x38a   : > { %v5410_v32 = vpop.f32.mrb[166].mxu1  ;;  %v5699_v29 = vpop.f32.mrb[166].mxu0 }
 0x38b   : > { %v5411_v21 = vadd.f32 %v5410_v32, %v11705_v37  ;;  %v5412_v51 = vpop.f32.mrb[167].mxu1  ;;  %v5701_v11 = vpop.f32.mrb[167].mxu0  ;;  %v11047_v40 = vadd.f32 %v5696_v58, %v5408_v14  ;;  %v8736_v32 = vld [vmem:[%s10182_s12 + $0x950] ss:$56 sps:$4 sm:$0xff]   ;;  %v8744_v58 = vld [vmem:[%s10182_s12 + $0x9c4] ss:$56 sps:$4 sm:$0xff]  }
 0x38c   : > { %v8741_v11 = vld [vmem:[%s10182_s12 + $0x9bc] ss:$56 sps:$4 sm:$0xff]  }
 0x38d   : > { %11706 = vst [vmem:[#allocation8_spill] sm:$0xff] %v11047_v40  ;;  %5944 = vmatmul.mubr.bf16.gmra.mrb[16].mxu1 %v8725_v49  ;;  %6233 = vmatmul.mubr.bf16.gmra.mrb[16].mxu0 %v8728_v1  ;;  %v11049_v42 = vadd.f32 %v5699_v29, %v5411_v21  ;;  %v11709_v14 = vld [vmem:[#allocation11_spill] sm:$0xff] }
 0x38e   : > { %5951 = vmatprep.mubr.bf16.mxu1 %v8735_v46  ;;  %6240 = vmatprep.mubr.bf16.mxu0 %v8738_v5  ;;  %v8739_v40 = vld [vmem:[%s10182_s12 + $0x9b8] ss:$56 sps:$4 sm:$0xff]  }
 0x38f   : > { %11707 = vst [vmem:[#allocation9_spill] sm:$0xff] %v11049_v42 }
 0x390   : > { %v5415_v25 = vpop.f32.mrb[168].mxu1  ;;  %v5704_v3 = vpop.f32.mrb[168].mxu0 }
 0x391   : > { %v5416_v44 = vadd.f32 %v5415_v25, %v11708_v60  ;;  %v5417_v8 = vpop.f32.mrb[169].mxu1  ;;  %v5706_v18 = vpop.f32.mrb[169].mxu0  ;;  %v11712_v25 = vld [vmem:[#allocation12_spill] sm:$0xff] }
 0x392   : > { %v5418_v37 = vpop.f32.mrb[170].mxu1  ;;  %v5707_v51 = vpop.f32.mrb[170].mxu0 }
 0x393   : > { %v5419_v49 = vadd.f32 %v5418_v37, %v11709_v14  ;;  %v5420_v1 = vpop.f32.mrb[171].mxu1  ;;  %v5709_v29 = vpop.f32.mrb[171].mxu0  ;;  %v11057_v46 = vadd.f32 %v5704_v3, %v5416_v44  ;;  %v8742_v37 = vld [vmem:[%s10182_s12 + $0x9c0] ss:$56 sps:$4 sm:$0xff]   ;;  %v8752_v3 = vld [vmem:[%s10182_s12 + $0xa34] ss:$56 sps:$4 sm:$0xff]  }
 0x394   : > { %v8749_v29 = vld [vmem:[%s10182_s12 + $0xa2c] ss:$56 sps:$4 sm:$0xff]  }
 0x395   : > { %11710 = vst [vmem:[#allocation10_spill] sm:$0xff] %v11057_v46  ;;  %5952 = vmatmul.mubr.bf16.gmra.mrb[20].mxu1 %v8733_v28  ;;  %6241 = vmatmul.mubr.bf16.gmra.mrb[20].mxu0 %v8736_v32  ;;  %v11059_v5 = vadd.f32 %v5707_v51, %v5419_v49  ;;  %v11713_v44 = vld [vmem:[#allocation13_spill] sm:$0xff] }
 0x396   : > { %5959 = vmatprep.mubr.bf16.mxu1 %v8741_v11  ;;  %6248 = vmatprep.mubr.bf16.mxu0 %v8744_v58  ;;  %v8747_v46 = vld [vmem:[%s10182_s12 + $0xa28] ss:$56 sps:$4 sm:$0xff]  }
 0x397   : > { %11711 = vst [vmem:[#allocation11_spill] sm:$0xff] %v11059_v5 }
 0x398   : > { %v5423_v18 = vpop.f32.mrb[172].mxu1  ;;  %v5712_v21 = vpop.f32.mrb[172].mxu0 }
 0x399   : > { %v5424_v60 = vadd.f32 %v5423_v18, %v11712_v25  ;;  %v5425_v8 = vpop.f32.mrb[173].mxu1  ;;  %v5714_v42 = vpop.f32.mrb[173].mxu0  ;;  %v11716_v18 = vld [vmem:[#allocation14_spill] sm:$0xff] }
 0x39a   : > { %v5426_v14 = vpop.f32.mrb[174].mxu1  ;;  %v5715_v1 = vpop.f32.mrb[174].mxu0 }
 0x39b   : > { %v5427_v28 = vadd.f32 %v5426_v14, %v11713_v44  ;;  %v5428_v32 = vpop.f32.mrb[175].mxu1  ;;  %v5717_v51 = vpop.f32.mrb[175].mxu0  ;;  %v11067_v11 = vadd.f32 %v5712_v21, %v5424_v60  ;;  %v8750_v14 = vld [vmem:[%s10182_s12 + $0xa30] ss:$56 sps:$4 sm:$0xff]   ;;  %v8758_v21 = vld [vmem:[%s10182_s12 + $0xaa4] ss:$56 sps:$4 sm:$0xff]  }
 0x39c   : > { %v8755_v51 = vld [vmem:[%s10182_s12 + $0xa9c] ss:$56 sps:$4 sm:$0xff]  }
 0x39d   : > { %11714 = vst [vmem:[#allocation12_spill] sm:$0xff] %v11067_v11  ;;  %5960 = vmatmul.mubr.bf16.gmra.mrb[24].mxu1 %v8739_v40  ;;  %6249 = vmatmul.mubr.bf16.gmra.mrb[24].mxu0 %v8742_v37  ;;  %v11069_v58 = vadd.f32 %v5715_v1, %v5427_v28  ;;  %v11717_v60 = vld [vmem:[#allocation15_spill] sm:$0xff] }
 0x39e   : > { %5967 = vmatprep.mubr.bf16.mxu1 %v8749_v29  ;;  %6256 = vmatprep.mubr.bf16.mxu0 %v8752_v3  ;;  %v8753_v11 = vld [vmem:[%s10182_s12 + $0xa98] ss:$56 sps:$4 sm:$0xff]  }
 0x39f   : > { %11715 = vst [vmem:[#allocation13_spill] sm:$0xff] %v11069_v58 }
 0x3a0   : > { %v5431_v42 = vpop.f32.mrb[176].mxu1  ;;  %v5720_v49 = vpop.f32.mrb[176].mxu0 }
 0x3a1   : > { %v5432_v25 = vadd.f32 %v5431_v42, %v11716_v18  ;;  %v5433_v8 = vpop.f32.mrb[177].mxu1  ;;  %v5722_v5 = vpop.f32.mrb[177].mxu0  ;;  %v11720_v42 = vld [vmem:[#allocation16_spill] sm:$0xff] }
 0x3a2   : > { %v5434_v44 = vpop.f32.mrb[178].mxu1  ;;  %v5723_v32 = vpop.f32.mrb[178].mxu0 }
 0x3a3   : > { %v5435_v40 = vadd.f32 %v5434_v44, %v11717_v60  ;;  %v5436_v37 = vpop.f32.mrb[179].mxu1  ;;  %v5725_v1 = vpop.f32.mrb[179].mxu0  ;;  %v11077_v29 = vadd.f32 %v5720_v49, %v5432_v25  ;;  %v8756_v44 = vld [vmem:[%s10182_s12 + $0xaa0] ss:$56 sps:$4 sm:$0xff]   ;;  %v8766_v49 = vld [vmem:[%s10182_s12 + $0xb14] ss:$56 sps:$4 sm:$0xff]  }
 0x3a4   : > { %v8763_v1 = vld [vmem:[%s10182_s12 + $0xb0c] ss:$56 sps:$4 sm:$0xff]  }
 0x3a5   : > { %11718 = vst [vmem:[#allocation14_spill] sm:$0xff] %v11077_v29  ;;  %5968 = vmatmul.mubr.bf16.gmra.mrb[28].mxu1 %v8747_v46  ;;  %6257 = vmatmul.mubr.bf16.gmra.mrb[28].mxu0 %v8750_v14  ;;  %v11079_v3 = vadd.f32 %v5723_v32, %v5435_v40  ;;  %v11721_v25 = vld [vmem:[#allocation17_spill] sm:$0xff] }
 0x3a6   : > { %5975 = vmatprep.mubr.bf16.mxu1 %v8755_v51  ;;  %6264 = vmatprep.mubr.bf16.mxu0 %v8758_v21  ;;  %v8761_v29 = vld [vmem:[%s10182_s12 + $0xb08] ss:$56 sps:$4 sm:$0xff]  }
 0x3a7   : > { %11719 = vst [vmem:[#allocation15_spill] sm:$0xff] %v11079_v3 }
 0x3a8   : > { %v5439_v5 = vpop.f32.mrb[180].mxu1  ;;  %v5728_v28 = vpop.f32.mrb[180].mxu0 }
 0x3a9   : > { %v5440_v18 = vadd.f32 %v5439_v5, %v11720_v42  ;;  %v5441_v8 = vpop.f32.mrb[181].mxu1  ;;  %v5730_v58 = vpop.f32.mrb[181].mxu0  ;;  %v11724_v5 = vld [vmem:[#allocation18_spill] sm:$0xff] }
 0x3aa   : > { %v5442_v60 = vpop.f32.mrb[182].mxu1  ;;  %v5731_v37 = vpop.f32.mrb[182].mxu0 }
 0x3ab   : > { %v5443_v46 = vadd.f32 %v5442_v60, %v11721_v25  ;;  %v5444_v14 = vpop.f32.mrb[183].mxu1  ;;  %v5733_v32 = vpop.f32.mrb[183].mxu0  ;;  %v11087_v51 = vadd.f32 %v5728_v28, %v5440_v18  ;;  %v8764_v60 = vld [vmem:[%s10182_s12 + $0xb10] ss:$56 sps:$4 sm:$0xff]   ;;  %v8772_v28 = vld [vmem:[%s10182_s12 + $0xb84] ss:$56 sps:$4 sm:$0xff]  }
 0x3ac   : > { %v8769_v32 = vld [vmem:[%s10182_s12 + $0xb7c] ss:$56 sps:$4 sm:$0xff]  }
 0x3ad   : > { %11722 = vst [vmem:[#allocation16_spill] sm:$0xff] %v11087_v51  ;;  %5976 = vmatmul.mubr.bf16.gmra.mrb[32].mxu1 %v8753_v11  ;;  %6265 = vmatmul.mubr.bf16.gmra.mrb[32].mxu0 %v8756_v44  ;;  %v11089_v21 = vadd.f32 %v5731_v37, %v5443_v46  ;;  %v11725_v18 = vld [vmem:[#allocation19_spill] sm:$0xff] }
 0x3ae   : > { %5983 = vmatprep.mubr.bf16.mxu1 %v8763_v1  ;;  %6272 = vmatprep.mubr.bf16.mxu0 %v8766_v49  ;;  %v8767_v51 = vld [vmem:[%s10182_s12 + $0xb78] ss:$56 sps:$4 sm:$0xff]  }
 0x3af   : > { %11723 = vst [vmem:[#allocation17_spill] sm:$0xff] %v11089_v21 }
 0x3b0   : > { %v5447_v58 = vpop.f32.mrb[184].mxu1  ;;  %v5736_v40 = vpop.f32.mrb[184].mxu0 }
 0x3b1   : > { %v5448_v42 = vadd.f32 %v5447_v58, %v11724_v5  ;;  %v5449_v8 = vpop.f32.mrb[185].mxu1  ;;  %v5738_v3 = vpop.f32.mrb[185].mxu0  ;;  %v11727_v58 = vld [vmem:[#allocation20_spill] sm:$0xff] }
 0x3b2   : > { %v5450_v25 = vpop.f32.mrb[186].mxu1  ;;  %v5739_v14 = vpop.f32.mrb[186].mxu0 }
 0x3b3   : > { %v5451_v11 = vadd.f32 %v5450_v25, %v11725_v18  ;;  %v5452_v44 = vpop.f32.mrb[187].mxu1  ;;  %v5741_v37 = vpop.f32.mrb[187].mxu0  ;;  %v11097_v1 = vadd.f32 %v5736_v40, %v5448_v42  ;;  %v8770_v25 = vld [vmem:[%s10182_s12 + $0xb80] ss:$56 sps:$4 sm:$0xff]   ;;  %v8780_v40 = vld [vmem:[%s10182_s12 + $0xbf4] ss:$56 sps:$4 sm:$0xff]  }
 0x3b4   : > { %v8777_v37 = vld [vmem:[%s10182_s12 + $0xbec] ss:$56 sps:$4 sm:$0xff]  }
 0x3b5   : > { %5984 = vmatmul.mubr.bf16.gmra.mrb[36].mxu1 %v8761_v29  ;;  %6273 = vmatmul.mubr.bf16.gmra.mrb[36].mxu0 %v8764_v60  ;;  %v11099_v49 = vadd.f32 %v5739_v14, %v5451_v11  ;;  %v11728_v42 = vld [vmem:[#allocation21_spill] sm:$0xff] }
 0x3b6   : > { %5991 = vmatprep.mubr.bf16.mxu1 %v8769_v32  ;;  %6280 = vmatprep.mubr.bf16.mxu0 %v8772_v28 }
 0x3b7   : > { %11726 = vst [vmem:[#allocation18_spill] sm:$0xff] %v11099_v49  ;;  %v8775_v49 = vld [vmem:[%s10182_s12 + $0xbe8] ss:$56 sps:$4 sm:$0xff]  }
 0x3b8   : > { %v5455_v3 = vpop.f32.mrb[188].mxu1  ;;  %v5744_v46 = vpop.f32.mrb[188].mxu0 }
 0x3b9   : > { %v5456_v5 = vadd.f32 %v5455_v3, %v11727_v58  ;;  %v5457_v8 = vpop.f32.mrb[189].mxu1  ;;  %v5746_v21 = vpop.f32.mrb[189].mxu0 }
 0x3ba   : > { %v5458_v18 = vpop.f32.mrb[190].mxu1  ;;  %v5747_v44 = vpop.f32.mrb[190].mxu0 }
 0x3bb   : > { %v5459_v29 = vadd.f32 %v5458_v18, %v11728_v42  ;;  %v5460_v60 = vpop.f32.mrb[191].mxu1  ;;  %v5749_v14 = vpop.f32.mrb[191].mxu0  ;;  %v11107_v32 = vadd.f32 %v5744_v46, %v5456_v5  ;;  %v8778_v18 = vld [vmem:[%s10182_s12 + $0xbf0] ss:$56 sps:$4 sm:$0xff]   ;;  %v8786_v46 = vld [vmem:[%s10182_s12 + $0xc64] ss:$56 sps:$4 sm:$0xff]  }
 0x3bc   : > { %v8783_v14 = vld [vmem:[%s10182_s12 + $0xc5c] ss:$56 sps:$4 sm:$0xff]  }
 0x3bd   : > { %5992 = vmatmul.mubr.bf16.gmra.mrb[40].mxu1 %v8767_v51  ;;  %6281 = vmatmul.mubr.bf16.gmra.mrb[40].mxu0 %v8770_v25  ;;  %v11109_v28 = vadd.f32 %v5747_v44, %v5459_v29 }
 0x3be   : > { %5999 = vmatprep.mubr.bf16.mxu1 %v8777_v37  ;;  %6288 = vmatprep.mubr.bf16.mxu0 %v8780_v40 }
 0x3c0   : > { %v5785_v21 = vpop.f32.mrb[192].mxu1  ;;  %v6074_v11 = vpop.f32.mrb[192].mxu0 }
 0x3c1   : > { %v5786_v3 = vadd.f32 %v5785_v21, %v10735_v2  ;;  %v5787_v58 = vpop.f32.mrb[193].mxu1  ;;  %v6076_v8 = vpop.f32.mrb[193].mxu0 }
 0x3c2   : > { %v5788_v42 = vpop.f32.mrb[194].mxu1  ;;  %v6077_v60 = vpop.f32.mrb[194].mxu0 }
 0x3c3   : > { %v11116_v51 = vadd.f32 %v6074_v11, %v5786_v3  ;;  %v5789_v5 = vadd.f32 %v5788_v42, %v10737_v63  ;;  %v5790_v25 = vpop.f32.mrb[195].mxu1  ;;  %v6079_v44 = vpop.f32.mrb[195].mxu0  ;;  %v8781_v11 = vld [vmem:[%s10182_s12 + $0xc58] ss:$56 sps:$4 sm:$0xff]   ;;  %v8791_v42 = vld [vmem:[%s10182_s12 + $0xccc] ss:$56 sps:$4 sm:$0xff]  }
 0x3c4   : > { %v8784_v3 = vld [vmem:[%s10182_s12 + $0xc60] ss:$56 sps:$4 sm:$0xff]   ;;  %v8794_v25 = vld [vmem:[%s10182_s12 + $0xcd4] ss:$56 sps:$4 sm:$0xff]  }
 0x3c5   : > { %v11119_v37 = vadd.f32 %v6077_v60, %v5789_v5  ;;  %6000 = vmatmul.mubr.bf16.gmra.mrb[44].mxu1 %v8775_v49  ;;  %6289 = vmatmul.mubr.bf16.gmra.mrb[44].mxu0 %v8778_v18 }
 0x3c6   : > { %6007 = vmatprep.mubr.bf16.mxu1 %v8783_v14  ;;  %6296 = vmatprep.mubr.bf16.mxu0 %v8786_v46 }
 0x3c8   : > { %v5793_v2 = vpop.f32.mrb[196].mxu1  ;;  %v6082_v40 = vpop.f32.mrb[196].mxu0 }
 0x3c9   : > { %v5794_v29 = vadd.f32 %v5793_v2, %v10745_v47  ;;  %v5795_v21 = vpop.f32.mrb[197].mxu1  ;;  %v6084_v58 = vpop.f32.mrb[197].mxu0 }
 0x3ca   : > { %v5796_v8 = vpop.f32.mrb[198].mxu1  ;;  %v6085_v63 = vpop.f32.mrb[198].mxu0 }
 0x3cb   : > { %v11126_v60 = vadd.f32 %v6082_v40, %v5794_v29  ;;  %v5797_v49 = vadd.f32 %v5796_v8, %v10747_v13  ;;  %v5798_v18 = vpop.f32.mrb[199].mxu1  ;;  %v6087_v14 = vpop.f32.mrb[199].mxu0  ;;  %v8789_v40 = vld [vmem:[%s10182_s12 + $0xcc8] ss:$56 sps:$4 sm:$0xff]   ;;  %v8797_v8 = vld [vmem:[%s10182_s12 + $0xd3c] ss:$56 sps:$4 sm:$0xff]  }
 0x3cc   : > { %v8792_v29 = vld [vmem:[%s10182_s12 + $0xcd0] ss:$56 sps:$4 sm:$0xff]   ;;  %v8800_v18 = vld [vmem:[%s10182_s12 + $0xd44] ss:$56 sps:$4 sm:$0xff]  }
 0x3cd   : > { %v11129_v46 = vadd.f32 %v6085_v63, %v5797_v49  ;;  %6008 = vmatmul.mubr.bf16.gmra.mrb[48].mxu1 %v8781_v11  ;;  %6297 = vmatmul.mubr.bf16.gmra.mrb[48].mxu0 %v8784_v3 }
 0x3ce   : > { %6015 = vmatprep.mubr.bf16.mxu1 %v8791_v42  ;;  %6304 = vmatprep.mubr.bf16.mxu0 %v8794_v25 }
 0x3d0   : > { %v5801_v47 = vpop.f32.mrb[200].mxu1  ;;  %v6090_v5 = vpop.f32.mrb[200].mxu0 }
 0x3d1   : > { %v5802_v44 = vadd.f32 %v5801_v47, %v10755_v34  ;;  %v5803_v2 = vpop.f32.mrb[201].mxu1  ;;  %v6092_v21 = vpop.f32.mrb[201].mxu0 }
 0x3d2   : > { %v5804_v58 = vpop.f32.mrb[202].mxu1  ;;  %v6093_v13 = vpop.f32.mrb[202].mxu0 }
 0x3d3   : > { %v11136_v63 = vadd.f32 %v6090_v5, %v5802_v44  ;;  %v5805_v11 = vadd.f32 %v5804_v58, %v10757_v26  ;;  %v5806_v3 = vpop.f32.mrb[203].mxu1  ;;  %v6095_v42 = vpop.f32.mrb[203].mxu0  ;;  %v8795_v5 = vld [vmem:[%s10182_s12 + $0xd38] ss:$56 sps:$4 sm:$0xff]   ;;  %v8805_v58 = vld [vmem:[%s10182_s12 + $0xdac] ss:$56 sps:$4 sm:$0xff]  }
 0x3d4   : > { %v8798_v44 = vld [vmem:[%s10182_s12 + $0xd40] ss:$56 sps:$4 sm:$0xff]   ;;  %v8808_v3 = vld [vmem:[%s10182_s12 + $0xdb4] ss:$56 sps:$4 sm:$0xff]  }
 0x3d5   : > { %v11139_v25 = vadd.f32 %v6093_v13, %v5805_v11  ;;  %6016 = vmatmul.mubr.bf16.gmra.mrb[52].mxu1 %v8789_v40  ;;  %6305 = vmatmul.mubr.bf16.gmra.mrb[52].mxu0 %v8792_v29 }
 0x3d6   : > { %6023 = vmatprep.mubr.bf16.mxu1 %v8797_v8  ;;  %6312 = vmatprep.mubr.bf16.mxu0 %v8800_v18 }
 0x3d8   : > { %v5809_v34 = vpop.f32.mrb[204].mxu1  ;;  %v6098_v49 = vpop.f32.mrb[204].mxu0 }
 0x3d9   : > { %v5810_v14 = vadd.f32 %v5809_v34, %v10765_v30  ;;  %v5811_v47 = vpop.f32.mrb[205].mxu1  ;;  %v6100_v2 = vpop.f32.mrb[205].mxu0 }
 0x3da   : > { %v5812_v21 = vpop.f32.mrb[206].mxu1  ;;  %v6101_v26 = vpop.f32.mrb[206].mxu0 }
 0x3db   : > { %v11146_v13 = vadd.f32 %v6098_v49, %v5810_v14  ;;  %v5813_v40 = vadd.f32 %v5812_v21, %v10767_v39  ;;  %v5814_v29 = vpop.f32.mrb[207].mxu1  ;;  %v6103_v8 = vpop.f32.mrb[207].mxu0  ;;  %v8803_v49 = vld [vmem:[%s10182_s12 + $0xda8] ss:$56 sps:$4 sm:$0xff]   ;;  %v8811_v21 = vld [vmem:[%s10182_s12 + $0x2c] ss:$56 sps:$4 sm:$0xff]  }
 0x3dc   : > { %v8806_v14 = vld [vmem:[%s10182_s12 + $0xdb0] ss:$56 sps:$4 sm:$0xff]   ;;  %v8814_v29 = vld [vmem:[%s10182_s12 + $0x34] ss:$56 sps:$4 sm:$0xff]  }
 0x3dd   : > { %v11149_v18 = vadd.f32 %v6101_v26, %v5813_v40  ;;  %6024 = vmatmul.mubr.bf16.gmra.mrb[56].mxu1 %v8795_v5  ;;  %6313 = vmatmul.mubr.bf16.gmra.mrb[56].mxu0 %v8798_v44 }
 0x3de   : > { %6031 = vmatprep.mubr.bf16.mxu1 %v8805_v58  ;;  %6320 = vmatprep.mubr.bf16.mxu0 %v8808_v3 }
 0x3e0   : > { %v5817_v30 = vpop.f32.mrb[208].mxu1  ;;  %v6106_v11 = vpop.f32.mrb[208].mxu0 }
 0x3e1   : > { %v5818_v42 = vadd.f32 %v5817_v30, %v10775_v38  ;;  %v5819_v34 = vpop.f32.mrb[209].mxu1  ;;  %v6108_v47 = vpop.f32.mrb[209].mxu0 }
 0x3e2   : > { %v5820_v2 = vpop.f32.mrb[210].mxu1  ;;  %v6109_v39 = vpop.f32.mrb[210].mxu0 }
 0x3e3   : > { %v11156_v26 = vadd.f32 %v6106_v11, %v5818_v42  ;;  %v5821_v5 = vadd.f32 %v5820_v2, %v10777_v52  ;;  %v5822_v44 = vpop.f32.mrb[211].mxu1  ;;  %v6111_v58 = vpop.f32.mrb[211].mxu0  ;;  %v8809_v11 = vld [vmem:[%s10182_s12 + $0x28] ss:$56 sps:$4 sm:$0xff]   ;;  %v8817_v2 = vld [vmem:[%s10182_s12 + $0x9c] ss:$56 sps:$4 sm:$0xff]  }
 0x3e4   : > { %v8812_v42 = vld [vmem:[%s10182_s12 + $0x30] ss:$56 sps:$4 sm:$0xff]   ;;  %v8820_v44 = vld [vmem:[%s10182_s12 + $0xa4] ss:$56 sps:$4 sm:$0xff]  }
 0x3e5   : > { %v11159_v3 = vadd.f32 %v6109_v39, %v5821_v5  ;;  %6032 = vmatmul.mubr.bf16.gmra.mrb[60].mxu1 %v8803_v49  ;;  %6321 = vmatmul.mubr.bf16.gmra.mrb[60].mxu0 %v8806_v14  ;;  %v11730_v58 = vld [vmem:[#allocation22_spill] sm:$0xff] }
 0x3e6   : > { %6361 = vmatprep.mubr.bf16.mxu1 %v8811_v21  ;;  %6650 = vmatprep.mubr.bf16.mxu0 %v8814_v29 }
 0x3e8   : > { %v5825_v38 = vpop.f32.mrb[212].mxu1  ;;  %v6114_v40 = vpop.f32.mrb[212].mxu0 }
 0x3e9   : > { %v5826_v8 = vadd.f32 %v5825_v38, %v10787_v61  ;;  %v5827_v30 = vpop.f32.mrb[213].mxu1  ;;  %v6116_v34 = vpop.f32.mrb[213].mxu0 }
 0x3ea   : > { %v5828_v47 = vpop.f32.mrb[214].mxu1  ;;  %v6117_v52 = vpop.f32.mrb[214].mxu0 }
 0x3eb   : > { %v11166_v39 = vadd.f32 %v6114_v40, %v5826_v8  ;;  %v5829_v49 = vadd.f32 %v5828_v47, %v10789_v4  ;;  %v5830_v14 = vpop.f32.mrb[215].mxu1  ;;  %v6119_v21 = vpop.f32.mrb[215].mxu0  ;;  %v8815_v40 = vld [vmem:[%s10182_s12 + $0x98] ss:$56 sps:$4 sm:$0xff]   ;;  %v8823_v47 = vld [vmem:[%s10182_s12 + $0x10c] ss:$56 sps:$4 sm:$0xff]  }
 0x3ec   : > { %v8818_v8 = vld [vmem:[%s10182_s12 + $0xa0] ss:$56 sps:$4 sm:$0xff]   ;;  %v8826_v14 = vld [vmem:[%s10182_s12 + $0x114] ss:$56 sps:$4 sm:$0xff]  }
 0x3ed   : > { %11729 = vst [vmem:[#allocation19_spill] sm:$0xff] %v11166_v39  ;;  %v11169_v29 = vadd.f32 %v6117_v52, %v5829_v49  ;;  %6362 = vmatmul.mubr.bf16.vlgmr.msra.gmra.mrb[64].mxu1 %v8809_v11  ;;  %6651 = vmatmul.mubr.bf16.vlgmr.msra.gmra.mrb[64].mxu0 %v8812_v42  ;;  %v11732_v11 = vld [vmem:[#allocation23_spill] sm:$0xff] }
 0x3ee   : > { %6369 = vmatprep.mubr.bf16.mxu1 %v8817_v2  ;;  %6658 = vmatprep.mubr.bf16.mxu0 %v8820_v44 }
 0x3f0   : > { %v5833_v61 = vpop.f32.mrb[216].mxu1  ;;  %v6122_v5 = vpop.f32.mrb[216].mxu0 }
 0x3f1   : > { %v5834_v38 = vadd.f32 %v5833_v61, %v11730_v58  ;;  %v5835_v30 = vpop.f32.mrb[217].mxu1  ;;  %v6124_v34 = vpop.f32.mrb[217].mxu0 }
 0x3f2   : > { %v5836_v39 = vpop.f32.mrb[218].mxu1  ;;  %v6125_v4 = vpop.f32.mrb[218].mxu0 }
 0x3f3   : > { %v11176_v52 = vadd.f32 %v6122_v5, %v5834_v38  ;;  %v5837_v42 = vadd.f32 %v5836_v39, %v11732_v11  ;;  %v5838_v2 = vpop.f32.mrb[219].mxu1  ;;  %v6127_v44 = vpop.f32.mrb[219].mxu0  ;;  %v8821_v5 = vld [vmem:[%s10182_s12 + $0x108] ss:$56 sps:$4 sm:$0xff]   ;;  %v8829_v11 = vld [vmem:[%s10182_s12 + $0x17c] ss:$56 sps:$4 sm:$0xff]  }
 0x3f4   : > { %v8824_v38 = vld [vmem:[%s10182_s12 + $0x110] ss:$56 sps:$4 sm:$0xff]   ;;  %v8832_v2 = vld [vmem:[%s10182_s12 + $0x184] ss:$56 sps:$4 sm:$0xff]  }
 0x3f5   : > { %11731 = vst [vmem:[#allocation20_spill] sm:$0xff] %v11176_v52  ;;  %v11179_v49 = vadd.f32 %v6125_v4, %v5837_v42  ;;  %6370 = vmatmul.mubr.bf16.gmra.mrb[68].mxu1 %v8815_v40  ;;  %6659 = vmatmul.mubr.bf16.gmra.mrb[68].mxu0 %v8818_v8 }
 0x3f6   : > { %6377 = vmatprep.mubr.bf16.mxu1 %v8823_v47  ;;  %6666 = vmatprep.mubr.bf16.mxu0 %v8826_v14 }
 0x3f8   : > { %v5841_v21 = vpop.f32.mrb[220].mxu1  ;;  %v6130_v61 = vpop.f32.mrb[220].mxu0 }
 0x3f9   : > { %v5842_v58 = vadd.f32 %v5841_v21, %v10821_v10  ;;  %v5843_v30 = vpop.f32.mrb[221].mxu1  ;;  %v6132_v34 = vpop.f32.mrb[221].mxu0 }
 0x3fa   : > { %v5844_v52 = vpop.f32.mrb[222].mxu1  ;;  %v6133_v39 = vpop.f32.mrb[222].mxu0 }
 0x3fb   : > { %v11186_v4 = vadd.f32 %v6130_v61, %v5842_v58  ;;  %v5845_v40 = vadd.f32 %v5844_v52, %v10825_v36  ;;  %v5846_v8 = vpop.f32.mrb[223].mxu1  ;;  %v6135_v47 = vpop.f32.mrb[223].mxu0  ;;  %v8827_v61 = vld [vmem:[%s10182_s12 + $0x178] ss:$56 sps:$4 sm:$0xff]   ;;  %v8835_v52 = vld [vmem:[%s10182_s12 + $0x1ec] ss:$56 sps:$4 sm:$0xff]  }
 0x3fc   : > { %v8830_v58 = vld [vmem:[%s10182_s12 + $0x180] ss:$56 sps:$4 sm:$0xff]   ;;  %v8838_v8 = vld [vmem:[%s10182_s12 + $0x1f4] ss:$56 sps:$4 sm:$0xff]  }
 0x3fd   : > { %v11189_v14 = vadd.f32 %v6133_v39, %v5845_v40  ;;  %6378 = vmatmul.mubr.bf16.gmra.mrb[72].mxu1 %v8821_v5  ;;  %6667 = vmatmul.mubr.bf16.gmra.mrb[72].mxu0 %v8824_v38 }
 0x3fe   : > { %6385 = vmatprep.mubr.bf16.mxu1 %v8829_v11  ;;  %6674 = vmatprep.mubr.bf16.mxu0 %v8832_v2 }
 0x400   : > { %v5849_v10 = vpop.f32.mrb[224].mxu1  ;;  %v6138_v42 = vpop.f32.mrb[224].mxu0 }
 0x401   : > { %v5850_v44 = vadd.f32 %v5849_v10, %v10839_v16  ;;  %v5851_v21 = vpop.f32.mrb[225].mxu1  ;;  %v6140_v30 = vpop.f32.mrb[225].mxu0 }
 0x402   : > { %v5852_v34 = vpop.f32.mrb[226].mxu1  ;;  %v6141_v36 = vpop.f32.mrb[226].mxu0 }
 0x403   : > { %v11196_v39 = vadd.f32 %v6138_v42, %v5850_v44  ;;  %v5853_v5 = vadd.f32 %v5852_v34, %v10843_v54  ;;  %v5854_v38 = vpop.f32.mrb[227].mxu1  ;;  %v6143_v11 = vpop.f32.mrb[227].mxu0  ;;  %v8833_v42 = vld [vmem:[%s10182_s12 + $0x1e8] ss:$56 sps:$4 sm:$0xff]   ;;  %v8841_v34 = vld [vmem:[%s10182_s12 + $0x25c] ss:$56 sps:$4 sm:$0xff]  }
 0x404   : > { %v8836_v44 = vld [vmem:[%s10182_s12 + $0x1f0] ss:$56 sps:$4 sm:$0xff]   ;;  %v8844_v38 = vld [vmem:[%s10182_s12 + $0x264] ss:$56 sps:$4 sm:$0xff]  }
 0x405   : > { %v11199_v2 = vadd.f32 %v6141_v36, %v5853_v5  ;;  %6386 = vmatmul.mubr.bf16.gmra.mrb[76].mxu1 %v8827_v61  ;;  %6675 = vmatmul.mubr.bf16.gmra.mrb[76].mxu0 %v8830_v58 }
 0x406   : > { %6393 = vmatprep.mubr.bf16.mxu1 %v8835_v52  ;;  %6682 = vmatprep.mubr.bf16.mxu0 %v8838_v8 }
 0x408   : > { %v5857_v16 = vpop.f32.mrb[228].mxu1  ;;  %v6146_v40 = vpop.f32.mrb[228].mxu0 }
 0x409   : > { %v5858_v47 = vadd.f32 %v5857_v16, %v10857_v20  ;;  %v5859_v10 = vpop.f32.mrb[229].mxu1  ;;  %v6148_v21 = vpop.f32.mrb[229].mxu0 }
 0x40a   : > { %v5860_v30 = vpop.f32.mrb[230].mxu1  ;;  %v6149_v54 = vpop.f32.mrb[230].mxu0 }
 0x40b   : > { %v11206_v36 = vadd.f32 %v6146_v40, %v5858_v47  ;;  %v5861_v61 = vadd.f32 %v5860_v30, %v10861_v15  ;;  %v5862_v58 = vpop.f32.mrb[231].mxu1  ;;  %v6151_v52 = vpop.f32.mrb[231].mxu0  ;;  %v8839_v40 = vld [vmem:[%s10182_s12 + $0x258] ss:$56 sps:$4 sm:$0xff]   ;;  %v8847_v30 = vld [vmem:[%s10182_s12 + $0x2cc] ss:$56 sps:$4 sm:$0xff]  }
 0x40c   : > { %v8842_v47 = vld [vmem:[%s10182_s12 + $0x260] ss:$56 sps:$4 sm:$0xff]   ;;  %v8850_v58 = vld [vmem:[%s10182_s12 + $0x2d4] ss:$56 sps:$4 sm:$0xff]  }
 0x40d   : > { %v11209_v8 = vadd.f32 %v6149_v54, %v5861_v61  ;;  %6394 = vmatmul.mubr.bf16.gmra.mrb[80].mxu1 %v8833_v42  ;;  %6683 = vmatmul.mubr.bf16.gmra.mrb[80].mxu0 %v8836_v44 }
 0x40e   : > { %6401 = vmatprep.mubr.bf16.mxu1 %v8841_v34  ;;  %6690 = vmatprep.mubr.bf16.mxu0 %v8844_v38 }
 0x410   : > { %v5865_v20 = vpop.f32.mrb[232].mxu1  ;;  %v6154_v5 = vpop.f32.mrb[232].mxu0 }
 0x411   : > { %v5866_v11 = vadd.f32 %v5865_v20, %v10875_v59  ;;  %v5867_v16 = vpop.f32.mrb[233].mxu1  ;;  %v6156_v10 = vpop.f32.mrb[233].mxu0 }
 0x412   : > { %v5868_v21 = vpop.f32.mrb[234].mxu1  ;;  %v6157_v15 = vpop.f32.mrb[234].mxu0 }
 0x413   : > { %v11216_v54 = vadd.f32 %v6154_v5, %v5866_v11  ;;  %v5869_v42 = vadd.f32 %v5868_v21, %v10879_v41  ;;  %v5870_v44 = vpop.f32.mrb[235].mxu1  ;;  %v6159_v34 = vpop.f32.mrb[235].mxu0  ;;  %v8845_v5 = vld [vmem:[%s10182_s12 + $0x2c8] ss:$56 sps:$4 sm:$0xff]   ;;  %v8853_v21 = vld [vmem:[%s10182_s12 + $0x33c] ss:$56 sps:$4 sm:$0xff]  }
 0x414   : > { %v8848_v11 = vld [vmem:[%s10182_s12 + $0x2d0] ss:$56 sps:$4 sm:$0xff]   ;;  %v8856_v44 = vld [vmem:[%s10182_s12 + $0x344] ss:$56 sps:$4 sm:$0xff]  }
 0x415   : > { %v11219_v38 = vadd.f32 %v6157_v15, %v5869_v42  ;;  %6402 = vmatmul.mubr.bf16.gmra.mrb[84].mxu1 %v8839_v40  ;;  %6691 = vmatmul.mubr.bf16.gmra.mrb[84].mxu0 %v8842_v47 }
 0x416   : > { %6409 = vmatprep.mubr.bf16.mxu1 %v8847_v30  ;;  %6698 = vmatprep.mubr.bf16.mxu0 %v8850_v58 }
 0x418   : > { %v5873_v59 = vpop.f32.mrb[236].mxu1  ;;  %v6162_v61 = vpop.f32.mrb[236].mxu0 }
 0x419   : > { %v5874_v52 = vadd.f32 %v5873_v59, %v10889_v43  ;;  %v5875_v20 = vpop.f32.mrb[237].mxu1  ;;  %v6164_v16 = vpop.f32.mrb[237].mxu0 }
 0x41a   : > { %v5876_v10 = vpop.f32.mrb[238].mxu1  ;;  %v6165_v41 = vpop.f32.mrb[238].mxu0 }
 0x41b   : > { %v11226_v15 = vadd.f32 %v6162_v61, %v5874_v52  ;;  %v5877_v40 = vadd.f32 %v5876_v10, %v10892_v31  ;;  %v5878_v47 = vpop.f32.mrb[239].mxu1  ;;  %v6167_v30 = vpop.f32.mrb[239].mxu0  ;;  %v8851_v61 = vld [vmem:[%s10182_s12 + $0x338] ss:$56 sps:$4 sm:$0xff]   ;;  %v8859_v10 = vld [vmem:[%s10182_s12 + $0x3ac] ss:$56 sps:$4 sm:$0xff]  }
 0x41c   : > { %v8854_v52 = vld [vmem:[%s10182_s12 + $0x340] ss:$56 sps:$4 sm:$0xff]   ;;  %v8862_v47 = vld [vmem:[%s10182_s12 + $0x3b4] ss:$56 sps:$4 sm:$0xff]  }
 0x41d   : > { %v11229_v58 = vadd.f32 %v6165_v41, %v5877_v40  ;;  %6410 = vmatmul.mubr.bf16.gmra.mrb[88].mxu1 %v8845_v5  ;;  %6699 = vmatmul.mubr.bf16.gmra.mrb[88].mxu0 %v8848_v11 }
 0x41e   : > { %6417 = vmatprep.mubr.bf16.mxu1 %v8853_v21  ;;  %6706 = vmatprep.mubr.bf16.mxu0 %v8856_v44 }
 0x420   : > { %v5881_v43 = vpop.f32.mrb[240].mxu1  ;;  %v6170_v42 = vpop.f32.mrb[240].mxu0 }
 0x421   : > { %v5882_v34 = vadd.f32 %v5881_v43, %v10902_v23  ;;  %v5883_v59 = vpop.f32.mrb[241].mxu1  ;;  %v6172_v20 = vpop.f32.mrb[241].mxu0 }
 0x422   : > { %v5884_v16 = vpop.f32.mrb[242].mxu1  ;;  %v6173_v31 = vpop.f32.mrb[242].mxu0 }
 0x423   : > { %v11236_v41 = vadd.f32 %v6170_v42, %v5882_v34  ;;  %v5885_v5 = vadd.f32 %v5884_v16, %v10905_v48  ;;  %v5886_v11 = vpop.f32.mrb[243].mxu1  ;;  %v6175_v21 = vpop.f32.mrb[243].mxu0  ;;  %v8857_v42 = vld [vmem:[%s10182_s12 + $0x3a8] ss:$56 sps:$4 sm:$0xff]   ;;  %v8865_v16 = vld [vmem:[%s10182_s12 + $0x41c] ss:$56 sps:$4 sm:$0xff]  }
 0x424   : > { %v8860_v34 = vld [vmem:[%s10182_s12 + $0x3b0] ss:$56 sps:$4 sm:$0xff]   ;;  %v8868_v11 = vld [vmem:[%s10182_s12 + $0x424] ss:$56 sps:$4 sm:$0xff]  }
 0x425   : > { %v11239_v44 = vadd.f32 %v6173_v31, %v5885_v5  ;;  %6418 = vmatmul.mubr.bf16.gmra.mrb[92].mxu1 %v8851_v61  ;;  %6707 = vmatmul.mubr.bf16.gmra.mrb[92].mxu0 %v8854_v52 }
 0x426   : > { %6425 = vmatprep.mubr.bf16.mxu1 %v8859_v10  ;;  %6714 = vmatprep.mubr.bf16.mxu0 %v8862_v47 }
 0x428   : > { %v5889_v23 = vpop.f32.mrb[244].mxu1  ;;  %v6178_v40 = vpop.f32.mrb[244].mxu0 }
 0x429   : > { %v5890_v30 = vadd.f32 %v5889_v23, %v10913_v33  ;;  %v5891_v43 = vpop.f32.mrb[245].mxu1  ;;  %v6180_v59 = vpop.f32.mrb[245].mxu0 }
 0x42a   : > { %v5892_v20 = vpop.f32.mrb[246].mxu1  ;;  %v6181_v48 = vpop.f32.mrb[246].mxu0 }
 0x42b   : > { %v11246_v31 = vadd.f32 %v6178_v40, %v5890_v30  ;;  %v5893_v61 = vadd.f32 %v5892_v20, %v10916_v56  ;;  %v5894_v52 = vpop.f32.mrb[247].mxu1  ;;  %v6183_v10 = vpop.f32.mrb[247].mxu0  ;;  %v8863_v40 = vld [vmem:[%s10182_s12 + $0x418] ss:$56 sps:$4 sm:$0xff]   ;;  %v8871_v20 = vld [vmem:[%s10182_s12 + $0x48c] ss:$56 sps:$4 sm:$0xff]  }
 0x42c   : > { %v8866_v30 = vld [vmem:[%s10182_s12 + $0x420] ss:$56 sps:$4 sm:$0xff]   ;;  %v8874_v52 = vld [vmem:[%s10182_s12 + $0x494] ss:$56 sps:$4 sm:$0xff]  }
 0x42d   : > { %v11249_v47 = vadd.f32 %v6181_v48, %v5893_v61  ;;  %6426 = vmatmul.mubr.bf16.gmra.mrb[96].mxu1 %v8857_v42  ;;  %6715 = vmatmul.mubr.bf16.gmra.mrb[96].mxu0 %v8860_v34 }
 0x42e   : > { %6433 = vmatprep.mubr.bf16.mxu1 %v8865_v16  ;;  %6722 = vmatprep.mubr.bf16.mxu0 %v8868_v11 }
 0x430   : > { %v5897_v33 = vpop.f32.mrb[248].mxu1  ;;  %v6186_v5 = vpop.f32.mrb[248].mxu0 }
 0x431   : > { %v5898_v21 = vadd.f32 %v5897_v33, %v10926_v17  ;;  %v5899_v23 = vpop.f32.mrb[249].mxu1  ;;  %v6188_v43 = vpop.f32.mrb[249].mxu0 }
 0x432   : > { %v5900_v59 = vpop.f32.mrb[250].mxu1  ;;  %v6189_v56 = vpop.f32.mrb[250].mxu0 }
 0x433   : > { %v11256_v48 = vadd.f32 %v6186_v5, %v5898_v21  ;;  %v5901_v42 = vadd.f32 %v5900_v59, %v10929_v22  ;;  %v5902_v34 = vpop.f32.mrb[251].mxu1  ;;  %v6191_v16 = vpop.f32.mrb[251].mxu0  ;;  %v8869_v5 = vld [vmem:[%s10182_s12 + $0x488] ss:$56 sps:$4 sm:$0xff]   ;;  %v8877_v59 = vld [vmem:[%s10182_s12 + $0x4fc] ss:$56 sps:$4 sm:$0xff]  }
 0x434   : > { %v8872_v21 = vld [vmem:[%s10182_s12 + $0x490] ss:$56 sps:$4 sm:$0xff]   ;;  %v8880_v34 = vld [vmem:[%s10182_s12 + $0x504] ss:$56 sps:$4 sm:$0xff]  }
 0x435   : > { %v11259_v11 = vadd.f32 %v6189_v56, %v5901_v42  ;;  %6434 = vmatmul.mubr.bf16.gmra.mrb[100].mxu1 %v8863_v40  ;;  %6723 = vmatmul.mubr.bf16.gmra.mrb[100].mxu0 %v8866_v30 }
 0x436   : > { %6441 = vmatprep.mubr.bf16.mxu1 %v8871_v20  ;;  %6730 = vmatprep.mubr.bf16.mxu0 %v8874_v52 }
 0x438   : > { %v5905_v17 = vpop.f32.mrb[252].mxu1  ;;  %v6194_v61 = vpop.f32.mrb[252].mxu0 }
 0x439   : > { %v5906_v10 = vadd.f32 %v5905_v17, %v10937_v50  ;;  %v5907_v33 = vpop.f32.mrb[253].mxu1  ;;  %v6196_v23 = vpop.f32.mrb[253].mxu0 }
 0x43a   : > { %v5908_v43 = vpop.f32.mrb[254].mxu1  ;;  %v6197_v22 = vpop.f32.mrb[254].mxu0 }
 0x43b   : > { %v11266_v56 = vadd.f32 %v6194_v61, %v5906_v10  ;;  %v5909_v40 = vadd.f32 %v5908_v43, %v10940_v24  ;;  %v5910_v30 = vpop.f32.mrb[255].mxu1  ;;  %v6199_v20 = vpop.f32.mrb[255].mxu0  ;;  %v8875_v61 = vld [vmem:[%s10182_s12 + $0x4f8] ss:$56 sps:$4 sm:$0xff]   ;;  %v8883_v43 = vld [vmem:[%s10182_s12 + $0x56c] ss:$56 sps:$4 sm:$0xff]  }
 0x43c   : > { %v8878_v10 = vld [vmem:[%s10182_s12 + $0x500] ss:$56 sps:$4 sm:$0xff]   ;;  %v8886_v30 = vld [vmem:[%s10182_s12 + $0x574] ss:$56 sps:$4 sm:$0xff]  }
 0x43d   : > { %v11269_v52 = vadd.f32 %v6197_v22, %v5909_v40  ;;  %6442 = vmatmul.mubr.bf16.gmra.mrb[104].mxu1 %v8869_v5  ;;  %6731 = vmatmul.mubr.bf16.gmra.mrb[104].mxu0 %v8872_v21 }
 0x43e   : > { %6449 = vmatprep.mubr.bf16.mxu1 %v8877_v59  ;;  %6738 = vmatprep.mubr.bf16.mxu0 %v8880_v34 }
 0x440   : > { %v5913_v50 = vpop.f32.mrb[0].mxu1  ;;  %v6202_v42 = vpop.f32.mrb[0].mxu0 }
 0x441   : > { %v5914_v16 = vadd.f32 %v5913_v50, %v10950_v55  ;;  %v5915_v17 = vpop.f32.mrb[1].mxu1  ;;  %v6204_v33 = vpop.f32.mrb[1].mxu0 }
 0x442   : > { %v5916_v23 = vpop.f32.mrb[2].mxu1  ;;  %v6205_v24 = vpop.f32.mrb[2].mxu0 }
 0x443   : > { %v11276_v22 = vadd.f32 %v6202_v42, %v5914_v16  ;;  %v5917_v5 = vadd.f32 %v5916_v23, %v10952_v0  ;;  %v5918_v21 = vpop.f32.mrb[3].mxu1  ;;  %v6207_v59 = vpop.f32.mrb[3].mxu0  ;;  %v8881_v42 = vld [vmem:[%s10182_s12 + $0x568] ss:$56 sps:$4 sm:$0xff]   ;;  %v8889_v23 = vld [vmem:[%s10182_s12 + $0x5dc] ss:$56 sps:$4 sm:$0xff]  }
 0x444   : > { %v8884_v16 = vld [vmem:[%s10182_s12 + $0x570] ss:$56 sps:$4 sm:$0xff]   ;;  %v8892_v21 = vld [vmem:[%s10182_s12 + $0x5e4] ss:$56 sps:$4 sm:$0xff]  }
 0x445   : > { %v11279_v34 = vadd.f32 %v6205_v24, %v5917_v5  ;;  %6450 = vmatmul.mubr.bf16.gmra.mrb[108].mxu1 %v8875_v61  ;;  %6739 = vmatmul.mubr.bf16.gmra.mrb[108].mxu0 %v8878_v10 }
 0x446   : > { %6457 = vmatprep.mubr.bf16.mxu1 %v8883_v43  ;;  %6746 = vmatprep.mubr.bf16.mxu0 %v8886_v30 }
 0x448   : > { %v5921_v55 = vpop.f32.mrb[4].mxu1  ;;  %v6210_v40 = vpop.f32.mrb[4].mxu0 }
 0x449   : > { %v5922_v20 = vadd.f32 %v5921_v55, %v10961_v45  ;;  %v5923_v50 = vpop.f32.mrb[5].mxu1  ;;  %v6212_v17 = vpop.f32.mrb[5].mxu0 }
 0x44a   : > { %v5924_v33 = vpop.f32.mrb[6].mxu1  ;;  %v6213_v0 = vpop.f32.mrb[6].mxu0 }
 0x44b   : > { %v11286_v24 = vadd.f32 %v6210_v40, %v5922_v20  ;;  %v5925_v61 = vadd.f32 %v5924_v33, %v10964_v12  ;;  %v5926_v10 = vpop.f32.mrb[7].mxu1  ;;  %v6215_v43 = vpop.f32.mrb[7].mxu0  ;;  %v8887_v40 = vld [vmem:[%s10182_s12 + $0x5d8] ss:$56 sps:$4 sm:$0xff]   ;;  %v8895_v33 = vld [vmem:[%s10182_s12 + $0x64c] ss:$56 sps:$4 sm:$0xff]  }
 0x44c   : > { %v8890_v20 = vld [vmem:[%s10182_s12 + $0x5e0] ss:$56 sps:$4 sm:$0xff]   ;;  %v8898_v10 = vld [vmem:[%s10182_s12 + $0x654] ss:$56 sps:$4 sm:$0xff]  }
 0x44d   : > { %v11289_v30 = vadd.f32 %v6213_v0, %v5925_v61  ;;  %6458 = vmatmul.mubr.bf16.gmra.mrb[112].mxu1 %v8881_v42  ;;  %6747 = vmatmul.mubr.bf16.gmra.mrb[112].mxu0 %v8884_v16 }
 0x44e   : > { %6465 = vmatprep.mubr.bf16.mxu1 %v8889_v23  ;;  %6754 = vmatprep.mubr.bf16.mxu0 %v8892_v21 }
 0x450   : > { %v5929_v45 = vpop.f32.mrb[8].mxu1  ;;  %v6218_v5 = vpop.f32.mrb[8].mxu0 }
 0x451   : > { %v5930_v59 = vadd.f32 %v5929_v45, %v10974_v35  ;;  %v5931_v55 = vpop.f32.mrb[9].mxu1  ;;  %v6220_v50 = vpop.f32.mrb[9].mxu0 }
 0x452   : > { %v5932_v17 = vpop.f32.mrb[10].mxu1  ;;  %v6221_v12 = vpop.f32.mrb[10].mxu0 }
 0x453   : > { %v11296_v0 = vadd.f32 %v6218_v5, %v5930_v59  ;;  %v5933_v42 = vadd.f32 %v5932_v17, %v10976_v27  ;;  %v5934_v16 = vpop.f32.mrb[11].mxu1  ;;  %v6223_v23 = vpop.f32.mrb[11].mxu0  ;;  %v8893_v5 = vld [vmem:[%s10182_s12 + $0x648] ss:$56 sps:$4 sm:$0xff]   ;;  %v8901_v17 = vld [vmem:[%s10182_s12 + $0x6bc] ss:$56 sps:$4 sm:$0xff]  }
 0x454   : > { %v8896_v59 = vld [vmem:[%s10182_s12 + $0x650] ss:$56 sps:$4 sm:$0xff]   ;;  %v8904_v16 = vld [vmem:[%s10182_s12 + $0x6c4] ss:$56 sps:$4 sm:$0xff]  }
 0x455   : > { %v11299_v21 = vadd.f32 %v6221_v12, %v5933_v42  ;;  %6466 = vmatmul.mubr.bf16.gmra.mrb[116].mxu1 %v8887_v40  ;;  %6755 = vmatmul.mubr.bf16.gmra.mrb[116].mxu0 %v8890_v20 }
 0x456   : > { %6473 = vmatprep.mubr.bf16.mxu1 %v8895_v33  ;;  %6762 = vmatprep.mubr.bf16.mxu0 %v8898_v10 }
 0x458   : > { %v5937_v35 = vpop.f32.mrb[12].mxu1  ;;  %v6226_v61 = vpop.f32.mrb[12].mxu0 }
 0x459   : > { %v5938_v43 = vadd.f32 %v5937_v35, %v10985_v9  ;;  %v5939_v45 = vpop.f32.mrb[13].mxu1  ;;  %v6228_v55 = vpop.f32.mrb[13].mxu0 }
 0x45a   : > { %v5940_v50 = vpop.f32.mrb[14].mxu1  ;;  %v6229_v27 = vpop.f32.mrb[14].mxu0 }
 0x45b   : > { %v11306_v12 = vadd.f32 %v6226_v61, %v5938_v43  ;;  %v5941_v40 = vadd.f32 %v5940_v50, %v10988_v57  ;;  %v5942_v20 = vpop.f32.mrb[15].mxu1  ;;  %v6231_v33 = vpop.f32.mrb[15].mxu0  ;;  %v8899_v61 = vld [vmem:[%s10182_s12 + $0x6b8] ss:$56 sps:$4 sm:$0xff]   ;;  %v8907_v50 = vld [vmem:[%s10182_s12 + $0x72c] ss:$56 sps:$4 sm:$0xff]  }
 0x45c   : > { %v8902_v43 = vld [vmem:[%s10182_s12 + $0x6c0] ss:$56 sps:$4 sm:$0xff]   ;;  %v8910_v20 = vld [vmem:[%s10182_s12 + $0x734] ss:$56 sps:$4 sm:$0xff]  }
 0x45d   : > { %v11309_v10 = vadd.f32 %v6229_v27, %v5941_v40  ;;  %6474 = vmatmul.mubr.bf16.gmra.mrb[120].mxu1 %v8893_v5  ;;  %6763 = vmatmul.mubr.bf16.gmra.mrb[120].mxu0 %v8896_v59 }
 0x45e   : > { %6481 = vmatprep.mubr.bf16.mxu1 %v8901_v17  ;;  %6770 = vmatprep.mubr.bf16.mxu0 %v8904_v16 }
 0x460   : > { %v5945_v9 = vpop.f32.mrb[16].mxu1  ;;  %v6234_v42 = vpop.f32.mrb[16].mxu0 }
 0x461   : > { %v5946_v23 = vadd.f32 %v5945_v9, %v10997_v6  ;;  %v5947_v35 = vpop.f32.mrb[17].mxu1  ;;  %v6236_v45 = vpop.f32.mrb[17].mxu0 }
 0x462   : > { %v5948_v55 = vpop.f32.mrb[18].mxu1  ;;  %v6237_v57 = vpop.f32.mrb[18].mxu0 }
 0x463   : > { %v11316_v27 = vadd.f32 %v6234_v42, %v5946_v23  ;;  %v5949_v5 = vadd.f32 %v5948_v55, %v10999_v53  ;;  %v5950_v59 = vpop.f32.mrb[19].mxu1  ;;  %v6239_v17 = vpop.f32.mrb[19].mxu0  ;;  %v8905_v42 = vld [vmem:[%s10182_s12 + $0x728] ss:$56 sps:$4 sm:$0xff]   ;;  %v8913_v55 = vld [vmem:[%s10182_s12 + $0x79c] ss:$56 sps:$4 sm:$0xff]  }
 0x464   : > { %v8908_v23 = vld [vmem:[%s10182_s12 + $0x730] ss:$56 sps:$4 sm:$0xff]   ;;  %v8916_v59 = vld [vmem:[%s10182_s12 + $0x7a4] ss:$56 sps:$4 sm:$0xff]  }
 0x465   : > { %v11319_v16 = vadd.f32 %v6237_v57, %v5949_v5  ;;  %6482 = vmatmul.mubr.bf16.gmra.mrb[124].mxu1 %v8899_v61  ;;  %6771 = vmatmul.mubr.bf16.gmra.mrb[124].mxu0 %v8902_v43 }
 0x466   : > { %6489 = vmatprep.mubr.bf16.mxu1 %v8907_v50  ;;  %6778 = vmatprep.mubr.bf16.mxu0 %v8910_v20 }
 0x468   : > { %v5953_v6 = vpop.f32.mrb[20].mxu1  ;;  %v6242_v40 = vpop.f32.mrb[20].mxu0 }
 0x469   : > { %v5954_v33 = vadd.f32 %v5953_v6, %v11007_v19  ;;  %v5955_v9 = vpop.f32.mrb[21].mxu1  ;;  %v6244_v35 = vpop.f32.mrb[21].mxu0 }
 0x46a   : > { %v5956_v45 = vpop.f32.mrb[22].mxu1  ;;  %v6245_v53 = vpop.f32.mrb[22].mxu0 }
 0x46b   : > { %v11326_v57 = vadd.f32 %v6242_v40, %v5954_v33  ;;  %v5957_v61 = vadd.f32 %v5956_v45, %v11009_v7  ;;  %v5958_v43 = vpop.f32.mrb[23].mxu1  ;;  %v6247_v50 = vpop.f32.mrb[23].mxu0  ;;  %v8911_v40 = vld [vmem:[%s10182_s12 + $0x798] ss:$56 sps:$4 sm:$0xff]   ;;  %v8919_v45 = vld [vmem:[%s10182_s12 + $0x80c] ss:$56 sps:$4 sm:$0xff]  }
 0x46c   : > { %v8914_v33 = vld [vmem:[%s10182_s12 + $0x7a0] ss:$56 sps:$4 sm:$0xff]   ;;  %v8922_v43 = vld [vmem:[%s10182_s12 + $0x814] ss:$56 sps:$4 sm:$0xff]  }
 0x46d   : > { %v11329_v20 = vadd.f32 %v6245_v53, %v5957_v61  ;;  %6490 = vmatmul.mubr.bf16.gmra.mrb[128].mxu1 %v8905_v42  ;;  %6779 = vmatmul.mubr.bf16.gmra.mrb[128].mxu0 %v8908_v23  ;;  %v11735_v42 = vld [vmem:[#allocation24_spill] sm:$0xff] }
 0x46e   : > { %6497 = vmatprep.mubr.bf16.mxu1 %v8913_v55  ;;  %6786 = vmatprep.mubr.bf16.mxu0 %v8916_v59 }
 0x46f   : > { %11733 = vst [vmem:[#allocation21_spill] sm:$0xff] %v11329_v20 }
 0x470   : > { %v5961_v19 = vpop.f32.mrb[24].mxu1  ;;  %v6250_v5 = vpop.f32.mrb[24].mxu0 }
 0x471   : > { %v5962_v17 = vadd.f32 %v5961_v19, %v11017_v62  ;;  %v5963_v6 = vpop.f32.mrb[25].mxu1  ;;  %v6252_v9 = vpop.f32.mrb[25].mxu0  ;;  %v11737_v19 = vld [vmem:[#allocation4_spill] sm:$0xff] }
 0x472   : > { %v5964_v35 = vpop.f32.mrb[26].mxu1  ;;  %v6253_v7 = vpop.f32.mrb[26].mxu0 }
 0x473   : > { %v11336_v53 = vadd.f32 %v6250_v5, %v5962_v17  ;;  %v5965_v23 = vadd.f32 %v5964_v35, %v11735_v42  ;;  %v5966_v55 = vpop.f32.mrb[27].mxu1  ;;  %v6255_v59 = vpop.f32.mrb[27].mxu0  ;;  %v8917_v5 = vld [vmem:[%s10182_s12 + $0x808] ss:$56 sps:$4 sm:$0xff]   ;;  %v8925_v42 = vld [vmem:[%s10182_s12 + $0x87c] ss:$56 sps:$4 sm:$0xff]  }
 0x474   : > { %v8920_v17 = vld [vmem:[%s10182_s12 + $0x810] ss:$56 sps:$4 sm:$0xff]   ;;  %v8928_v55 = vld [vmem:[%s10182_s12 + $0x884] ss:$56 sps:$4 sm:$0xff]  }
 0x475   : > { %11734 = vst [vmem:[#allocation22_spill] sm:$0xff] %v11336_v53  ;;  %v11339_v61 = vadd.f32 %v6253_v7, %v5965_v23  ;;  %6498 = vmatmul.mubr.bf16.gmra.mrb[132].mxu1 %v8911_v40  ;;  %6787 = vmatmul.mubr.bf16.gmra.mrb[132].mxu0 %v8914_v33  ;;  %v11739_v40 = vld [vmem:[#allocation5_spill] sm:$0xff] }
 0x476   : > { %6505 = vmatprep.mubr.bf16.mxu1 %v8919_v45  ;;  %6794 = vmatprep.mubr.bf16.mxu0 %v8922_v43 }
 0x477   : > { %11736 = vst [vmem:[#allocation23_spill] sm:$0xff] %v11339_v61 }
 0x478   : > { %v5969_v62 = vpop.f32.mrb[28].mxu1  ;;  %v6258_v50 = vpop.f32.mrb[28].mxu0 }
 0x479   : > { %v5970_v6 = vadd.f32 %v5969_v62, %v11737_v19  ;;  %v5971_v9 = vpop.f32.mrb[29].mxu1  ;;  %v6260_v20 = vpop.f32.mrb[29].mxu0  ;;  %v11741_v62 = vld [vmem:[#allocation6_spill] sm:$0xff] }
 0x47a   : > { %v5972_v53 = vpop.f32.mrb[30].mxu1  ;;  %v6261_v35 = vpop.f32.mrb[30].mxu0 }
 0x47b   : > { %v11346_v7 = vadd.f32 %v6258_v50, %v5970_v6  ;;  %v5973_v33 = vadd.f32 %v5972_v53, %v11739_v40  ;;  %v5974_v45 = vpop.f32.mrb[31].mxu1  ;;  %v6263_v43 = vpop.f32.mrb[31].mxu0  ;;  %v8923_v50 = vld [vmem:[%s10182_s12 + $0x878] ss:$56 sps:$4 sm:$0xff]   ;;  %v8931_v40 = vld [vmem:[%s10182_s12 + $0x8ec] ss:$56 sps:$4 sm:$0xff]  }
 0x47c   : > { %v8926_v6 = vld [vmem:[%s10182_s12 + $0x880] ss:$56 sps:$4 sm:$0xff]   ;;  %v8934_v45 = vld [vmem:[%s10182_s12 + $0x8f4] ss:$56 sps:$4 sm:$0xff]  }
 0x47d   : > { %11738 = vst [vmem:[#allocation24_spill] sm:$0xff] %v11346_v7  ;;  %v11349_v23 = vadd.f32 %v6261_v35, %v5973_v33  ;;  %6506 = vmatmul.mubr.bf16.gmra.mrb[136].mxu1 %v8917_v5  ;;  %6795 = vmatmul.mubr.bf16.gmra.mrb[136].mxu0 %v8920_v17  ;;  %v11743_v5 = vld [vmem:[#allocation7_spill] sm:$0xff] }
 0x47e   : > { %6513 = vmatprep.mubr.bf16.mxu1 %v8925_v42  ;;  %6802 = vmatprep.mubr.bf16.mxu0 %v8928_v55 }
 0x47f   : > { %11740 = vst [vmem:[#allocation4_spill] sm:$0xff] %v11349_v23 }
 0x480   : > { %v5977_v20 = vpop.f32.mrb[32].mxu1  ;;  %v6266_v59 = vpop.f32.mrb[32].mxu0 }
 0x481   : > { %v5978_v19 = vadd.f32 %v5977_v20, %v11741_v62  ;;  %v5979_v9 = vpop.f32.mrb[33].mxu1  ;;  %v6268_v61 = vpop.f32.mrb[33].mxu0  ;;  %v11745_v20 = vld [vmem:[#allocation8_spill] sm:$0xff] }
 0x482   : > { %v5980_v7 = vpop.f32.mrb[34].mxu1  ;;  %v6269_v53 = vpop.f32.mrb[34].mxu0 }
 0x483   : > { %v11356_v35 = vadd.f32 %v6266_v59, %v5978_v19  ;;  %v5981_v17 = vadd.f32 %v5980_v7, %v11743_v5  ;;  %v5982_v42 = vpop.f32.mrb[35].mxu1  ;;  %v6271_v55 = vpop.f32.mrb[35].mxu0  ;;  %v8929_v59 = vld [vmem:[%s10182_s12 + $0x8e8] ss:$56 sps:$4 sm:$0xff]   ;;  %v8937_v5 = vld [vmem:[%s10182_s12 + $0x95c] ss:$56 sps:$4 sm:$0xff]  }
 0x484   : > { %v8932_v19 = vld [vmem:[%s10182_s12 + $0x8f0] ss:$56 sps:$4 sm:$0xff]   ;;  %v8940_v42 = vld [vmem:[%s10182_s12 + $0x964] ss:$56 sps:$4 sm:$0xff]  }
 0x485   : > { %11742 = vst [vmem:[#allocation5_spill] sm:$0xff] %v11356_v35  ;;  %v11359_v33 = vadd.f32 %v6269_v53, %v5981_v17  ;;  %6514 = vmatmul.mubr.bf16.gmra.mrb[140].mxu1 %v8923_v50  ;;  %6803 = vmatmul.mubr.bf16.gmra.mrb[140].mxu0 %v8926_v6  ;;  %v11747_v50 = vld [vmem:[#allocation9_spill] sm:$0xff] }
 0x486   : > { %6521 = vmatprep.mubr.bf16.mxu1 %v8931_v40  ;;  %6810 = vmatprep.mubr.bf16.mxu0 %v8934_v45 }
 0x487   : > { %11744 = vst [vmem:[#allocation6_spill] sm:$0xff] %v11359_v33 }
 0x488   : > { %v5985_v61 = vpop.f32.mrb[36].mxu1  ;;  %v6274_v43 = vpop.f32.mrb[36].mxu0 }
 0x489   : > { %v5986_v62 = vadd.f32 %v5985_v61, %v11745_v20  ;;  %v5987_v9 = vpop.f32.mrb[37].mxu1  ;;  %v6276_v23 = vpop.f32.mrb[37].mxu0  ;;  %v11749_v61 = vld [vmem:[#allocation10_spill] sm:$0xff] }
 0x48a   : > { %v5988_v35 = vpop.f32.mrb[38].mxu1  ;;  %v6277_v7 = vpop.f32.mrb[38].mxu0 }
 0x48b   : > { %v11366_v53 = vadd.f32 %v6274_v43, %v5986_v62  ;;  %v5989_v6 = vadd.f32 %v5988_v35, %v11747_v50  ;;  %v5990_v40 = vpop.f32.mrb[39].mxu1  ;;  %v6279_v45 = vpop.f32.mrb[39].mxu0  ;;  %v8935_v43 = vld [vmem:[%s10182_s12 + $0x958] ss:$56 sps:$4 sm:$0xff]   ;;  %v8943_v50 = vld [vmem:[%s10182_s12 + $0x9cc] ss:$56 sps:$4 sm:$0xff]  }
 0x48c   : > { %v8938_v62 = vld [vmem:[%s10182_s12 + $0x960] ss:$56 sps:$4 sm:$0xff]   ;;  %v8946_v40 = vld [vmem:[%s10182_s12 + $0x9d4] ss:$56 sps:$4 sm:$0xff]  }
 0x48d   : > { %11746 = vst [vmem:[#allocation7_spill] sm:$0xff] %v11366_v53  ;;  %v11369_v17 = vadd.f32 %v6277_v7, %v5989_v6  ;;  %6522 = vmatmul.mubr.bf16.gmra.mrb[144].mxu1 %v8929_v59  ;;  %6811 = vmatmul.mubr.bf16.gmra.mrb[144].mxu0 %v8932_v19  ;;  %v11751_v59 = vld [vmem:[#allocation11_spill] sm:$0xff] }
 0x48e   : > { %6529 = vmatprep.mubr.bf16.mxu1 %v8937_v5  ;;  %6818 = vmatprep.mubr.bf16.mxu0 %v8940_v42 }
 0x48f   : > { %11748 = vst [vmem:[#allocation8_spill] sm:$0xff] %v11369_v17 }
 0x490   : > { %v5993_v23 = vpop.f32.mrb[40].mxu1  ;;  %v6282_v55 = vpop.f32.mrb[40].mxu0 }
 0x491   : > { %v5994_v20 = vadd.f32 %v5993_v23, %v11749_v61  ;;  %v5995_v9 = vpop.f32.mrb[41].mxu1  ;;  %v6284_v33 = vpop.f32.mrb[41].mxu0  ;;  %v11753_v23 = vld [vmem:[#allocation12_spill] sm:$0xff] }
 0x492   : > { %v5996_v53 = vpop.f32.mrb[42].mxu1  ;;  %v6285_v35 = vpop.f32.mrb[42].mxu0 }
 0x493   : > { %v11376_v7 = vadd.f32 %v6282_v55, %v5994_v20  ;;  %v5997_v19 = vadd.f32 %v5996_v53, %v11751_v59  ;;  %v5998_v5 = vpop.f32.mrb[43].mxu1  ;;  %v6287_v42 = vpop.f32.mrb[43].mxu0  ;;  %v8941_v55 = vld [vmem:[%s10182_s12 + $0x9c8] ss:$56 sps:$4 sm:$0xff]   ;;  %v8949_v59 = vld [vmem:[%s10182_s12 + $0xa3c] ss:$56 sps:$4 sm:$0xff]  }
 0x494   : > { %v8944_v20 = vld [vmem:[%s10182_s12 + $0x9d0] ss:$56 sps:$4 sm:$0xff]   ;;  %v8952_v5 = vld [vmem:[%s10182_s12 + $0xa44] ss:$56 sps:$4 sm:$0xff]  }
 0x495   : > { %11750 = vst [vmem:[#allocation9_spill] sm:$0xff] %v11376_v7  ;;  %v11379_v6 = vadd.f32 %v6285_v35, %v5997_v19  ;;  %6530 = vmatmul.mubr.bf16.gmra.mrb[148].mxu1 %v8935_v43  ;;  %6819 = vmatmul.mubr.bf16.gmra.mrb[148].mxu0 %v8938_v62  ;;  %v11755_v43 = vld [vmem:[#allocation13_spill] sm:$0xff] }
 0x496   : > { %6537 = vmatprep.mubr.bf16.mxu1 %v8943_v50  ;;  %6826 = vmatprep.mubr.bf16.mxu0 %v8946_v40 }
 0x497   : > { %11752 = vst [vmem:[#allocation10_spill] sm:$0xff] %v11379_v6 }
 0x498   : > { %v6001_v33 = vpop.f32.mrb[44].mxu1  ;;  %v6290_v45 = vpop.f32.mrb[44].mxu0 }
 0x499   : > { %v6002_v61 = vadd.f32 %v6001_v33, %v11753_v23  ;;  %v6003_v9 = vpop.f32.mrb[45].mxu1  ;;  %v6292_v17 = vpop.f32.mrb[45].mxu0  ;;  %v11757_v33 = vld [vmem:[#allocation14_spill] sm:$0xff] }
 0x49a   : > { %v6004_v7 = vpop.f32.mrb[46].mxu1  ;;  %v6293_v53 = vpop.f32.mrb[46].mxu0 }
 0x49b   : > { %v11386_v35 = vadd.f32 %v6290_v45, %v6002_v61  ;;  %v6005_v62 = vadd.f32 %v6004_v7, %v11755_v43  ;;  %v6006_v50 = vpop.f32.mrb[47].mxu1  ;;  %v6295_v40 = vpop.f32.mrb[47].mxu0  ;;  %v8947_v45 = vld [vmem:[%s10182_s12 + $0xa38] ss:$56 sps:$4 sm:$0xff]   ;;  %v8955_v43 = vld [vmem:[%s10182_s12 + $0xaac] ss:$56 sps:$4 sm:$0xff]  }
 0x49c   : > { %v8950_v61 = vld [vmem:[%s10182_s12 + $0xa40] ss:$56 sps:$4 sm:$0xff]   ;;  %v8958_v50 = vld [vmem:[%s10182_s12 + $0xab4] ss:$56 sps:$4 sm:$0xff]  }
 0x49d   : > { %11754 = vst [vmem:[#allocation11_spill] sm:$0xff] %v11386_v35  ;;  %v11389_v19 = vadd.f32 %v6293_v53, %v6005_v62  ;;  %6538 = vmatmul.mubr.bf16.gmra.mrb[152].mxu1 %v8941_v55  ;;  %6827 = vmatmul.mubr.bf16.gmra.mrb[152].mxu0 %v8944_v20  ;;  %v11759_v55 = vld [vmem:[#allocation15_spill] sm:$0xff] }
 0x49e   : > { %6545 = vmatprep.mubr.bf16.mxu1 %v8949_v59  ;;  %6834 = vmatprep.mubr.bf16.mxu0 %v8952_v5 }
 0x49f   : > { %11756 = vst [vmem:[#allocation12_spill] sm:$0xff] %v11389_v19 }
 0x4a0   : > { %v6009_v17 = vpop.f32.mrb[48].mxu1  ;;  %v6298_v42 = vpop.f32.mrb[48].mxu0 }
 0x4a1   : > { %v6010_v23 = vadd.f32 %v6009_v17, %v11757_v33  ;;  %v6011_v9 = vpop.f32.mrb[49].mxu1  ;;  %v6300_v6 = vpop.f32.mrb[49].mxu0  ;;  %v11760_v17 = vld [vmem:[#allocation16_spill] sm:$0xff] }
 0x4a2   : > { %v6012_v35 = vpop.f32.mrb[50].mxu1  ;;  %v6301_v7 = vpop.f32.mrb[50].mxu0 }
 0x4a3   : > { %v11396_v53 = vadd.f32 %v6298_v42, %v6010_v23  ;;  %v6013_v20 = vadd.f32 %v6012_v35, %v11759_v55  ;;  %v6014_v59 = vpop.f32.mrb[51].mxu1  ;;  %v6303_v5 = vpop.f32.mrb[51].mxu0  ;;  %v8953_v42 = vld [vmem:[%s10182_s12 + $0xaa8] ss:$56 sps:$4 sm:$0xff]   ;;  %v8961_v55 = vld [vmem:[%s10182_s12 + $0xb1c] ss:$56 sps:$4 sm:$0xff]  }
 0x4a4   : > { %v8956_v23 = vld [vmem:[%s10182_s12 + $0xab0] ss:$56 sps:$4 sm:$0xff]   ;;  %v8964_v59 = vld [vmem:[%s10182_s12 + $0xb24] ss:$56 sps:$4 sm:$0xff]  }
 0x4a5   : > { %11758 = vst [vmem:[#allocation13_spill] sm:$0xff] %v11396_v53  ;;  %v11399_v62 = vadd.f32 %v6301_v7, %v6013_v20  ;;  %6546 = vmatmul.mubr.bf16.gmra.mrb[156].mxu1 %v8947_v45  ;;  %6835 = vmatmul.mubr.bf16.gmra.mrb[156].mxu0 %v8950_v61  ;;  %v11762_v45 = vld [vmem:[#allocation17_spill] sm:$0xff] }
 0x4a6   : > { %6553 = vmatprep.mubr.bf16.mxu1 %v8955_v43  ;;  %6842 = vmatprep.mubr.bf16.mxu0 %v8958_v50 }
 0x4a8   : > { %v6017_v6 = vpop.f32.mrb[52].mxu1  ;;  %v6306_v40 = vpop.f32.mrb[52].mxu0 }
 0x4a9   : > { %v6018_v33 = vadd.f32 %v6017_v6, %v11760_v17  ;;  %v6019_v9 = vpop.f32.mrb[53].mxu1  ;;  %v6308_v19 = vpop.f32.mrb[53].mxu0 }
 0x4aa   : > { %v6020_v53 = vpop.f32.mrb[54].mxu1  ;;  %v6309_v35 = vpop.f32.mrb[54].mxu0 }
 0x4ab   : > { %v11406_v7 = vadd.f32 %v6306_v40, %v6018_v33  ;;  %v6021_v61 = vadd.f32 %v6020_v53, %v11762_v45  ;;  %v6022_v43 = vpop.f32.mrb[55].mxu1  ;;  %v6311_v50 = vpop.f32.mrb[55].mxu0  ;;  %v8959_v40 = vld [vmem:[%s10182_s12 + $0xb18] ss:$56 sps:$4 sm:$0xff]   ;;  %v8967_v45 = vld [vmem:[%s10182_s12 + $0xb8c] ss:$56 sps:$4 sm:$0xff]  }
 0x4ac   : > { %v8962_v33 = vld [vmem:[%s10182_s12 + $0xb20] ss:$56 sps:$4 sm:$0xff]   ;;  %v8970_v43 = vld [vmem:[%s10182_s12 + $0xb94] ss:$56 sps:$4 sm:$0xff]  }
 0x4ad   : > { %11761 = vst [vmem:[#allocation14_spill] sm:$0xff] %v11406_v7  ;;  %v11409_v20 = vadd.f32 %v6309_v35, %v6021_v61  ;;  %6554 = vmatmul.mubr.bf16.gmra.mrb[160].mxu1 %v8953_v42  ;;  %6843 = vmatmul.mubr.bf16.gmra.mrb[160].mxu0 %v8956_v23  ;;  %v11764_v42 = vld [vmem:[#allocation18_spill] sm:$0xff] }
 0x4ae   : > { %6561 = vmatprep.mubr.bf16.mxu1 %v8961_v55  ;;  %6850 = vmatprep.mubr.bf16.mxu0 %v8964_v59 }
 0x4b0   : > { %v6025_v19 = vpop.f32.mrb[56].mxu1  ;;  %v6314_v5 = vpop.f32.mrb[56].mxu0 }
 0x4b1   : > { %v6026_v6 = vadd.f32 %v6025_v19, %v11097_v1  ;;  %v6027_v17 = vpop.f32.mrb[57].mxu1  ;;  %v6316_v9 = vpop.f32.mrb[57].mxu0 }
 0x4b2   : > { %v6028_v7 = vpop.f32.mrb[58].mxu1  ;;  %v6317_v53 = vpop.f32.mrb[58].mxu0 }
 0x4b3   : > { %v11416_v35 = vadd.f32 %v6314_v5, %v6026_v6  ;;  %v6029_v23 = vadd.f32 %v6028_v7, %v11764_v42  ;;  %v6030_v55 = vpop.f32.mrb[59].mxu1  ;;  %v6319_v59 = vpop.f32.mrb[59].mxu0  ;;  %v8965_v5 = vld [vmem:[%s10182_s12 + $0xb88] ss:$56 sps:$4 sm:$0xff]   ;;  %v8973_v42 = vld [vmem:[%s10182_s12 + $0xbfc] ss:$56 sps:$4 sm:$0xff]  }
 0x4b4   : > { %v8968_v6 = vld [vmem:[%s10182_s12 + $0xb90] ss:$56 sps:$4 sm:$0xff]   ;;  %v8976_v55 = vld [vmem:[%s10182_s12 + $0xc04] ss:$56 sps:$4 sm:$0xff]  }
 0x4b5   : > { %11763 = vst [vmem:[#allocation15_spill] sm:$0xff] %v11416_v35  ;;  %v11419_v61 = vadd.f32 %v6317_v53, %v6029_v23  ;;  %6562 = vmatmul.mubr.bf16.gmra.mrb[164].mxu1 %v8959_v40  ;;  %6851 = vmatmul.mubr.bf16.gmra.mrb[164].mxu0 %v8962_v33 }
 0x4b6   : > { %6569 = vmatprep.mubr.bf16.mxu1 %v8967_v45  ;;  %6858 = vmatprep.mubr.bf16.mxu0 %v8970_v43  ;;  %v1236_v43 = vld [vmem:[#allocation2] sm:$0xff] }
 0x4b8   : > { %v6033_v1 = vpop.f32.mrb[60].mxu1  ;;  %v6322_v50 = vpop.f32.mrb[60].mxu0 }
 0x4b9   : > { %v6034_v19 = vadd.f32 %v6033_v1, %v11107_v32  ;;  %v6035_v17 = vpop.f32.mrb[61].mxu1  ;;  %v6324_v9 = vpop.f32.mrb[61].mxu0 }
 0x4ba   : > { %v6036_v35 = vpop.f32.mrb[62].mxu1  ;;  %v6325_v7 = vpop.f32.mrb[62].mxu0  ;;  %v8971_v17 = vld [vmem:[%s10182_s12 + $0xbf8] ss:$56 sps:$4 sm:$0xff]  }
 0x4bb   : > { %v11426_v59 = vadd.f32 %v6322_v50, %v6034_v19  ;;  %v6037_v40 = vadd.f32 %v6036_v35, %v11109_v28  ;;  %v6038_v33 = vpop.f32.mrb[63].mxu1  ;;  %v6327_v53 = vpop.f32.mrb[63].mxu0  ;;  %v8974_v9 = vld [vmem:[%s10182_s12 + $0xc00] ss:$56 sps:$4 sm:$0xff]  }
 0x4bc   : > { %v8979_v33 = vld [vmem:[%s10182_s12 + $0xc6c] ss:$56 sps:$4 sm:$0xff]  }
 0x4bd   : > { %v11429_v45 = vadd.f32 %v6325_v7, %v6037_v40  ;;  %6570 = vmatmul.mubr.bf16.gmra.mrb[168].mxu1 %v8965_v5  ;;  %6859 = vmatmul.mubr.bf16.gmra.mrb[168].mxu0 %v8968_v6  ;;  %v8982_v53 = vld [vmem:[%s10182_s12 + $0xc74] ss:$56 sps:$4 sm:$0xff]  }
 0x4be   : > { %6577 = vmatprep.mubr.bf16.mxu1 %v8973_v42  ;;  %6866 = vmatprep.mubr.bf16.mxu0 %v8976_v55  ;;  %v1237_v42 = vld [vmem:[#allocation2 + $0x8] sm:$0xff] }
 0x4bf   : > { %11765 = vst [vmem:[#allocation16_spill] sm:$0xff] %v11429_v45 }
 0x4c0   : > { %v6363_v32 = vpop.f32.mrb[64].mxu1  ;;  %v6652_v23 = vpop.f32.mrb[64].mxu0 }
 0x4c1   : > { %v6364_v1 = vadd.f32 %v6363_v32, %v11116_v51  ;;  %v6365_v50 = vpop.f32.mrb[65].mxu1  ;;  %v6654_v19 = vpop.f32.mrb[65].mxu0 }
 0x4c2   : > { %v6366_v28 = vpop.f32.mrb[66].mxu1  ;;  %v6655_v35 = vpop.f32.mrb[66].mxu0  ;;  %v1238_v50 = vld [vmem:[#allocation2 + $0x10] sm:$0xff] }
 0x4c3   : > { %v6653_v7 = vadd.f32 %v6652_v23, %v6364_v1  ;;  %v6367_v40 = vadd.f32 %v6366_v28, %v11119_v37  ;;  %v6368_v5 = vpop.f32.mrb[67].mxu1  ;;  %v6657_v6 = vpop.f32.mrb[67].mxu0  ;;  %v8977_v28 = vld [vmem:[%s10182_s12 + $0xc68] ss:$56 sps:$4 sm:$0xff]  }
 0x4c5   : > { %v6907_v55 = vadd.f32 %v6653_v7, %v1236_v43  ;;  %v6656_v45 = vadd.f32 %v6655_v35, %v6367_v40  ;;  %6578 = vmatmul.mubr.bf16.gmra.mrb[172].mxu1 %v8971_v17  ;;  %6867 = vmatmul.mubr.bf16.gmra.mrb[172].mxu0 %v8974_v9  ;;  %v8980_v43 = vld [vmem:[%s10182_s12 + $0xc70] ss:$56 sps:$4 sm:$0xff]   ;;  %v8985_v17 = vld [vmem:[%s10182_s12 + $0xcdc] ss:$56 sps:$4 sm:$0xff]  }
 0x4c6   : > { %6585 = vmatprep.mubr.bf16.mxu1 %v8979_v33  ;;  %6874 = vmatprep.mubr.bf16.mxu0 %v8982_v53  ;;  %v8988_v9 = vld [vmem:[%s10182_s12 + $0xce4] ss:$56 sps:$4 sm:$0xff]  }
 0x4c7   : > { %6971 = vst [vmem:[#allocation2] sm:$0xff] %v6907_v55  ;;  %v6908_v51 = vadd.f32 %v6656_v45, %v1237_v42  ;;  %v1239_v45 = vld [vmem:[#allocation2 + $0x18] sm:$0xff] }
 0x4c8   : > { %v6371_v32 = vpop.f32.mrb[68].mxu1  ;;  %v6660_v23 = vpop.f32.mrb[68].mxu0 }
 0x4c9   : > { %6972 = vst [vmem:[#allocation2 + $0x8] sm:$0xff] %v6908_v51  ;;  %v6372_v37 = vadd.f32 %v6371_v32, %v11126_v60  ;;  %v6373_v1 = vpop.f32.mrb[69].mxu1  ;;  %v6662_v19 = vpop.f32.mrb[69].mxu0  ;;  %v1240_v51 = vld [vmem:[#allocation2 + $0x20] sm:$0xff] }
 0x4ca   : > { %v6374_v7 = vpop.f32.mrb[70].mxu1  ;;  %v6663_v35 = vpop.f32.mrb[70].mxu0  ;;  %v8983_v1 = vld [vmem:[%s10182_s12 + $0xcd8] ss:$56 sps:$4 sm:$0xff]  }
 0x4cb   : > { %v6661_v40 = vadd.f32 %v6660_v23, %v6372_v37  ;;  %v6375_v33 = vadd.f32 %v6374_v7, %v11129_v46  ;;  %v6376_v53 = vpop.f32.mrb[71].mxu1  ;;  %v6665_v5 = vpop.f32.mrb[71].mxu0 }
 0x4cd   : > { %v6909_v6 = vadd.f32 %v6661_v40, %v1238_v50  ;;  %v6664_v42 = vadd.f32 %v6663_v35, %v6375_v33  ;;  %6586 = vmatmul.mubr.bf16.gmra.mrb[176].mxu1 %v8977_v28  ;;  %6875 = vmatmul.mubr.bf16.gmra.mrb[176].mxu0 %v8980_v43  ;;  %v8986_v50 = vld [vmem:[%s10182_s12 + $0xce0] ss:$56 sps:$4 sm:$0xff]   ;;  %v8991_v28 = vld [vmem:[%s10182_s12 + $0xd4c] ss:$56 sps:$4 sm:$0xff]  }
 0x4ce   : > { %6593 = vmatprep.mubr.bf16.mxu1 %v8985_v17  ;;  %6882 = vmatprep.mubr.bf16.mxu0 %v8988_v9  ;;  %v8994_v43 = vld [vmem:[%s10182_s12 + $0xd54] ss:$56 sps:$4 sm:$0xff]  }
 0x4cf   : > { %6973 = vst [vmem:[#allocation2 + $0x10] sm:$0xff] %v6909_v6  ;;  %v6910_v60 = vadd.f32 %v6664_v42, %v1239_v45  ;;  %v1241_v33 = vld [vmem:[#allocation2 + $0x28] sm:$0xff]  ;;  %v1242_v6 = vld [vmem:[#allocation2 + $0x30] sm:$0xff] }
 0x4d0   : > { %v6379_v55 = vpop.f32.mrb[72].mxu1  ;;  %v6668_v32 = vpop.f32.mrb[72].mxu0 }
 0x4d1   : > { %6974 = vst [vmem:[#allocation2 + $0x18] sm:$0xff] %v6910_v60  ;;  %v6380_v46 = vadd.f32 %v6379_v55, %v11136_v63  ;;  %v6381_v23 = vpop.f32.mrb[73].mxu1  ;;  %v6670_v37 = vpop.f32.mrb[73].mxu0 }
 0x4d2   : > { %v6382_v19 = vpop.f32.mrb[74].mxu1  ;;  %v6671_v7 = vpop.f32.mrb[74].mxu0  ;;  %v8997_v37 = vld [vmem:[%s10182_s12 + $0xdbc] ss:$56 sps:$4 sm:$0xff]  }
 0x4d3   : > { %v6669_v35 = vadd.f32 %v6668_v32, %v6380_v46  ;;  %v6383_v17 = vadd.f32 %v6382_v19, %v11139_v25  ;;  %v6384_v9 = vpop.f32.mrb[75].mxu1  ;;  %v6673_v40 = vpop.f32.mrb[75].mxu0  ;;  %v8989_v32 = vld [vmem:[%s10182_s12 + $0xd48] ss:$56 sps:$4 sm:$0xff]  }
 0x4d5   : > { %v6911_v53 = vadd.f32 %v6669_v35, %v1240_v51  ;;  %v6672_v5 = vadd.f32 %v6671_v7, %v6383_v17  ;;  %6594 = vmatmul.mubr.bf16.gmra.mrb[180].mxu1 %v8983_v1  ;;  %6883 = vmatmul.mubr.bf16.gmra.mrb[180].mxu0 %v8986_v50  ;;  %v8992_v51 = vld [vmem:[%s10182_s12 + $0xd50] ss:$56 sps:$4 sm:$0xff]   ;;  %v9000_v1 = vld [vmem:[%s10182_s12 + $0xdc4] ss:$56 sps:$4 sm:$0xff]  }
 0x4d6   : > { %6601 = vmatprep.mubr.bf16.mxu1 %v8991_v28  ;;  %6890 = vmatprep.mubr.bf16.mxu0 %v8994_v43  ;;  %v1243_v43 = vld [vmem:[#allocation2 + $0x38] sm:$0xff] }
 0x4d7   : > { %6975 = vst [vmem:[#allocation2 + $0x20] sm:$0xff] %v6911_v53  ;;  %v6912_v63 = vadd.f32 %v6672_v5, %v1241_v33  ;;  %v8995_v5 = vld [vmem:[%s10182_s12 + $0xdb8] ss:$56 sps:$4 sm:$0xff]  }
 0x4d8   : > { %v6387_v45 = vpop.f32.mrb[76].mxu1  ;;  %v6676_v42 = vpop.f32.mrb[76].mxu0 }
 0x4d9   : > { %6976 = vst [vmem:[#allocation2 + $0x28] sm:$0xff] %v6912_v63  ;;  %v6388_v25 = vadd.f32 %v6387_v45, %v11146_v13  ;;  %v6389_v60 = vpop.f32.mrb[77].mxu1  ;;  %v6678_v55 = vpop.f32.mrb[77].mxu0  ;;  %v8998_v63 = vld [vmem:[%s10182_s12 + $0xdc0] ss:$56 sps:$4 sm:$0xff]  }
 0x4da   : > { %v6390_v46 = vpop.f32.mrb[78].mxu1  ;;  %v6679_v23 = vpop.f32.mrb[78].mxu0  ;;  %v1244_v45 = vld [vmem:[#allocation2 + $0x40] sm:$0xff] }
 0x4db   : > { %v6677_v50 = vadd.f32 %v6676_v42, %v6388_v25  ;;  %v6391_v19 = vadd.f32 %v6390_v46, %v11149_v18  ;;  %v6392_v7 = vpop.f32.mrb[79].mxu1  ;;  %v6681_v28 = vpop.f32.mrb[79].mxu0 }
 0x4dd   : > { %v6913_v35 = vadd.f32 %v6677_v50, %v1242_v6  ;;  %v6680_v17 = vadd.f32 %v6679_v23, %v6391_v19  ;;  %6602 = vmatmul.mubr.bf16.gmra.mrb[184].mxu1 %v8989_v32  ;;  %6891 = vmatmul.mubr.bf16.gmra.mrb[184].mxu0 %v8992_v51  ;;  %v1245_v51 = vld [vmem:[#allocation2 + $0x48] sm:$0xff]  ;;  %v11766_v50 = vld [vmem:[#allocation19_spill] sm:$0xff] }
 0x4de   : > { %6609 = vmatprep.mubr.bf16.mxu1 %v8997_v37  ;;  %6898 = vmatprep.mubr.bf16.mxu0 %v9000_v1 }
 0x4df   : > { %6977 = vst [vmem:[#allocation2 + $0x30] sm:$0xff] %v6913_v35  ;;  %v6914_v13 = vadd.f32 %v6680_v17, %v1243_v43  ;;  %v1246_v43 = vld [vmem:[#allocation2 + $0x50] sm:$0xff] }
 0x4e0   : > { %v6395_v9 = vpop.f32.mrb[80].mxu1  ;;  %v6684_v40 = vpop.f32.mrb[80].mxu0 }
 0x4e1   : > { %6978 = vst [vmem:[#allocation2 + $0x38] sm:$0xff] %v6914_v13  ;;  %v6396_v33 = vadd.f32 %v6395_v9, %v11156_v26  ;;  %v6397_v53 = vpop.f32.mrb[81].mxu1  ;;  %v6686_v18 = vpop.f32.mrb[81].mxu0 }
 0x4e2   : > { %v6398_v42 = vpop.f32.mrb[82].mxu1  ;;  %v6687_v25 = vpop.f32.mrb[82].mxu0 }
 0x4e3   : > { %v6685_v6 = vadd.f32 %v6684_v40, %v6396_v33  ;;  %v6399_v60 = vadd.f32 %v6398_v42, %v11159_v3  ;;  %v6400_v55 = vpop.f32.mrb[83].mxu1  ;;  %v6689_v32 = vpop.f32.mrb[83].mxu0  ;;  %v1247_v33 = vld [vmem:[#allocation2 + $0x58] sm:$0xff]  ;;  %v11767_v42 = vld [vmem:[#allocation20_spill] sm:$0xff] }
 0x4e4   : > { %v1248_v55 = vld [vmem:[#allocation2 + $0x60] sm:$0xff] }
 0x4e5   : > { %v6915_v46 = vadd.f32 %v6685_v6, %v1244_v45  ;;  %v6688_v23 = vadd.f32 %v6687_v25, %v6399_v60  ;;  %6610 = vmatmul.mubr.bf16.gmra.mrb[188].mxu1 %v8995_v5  ;;  %6899 = vmatmul.mubr.bf16.gmra.mrb[188].mxu0 %v8998_v63 }
 0x4e7   : > { %6979 = vst [vmem:[#allocation2 + $0x40] sm:$0xff] %v6915_v46  ;;  %v6916_v37 = vadd.f32 %v6688_v23, %v1245_v51 }
 0x4e8   : > { %v6403_v26 = vpop.f32.mrb[84].mxu1  ;;  %v6692_v1 = vpop.f32.mrb[84].mxu0 }
 0x4e9   : > { %6980 = vst [vmem:[#allocation2 + $0x48] sm:$0xff] %v6916_v37  ;;  %v6404_v19 = vadd.f32 %v6403_v26, %v11766_v50  ;;  %v6405_v7 = vpop.f32.mrb[85].mxu1  ;;  %v6694_v28 = vpop.f32.mrb[85].mxu0  ;;  %v1249_v26 = vld [vmem:[#allocation2 + $0x68] sm:$0xff] }
 0x4ea   : > { %v6406_v35 = vpop.f32.mrb[86].mxu1  ;;  %v6695_v17 = vpop.f32.mrb[86].mxu0 }
 0x4eb   : > { %v6693_v3 = vadd.f32 %v6692_v1, %v6404_v19  ;;  %v6407_v13 = vadd.f32 %v6406_v35, %v11169_v29  ;;  %v6408_v9 = vpop.f32.mrb[87].mxu1  ;;  %v6697_v40 = vpop.f32.mrb[87].mxu0 }
 0x4ed   : > { %v6917_v53 = vadd.f32 %v6693_v3, %v1246_v43  ;;  %v6696_v18 = vadd.f32 %v6695_v17, %v6407_v13  ;;  %v1250_v3 = vld [vmem:[#allocation2 + $0x70] sm:$0xff] }
 0x4ef   : > { %6981 = vst [vmem:[#allocation2 + $0x50] sm:$0xff] %v6917_v53  ;;  %v6918_v5 = vadd.f32 %v6696_v18, %v1247_v33  ;;  %v1251_v18 = vld [vmem:[#allocation2 + $0x78] sm:$0xff] }
 0x4f0   : > { %v6411_v63 = vpop.f32.mrb[88].mxu1  ;;  %v6700_v45 = vpop.f32.mrb[88].mxu0 }
 0x4f1   : > { %6982 = vst [vmem:[#allocation2 + $0x58] sm:$0xff] %v6918_v5  ;;  %v6412_v25 = vadd.f32 %v6411_v63, %v11767_v42  ;;  %v6413_v6 = vpop.f32.mrb[89].mxu1  ;;  %v6702_v60 = vpop.f32.mrb[89].mxu0 }
 0x4f2   : > { %v6414_v32 = vpop.f32.mrb[90].mxu1  ;;  %v6703_v51 = vpop.f32.mrb[90].mxu0 }
 0x4f3   : > { %v6701_v46 = vadd.f32 %v6700_v45, %v6412_v25  ;;  %v6415_v29 = vadd.f32 %v6414_v32, %v11179_v49  ;;  %v6416_v23 = vpop.f32.mrb[91].mxu1  ;;  %v6705_v37 = vpop.f32.mrb[91].mxu0 }
 0x4f4   : > { %v1253_v37 = vld [vmem:[#allocation2 + $0x88] sm:$0xff] }
 0x4f5   : > { %v6919_v1 = vadd.f32 %v6701_v46, %v1248_v55  ;;  %v6704_v50 = vadd.f32 %v6703_v51, %v6415_v29  ;;  %v1252_v55 = vld [vmem:[#allocation2 + $0x80] sm:$0xff] }
 0x4f7   : > { %6983 = vst [vmem:[#allocation2 + $0x60] sm:$0xff] %v6919_v1  ;;  %v6920_v19 = vadd.f32 %v6704_v50, %v1249_v26 }
 0x4f8   : > { %v6419_v7 = vpop.f32.mrb[92].mxu1  ;;  %v6708_v28 = vpop.f32.mrb[92].mxu0 }
 0x4f9   : > { %6984 = vst [vmem:[#allocation2 + $0x68] sm:$0xff] %v6920_v19  ;;  %v6420_v43 = vadd.f32 %v6419_v7, %v11186_v4  ;;  %v6421_v35 = vpop.f32.mrb[93].mxu1  ;;  %v6710_v17 = vpop.f32.mrb[93].mxu0 }
 0x4fa   : > { %v6422_v13 = vpop.f32.mrb[94].mxu1  ;;  %v6711_v9 = vpop.f32.mrb[94].mxu0  ;;  %v1254_v35 = vld [vmem:[#allocation2 + $0x90] sm:$0xff] }
 0x4fb   : > { %v6709_v40 = vadd.f32 %v6708_v28, %v6420_v43  ;;  %v6423_v49 = vadd.f32 %v6422_v13, %v11189_v14  ;;  %v6424_v33 = vpop.f32.mrb[95].mxu1  ;;  %v6713_v53 = vpop.f32.mrb[95].mxu0 }
 0x4fd   : > { %v6921_v5 = vadd.f32 %v6709_v40, %v1250_v3  ;;  %v6712_v63 = vadd.f32 %v6711_v9, %v6423_v49  ;;  %v1255_v49 = vld [vmem:[#allocation2 + $0x98] sm:$0xff] }
 0x4ff   : > { %6985 = vst [vmem:[#allocation2 + $0x70] sm:$0xff] %v6921_v5  ;;  %v6922_v45 = vadd.f32 %v6712_v63, %v1251_v18 }
 0x500   : > { %v6427_v42 = vpop.f32.mrb[96].mxu1  ;;  %v6716_v25 = vpop.f32.mrb[96].mxu0 }
 0x501   : > { %6986 = vst [vmem:[#allocation2 + $0x78] sm:$0xff] %v6922_v45  ;;  %v6428_v4 = vadd.f32 %v6427_v42, %v11196_v39  ;;  %v6429_v6 = vpop.f32.mrb[97].mxu1  ;;  %v6718_v60 = vpop.f32.mrb[97].mxu0 }
 0x502   : > { %v6430_v32 = vpop.f32.mrb[98].mxu1  ;;  %v6719_v51 = vpop.f32.mrb[98].mxu0 }
 0x503   : > { %v6717_v46 = vadd.f32 %v6716_v25, %v6428_v4  ;;  %v6431_v14 = vadd.f32 %v6430_v32, %v11199_v2  ;;  %v6432_v29 = vpop.f32.mrb[99].mxu1  ;;  %v6721_v23 = vpop.f32.mrb[99].mxu0  ;;  %v1256_v25 = vld [vmem:[#allocation2 + $0xa0] sm:$0xff] }
 0x505   : > { %v6923_v26 = vadd.f32 %v6717_v46, %v1252_v55  ;;  %v6720_v1 = vadd.f32 %v6719_v51, %v6431_v14  ;;  %v1257_v51 = vld [vmem:[#allocation2 + $0xa8] sm:$0xff] }
 0x507   : > { %6987 = vst [vmem:[#allocation2 + $0x80] sm:$0xff] %v6923_v26  ;;  %v6924_v50 = vadd.f32 %v6720_v1, %v1253_v37 }
 0x508   : > { %v6435_v19 = vpop.f32.mrb[100].mxu1  ;;  %v6724_v7 = vpop.f32.mrb[100].mxu0 }
 0x509   : > { %6988 = vst [vmem:[#allocation2 + $0x88] sm:$0xff] %v6924_v50  ;;  %v6436_v39 = vadd.f32 %v6435_v19, %v11206_v36  ;;  %v6437_v28 = vpop.f32.mrb[101].mxu1  ;;  %v6726_v43 = vpop.f32.mrb[101].mxu0  ;;  %v1258_v50 = vld [vmem:[#allocation2 + $0xb0] sm:$0xff] }
 0x50a   : > { %v6438_v17 = vpop.f32.mrb[102].mxu1  ;;  %v6727_v3 = vpop.f32.mrb[102].mxu0 }
 0x50b   : > { %v6725_v13 = vadd.f32 %v6724_v7, %v6436_v39  ;;  %v6439_v2 = vadd.f32 %v6438_v17, %v11209_v8  ;;  %v6440_v9 = vpop.f32.mrb[103].mxu1  ;;  %v6729_v40 = vpop.f32.mrb[103].mxu0 }
 0x50d   : > { %v6925_v33 = vadd.f32 %v6725_v13, %v1254_v35  ;;  %v6728_v53 = vadd.f32 %v6727_v3, %v6439_v2  ;;  %v1259_v35 = vld [vmem:[#allocation2 + $0xb8] sm:$0xff] }
 0x50f   : > { %6989 = vst [vmem:[#allocation2 + $0x90] sm:$0xff] %v6925_v33  ;;  %v6926_v18 = vadd.f32 %v6728_v53, %v1255_v49  ;;  %v1260_v33 = vld [vmem:[#allocation2 + $0xc0] sm:$0xff] }
 0x510   : > { %v6443_v5 = vpop.f32.mrb[104].mxu1  ;;  %v6732_v63 = vpop.f32.mrb[104].mxu0 }
 0x511   : > { %6990 = vst [vmem:[#allocation2 + $0x98] sm:$0xff] %v6926_v18  ;;  %v6444_v36 = vadd.f32 %v6443_v5, %v11216_v54  ;;  %v6445_v45 = vpop.f32.mrb[105].mxu1  ;;  %v6734_v42 = vpop.f32.mrb[105].mxu0 }
 0x512   : > { %v6446_v4 = vpop.f32.mrb[106].mxu1  ;;  %v6735_v6 = vpop.f32.mrb[106].mxu0  ;;  %v1261_v45 = vld [vmem:[#allocation2 + $0xc8] sm:$0xff] }
 0x513   : > { %v6733_v60 = vadd.f32 %v6732_v63, %v6444_v36  ;;  %v6447_v8 = vadd.f32 %v6446_v4, %v11219_v38  ;;  %v6448_v55 = vpop.f32.mrb[107].mxu1  ;;  %v6737_v32 = vpop.f32.mrb[107].mxu0 }
 0x514   : > { %v1262_v32 = vld [vmem:[#allocation2 + $0xd0] sm:$0xff] }
 0x515   : > { %v6927_v46 = vadd.f32 %v6733_v60, %v1256_v25  ;;  %v6736_v14 = vadd.f32 %v6735_v6, %v6447_v8 }
 0x517   : > { %6991 = vst [vmem:[#allocation2 + $0xa0] sm:$0xff] %v6927_v46  ;;  %v6928_v29 = vadd.f32 %v6736_v14, %v1257_v51 }
 0x518   : > { %v6451_v23 = vpop.f32.mrb[108].mxu1  ;;  %v6740_v37 = vpop.f32.mrb[108].mxu0 }
 0x519   : > { %6992 = vst [vmem:[#allocation2 + $0xa8] sm:$0xff] %v6928_v29  ;;  %v6452_v54 = vadd.f32 %v6451_v23, %v11226_v15  ;;  %v6453_v26 = vpop.f32.mrb[109].mxu1  ;;  %v6742_v1 = vpop.f32.mrb[109].mxu0 }
 0x51a   : > { %v6454_v19 = vpop.f32.mrb[110].mxu1  ;;  %v6743_v7 = vpop.f32.mrb[110].mxu0 }
 0x51b   : > { %v6741_v39 = vadd.f32 %v6740_v37, %v6452_v54  ;;  %v6455_v38 = vadd.f32 %v6454_v19, %v11229_v58  ;;  %v6456_v28 = vpop.f32.mrb[111].mxu1  ;;  %v6745_v43 = vpop.f32.mrb[111].mxu0  ;;  %v1263_v37 = vld [vmem:[#allocation2 + $0xd8] sm:$0xff] }
 0x51d   : > { %v6929_v17 = vadd.f32 %v6741_v39, %v1258_v50  ;;  %v6744_v3 = vadd.f32 %v6743_v7, %v6455_v38  ;;  %v1264_v38 = vld [vmem:[#allocation2 + $0xe0] sm:$0xff] }
 0x51f   : > { %6993 = vst [vmem:[#allocation2 + $0xb0] sm:$0xff] %v6929_v17  ;;  %v6930_v13 = vadd.f32 %v6744_v3, %v1259_v35 }
 0x520   : > { %v6459_v2 = vpop.f32.mrb[112].mxu1  ;;  %v6748_v9 = vpop.f32.mrb[112].mxu0 }
 0x521   : > { %6994 = vst [vmem:[#allocation2 + $0xb8] sm:$0xff] %v6930_v13  ;;  %v6460_v15 = vadd.f32 %v6459_v2, %v11236_v41  ;;  %v6461_v40 = vpop.f32.mrb[113].mxu1  ;;  %v6750_v49 = vpop.f32.mrb[113].mxu0  ;;  %v1265_v13 = vld [vmem:[#allocation2 + $0xe8] sm:$0xff] }
 0x522   : > { %v6462_v53 = vpop.f32.mrb[114].mxu1  ;;  %v6751_v18 = vpop.f32.mrb[114].mxu0 }
 0x523   : > { %v6749_v5 = vadd.f32 %v6748_v9, %v6460_v15  ;;  %v6463_v58 = vadd.f32 %v6462_v53, %v11239_v44  ;;  %v6464_v63 = vpop.f32.mrb[115].mxu1  ;;  %v6753_v36 = vpop.f32.mrb[115].mxu0 }
 0x525   : > { %v6931_v42 = vadd.f32 %v6749_v5, %v1260_v33  ;;  %v6752_v25 = vadd.f32 %v6751_v18, %v6463_v58  ;;  %v1266_v18 = vld [vmem:[#allocation2 + $0xf0] sm:$0xff] }
 0x527   : > { %6995 = vst [vmem:[#allocation2 + $0xc0] sm:$0xff] %v6931_v42  ;;  %v6932_v4 = vadd.f32 %v6752_v25, %v1261_v45  ;;  %v1267_v42 = vld [vmem:[#allocation2 + $0xf8] sm:$0xff] }
 0x528   : > { %v6467_v6 = vpop.f32.mrb[116].mxu1  ;;  %v6756_v60 = vpop.f32.mrb[116].mxu0 }
 0x529   : > { %6996 = vst [vmem:[#allocation2 + $0xc8] sm:$0xff] %v6932_v4  ;;  %v6468_v41 = vadd.f32 %v6467_v6, %v11246_v31  ;;  %v6469_v8 = vpop.f32.mrb[117].mxu1  ;;  %v6758_v55 = vpop.f32.mrb[117].mxu0 }
 0x52a   : > { %v6470_v51 = vpop.f32.mrb[118].mxu1  ;;  %v6759_v46 = vpop.f32.mrb[118].mxu0 }
 0x52b   : > { %v6757_v14 = vadd.f32 %v6756_v60, %v6468_v41  ;;  %v6471_v44 = vadd.f32 %v6470_v51, %v11249_v47  ;;  %v6472_v29 = vpop.f32.mrb[119].mxu1  ;;  %v6761_v23 = vpop.f32.mrb[119].mxu0 }
 0x52c   : > { %v1269_v23 = vld [vmem:[#allocation2 + $0x108] sm:$0xff] }
 0x52d   : > { %v6933_v54 = vadd.f32 %v6757_v14, %v1262_v32  ;;  %v6760_v26 = vadd.f32 %v6759_v46, %v6471_v44  ;;  %v1268_v32 = vld [vmem:[#allocation2 + $0x100] sm:$0xff] }
 0x52f   : > { %6997 = vst [vmem:[#allocation2 + $0xd0] sm:$0xff] %v6933_v54  ;;  %v6934_v1 = vadd.f32 %v6760_v26, %v1263_v37 }
 0x530   : > { %v6475_v50 = vpop.f32.mrb[120].mxu1  ;;  %v6764_v19 = vpop.f32.mrb[120].mxu0 }
 0x531   : > { %6998 = vst [vmem:[#allocation2 + $0xd8] sm:$0xff] %v6934_v1  ;;  %v6476_v31 = vadd.f32 %v6475_v50, %v11256_v48  ;;  %v6477_v7 = vpop.f32.mrb[121].mxu1  ;;  %v6766_v39 = vpop.f32.mrb[121].mxu0 }
 0x532   : > { %v6478_v28 = vpop.f32.mrb[122].mxu1  ;;  %v6767_v43 = vpop.f32.mrb[122].mxu0  ;;  %v1270_v7 = vld [vmem:[#allocation2 + $0x110] sm:$0xff] }
 0x533   : > { %v6765_v35 = vadd.f32 %v6764_v19, %v6476_v31  ;;  %v6479_v47 = vadd.f32 %v6478_v28, %v11259_v11  ;;  %v6480_v17 = vpop.f32.mrb[123].mxu1  ;;  %v6769_v3 = vpop.f32.mrb[123].mxu0 }
 0x535   : > { %v6935_v2 = vadd.f32 %v6765_v35, %v1264_v38  ;;  %v6768_v9 = vadd.f32 %v6767_v43, %v6479_v47  ;;  %v1271_v47 = vld [vmem:[#allocation2 + $0x118] sm:$0xff] }
 0x537   : > { %6999 = vst [vmem:[#allocation2 + $0xe0] sm:$0xff] %v6935_v2  ;;  %v6936_v15 = vadd.f32 %v6768_v9, %v1265_v13 }
 0x538   : > { %v6483_v40 = vpop.f32.mrb[124].mxu1  ;;  %v6772_v49 = vpop.f32.mrb[124].mxu0 }
 0x539   : > { %7000 = vst [vmem:[#allocation2 + $0xe8] sm:$0xff] %v6936_v15  ;;  %v6484_v48 = vadd.f32 %v6483_v40, %v11266_v56  ;;  %v6485_v33 = vpop.f32.mrb[125].mxu1  ;;  %v6774_v53 = vpop.f32.mrb[125].mxu0 }
 0x53a   : > { %v6486_v5 = vpop.f32.mrb[126].mxu1  ;;  %v6775_v58 = vpop.f32.mrb[126].mxu0 }
 0x53b   : > { %v6773_v63 = vadd.f32 %v6772_v49, %v6484_v48  ;;  %v6487_v11 = vadd.f32 %v6486_v5, %v11269_v52  ;;  %v6488_v36 = vpop.f32.mrb[127].mxu1  ;;  %v6777_v45 = vpop.f32.mrb[127].mxu0  ;;  %v1272_v49 = vld [vmem:[#allocation2 + $0x120] sm:$0xff] }
 0x53d   : > { %v6937_v25 = vadd.f32 %v6773_v63, %v1266_v18  ;;  %v6776_v4 = vadd.f32 %v6775_v58, %v6487_v11  ;;  %v1273_v58 = vld [vmem:[#allocation2 + $0x128] sm:$0xff] }
 0x53f   : > { %7001 = vst [vmem:[#allocation2 + $0xf0] sm:$0xff] %v6937_v25  ;;  %v6938_v6 = vadd.f32 %v6776_v4, %v1267_v42 }
 0x540   : > { %v6491_v60 = vpop.f32.mrb[128].mxu1  ;;  %v6780_v41 = vpop.f32.mrb[128].mxu0 }
 0x541   : > { %7002 = vst [vmem:[#allocation2 + $0xf8] sm:$0xff] %v6938_v6  ;;  %v6492_v56 = vadd.f32 %v6491_v60, %v11276_v22  ;;  %v6493_v8 = vpop.f32.mrb[129].mxu1  ;;  %v6782_v55 = vpop.f32.mrb[129].mxu0  ;;  %v1274_v6 = vld [vmem:[#allocation2 + $0x130] sm:$0xff] }
 0x542   : > { %v6494_v51 = vpop.f32.mrb[130].mxu1  ;;  %v6783_v46 = vpop.f32.mrb[130].mxu0 }
 0x543   : > { %v6781_v14 = vadd.f32 %v6780_v41, %v6492_v56  ;;  %v6495_v52 = vadd.f32 %v6494_v51, %v11279_v34  ;;  %v6496_v44 = vpop.f32.mrb[131].mxu1  ;;  %v6785_v29 = vpop.f32.mrb[131].mxu0 }
 0x545   : > { %v6939_v37 = vadd.f32 %v6781_v14, %v1268_v32  ;;  %v6784_v54 = vadd.f32 %v6783_v46, %v6495_v52  ;;  %v1275_v32 = vld [vmem:[#allocation2 + $0x138] sm:$0xff] }
 0x547   : > { %7003 = vst [vmem:[#allocation2 + $0x100] sm:$0xff] %v6939_v37  ;;  %v6940_v26 = vadd.f32 %v6784_v54, %v1269_v23  ;;  %v1276_v37 = vld [vmem:[#allocation2 + $0x140] sm:$0xff] }
 0x548   : > { %v6499_v1 = vpop.f32.mrb[132].mxu1  ;;  %v6788_v50 = vpop.f32.mrb[132].mxu0 }
 0x549   : > { %7004 = vst [vmem:[#allocation2 + $0x108] sm:$0xff] %v6940_v26  ;;  %v6500_v22 = vadd.f32 %v6499_v1, %v11286_v24  ;;  %v6501_v19 = vpop.f32.mrb[133].mxu1  ;;  %v6790_v31 = vpop.f32.mrb[133].mxu0 }
 0x54a   : > { %v6502_v39 = vpop.f32.mrb[134].mxu1  ;;  %v6791_v38 = vpop.f32.mrb[134].mxu0  ;;  %v1277_v19 = vld [vmem:[#allocation2 + $0x148] sm:$0xff] }
 0x54b   : > { %v6789_v28 = vadd.f32 %v6788_v50, %v6500_v22  ;;  %v6503_v34 = vadd.f32 %v6502_v39, %v11289_v30  ;;  %v6504_v43 = vpop.f32.mrb[135].mxu1  ;;  %v6793_v35 = vpop.f32.mrb[135].mxu0 }
 0x54c   : > { %v1278_v35 = vld [vmem:[#allocation2 + $0x150] sm:$0xff] }
 0x54d   : > { %v6941_v17 = vadd.f32 %v6789_v28, %v1270_v7  ;;  %v6792_v3 = vadd.f32 %v6791_v38, %v6503_v34 }
 0x54f   : > { %7005 = vst [vmem:[#allocation2 + $0x110] sm:$0xff] %v6941_v17  ;;  %v6942_v13 = vadd.f32 %v6792_v3, %v1271_v47 }
 0x550   : > { %v6507_v2 = vpop.f32.mrb[136].mxu1  ;;  %v6796_v9 = vpop.f32.mrb[136].mxu0 }
 0x551   : > { %7006 = vst [vmem:[#allocation2 + $0x118] sm:$0xff] %v6942_v13  ;;  %v6508_v24 = vadd.f32 %v6507_v2, %v11296_v0  ;;  %v6509_v15 = vpop.f32.mrb[137].mxu1  ;;  %v6798_v40 = vpop.f32.mrb[137].mxu0  ;;  %v11768_v13 = vld [vmem:[#allocation21_spill] sm:$0xff] }
 0x552   : > { %v6510_v48 = vpop.f32.mrb[138].mxu1  ;;  %v6799_v33 = vpop.f32.mrb[138].mxu0 }
 0x553   : > { %v6797_v53 = vadd.f32 %v6796_v9, %v6508_v24  ;;  %v6511_v30 = vadd.f32 %v6510_v48, %v11299_v21  ;;  %v6512_v18 = vpop.f32.mrb[139].mxu1  ;;  %v6801_v5 = vpop.f32.mrb[139].mxu0  ;;  %v1279_v24 = vld [vmem:[#allocation2 + $0x158] sm:$0xff] }
 0x554   : > { %v1280_v5 = vld [vmem:[#allocation2 + $0x160] sm:$0xff] }
 0x555   : > { %v6943_v63 = vadd.f32 %v6797_v53, %v1272_v49  ;;  %v6800_v11 = vadd.f32 %v6799_v33, %v6511_v30  ;;  %v11769_v53 = vld [vmem:[#allocation22_spill] sm:$0xff] }
 0x557   : > { %7007 = vst [vmem:[#allocation2 + $0x120] sm:$0xff] %v6943_v63  ;;  %v6944_v36 = vadd.f32 %v6800_v11, %v1273_v58 }
 0x558   : > { %v6515_v45 = vpop.f32.mrb[140].mxu1  ;;  %v6804_v42 = vpop.f32.mrb[140].mxu0 }
 0x559   : > { %7008 = vst [vmem:[#allocation2 + $0x128] sm:$0xff] %v6944_v36  ;;  %v6516_v0 = vadd.f32 %v6515_v45, %v11306_v12  ;;  %v6517_v25 = vpop.f32.mrb[141].mxu1  ;;  %v6806_v4 = vpop.f32.mrb[141].mxu0  ;;  %v11770_v36 = vld [vmem:[#allocation23_spill] sm:$0xff] }
 0x55a   : > { %v6518_v60 = vpop.f32.mrb[142].mxu1  ;;  %v6807_v41 = vpop.f32.mrb[142].mxu0  ;;  %v1281_v25 = vld [vmem:[#allocation2 + $0x168] sm:$0xff] }
 0x55b   : > { %v6805_v56 = vadd.f32 %v6804_v42, %v6516_v0  ;;  %v6519_v21 = vadd.f32 %v6518_v60, %v11309_v10  ;;  %v6520_v8 = vpop.f32.mrb[143].mxu1  ;;  %v6809_v55 = vpop.f32.mrb[143].mxu0 }
 0x55d   : > { %v6945_v51 = vadd.f32 %v6805_v56, %v1274_v6  ;;  %v6808_v46 = vadd.f32 %v6807_v41, %v6519_v21  ;;  %v11771_v21 = vld [vmem:[#allocation24_spill] sm:$0xff] }
 0x55f   : > { %7009 = vst [vmem:[#allocation2 + $0x130] sm:$0xff] %v6945_v51  ;;  %v6946_v14 = vadd.f32 %v6808_v46, %v1275_v32  ;;  %v1282_v51 = vld [vmem:[#allocation2 + $0x170] sm:$0xff] }
 0x560   : > { %v6523_v52 = vpop.f32.mrb[144].mxu1  ;;  %v6812_v44 = vpop.f32.mrb[144].mxu0 }
 0x561   : > { %7010 = vst [vmem:[#allocation2 + $0x138] sm:$0xff] %v6946_v14  ;;  %v6524_v12 = vadd.f32 %v6523_v52, %v11316_v27  ;;  %v6525_v29 = vpop.f32.mrb[145].mxu1  ;;  %v6814_v23 = vpop.f32.mrb[145].mxu0 }
 0x562   : > { %v6526_v54 = vpop.f32.mrb[146].mxu1  ;;  %v6815_v26 = vpop.f32.mrb[146].mxu0 }
 0x563   : > { %v6813_v1 = vadd.f32 %v6812_v44, %v6524_v12  ;;  %v6527_v10 = vadd.f32 %v6526_v54, %v11319_v16  ;;  %v6528_v50 = vpop.f32.mrb[147].mxu1  ;;  %v6817_v22 = vpop.f32.mrb[147].mxu0  ;;  %v11772_v44 = vld [vmem:[#allocation4_spill] sm:$0xff] }
 0x564   : > { %v11773_v22 = vld [vmem:[#allocation5_spill] sm:$0xff] }
 0x565   : > { %v6947_v31 = vadd.f32 %v6813_v1, %v1276_v37  ;;  %v6816_v7 = vadd.f32 %v6815_v26, %v6527_v10  ;;  %v1283_v37 = vld [vmem:[#allocation2 + $0x178] sm:$0xff] }
 0x567   : > { %7011 = vst [vmem:[#allocation2 + $0x140] sm:$0xff] %v6947_v31  ;;  %v6948_v39 = vadd.f32 %v6816_v7, %v1277_v19 }
 0x568   : > { %v6531_v38 = vpop.f32.mrb[148].mxu1  ;;  %v6820_v28 = vpop.f32.mrb[148].mxu0 }
 0x569   : > { %7012 = vst [vmem:[#allocation2 + $0x148] sm:$0xff] %v6948_v39  ;;  %v6532_v27 = vadd.f32 %v6531_v38, %v11326_v57  ;;  %v6533_v34 = vpop.f32.mrb[149].mxu1  ;;  %v6822_v43 = vpop.f32.mrb[149].mxu0  ;;  %v1284_v39 = vld [vmem:[#allocation2 + $0x180] sm:$0xff] }
 0x56a   : > { %v6534_v47 = vpop.f32.mrb[150].mxu1  ;;  %v6823_v17 = vpop.f32.mrb[150].mxu0  ;;  %v11774_v34 = vld [vmem:[#allocation6_spill] sm:$0xff] }
 0x56b   : > { %v6821_v3 = vadd.f32 %v6820_v28, %v6532_v27  ;;  %v6535_v16 = vadd.f32 %v6534_v47, %v11768_v13  ;;  %v6536_v2 = vpop.f32.mrb[151].mxu1  ;;  %v6825_v9 = vpop.f32.mrb[151].mxu0 }
 0x56d   : > { %v6949_v15 = vadd.f32 %v6821_v3, %v1278_v35  ;;  %v6824_v40 = vadd.f32 %v6823_v17, %v6535_v16  ;;  %v1285_v17 = vld [vmem:[#allocation2 + $0x188] sm:$0xff] }
 0x56f   : > { %7013 = vst [vmem:[#allocation2 + $0x150] sm:$0xff] %v6949_v15  ;;  %v6950_v49 = vadd.f32 %v6824_v40, %v1279_v24  ;;  %v11775_v24 = vld [vmem:[#allocation7_spill] sm:$0xff] }
 0x570   : > { %v6539_v48 = vpop.f32.mrb[152].mxu1  ;;  %v6828_v33 = vpop.f32.mrb[152].mxu0 }
 0x571   : > { %7014 = vst [vmem:[#allocation2 + $0x158] sm:$0xff] %v6950_v49  ;;  %v6540_v57 = vadd.f32 %v6539_v48, %v11769_v53  ;;  %v6541_v30 = vpop.f32.mrb[153].mxu1  ;;  %v6830_v18 = vpop.f32.mrb[153].mxu0  ;;  %v1286_v48 = vld [vmem:[#allocation2 + $0x190] sm:$0xff] }
 0x572   : > { %v6542_v58 = vpop.f32.mrb[154].mxu1  ;;  %v6831_v63 = vpop.f32.mrb[154].mxu0  ;;  %v11776_v30 = vld [vmem:[#allocation8_spill] sm:$0xff] }
 0x573   : > { %v6829_v11 = vadd.f32 %v6828_v33, %v6540_v57  ;;  %v6543_v45 = vadd.f32 %v6542_v58, %v11770_v36  ;;  %v6544_v42 = vpop.f32.mrb[155].mxu1  ;;  %v6833_v0 = vpop.f32.mrb[155].mxu0 }
 0x575   : > { %v6951_v4 = vadd.f32 %v6829_v11, %v1280_v5  ;;  %v6832_v6 = vadd.f32 %v6831_v63, %v6543_v45  ;;  %v1287_v63 = vld [vmem:[#allocation2 + $0x198] sm:$0xff] }
 0x577   : > { %7015 = vst [vmem:[#allocation2 + $0x160] sm:$0xff] %v6951_v4  ;;  %v6952_v60 = vadd.f32 %v6832_v6, %v1281_v25  ;;  %v11777_v25 = vld [vmem:[#allocation9_spill] sm:$0xff] }
 0x578   : > { %v6547_v41 = vpop.f32.mrb[156].mxu1  ;;  %v6836_v56 = vpop.f32.mrb[156].mxu0 }
 0x579   : > { %7016 = vst [vmem:[#allocation2 + $0x168] sm:$0xff] %v6952_v60  ;;  %v6548_v8 = vadd.f32 %v6547_v41, %v11771_v21  ;;  %v6549_v55 = vpop.f32.mrb[157].mxu1  ;;  %v6838_v32 = vpop.f32.mrb[157].mxu0  ;;  %v1288_v41 = vld [vmem:[#allocation2 + $0x1a0] sm:$0xff] }
 0x57a   : > { %v6550_v46 = vpop.f32.mrb[158].mxu1  ;;  %v6839_v14 = vpop.f32.mrb[158].mxu0  ;;  %v11778_v55 = vld [vmem:[#allocation10_spill] sm:$0xff] }
 0x57b   : > { %v6837_v52 = vadd.f32 %v6836_v56, %v6548_v8  ;;  %v6551_v12 = vadd.f32 %v6550_v46, %v11772_v44  ;;  %v6552_v29 = vpop.f32.mrb[159].mxu1  ;;  %v6841_v23 = vpop.f32.mrb[159].mxu0 }
 0x57d   : > { %v6953_v54 = vadd.f32 %v6837_v52, %v1282_v51  ;;  %v6840_v26 = vadd.f32 %v6839_v14, %v6551_v12  ;;  %v1289_v14 = vld [vmem:[#allocation2 + $0x1a8] sm:$0xff] }
 0x57f   : > { %7017 = vst [vmem:[#allocation2 + $0x170] sm:$0xff] %v6953_v54  ;;  %v6954_v1 = vadd.f32 %v6840_v26, %v1283_v37  ;;  %v11779_v37 = vld [vmem:[#allocation11_spill] sm:$0xff] }
 0x580   : > { %v6555_v10 = vpop.f32.mrb[160].mxu1  ;;  %v6844_v50 = vpop.f32.mrb[160].mxu0 }
 0x581   : > { %7018 = vst [vmem:[#allocation2 + $0x178] sm:$0xff] %v6954_v1  ;;  %v6556_v19 = vadd.f32 %v6555_v10, %v11773_v22  ;;  %v6557_v31 = vpop.f32.mrb[161].mxu1  ;;  %v6846_v7 = vpop.f32.mrb[161].mxu0  ;;  %v1290_v10 = vld [vmem:[#allocation2 + $0x1b0] sm:$0xff] }
 0x582   : > { %v6558_v38 = vpop.f32.mrb[162].mxu1  ;;  %v6847_v28 = vpop.f32.mrb[162].mxu0  ;;  %v11780_v31 = vld [vmem:[#allocation12_spill] sm:$0xff] }
 0x583   : > { %v6845_v27 = vadd.f32 %v6844_v50, %v6556_v19  ;;  %v6559_v43 = vadd.f32 %v6558_v38, %v11774_v34  ;;  %v6560_v35 = vpop.f32.mrb[163].mxu1  ;;  %v6849_v47 = vpop.f32.mrb[163].mxu0 }
 0x585   : > { %v6955_v3 = vadd.f32 %v6845_v27, %v1284_v39  ;;  %v6848_v13 = vadd.f32 %v6847_v28, %v6559_v43  ;;  %v1291_v28 = vld [vmem:[#allocation2 + $0x1b8] sm:$0xff] }
 0x587   : > { %7019 = vst [vmem:[#allocation2 + $0x180] sm:$0xff] %v6955_v3  ;;  %v6956_v16 = vadd.f32 %v6848_v13, %v1285_v17  ;;  %v11781_v17 = vld [vmem:[#allocation13_spill] sm:$0xff] }
 0x588   : > { %v6563_v2 = vpop.f32.mrb[164].mxu1  ;;  %v6852_v9 = vpop.f32.mrb[164].mxu0 }
 0x589   : > { %7020 = vst [vmem:[#allocation2 + $0x188] sm:$0xff] %v6956_v16  ;;  %v6564_v15 = vadd.f32 %v6563_v2, %v11775_v24  ;;  %v6565_v40 = vpop.f32.mrb[165].mxu1  ;;  %v6854_v49 = vpop.f32.mrb[165].mxu0  ;;  %v1292_v2 = vld [vmem:[#allocation2 + $0x1c0] sm:$0xff] }
 0x58a   : > { %v6566_v33 = vpop.f32.mrb[166].mxu1  ;;  %v6855_v53 = vpop.f32.mrb[166].mxu0 }
 0x58b   : > { %v6853_v57 = vadd.f32 %v6852_v9, %v6564_v15  ;;  %v6567_v18 = vadd.f32 %v6566_v33, %v11776_v30  ;;  %v6568_v5 = vpop.f32.mrb[167].mxu1  ;;  %v6857_v58 = vpop.f32.mrb[167].mxu0  ;;  %v1293_v33 = vld [vmem:[#allocation2 + $0x1c8] sm:$0xff] }
 0x58c   : > { %v11782_v58 = vld [vmem:[#allocation14_spill] sm:$0xff] }
 0x58d   : > { %v6957_v11 = vadd.f32 %v6853_v57, %v1286_v48  ;;  %v6856_v36 = vadd.f32 %v6855_v53, %v6567_v18 }
 0x58f   : > { %7021 = vst [vmem:[#allocation2 + $0x190] sm:$0xff] %v6957_v11  ;;  %v6958_v45 = vadd.f32 %v6856_v36, %v1287_v63 }
 0x590   : > { %v6571_v42 = vpop.f32.mrb[168].mxu1  ;;  %v6860_v0 = vpop.f32.mrb[168].mxu0 }
 0x591   : > { %7022 = vst [vmem:[#allocation2 + $0x198] sm:$0xff] %v6958_v45  ;;  %v6572_v4 = vadd.f32 %v6571_v42, %v11777_v25  ;;  %v6573_v6 = vpop.f32.mrb[169].mxu1  ;;  %v6862_v60 = vpop.f32.mrb[169].mxu0  ;;  %v1294_v45 = vld [vmem:[#allocation2 + $0x1d0] sm:$0xff] }
 0x592   : > { %v6574_v56 = vpop.f32.mrb[170].mxu1  ;;  %v6863_v21 = vpop.f32.mrb[170].mxu0  ;;  %v1295_v60 = vld [vmem:[#allocation2 + $0x1d8] sm:$0xff] }
 0x593   : > { %v6861_v8 = vadd.f32 %v6860_v0, %v6572_v4  ;;  %v6575_v32 = vadd.f32 %v6574_v56, %v11778_v55  ;;  %v6576_v51 = vpop.f32.mrb[171].mxu1  ;;  %v6865_v46 = vpop.f32.mrb[171].mxu0 }
 0x595   : > { %v6959_v52 = vadd.f32 %v6861_v8, %v1288_v41  ;;  %v6864_v44 = vadd.f32 %v6863_v21, %v6575_v32  ;;  %v11783_v32 = vld [vmem:[#allocation15_spill] sm:$0xff] }
 0x597   : > { %7023 = vst [vmem:[#allocation2 + $0x1a0] sm:$0xff] %v6959_v52  ;;  %v6960_v12 = vadd.f32 %v6864_v44, %v1289_v14  ;;  %v1296_v52 = vld [vmem:[#allocation2 + $0x1e0] sm:$0xff] }
 0x598   : > { %v6579_v29 = vpop.f32.mrb[172].mxu1  ;;  %v6868_v23 = vpop.f32.mrb[172].mxu0 }
 0x599   : > { %7024 = vst [vmem:[#allocation2 + $0x1a8] sm:$0xff] %v6960_v12  ;;  %v6580_v54 = vadd.f32 %v6579_v29, %v11779_v37  ;;  %v6581_v26 = vpop.f32.mrb[173].mxu1  ;;  %v6870_v1 = vpop.f32.mrb[173].mxu0 }
 0x59a   : > { %v6582_v50 = vpop.f32.mrb[174].mxu1  ;;  %v6871_v22 = vpop.f32.mrb[174].mxu0 }
 0x59b   : > { %v6869_v19 = vadd.f32 %v6868_v23, %v6580_v54  ;;  %v6583_v7 = vadd.f32 %v6582_v50, %v11780_v31  ;;  %v6584_v39 = vpop.f32.mrb[175].mxu1  ;;  %v6873_v38 = vpop.f32.mrb[175].mxu0  ;;  %v1297_v54 = vld [vmem:[#allocation2 + $0x1e8] sm:$0xff] }
 0x59c   : > { %v1298_v39 = vld [vmem:[#allocation2 + $0x1f0] sm:$0xff] }
 0x59d   : > { %v6961_v27 = vadd.f32 %v6869_v19, %v1290_v10  ;;  %v6872_v34 = vadd.f32 %v6871_v22, %v6583_v7 }
 0x59f   : > { %7025 = vst [vmem:[#allocation2 + $0x1b0] sm:$0xff] %v6961_v27  ;;  %v6962_v43 = vadd.f32 %v6872_v34, %v1291_v28  ;;  %v11784_v34 = vld [vmem:[#allocation16_spill] sm:$0xff] }
 0x5a0   : > { %v6587_v35 = vpop.f32.mrb[176].mxu1  ;;  %v6876_v47 = vpop.f32.mrb[176].mxu0 }
 0x5a1   : > { %7026 = vst [vmem:[#allocation2 + $0x1b8] sm:$0xff] %v6962_v43  ;;  %v6588_v3 = vadd.f32 %v6587_v35, %v11781_v17  ;;  %v6589_v13 = vpop.f32.mrb[177].mxu1  ;;  %v6878_v16 = vpop.f32.mrb[177].mxu0 }
 0x5a2   : > { %v6590_v9 = vpop.f32.mrb[178].mxu1  ;;  %v6879_v24 = vpop.f32.mrb[178].mxu0  ;;  %v11517_v16 = vld [vmem:[%s11670_s2] ss:$0 sm:$0xff] (!%p8120_p13) }
 0x5a3   : > { %v6877_v15 = vadd.f32 %v6876_v47, %v6588_v3  ;;  %v6591_v40 = vadd.f32 %v6590_v9, %v11399_v62  ;;  %v6592_v49 = vpop.f32.mrb[179].mxu1  ;;  %v6881_v48 = vpop.f32.mrb[179].mxu0  ;;  %v1299_v47 = vld [vmem:[#allocation2 + $0x1f8] sm:$0xff] }
 0x5a4   : > { %v7043_v49 = vld [vmem:[#allocation2 + $0x20] sm:$0xff] (!%p8120_p13) }
 0x5a5   : > { %v6963_v53 = vadd.f32 %v6877_v15, %v1292_v2  ;;  %v6880_v57 = vadd.f32 %v6879_v24, %v6591_v40  ;;  %v7040_v2 = vld [vmem:[#allocation2 + $0x8] sm:$0xff] (!%p8120_p13)  ;;  %v7041_v15 = vld [vmem:[#allocation2 + $0x10] sm:$0xff] (!%p8120_p13)  ;;  %v7042_v40 = vld [vmem:[#allocation2 + $0x18] sm:$0xff] (!%p8120_p13) }
 0x5a6   : > { %v7111_v24 = vadd.f32 (!%p8120_p13), %v11517_v16, %v7040_v2  ;;  %v7112_v48 = vadd.f32 (!%p8120_p13), %v11517_v16, %v7041_v15 }
 0x5a7   : > { %7027 = vst [vmem:[#allocation2 + $0x1c0] sm:$0xff] %v6963_v53  ;;  %v6964_v30 = vadd.f32 %v6880_v57, %v1293_v33  ;;  %v7113_v33 = vadd.f32 (!%p8120_p13), %v11517_v16, %v7042_v40  ;;  %v7044_v53 = vld [vmem:[#allocation2 + $0x28] sm:$0xff] (!%p8120_p13)  ;;  %v7045_v57 = vld [vmem:[#allocation2 + $0x30] sm:$0xff] (!%p8120_p13) }
 0x5a8   : > { %v6595_v18 = vpop.f32.mrb[180].mxu1  ;;  %v6884_v5 = vpop.f32.mrb[180].mxu0 }
 0x5a9   : > { %7028 = vst [vmem:[#allocation2 + $0x1c8] sm:$0xff] %v6964_v30  ;;  %v6596_v63 = vadd.f32 %v6595_v18, %v11782_v58  ;;  %v6597_v11 = vpop.f32.mrb[181].mxu1  ;;  %v6886_v36 = vpop.f32.mrb[181].mxu0  ;;  %v7114_v30 = vadd.f32 (!%p8120_p13), %v11517_v16, %v7043_v49  ;;  %v7046_v18 = vld [vmem:[#allocation2 + $0x38] sm:$0xff] (!%p8120_p13)  ;;  %v7047_v58 = vld [vmem:[#allocation2 + $0x40] sm:$0xff] (!%p8120_p13) }
 0x5aa   : > { %v6598_v42 = vpop.f32.mrb[182].mxu1  ;;  %v6887_v0 = vpop.f32.mrb[182].mxu0  ;;  %v7048_v11 = vld [vmem:[#allocation2 + $0x48] sm:$0xff] (!%p8120_p13)  ;;  %v7117_v36 = vadd.f32 (!%p8120_p13), %v11517_v16, %v7046_v18 }
 0x5ab   : > { %v6885_v25 = vadd.f32 %v6884_v5, %v6596_v63  ;;  %v6599_v62 = vadd.f32 %v6598_v42, %v11409_v20  ;;  %v6600_v4 = vpop.f32.mrb[183].mxu1  ;;  %v6889_v6 = vpop.f32.mrb[183].mxu0  ;;  %v7115_v5 = vadd.f32 (!%p8120_p13), %v11517_v16, %v7044_v53  ;;  %v7116_v63 = vadd.f32 (!%p8120_p13), %v11517_v16, %v7045_v57 }
 0x5ac   : > { %v7118_v42 = vadd.f32 (!%p8120_p13), %v11517_v16, %v7047_v58  ;;  %v7052_v6 = vld [vmem:[#allocation2 + $0x68] sm:$0xff] (!%p8120_p13) }
 0x5ad   : > { %v6965_v41 = vadd.f32 %v6885_v25, %v1294_v45  ;;  %v6888_v56 = vadd.f32 %v6887_v0, %v6599_v62  ;;  %v7049_v45 = vld [vmem:[#allocation2 + $0x50] sm:$0xff] (!%p8120_p13)  ;;  %v7050_v0 = vld [vmem:[#allocation2 + $0x58] sm:$0xff] (!%p8120_p13)  ;;  %v7119_v25 = vadd.f32 (!%p8120_p13), %v11517_v16, %v7048_v11  ;;  %v7051_v62 = vld [vmem:[#allocation2 + $0x60] sm:$0xff] (!%p8120_p13) }
 0x5ae   : > { %v7120_v4 = vadd.f32 (!%p8120_p13), %v11517_v16, %v7049_v45  ;;  %v7066_v45 = vld [vmem:[#allocation2 + $0xd8] sm:$0xff] (!%p8120_p13) }
 0x5af   : > { %7029 = vst [vmem:[#allocation2 + $0x1d0] sm:$0xff] %v6965_v41  ;;  %v6966_v21 = vadd.f32 %v6888_v56, %v1295_v60  ;;  %v7121_v60 = vadd.f32 (!%p8120_p13), %v11517_v16, %v7050_v0  ;;  %v7053_v41 = vld [vmem:[#allocation2 + $0x70] sm:$0xff] (!%p8120_p13)  ;;  %v7122_v56 = vadd.f32 (!%p8120_p13), %v11517_v16, %v7051_v62 }
 0x5b0   : > { %v6603_v8 = vpop.f32.mrb[184].mxu1  ;;  %v6892_v55 = vpop.f32.mrb[184].mxu0 }
 0x5b1   : > { %7030 = vst [vmem:[#allocation2 + $0x1d8] sm:$0xff] %v6966_v21  ;;  %v6604_v51 = vadd.f32 %v6603_v8, %v11783_v32  ;;  %v6605_v46 = vpop.f32.mrb[185].mxu1  ;;  %v6894_v14 = vpop.f32.mrb[185].mxu0  ;;  %v7054_v21 = vld [vmem:[#allocation2 + $0x78] sm:$0xff] (!%p8120_p13)  ;;  %v7123_v8 = vadd.f32 (!%p8120_p13), %v11517_v16, %v7052_v6 }
 0x5b2   : > { %v6606_v44 = vpop.f32.mrb[186].mxu1  ;;  %v6895_v12 = vpop.f32.mrb[186].mxu0  ;;  %v7056_v46 = vld [vmem:[#allocation2 + $0x88] sm:$0xff] (!%p8120_p13) }
 0x5b3   : > { %v6893_v29 = vadd.f32 %v6892_v55, %v6604_v51  ;;  %v6607_v20 = vadd.f32 %v6606_v44, %v11419_v61  ;;  %v6608_v23 = vpop.f32.mrb[187].mxu1  ;;  %v6897_v37 = vpop.f32.mrb[187].mxu0  ;;  %v7055_v55 = vld [vmem:[#allocation2 + $0x80] sm:$0xff] (!%p8120_p13)  ;;  %v7124_v51 = vadd.f32 (!%p8120_p13), %v11517_v16, %v7053_v41  ;;  %v7125_v44 = vadd.f32 (!%p8120_p13), %v11517_v16, %v7054_v21  ;;  %v7068_v21 = vld [vmem:[#allocation2 + $0xe8] sm:$0xff] (!%p8120_p13) }
 0x5b4   : > { %v7126_v23 = vadd.f32 (!%p8120_p13), %v11517_v16, %v7055_v55  ;;  %v7058_v37 = vld [vmem:[#allocation2 + $0x98] sm:$0xff] (!%p8120_p13) }
 0x5b5   : > { %v6967_v26 = vadd.f32 %v6893_v29, %v1296_v52  ;;  %v6896_v1 = vadd.f32 %v6895_v12, %v6607_v20  ;;  %v7057_v12 = vld [vmem:[#allocation2 + $0x90] sm:$0xff] (!%p8120_p13) }
 0x5b7   : > { %7031 = vst [vmem:[#allocation2 + $0x1e0] sm:$0xff] %v6967_v26  ;;  %v6968_v10 = vadd.f32 %v6896_v1, %v1297_v54 }
 0x5b8   : > { %v6611_v50 = vpop.f32.mrb[188].mxu1  ;;  %v6900_v22 = vpop.f32.mrb[188].mxu0 }
 0x5b9   : > { %7032 = vst [vmem:[#allocation2 + $0x1e8] sm:$0xff] %v6968_v10  ;;  %v6612_v19 = vadd.f32 %v6611_v50, %v11426_v59  ;;  %v6613_v31 = vpop.f32.mrb[189].mxu1  ;;  %v6902_v7 = vpop.f32.mrb[189].mxu0  ;;  %v7039_v59 = vld [vmem:[#allocation2] sm:$0xff] (!%p8120_p13)  ;;  %v7127_v10 = vadd.f32 (!%p8120_p13), %v11517_v16, %v7056_v46  ;;  %v7069_v46 = vld [vmem:[#allocation2 + $0xf0] sm:$0xff] (!%p8120_p13) }
 0x5ba   : > { %v6614_v38 = vpop.f32.mrb[190].mxu1  ;;  %v6903_v28 = vpop.f32.mrb[190].mxu0  ;;  %v7110_v9 = vadd.f32 (!%p8120_p13), %v11517_v16, %v7039_v59  ;;  %v7059_v50 = vld [vmem:[#allocation2 + $0xa0] sm:$0xff] (!%p8120_p13)  ;;  %v7128_v7 = vadd.f32 (!%p8120_p13), %v11517_v16, %v7057_v12 }
 0x5bb   : > { %v6901_v27 = vadd.f32 %v6900_v22, %v6612_v19  ;;  %v6615_v61 = vadd.f32 %v6614_v38, %v11784_v34  ;;  %v6616_v43 = vpop.f32.mrb[191].mxu1  ;;  %v6905_v35 = vpop.f32.mrb[191].mxu0  ;;  %7038 = sbr.rel (%p8120_p13) target bundleno = 1547 (0x60b), region = 63  ;;  %v7129_v34 = vadd.f32 (!%p8120_p13), %v11517_v16, %v7058_v37 }
 0x5bc   : > { %9001 = vtanh.f32 (!%p8120_p13), %v7110_v9 }
 0x5bd   : > { %v6969_v17 = vadd.f32 %v6901_v27, %v1298_v39  ;;  %v6904_v3 = vadd.f32 %v6903_v28, %v6615_v61  ;;  %9003 = vtanh.f32 (!%p8120_p13), %v7111_v24  ;;  %v7060_v39 = vld [vmem:[#allocation2 + $0xa8] sm:$0xff] (!%p8120_p13)  ;;  %v7061_v61 = vld [vmem:[#allocation2 + $0xb0] sm:$0xff] (!%p8120_p13)  ;;  %v7063_v24 = vld [vmem:[#allocation2 + $0xc0] sm:$0xff] (!%p8120_p13) }
 0x5be   : > { %9005 = vtanh.f32 (!%p8120_p13), %v7112_v48  ;;  %v7131_v9 = vadd.f32 (!%p8120_p13), %v11517_v16, %v7060_v39  ;;  %v7132_v48 = vadd.f32 (!%p8120_p13), %v11517_v16, %v7061_v61 }
 0x5bf   : > { %7033 = vst [vmem:[#allocation2 + $0x1f0] sm:$0xff] %v6969_v17  ;;  %v6970_v13 = vadd.f32 %v6904_v3, %v1299_v47  ;;  %9007 = vtanh.f32 (!%p8120_p13), %v7113_v33  ;;  %v7130_v17 = vadd.f32 (!%p8120_p13), %v11517_v16, %v7059_v50  ;;  %v7062_v3 = vld [vmem:[#allocation2 + $0xb8] sm:$0xff] (!%p8120_p13)  ;;  %v7064_v33 = vld [vmem:[#allocation2 + $0xc8] sm:$0xff] (!%p8120_p13) }
 0x5c0   : > { %9009 = vtanh.f32 (!%p8120_p13), %v7114_v30  ;;  %v7133_v18 = vadd.f32 (!%p8120_p13), %v11517_v16, %v7062_v3  ;;  %v7135_v62 = vadd.f32 (!%p8120_p13), %v11517_v16, %v7064_v33 }
 0x5c1   : > { %7034 = vst [vmem:[#allocation2 + $0x1f8] sm:$0xff] %v6970_v13  ;;  %9011 = vtanh.f32 (!%p8120_p13), %v7115_v5  ;;  %v7065_v5 = vld [vmem:[#allocation2 + $0xd0] sm:$0xff] (!%p8120_p13) }
 0x5c2   : > { %9013 = vtanh.f32 %v7116_v63 }
 0x5c3   : > { %9015 = vtanh.f32 %v7117_v36  ;;  %v7134_v36 = vadd.f32 %v11517_v16, %v7063_v24 }
 0x5c4   : > { %9017 = vtanh.f32 %v7118_v42 }
 0x5c5   : > { %9019 = vtanh.f32 %v7119_v25 }
 0x5c6   : > { %v9002_v32 = vpop.eup %9001  ;;  %9021 = vtanh.f32 %v7120_v4  ;;  %v7067_v4 = vld [vmem:[#allocation2 + $0xe0] sm:$0xff] }
 0x5c7   : > { %v9004_v14 = vpop.eup %9003  ;;  %v7238_v52 = vadd.f32 1.0, %v9002_v32  ;;  %9023 = vtanh.f32 %v7121_v60  ;;  %v7138_v12 = vadd.f32 %v11517_v16, %v7067_v4 }
 0x5c8   : > { %v9006_v29 = vpop.eup %9005  ;;  %v7239_v20 = vadd.f32 1.0, %v9004_v14  ;;  %9025 = vtanh.f32 %v7122_v56  ;;  %v7136_v56 = vadd.f32 %v11517_v16, %v7065_v5 }
 0x5c9   : > { %v9008_v54 = vpop.eup %9007  ;;  %v7302_v26 = vmul.f32 0.5, %v7238_v52  ;;  %v7240_v1 = vadd.f32 1.0, %v9006_v29  ;;  %9027 = vtanh.f32 %v7123_v8  ;;  %v7070_v29 = vld [vmem:[#allocation2 + $0xf8] sm:$0xff] }
 0x5ca   : > { %v9010_v22 = vpop.eup %9009  ;;  %v7303_v19 = vmul.f32 0.5, %v7239_v20  ;;  %v7241_v31 = vadd.f32 1.0, %v9008_v54  ;;  %9029 = vtanh.f32 %v7124_v51  ;;  %v7137_v51 = vadd.f32 %v11517_v16, %v7066_v45 }
 0x5cb   : > { %v9012_v38 = vpop.eup %9011  ;;  %7366 = vst [vmem:[%s10180_s30] sm:$0xff] %v7302_v26  ;;  %v7304_v28 = vmul.f32 0.5, %v7240_v1  ;;  %v7242_v27 = vadd.f32 1.0, %v9010_v22  ;;  %9031 = vtanh.f32 %v7125_v44  ;;  %v7139_v54 = vadd.f32 %v11517_v16, %v7068_v21  ;;  %v7071_v26 = vld [vmem:[#allocation2 + $0x100] sm:$0xff] }
 0x5cc   : > { %v9014_v43 = vpop.eup %9013  ;;  %7367 = vst [vmem:[%s10180_s30 + $0x8] sm:$0xff] %v7303_v19  ;;  %v7305_v35 = vmul.f32 0.5, %v7241_v31  ;;  %v7243_v47 = vadd.f32 1.0, %v9012_v38  ;;  %9033 = vtanh.f32 %v7126_v23  ;;  %v7140_v22 = vadd.f32 %v11517_v16, %v7069_v46  ;;  %v7072_v19 = vld [vmem:[#allocation2 + $0x108] sm:$0xff] }
 0x5cd   : > { %v9016_v13 = vpop.eup %9015  ;;  %7368 = vst [vmem:[%s10180_s30 + $0x10] sm:$0xff] %v7304_v28  ;;  %v7306_v59 = vmul.f32 0.5, %v7242_v27  ;;  %v7244_v2 = vadd.f32 1.0, %v9014_v43  ;;  %9035 = vtanh.f32 %v7127_v10  ;;  %v7141_v38 = vadd.f32 %v11517_v16, %v7070_v29  ;;  %v7073_v28 = vld [vmem:[#allocation2 + $0x110] sm:$0xff] }
 0x5ce   : > { %v9018_v15 = vpop.eup %9017  ;;  %7369 = vst [vmem:[%s10180_s30 + $0x18] sm:$0xff] %v7305_v35  ;;  %v7307_v40 = vmul.f32 0.5, %v7243_v47  ;;  %v7245_v49 = vadd.f32 1.0, %v9016_v13  ;;  %9037 = vtanh.f32 %v7128_v7  ;;  %v7142_v43 = vadd.f32 %v11517_v16, %v7071_v26  ;;  %v7074_v35 = vld [vmem:[#allocation2 + $0x118] sm:$0xff] }
 0x5cf   : > { %v9020_v53 = vpop.eup %9019  ;;  %7370 = vst [vmem:[%s10180_s30 + $0x20] sm:$0xff] %v7306_v59  ;;  %v7308_v57 = vmul.f32 0.5, %v7244_v2  ;;  %v7246_v30 = vadd.f32 1.0, %v9018_v15  ;;  %9039 = vtanh.f32 %v7129_v34  ;;  %v7143_v13 = vadd.f32 %v11517_v16, %v7072_v19  ;;  %v7075_v59 = vld [vmem:[#allocation2 + $0x120] sm:$0xff] }
 0x5d0   : > { %v9022_v58 = vpop.eup %9021  ;;  %7371 = vst [vmem:[%s10180_s30 + $0x28] sm:$0xff] %v7307_v40  ;;  %v7309_v63 = vmul.f32 0.5, %v7245_v49  ;;  %v7247_v11 = vadd.f32 1.0, %v9020_v53  ;;  %9041 = vtanh.f32 %v7130_v17  ;;  %v7144_v15 = vadd.f32 %v11517_v16, %v7073_v28  ;;  %v7076_v40 = vld [vmem:[#allocation2 + $0x128] sm:$0xff] }
 0x5d1   : > { %v9024_v42 = vpop.eup %9023  ;;  %7372 = vst [vmem:[%s10180_s30 + $0x30] sm:$0xff] %v7308_v57  ;;  %v7310_v0 = vmul.f32 0.5, %v7246_v30  ;;  %v7248_v25 = vadd.f32 1.0, %v9022_v58  ;;  %9043 = vtanh.f32 %v7131_v9  ;;  %v7145_v53 = vadd.f32 %v11517_v16, %v7074_v35  ;;  %v7077_v57 = vld [vmem:[#allocation2 + $0x130] sm:$0xff] }
 0x5d2   : > { %v9026_v6 = vpop.eup %9025  ;;  %7373 = vst [vmem:[%s10180_s30 + $0x38] sm:$0xff] %v7309_v63  ;;  %v7311_v60 = vmul.f32 0.5, %v7247_v11  ;;  %v7249_v41 = vadd.f32 1.0, %v9024_v42  ;;  %9045 = vtanh.f32 %v7132_v48  ;;  %v7146_v58 = vadd.f32 %v11517_v16, %v7075_v59  ;;  %v7078_v63 = vld [vmem:[#allocation2 + $0x138] sm:$0xff] }
 0x5d3   : > { %v9028_v8 = vpop.eup %9027  ;;  %7374 = vst [vmem:[%s10180_s30 + $0x40] sm:$0xff] %v7310_v0  ;;  %v7312_v55 = vmul.f32 0.5, %v7248_v25  ;;  %v7250_v32 = vadd.f32 1.0, %v9026_v6  ;;  %9047 = vtanh.f32 %v7133_v18  ;;  %v7147_v42 = vadd.f32 %v11517_v16, %v7076_v40  ;;  %v7079_v0 = vld [vmem:[#allocation2 + $0x140] sm:$0xff] }
 0x5d4   : > { %v9030_v14 = vpop.eup %9029  ;;  %7375 = vst [vmem:[%s10180_s30 + $0x48] sm:$0xff] %v7311_v60  ;;  %v7313_v52 = vmul.f32 0.5, %v7249_v41  ;;  %v7251_v44 = vadd.f32 1.0, %v9028_v8  ;;  %9049 = vtanh.f32 %v7134_v36  ;;  %v7148_v6 = vadd.f32 %v11517_v16, %v7077_v57  ;;  %v7080_v60 = vld [vmem:[#allocation2 + $0x148] sm:$0xff] }
 0x5d5   : > { %v9032_v20 = vpop.eup %9031  ;;  %7376 = vst [vmem:[%s10180_s30 + $0x50] sm:$0xff] %v7312_v55  ;;  %v7314_v23 = vmul.f32 0.5, %v7250_v32  ;;  %v7252_v37 = vadd.f32 1.0, %v9030_v14  ;;  %9051 = vtanh.f32 %v7135_v62  ;;  %v7149_v8 = vadd.f32 %v11517_v16, %v7078_v63  ;;  %v7081_v55 = vld [vmem:[#allocation2 + $0x150] sm:$0xff] }
 0x5d6   : > { %v9034_v1 = vpop.eup %9033  ;;  %7377 = vst [vmem:[%s10180_s30 + $0x58] sm:$0xff] %v7313_v52  ;;  %v7315_v10 = vmul.f32 0.5, %v7251_v44  ;;  %v7253_v50 = vadd.f32 1.0, %v9032_v20  ;;  %9053 = vtanh.f32 %v7136_v56  ;;  %v7150_v14 = vadd.f32 %v11517_v16, %v7079_v0  ;;  %v7082_v52 = vld [vmem:[#allocation2 + $0x158] sm:$0xff] }
 0x5d7   : > { %v9036_v31 = vpop.eup %9035  ;;  %7378 = vst [vmem:[%s10180_s30 + $0x60] sm:$0xff] %v7314_v23  ;;  %v7316_v7 = vmul.f32 0.5, %v7252_v37  ;;  %v7254_v39 = vadd.f32 1.0, %v9034_v1  ;;  %9055 = vtanh.f32 %v7137_v51  ;;  %v7151_v20 = vadd.f32 %v11517_v16, %v7080_v60  ;;  %v7083_v23 = vld [vmem:[#allocation2 + $0x160] sm:$0xff] }
 0x5d8   : > { %v9038_v27 = vpop.eup %9037  ;;  %7379 = vst [vmem:[%s10180_s30 + $0x68] sm:$0xff] %v7315_v10  ;;  %v7317_v34 = vmul.f32 0.5, %v7253_v50  ;;  %v7255_v61 = vadd.f32 1.0, %v9036_v31  ;;  %9057 = vtanh.f32 %v7138_v12  ;;  %v7152_v1 = vadd.f32 %v11517_v16, %v7081_v55  ;;  %v7084_v10 = vld [vmem:[#allocation2 + $0x168] sm:$0xff] }
 0x5d9   : > { %v9040_v47 = vpop.eup %9039  ;;  %7380 = vst [vmem:[%s10180_s30 + $0x70] sm:$0xff] %v7316_v7  ;;  %v7318_v17 = vmul.f32 0.5, %v7254_v39  ;;  %v7256_v3 = vadd.f32 1.0, %v9038_v27  ;;  %9059 = vtanh.f32 %v7139_v54  ;;  %v7153_v31 = vadd.f32 %v11517_v16, %v7082_v52  ;;  %v7085_v7 = vld [vmem:[#allocation2 + $0x170] sm:$0xff] }
 0x5da   : > { %v9042_v2 = vpop.eup %9041  ;;  %7381 = vst [vmem:[%s10180_s30 + $0x78] sm:$0xff] %v7317_v34  ;;  %v7319_v9 = vmul.f32 0.5, %v7255_v61  ;;  %v7257_v24 = vadd.f32 1.0, %v9040_v47  ;;  %9061 = vtanh.f32 %v7140_v22  ;;  %v7154_v27 = vadd.f32 %v11517_v16, %v7083_v23  ;;  %v7086_v34 = vld [vmem:[#allocation2 + $0x178] sm:$0xff] }
 0x5db   : > { %v9044_v49 = vpop.eup %9043  ;;  %7382 = vst [vmem:[%s10180_s30 + $0x80] sm:$0xff] %v7318_v17  ;;  %v7320_v48 = vmul.f32 0.5, %v7256_v3  ;;  %v7258_v33 = vadd.f32 1.0, %v9042_v2  ;;  %9063 = vtanh.f32 %v7141_v38  ;;  %v7155_v47 = vadd.f32 %v11517_v16, %v7084_v10  ;;  %v7087_v17 = vld [vmem:[#allocation2 + $0x180] sm:$0xff] }
 0x5dc   : > { %v9046_v30 = vpop.eup %9045  ;;  %7383 = vst [vmem:[%s10180_s30 + $0x88] sm:$0xff] %v7319_v9  ;;  %v7321_v18 = vmul.f32 0.5, %v7257_v24  ;;  %v7259_v5 = vadd.f32 1.0, %v9044_v49  ;;  %9065 = vtanh.f32 %v7142_v43  ;;  %v7156_v2 = vadd.f32 %v11517_v16, %v7085_v7  ;;  %v7088_v9 = vld [vmem:[#allocation2 + $0x188] sm:$0xff] }
 0x5dd   : > { %v9048_v11 = vpop.eup %9047  ;;  %7384 = vst [vmem:[%s10180_s30 + $0x90] sm:$0xff] %v7320_v48  ;;  %v7322_v36 = vmul.f32 0.5, %v7258_v33  ;;  %v7260_v45 = vadd.f32 1.0, %v9046_v30  ;;  %9067 = vtanh.f32 %v7143_v13  ;;  %v7157_v49 = vadd.f32 %v11517_v16, %v7086_v34  ;;  %v7089_v48 = vld [vmem:[#allocation2 + $0x190] sm:$0xff] }
 0x5de   : > { %v9050_v25 = vpop.eup %9049  ;;  %7385 = vst [vmem:[%s10180_s30 + $0x98] sm:$0xff] %v7321_v18  ;;  %v7323_v62 = vmul.f32 0.5, %v7259_v5  ;;  %v7261_v4 = vadd.f32 1.0, %v9048_v11  ;;  %9069 = vtanh.f32 %v7144_v15  ;;  %v7158_v30 = vadd.f32 %v11517_v16, %v7087_v17  ;;  %v7090_v18 = vld [vmem:[#allocation2 + $0x198] sm:$0xff] }
 0x5df   : > { %v9052_v41 = vpop.eup %9051  ;;  %7386 = vst [vmem:[%s10180_s30 + $0xa0] sm:$0xff] %v7322_v36  ;;  %v7324_v56 = vmul.f32 0.5, %v7260_v45  ;;  %v7262_v21 = vadd.f32 1.0, %v9050_v25  ;;  %9071 = vtanh.f32 %v7145_v53  ;;  %v7159_v11 = vadd.f32 %v11517_v16, %v7088_v9  ;;  %v7091_v36 = vld [vmem:[#allocation2 + $0x1a0] sm:$0xff] }
 0x5e0   : > { %v9054_v32 = vpop.eup %9053  ;;  %7387 = vst [vmem:[%s10180_s30 + $0xa8] sm:$0xff] %v7323_v62  ;;  %v7325_v51 = vmul.f32 0.5, %v7261_v4  ;;  %v7263_v46 = vadd.f32 1.0, %v9052_v41  ;;  %9073 = vtanh.f32 %v7146_v58  ;;  %v7160_v25 = vadd.f32 %v11517_v16, %v7089_v48  ;;  %v7092_v62 = vld [vmem:[#allocation2 + $0x1a8] sm:$0xff] }
 0x5e1   : > { %v9056_v44 = vpop.eup %9055  ;;  %7388 = vst [vmem:[%s10180_s30 + $0xb0] sm:$0xff] %v7324_v56  ;;  %v7326_v12 = vmul.f32 0.5, %v7262_v21  ;;  %v7264_v29 = vadd.f32 1.0, %v9054_v32  ;;  %9075 = vtanh.f32 %v7147_v42  ;;  %v7161_v41 = vadd.f32 %v11517_v16, %v7090_v18  ;;  %v7093_v56 = vld [vmem:[#allocation2 + $0x1b0] sm:$0xff] }
 0x5e2   : > { %v9058_v37 = vpop.eup %9057  ;;  %7389 = vst [vmem:[%s10180_s30 + $0xb8] sm:$0xff] %v7325_v51  ;;  %v7327_v54 = vmul.f32 0.5, %v7263_v46  ;;  %v7265_v26 = vadd.f32 1.0, %v9056_v44  ;;  %9077 = vtanh.f32 %v7148_v6  ;;  %v7162_v32 = vadd.f32 %v11517_v16, %v7091_v36  ;;  %v7094_v51 = vld [vmem:[#allocation2 + $0x1b8] sm:$0xff] }
 0x5e3   : > { %v9060_v50 = vpop.eup %9059  ;;  %7390 = vst [vmem:[%s10180_s30 + $0xc0] sm:$0xff] %v7326_v12  ;;  %v7328_v22 = vmul.f32 0.5, %v7264_v29  ;;  %v7266_v19 = vadd.f32 1.0, %v9058_v37  ;;  %9079 = vtanh.f32 %v7149_v8  ;;  %v7163_v44 = vadd.f32 %v11517_v16, %v7092_v62  ;;  %v7095_v12 = vld [vmem:[#allocation2 + $0x1c0] sm:$0xff] }
 0x5e4   : > { %v9062_v39 = vpop.eup %9061  ;;  %7391 = vst [vmem:[%s10180_s30 + $0xc8] sm:$0xff] %v7327_v54  ;;  %v7329_v38 = vmul.f32 0.5, %v7265_v26  ;;  %v7267_v28 = vadd.f32 1.0, %v9060_v50  ;;  %9081 = vtanh.f32 %v7150_v14  ;;  %v7164_v37 = vadd.f32 %v11517_v16, %v7093_v56  ;;  %v7096_v54 = vld [vmem:[#allocation2 + $0x1c8] sm:$0xff] }
 0x5e5   : > { %v9064_v61 = vpop.eup %9063  ;;  %7392 = vst [vmem:[%s10180_s30 + $0xd0] sm:$0xff] %v7328_v22  ;;  %v7330_v43 = vmul.f32 0.5, %v7266_v19  ;;  %v7268_v35 = vadd.f32 1.0, %v9062_v39  ;;  %9083 = vtanh.f32 %v7151_v20  ;;  %v7165_v50 = vadd.f32 %v11517_v16, %v7094_v51  ;;  %v7097_v22 = vld [vmem:[#allocation2 + $0x1d0] sm:$0xff] }
 0x5e6   : > { %v9066_v3 = vpop.eup %9065  ;;  %7393 = vst [vmem:[%s10180_s30 + $0xd8] sm:$0xff] %v7329_v38  ;;  %v7331_v13 = vmul.f32 0.5, %v7267_v28  ;;  %v7269_v59 = vadd.f32 1.0, %v9064_v61  ;;  %9085 = vtanh.f32 %v7152_v1  ;;  %v7166_v39 = vadd.f32 %v11517_v16, %v7095_v12  ;;  %v7098_v38 = vld [vmem:[#allocation2 + $0x1d8] sm:$0xff] }
 0x5e7   : > { %v9068_v24 = vpop.eup %9067  ;;  %7394 = vst [vmem:[%s10180_s30 + $0xe0] sm:$0xff] %v7330_v43  ;;  %v7332_v15 = vmul.f32 0.5, %v7268_v35  ;;  %v7270_v40 = vadd.f32 1.0, %v9066_v3  ;;  %9087 = vtanh.f32 %v7153_v31  ;;  %v7167_v61 = vadd.f32 %v11517_v16, %v7096_v54  ;;  %v7099_v43 = vld [vmem:[#allocation2 + $0x1e0] sm:$0xff] }
 0x5e8   : > { %v9070_v33 = vpop.eup %9069  ;;  %7395 = vst [vmem:[%s10180_s30 + $0xe8] sm:$0xff] %v7331_v13  ;;  %v7333_v53 = vmul.f32 0.5, %v7269_v59  ;;  %v7271_v57 = vadd.f32 1.0, %v9068_v24  ;;  %9089 = vtanh.f32 %v7154_v27  ;;  %v7168_v3 = vadd.f32 %v11517_v16, %v7097_v22  ;;  %v7100_v13 = vld [vmem:[#allocation2 + $0x1e8] sm:$0xff] }
 0x5e9   : > { %v9072_v5 = vpop.eup %9071  ;;  %7396 = vst [vmem:[%s10180_s30 + $0xf0] sm:$0xff] %v7332_v15  ;;  %v7334_v58 = vmul.f32 0.5, %v7270_v40  ;;  %v7272_v63 = vadd.f32 1.0, %v9070_v33  ;;  %9091 = vtanh.f32 %v7155_v47  ;;  %v7169_v24 = vadd.f32 %v11517_v16, %v7098_v38  ;;  %v7101_v15 = vld [vmem:[#allocation2 + $0x1f0] sm:$0xff] }
 0x5ea   : > { %v9074_v45 = vpop.eup %9073  ;;  %7397 = vst [vmem:[%s10180_s30 + $0xf8] sm:$0xff] %v7333_v53  ;;  %v7335_v42 = vmul.f32 0.5, %v7271_v57  ;;  %v7273_v0 = vadd.f32 1.0, %v9072_v5  ;;  %9093 = vtanh.f32 %v7156_v2  ;;  %v7170_v33 = vadd.f32 %v11517_v16, %v7099_v43  ;;  %v7102_v53 = vld [vmem:[#allocation2 + $0x1f8] sm:$0xff] }
 0x5eb   : > { %v9076_v4 = vpop.eup %9075  ;;  %7398 = vst [vmem:[%s10180_s30 + $0x100] sm:$0xff] %v7334_v58  ;;  %v7336_v6 = vmul.f32 0.5, %v7272_v63  ;;  %v7274_v60 = vadd.f32 1.0, %v9074_v45  ;;  %9095 = vtanh.f32 %v7157_v49  ;;  %v7171_v5 = vadd.f32 %v11517_v16, %v7100_v13 }
 0x5ec   : > { %v9078_v21 = vpop.eup %9077  ;;  %7399 = vst [vmem:[%s10180_s30 + $0x108] sm:$0xff] %v7335_v42  ;;  %v7337_v8 = vmul.f32 0.5, %v7273_v0  ;;  %v7275_v55 = vadd.f32 1.0, %v9076_v4  ;;  %9097 = vtanh.f32 %v7158_v30  ;;  %v7172_v36 = vadd.f32 %v11517_v16, %v7101_v15 }
 0x5ed   : > { %v9080_v46 = vpop.eup %9079  ;;  %7400 = vst [vmem:[%s10180_s30 + $0x110] sm:$0xff] %v7336_v6  ;;  %v7338_v14 = vmul.f32 0.5, %v7274_v60  ;;  %v7276_v52 = vadd.f32 1.0, %v9078_v21  ;;  %9099 = vtanh.f32 %v7159_v11 }
 0x5ee   : > { %v9082_v29 = vpop.eup %9081  ;;  %7401 = vst [vmem:[%s10180_s30 + $0x118] sm:$0xff] %v7337_v8  ;;  %v7339_v20 = vmul.f32 0.5, %v7275_v55  ;;  %v7277_v23 = vadd.f32 1.0, %v9080_v46  ;;  %9101 = vtanh.f32 %v7160_v25  ;;  %v7173_v25 = vadd.f32 %v11517_v16, %v7102_v53 }
 0x5ef   : > { %v9084_v26 = vpop.eup %9083  ;;  %7402 = vst [vmem:[%s10180_s30 + $0x120] sm:$0xff] %v7338_v14  ;;  %v7340_v1 = vmul.f32 0.5, %v7276_v52  ;;  %v7278_v10 = vadd.f32 1.0, %v9082_v29  ;;  %9103 = vtanh.f32 %v7161_v41 }
 0x5f0   : > { %v9086_v19 = vpop.eup %9085  ;;  %7403 = vst [vmem:[%s10180_s30 + $0x128] sm:$0xff] %v7339_v20  ;;  %v7341_v31 = vmul.f32 0.5, %v7277_v23  ;;  %v7279_v7 = vadd.f32 1.0, %v9084_v26  ;;  %9105 = vtanh.f32 %v7162_v32 }
 0x5f1   : > { %v9088_v28 = vpop.eup %9087  ;;  %7404 = vst [vmem:[%s10180_s30 + $0x130] sm:$0xff] %v7340_v1  ;;  %v7342_v27 = vmul.f32 0.5, %v7278_v10  ;;  %v7280_v34 = vadd.f32 1.0, %v9086_v19  ;;  %9107 = vtanh.f32 %v7163_v44 }
 0x5f2   : > { %v9090_v35 = vpop.eup %9089  ;;  %7405 = vst [vmem:[%s10180_s30 + $0x138] sm:$0xff] %v7341_v31  ;;  %v7343_v47 = vmul.f32 0.5, %v7279_v7  ;;  %v7281_v17 = vadd.f32 1.0, %v9088_v28  ;;  %9109 = vtanh.f32 %v7164_v37 }
 0x5f3   : > { %v9092_v59 = vpop.eup %9091  ;;  %7406 = vst [vmem:[%s10180_s30 + $0x140] sm:$0xff] %v7342_v27  ;;  %v7344_v2 = vmul.f32 0.5, %v7280_v34  ;;  %v7282_v9 = vadd.f32 1.0, %v9090_v35  ;;  %9111 = vtanh.f32 %v7165_v50 }
 0x5f4   : > { %v9094_v40 = vpop.eup %9093  ;;  %7407 = vst [vmem:[%s10180_s30 + $0x148] sm:$0xff] %v7343_v47  ;;  %v7345_v49 = vmul.f32 0.5, %v7281_v17  ;;  %v7283_v48 = vadd.f32 1.0, %v9092_v59  ;;  %9113 = vtanh.f32 %v7166_v39 }
 0x5f5   : > { %v9096_v57 = vpop.eup %9095  ;;  %7408 = vst [vmem:[%s10180_s30 + $0x150] sm:$0xff] %v7344_v2  ;;  %v7346_v30 = vmul.f32 0.5, %v7282_v9  ;;  %v7284_v18 = vadd.f32 1.0, %v9094_v40  ;;  %9115 = vtanh.f32 %v7167_v61 }
 0x5f6   : > { %v9098_v58 = vpop.eup %9097  ;;  %7409 = vst [vmem:[%s10180_s30 + $0x158] sm:$0xff] %v7345_v49  ;;  %v7347_v63 = vmul.f32 0.5, %v7283_v48  ;;  %v7285_v11 = vadd.f32 1.0, %v9096_v57  ;;  %9117 = vtanh.f32 %v7168_v3 }
 0x5f7   : > { %v9100_v45 = vpop.eup %9099  ;;  %7410 = vst [vmem:[%s10180_s30 + $0x160] sm:$0xff] %v7346_v30  ;;  %v7348_v42 = vmul.f32 0.5, %v7284_v18  ;;  %v7286_v0 = vadd.f32 1.0, %v9098_v58  ;;  %9119 = vtanh.f32 %v7169_v24 }
 0x5f8   : > { %v9102_v62 = vpop.eup %9101  ;;  %7411 = vst [vmem:[%s10180_s30 + $0x168] sm:$0xff] %v7347_v63  ;;  %v7349_v4 = vmul.f32 0.5, %v7285_v11  ;;  %v7287_v6 = vadd.f32 1.0, %v9100_v45  ;;  %9121 = vtanh.f32 %v7170_v33 }
 0x5f9   : > { %v9104_v60 = vpop.eup %9103  ;;  %7412 = vst [vmem:[%s10180_s30 + $0x170] sm:$0xff] %v7348_v42  ;;  %v7350_v41 = vmul.f32 0.5, %v7286_v0  ;;  %v7288_v56 = vadd.f32 1.0, %v9102_v62  ;;  %9123 = vtanh.f32 %v7171_v5 }
 0x5fa   : > { %v9106_v21 = vpop.eup %9105  ;;  %7413 = vst [vmem:[%s10180_s30 + $0x178] sm:$0xff] %v7349_v4  ;;  %v7351_v8 = vmul.f32 0.5, %v7287_v6  ;;  %v7289_v55 = vadd.f32 1.0, %v9104_v60  ;;  %9125 = vtanh.f32 %v7172_v36 }
 0x5fb   : > { %v9108_v16 = vpop.eup %9107  ;;  %7414 = vst [vmem:[%s10180_s30 + $0x180] sm:$0xff] %v7350_v41  ;;  %v7352_v32 = vmul.f32 0.5, %v7288_v56  ;;  %v7290_v51 = vadd.f32 1.0, %v9106_v21  ;;  %9127 = vtanh.f32 %v7173_v25 }
 0x5fc   : > { %v9110_v46 = vpop.eup %9109  ;;  %7415 = vst [vmem:[%s10180_s30 + $0x188] sm:$0xff] %v7351_v8  ;;  %v7353_v14 = vmul.f32 0.5, %v7289_v55  ;;  %v7291_v52 = vadd.f32 1.0, %v9108_v16 }
 0x5fd   : > { %v9112_v44 = vpop.eup %9111  ;;  %7416 = vst [vmem:[%s10180_s30 + $0x190] sm:$0xff] %v7352_v32  ;;  %v7354_v12 = vmul.f32 0.5, %v7290_v51  ;;  %v7292_v29 = vadd.f32 1.0, %v9110_v46 }
 0x5fe   : > { %v9114_v20 = vpop.eup %9113  ;;  %7417 = vst [vmem:[%s10180_s30 + $0x198] sm:$0xff] %v7353_v14  ;;  %v7355_v23 = vmul.f32 0.5, %v7291_v52  ;;  %v7293_v37 = vadd.f32 1.0, %v9112_v44 }
 0x5ff   : > { %v9116_v54 = vpop.eup %9115  ;;  %7418 = vst [vmem:[%s10180_s30 + $0x1a0] sm:$0xff] %v7354_v12  ;;  %v7356_v26 = vmul.f32 0.5, %v7292_v29  ;;  %v7294_v1 = vadd.f32 1.0, %v9114_v20 }
 0x600   : > { %v9118_v10 = vpop.eup %9117  ;;  %7419 = vst [vmem:[%s10180_s30 + $0x1a8] sm:$0xff] %v7355_v23  ;;  %v7357_v50 = vmul.f32 0.5, %v7293_v37  ;;  %v7295_v22 = vadd.f32 1.0, %v9116_v54 }
 0x601   : > { %v9120_v19 = vpop.eup %9119  ;;  %7420 = vst [vmem:[%s10180_s30 + $0x1b0] sm:$0xff] %v7356_v26  ;;  %v7358_v31 = vmul.f32 0.5, %v7294_v1  ;;  %v7296_v7 = vadd.f32 1.0, %v9118_v10 }
 0x602   : > { %v9122_v39 = vpop.eup %9121  ;;  %7421 = vst [vmem:[%s10180_s30 + $0x1b8] sm:$0xff] %v7357_v50  ;;  %v7359_v38 = vmul.f32 0.5, %v7295_v22  ;;  %v7297_v28 = vadd.f32 1.0, %v9120_v19 }
 0x603   : > { %v9124_v27 = vpop.eup %9123  ;;  %7422 = vst [vmem:[%s10180_s30 + $0x1c0] sm:$0xff] %v7358_v31  ;;  %v7360_v34 = vmul.f32 0.5, %v7296_v7  ;;  %v7298_v61 = vadd.f32 1.0, %v9122_v39 }
 0x604   : > { %v9126_v43 = vpop.eup %9125  ;;  %7423 = vst [vmem:[%s10180_s30 + $0x1c8] sm:$0xff] %v7359_v38  ;;  %v7361_v35 = vmul.f32 0.5, %v7297_v28  ;;  %v7299_v47 = vadd.f32 1.0, %v9124_v27 }
 0x605   : > { %v9128_v17 = vpop.eup %9127  ;;  %7424 = vst [vmem:[%s10180_s30 + $0x1d0] sm:$0xff] %v7360_v34  ;;  %v7362_v3 = vmul.f32 0.5, %v7298_v61  ;;  %v7300_v13 = vadd.f32 1.0, %v9126_v43 }
 0x606   : > { %7425 = vst [vmem:[%s10180_s30 + $0x1d8] sm:$0xff] %v7361_v35  ;;  %v7363_v59 = vmul.f32 0.5, %v7299_v47  ;;  %v7301_v2 = vadd.f32 1.0, %v9128_v17 }
 0x607   : > { %7426 = vst [vmem:[%s10180_s30 + $0x1e0] sm:$0xff] %v7362_v3  ;;  %v7364_v9 = vmul.f32 0.5, %v7300_v13 }
 0x608   : > { %7427 = vst [vmem:[%s10180_s30 + $0x1e8] sm:$0xff] %v7363_v59  ;;  %v7365_v24 = vmul.f32 0.5, %v7301_v2 }
 0x609   : > { %7428 = vst [vmem:[%s10180_s30 + $0x1f0] sm:$0xff] %v7364_v9 }
 0x60a   : > { %7429 = vst [vmem:[%s10180_s30 + $0x1f8] sm:$0xff] %v7365_v24 }
 0x60b PF: > { %s13_s18 = sadd.s32 1, %s9183_s18   ;;  %s11785_s12 = smov %s9163_s13 }
 0x60c   : > { %p10_p0 = scmp.ge.s32.totalorder %s13_s18, 14   ;;  %s11786_s13 = smov %s9258_s25 }
 0x60d   : > { %s11787_s14 = smov %s9175_s16  ;;  %s11788_s15 = smov %s9179_s17 }
 0x60e   : > { %s11789_s16 = smov %s11792_s19  ;;  %s11790_s17 = smov %s11796_s20 }
 0x60f   :  { %12 = sbr.rel (!%p10_p0) target bundleno = 4 (0x4), region = 104 }

</bundles_post_ra>
